<compile_context>
chip_gen: v7x
topology: tpu7x:2x2x1
jax: 0.10.0
libtpu: 0.0.40
codegen_flags: <defaults>
</compile_context>

<pallas_src>
import jax
import jax.numpy as jnp
import numpy as np
from jax.experimental import pallas as pl
from jax.experimental.pallas import tpu as pltpu

NEG_SLOPE = 0.05      # B.activation('lrelu') default neg_slope in IMDN/RFDN block.py
CA_REDUCTION = 16     # B.CALayer default reduction
GROUPS = 4
LANES = 128


def _lrelu(v):
    return jnp.where(v >= 0, v, NEG_SLOPE * v)


# ---------------------------------------------------------------------------
# Pallas kernel
# ---------------------------------------------------------------------------
def make_scab_kernel(H, W, C, G):
    Ch = C // 2
    HW = H * W
    GC = G * C
    GCh = G * Ch
    # Top/bottom halo rows; multiple of 16 so the dx=0 windows (offsets
    # PADR + dy*W) stay aligned with bf16 16-row sublane packing when W%16==0.
    PADR = -(-(W + 1) // 16) * 16
    ROWS = PADR + HW + PADR

    def kernel(x_ref, ml_ref, mr_ref,
               w1, b1, w23, b23, w4, b4, w5a, w5b, b5,
               wd1a, wd1b, bd1, wd2a, bd2a, wd2b, bd2b,
               o_ref, padA, padB):
        f32 = jnp.float32
        bf16 = jnp.bfloat16

        # ---- zero only the halo rows (interiors are fully overwritten).
        # Done every step: with dimension_semantics=("parallel",) the batch
        # axis may be split across TensorCores, each with its own scratch,
        # so "program_id==0" is not a safe one-time-init guard.
        padA[0:PADR, :] = jnp.zeros((PADR, GC), bf16)
        padA[PADR + HW:ROWS, :] = jnp.zeros((PADR, GC), bf16)
        padB[0:PADR, :] = jnp.zeros((PADR, GCh), bf16)
        padB[PADR + HW:ROWS, :] = jnp.zeros((PADR, GCh), bf16)

        not_left = ml_ref[...]      # (HW,1) bf16: 1.0 where col != 0
        not_right = mr_ref[...]     # (HW,1) bf16: 1.0 where col != W-1

        def conv3x3(pad_ref, w_ref, b_ref):
            # 9 accumulating matmuls reading shifted windows straight from the
            # padded bf16 scratch; horizontal zero-padding applied in-register
            # (vertical handled by the halo rows).  No im2col round trip.
            acc = None
            for dy in (-1, 0, 1):
                for dx in (-1, 0, 1):
                    k = (dy + 1) * 3 + (dx + 1)
                    off = PADR + dy * W + dx
                    win = pad_ref[off:off + HW, :]
                    if dx == -1:
                        win = win * not_left
                    elif dx == 1:
                        win = win * not_right
                    p = jnp.dot(win, w_ref[k], preferred_element_type=f32)
                    acc = p if acc is None else acc + p
            return acc + b_ref[...]

        # conv1 -> lrelu
        padA[PADR:PADR + HW, :] = x_ref[0].astype(bf16)
        out1 = _lrelu(conv3x3(padA, w1, b1))                  # (HW, GCh) f32
        padB[PADR:PADR + HW, :] = out1.astype(bf16)

        # conv2 (grouped, block-diag dense) and conv3 fused along cout so the
        # fused output is full lane width.
        o23 = conv3x3(padB, w23, b23)                         # (HW, 2*GCh) f32
        out_1 = o23[:, :GCh]
        out2 = o23[:, GCh:]
        m1 = jnp.mean(out_1, axis=0, keepdims=True)           # (1, GCh)

        # sigmoid gate, then conv4 (grouped); out1 is dead so padB is reused
        out3 = jax.nn.sigmoid(out_1) * out2
        padB[PADR:PADR + HW, :] = out3.astype(bf16)
        out_2 = conv3x3(padB, w4, b4)                         # (HW, GCh) f32
        m2 = jnp.mean(out_2, axis=0, keepdims=True)           # (1, GCh)

        # CALayer without materializing cat([out_1, out_2]); weights were
        # split into top/bottom halves (and block-diag'd over G) at pack time.
        ymid = jnp.maximum(
            jnp.dot(m1, wd1a[...], preferred_element_type=f32)
            + jnp.dot(m2, wd1b[...], preferred_element_type=f32)
            + bd1[...], 0.0)
        y1 = jax.nn.sigmoid(
            jnp.dot(ymid, wd2a[...], preferred_element_type=f32) + bd2a[...])
        y2 = jax.nn.sigmoid(
            jnp.dot(ymid, wd2b[...], preferred_element_type=f32) + bd2b[...])

        # Fold the CA gate into the 1x1 conv5 weights: scale the rows of the
        # (GCh, GC) weights by y1/y2 via diag(y) @ W (tiny matmuls; avoids a
        # lane->sublane transpose and the two full-image camo multiplies).
        rr = jax.lax.broadcasted_iota(jnp.int32, (GCh, GCh), 0)
        cc = jax.lax.broadcasted_iota(jnp.int32, (GCh, GCh), 1)
        eye = (rr == cc).astype(f32)                          # (GCh, GCh)
        w5a_s = jnp.dot(eye * y1, w5a[...], preferred_element_type=f32)
        w5b_s = jnp.dot(eye * y2, w5b[...], preferred_element_type=f32)

        out5 = _lrelu(
            jnp.dot(out_1, w5a_s, preferred_element_type=f32)
            + jnp.dot(out_2, w5b_s, preferred_element_type=f32)
            + b5[...])
        o_ref[0] = (out5 + x_ref[0].astype(f32)).astype(o_ref.dtype)

    return kernel, ROWS


# ---------------------------------------------------------------------------
# Wrapper
# ---------------------------------------------------------------------------
def _largest_pack(N, C):
    gmax = max(1, LANES // C)
    g = 1
    for cand in range(1, min(gmax, N) + 1):
        if N % cand == 0:
            g = cand
    return g


def _vmem_limit_bytes():
    # Per-generation VMEM sizing (v7x: 64 MiB physical; v5e/v6e: 128 MiB).
    cap = 128 * 1024 * 1024
    try:
        cap = int(pltpu.get_tpu_info().vmem_capacity_bytes)
    except Exception:
        pass
    return max(32 * 1024 * 1024, min((cap * 3) // 4, 96 * 1024 * 1024))


def scab_forward(x_nchw, raw):
    N, C, H, W = x_nchw.shape
    Ch = C // 2
    HW = H * W
    G = _largest_pack(N, C)
    NG = N // G
    GC = G * C
    GCh = G * Ch

    params = pack_params(raw, C, G)

    # NCHW -> per-step (HW, G*C) slabs: G images packed along the lane dim.
    x_flat = jnp.transpose(x_nchw, (0, 2, 3, 1)).reshape(NG, G, HW, C)
    x_pack = jnp.transpose(x_flat, (0, 2, 1, 3)).reshape(NG, HW, GC)

    col = jnp.arange(HW, dtype=jnp.int32) % W
    mask_l = (col != 0).astype(jnp.bfloat16).reshape(HW, 1)
    mask_r = (col != (W - 1)).astype(jnp.bfloat16).reshape(HW, 1)

    kernel, ROWS = make_scab_kernel(H, W, C, G)

    def rep(a):
        nd = a.ndim
        return pl.BlockSpec(a.shape, lambda n, _nd=nd: (0,) * _nd)

    in_specs = [pl.BlockSpec((1, HW, GC), lambda n: (n, 0, 0)),
                rep(mask_l), rep(mask_r)] + [rep(a) for a in params]

    out = pl.pallas_call(
        kernel,
        out_shape=jax.ShapeDtypeStruct((NG, HW, GC), x_nchw.dtype),
        grid_spec=pltpu.PrefetchScalarGridSpec(
            num_scalar_prefetch=0,
            grid=(NG,),
            in_specs=in_specs,
            out_specs=pl.BlockSpec((1, HW, GC), lambda n: (n, 0, 0)),
            scratch_shapes=[
                pltpu.VMEM((ROWS, GC), jnp.bfloat16),    # padded x (conv1 input)
                pltpu.VMEM((ROWS, GCh), jnp.bfloat16),   # padded out1 / out3
            ]),
        compiler_params=pltpu.CompilerParams(
            dimension_semantics=("parallel",),            # batch across cores
            vmem_limit_bytes=_vmem_limit_bytes()),
    )(x_pack, mask_l, mask_r, *params)

    out = out.reshape(NG, HW, G, C).transpose(0, 2, 1, 3).reshape(N, H, W, C)
    return jnp.transpose(out, (0, 3, 1, 2))


# ---------------------------------------------------------------------------
# Parameters (deterministic, synthetic) + packing + pure-JAX reference
# ---------------------------------------------------------------------------
def init_params(C, key):
    Ch = C // 2
    mid = max(C // CA_REDUCTION, 1)
    ks = jax.random.split(key, 14)

    def w(k, shape, s=0.1):
        return (jax.random.normal(k, shape) * s).astype(jnp.float32)

    return dict(
        w1=w(ks[0], (3, 3, C, Ch)),                 b1=w(ks[1], (Ch,)),
        w2=w(ks[2], (3, 3, Ch // GROUPS, Ch)),      b2=w(ks[3], (Ch,)),
        w3=w(ks[4], (3, 3, Ch, Ch)),                b3=w(ks[5], (Ch,)),
        w4=w(ks[6], (3, 3, Ch // GROUPS, Ch)),      b4=w(ks[7], (Ch,)),
        w5=w(ks[8], (C, C)),                        b5=w(ks[9], (C,)),
        wdu1=w(ks[10], (C, mid)),                   bdu1=w(ks[11], (mid,)),
        wdu2=w(ks[12], (mid, C)),                   bdu2=w(ks[13], (C,)),
    )


def expand_grouped(w, cin, groups):
    # HWIO grouped weight (kh,kw,cin/g,cout) -> dense block-diagonal (kh,kw,cin,cout)
    kh, kw, cpg, cout = w.shape
    opg = cout // groups
    dense = jnp.zeros((kh, kw, cin, cout), w.dtype)
    for g in range(groups):
        dense = dense.at[:, :, g * cpg:(g + 1) * cpg, g * opg:(g + 1) * opg].set(
            w[:, :, :, g * opg:(g + 1) * opg])
    return dense


def _block_diag(w, G):
    # (r, c) -> (G*r, G*c) block diagonal (one block per lane-packed image)
    r, c = w.shape
    eye = jnp.eye(G, dtype=w.dtype)
    return jnp.einsum('ij,rc->irjc', eye, w).reshape(G * r, G * c)


def _block_diag_taps(w, G):
    # (3,3,cin,cout) HWIO -> (9, G*cin, G*cout); tap k = (dy+1)*3 + (dx+1)
    kh, kw, cin, cout = w.shape
    w9 = w.reshape(kh * kw, cin, cout)
    eye = jnp.eye(G, dtype=w.dtype)
    return jnp.einsum('ij,krc->kirjc', eye, w9).reshape(kh * kw, G * cin, G * cout)


def _tile_b(b, G):
    return jnp.tile(b, G).reshape(1, -1)


def pack_params(raw, C, G):
    Ch = C // 2
    bf16 = jnp.bfloat16

    w2d = expand_grouped(raw['w2'], Ch, GROUPS)
    w4d = expand_grouped(raw['w4'], Ch, GROUPS)

    w1 = _block_diag_taps(raw['w1'], G).astype(bf16)
    w23 = jnp.concatenate([_block_diag_taps(w2d, G),
                           _block_diag_taps(raw['w3'], G)], axis=2).astype(bf16)
    b23 = jnp.concatenate([jnp.tile(raw['b2'], G),
                           jnp.tile(raw['b3'], G)]).reshape(1, -1)
    w4 = _block_diag_taps(w4d, G).astype(bf16)

    w5, wd1, wd2, bd2 = raw['w5'], raw['wdu1'], raw['wdu2'], raw['bdu2']

    return (
        w1, _tile_b(raw['b1'], G),
        w23, b23,
        w4, _tile_b(raw['b4'], G),
        _block_diag(w5[:Ch, :], G), _block_diag(w5[Ch:, :], G), _tile_b(raw['b5'], G),
        _block_diag(wd1[:Ch, :], G), _block_diag(wd1[Ch:, :], G), _tile_b(raw['bdu1'], G),
        _block_diag(wd2[:, :Ch], G), _tile_b(bd2[:Ch], G),
        _block_diag(wd2[:, Ch:], G), _tile_b(bd2[Ch:], G),
    )


def _conv_ref(x, w, b, groups=1):
    y = jax.lax.conv_general_dilated(
        x, w, (1, 1), 'SAME',
        dimension_numbers=('NHWC', 'HWIO', 'NHWC'),
        feature_group_count=groups,
        precision=jax.lax.Precision.HIGHEST)
    return y + b


def scab_reference(x_nchw, raw):
    x = jnp.transpose(x_nchw, (0, 2, 3, 1))
    out1 = _lrelu(_conv_ref(x, raw['w1'], raw['b1']))
    out_1 = _conv_ref(out1, raw['w2'], raw['b2'], groups=GROUPS)
    out2 = _conv_ref(out1, raw['w3'], raw['b3'])
    out3 = jax.nn.sigmoid(out_1) * out2
    out_2 = _conv_ref(out3, raw['w4'], raw['b4'], groups=GROUPS)
    cat = jnp.concatenate([out_1, out_2], axis=-1)
    y = jnp.mean(cat, axis=(1, 2), keepdims=True)
    y = jax.nn.relu(jnp.einsum('nhwc,cd->nhwd', y, raw['wdu1'],
                               precision=jax.lax.Precision.HIGHEST) + raw['bdu1'])
    y = jax.nn.sigmoid(jnp.einsum('nhwc,cd->nhwd', y, raw['wdu2'],
                                  precision=jax.lax.Precision.HIGHEST) + raw['bdu2'])
    camo = cat * y
    out5 = _lrelu(jnp.einsum('nhwc,cd->nhwd', camo, raw['w5'],
                             precision=jax.lax.Precision.HIGHEST) + raw['b5'])
    out = out5 + x
    return jnp.transpose(out, (0, 3, 1, 2))


if __name__ == "__main__":
    # in_channels=32 (CALayer reduction=16 -> mid=2, groups=4 -> Ch%4==0);
    # N=8 so 4 images pack the 128 lanes and the grid has 2 steps.
    N, C, H, W = 8, 32, 16, 16
    key = jax.random.PRNGKey(0)
    kx, kp = jax.random.split(key)
    x = jax.random.normal(kx, (N, C, H, W), dtype=jnp.float32)

    raw = init_params(C, kp)

    out = scab_forward(x, raw)
    out = jax.block_until_ready(out)

    ref = scab_reference(x, raw)
    np.testing.assert_allclose(np.asarray(out), np.asarray(ref),
                               rtol=5e-2, atol=5e-2)
    assert out.shape == x.shape and out.dtype == x.dtype
    print("KERNEL_OK")
</pallas_src>

<mosaic_0001>
module attributes {stable_mosaic.version = 11 : i64} {
  func.func @kernel(%arg0: i32, %arg1: memref<1x256x128xf32, #tpu.memory_space<vmem>>, %arg2: memref<256x1xbf16, #tpu.memory_space<vmem>>, %arg3: memref<256x1xbf16, #tpu.memory_space<vmem>>, %arg4: memref<9x128x64xbf16, #tpu.memory_space<vmem>>, %arg5: memref<1x64xf32, #tpu.memory_space<vmem>>, %arg6: memref<9x64x128xbf16, #tpu.memory_space<vmem>>, %arg7: memref<1x128xf32, #tpu.memory_space<vmem>>, %arg8: memref<9x64x64xbf16, #tpu.memory_space<vmem>>, %arg9: memref<1x64xf32, #tpu.memory_space<vmem>>, %arg10: memref<64x128xf32, #tpu.memory_space<vmem>>, %arg11: memref<64x128xf32, #tpu.memory_space<vmem>>, %arg12: memref<1x128xf32, #tpu.memory_space<vmem>>, %arg13: memref<64x8xf32, #tpu.memory_space<vmem>>, %arg14: memref<64x8xf32, #tpu.memory_space<vmem>>, %arg15: memref<1x8xf32, #tpu.memory_space<vmem>>, %arg16: memref<8x64xf32, #tpu.memory_space<vmem>>, %arg17: memref<1x64xf32, #tpu.memory_space<vmem>>, %arg18: memref<8x64xf32, #tpu.memory_space<vmem>>, %arg19: memref<1x64xf32, #tpu.memory_space<vmem>>, %arg20: memref<1x256x128xf32, #tpu.memory_space<vmem>>, %arg21: memref<320x128xbf16, #tpu.memory_space<vmem>>, %arg22: memref<320x64xbf16, #tpu.memory_space<vmem>>) attributes {dimension_semantics = [#tpu.dimension_semantics<parallel>], iteration_bounds = array<i64: 2>, scalar_prefetch = 0 : i64, scratch_operands = 2 : i64, tpu.core_type = #tpu.core_type<tc>, window_params = [{transform_indices = @transform_0, window_bounds = array<i64: 1, 256, 128>}, {pipeline_mode = #tpu.pipeline_mode<synchronous>, transform_indices = @transform_1, window_bounds = array<i64: 256, 1>}, {pipeline_mode = #tpu.pipeline_mode<synchronous>, transform_indices = @transform_2, window_bounds = array<i64: 256, 1>}, {pipeline_mode = #tpu.pipeline_mode<synchronous>, transform_indices = @transform_3, window_bounds = array<i64: 9, 128, 64>}, {pipeline_mode = #tpu.pipeline_mode<synchronous>, transform_indices = @transform_4, window_bounds = array<i64: 1, 64>}, {pipeline_mode = #tpu.pipeline_mode<synchronous>, transform_indices = @transform_5, window_bounds = array<i64: 9, 64, 128>}, {pipeline_mode = #tpu.pipeline_mode<synchronous>, transform_indices = @transform_6, window_bounds = array<i64: 1, 128>}, {pipeline_mode = #tpu.pipeline_mode<synchronous>, transform_indices = @transform_7, window_bounds = array<i64: 9, 64, 64>}, {pipeline_mode = #tpu.pipeline_mode<synchronous>, transform_indices = @transform_8, window_bounds = array<i64: 1, 64>}, {pipeline_mode = #tpu.pipeline_mode<synchronous>, transform_indices = @transform_9, window_bounds = array<i64: 64, 128>}, {pipeline_mode = #tpu.pipeline_mode<synchronous>, transform_indices = @transform_10, window_bounds = array<i64: 64, 128>}, {pipeline_mode = #tpu.pipeline_mode<synchronous>, transform_indices = @transform_11, window_bounds = array<i64: 1, 128>}, {pipeline_mode = #tpu.pipeline_mode<synchronous>, transform_indices = @transform_12, window_bounds = array<i64: 64, 8>}, {pipeline_mode = #tpu.pipeline_mode<synchronous>, transform_indices = @transform_13, window_bounds = array<i64: 64, 8>}, {pipeline_mode = #tpu.pipeline_mode<synchronous>, transform_indices = @transform_14, window_bounds = array<i64: 1, 8>}, {pipeline_mode = #tpu.pipeline_mode<synchronous>, transform_indices = @transform_15, window_bounds = array<i64: 8, 64>}, {pipeline_mode = #tpu.pipeline_mode<synchronous>, transform_indices = @transform_16, window_bounds = array<i64: 1, 64>}, {pipeline_mode = #tpu.pipeline_mode<synchronous>, transform_indices = @transform_17, window_bounds = array<i64: 8, 64>}, {pipeline_mode = #tpu.pipeline_mode<synchronous>, transform_indices = @transform_18, window_bounds = array<i64: 1, 64>}, {transform_indices = @transform_19, window_bounds = array<i64: 1, 256, 128>}]} {
    %cst = arith.constant 0.000000e+00 : bf16
    %0 = vector.broadcast %cst : bf16 to vector<32x128xbf16>
    %c0 = arith.constant 0 : index
    %c0_0 = arith.constant 0 : index
    %1 = vector.load %arg21[%c0, %c0_0] : memref<320x128xbf16, #tpu.memory_space<vmem>>, vector<32x128xbf16>
    tpu.vector_store %arg21[%c0, %c0_0], %0 {strides = array<i32>} : memref<320x128xbf16, #tpu.memory_space<vmem>>, vector<32x128xbf16>,
    %cst_1 = arith.constant 0.000000e+00 : bf16
    %2 = vector.broadcast %cst_1 : bf16 to vector<32x128xbf16>
    %c288 = arith.constant 288 : index
    %c0_2 = arith.constant 0 : index
    %3 = vector.load %arg21[%c288, %c0_2] : memref<320x128xbf16, #tpu.memory_space<vmem>>, vector<32x128xbf16>
    tpu.vector_store %arg21[%c288, %c0_2], %2 {strides = array<i32>} : memref<320x128xbf16, #tpu.memory_space<vmem>>, vector<32x128xbf16>,
    %cst_3 = arith.constant 0.000000e+00 : bf16
    %4 = vector.broadcast %cst_3 : bf16 to vector<32x64xbf16>
    %c0_4 = arith.constant 0 : index
    %c0_5 = arith.constant 0 : index
    %5 = vector.load %arg22[%c0_4, %c0_5] : memref<320x64xbf16, #tpu.memory_space<vmem>>, vector<32x64xbf16>
    tpu.vector_store %arg22[%c0_4, %c0_5], %4 {strides = array<i32>} : memref<320x64xbf16, #tpu.memory_space<vmem>>, vector<32x64xbf16>,
    %cst_6 = arith.constant 0.000000e+00 : bf16
    %6 = vector.broadcast %cst_6 : bf16 to vector<32x64xbf16>
    %c288_7 = arith.constant 288 : index
    %c0_8 = arith.constant 0 : index
    %7 = vector.load %arg22[%c288_7, %c0_8] : memref<320x64xbf16, #tpu.memory_space<vmem>>, vector<32x64xbf16>
    tpu.vector_store %arg22[%c288_7, %c0_8], %6 {strides = array<i32>} : memref<320x64xbf16, #tpu.memory_space<vmem>>, vector<32x64xbf16>,
    %c0_9 = arith.constant 0 : index
    %c0_10 = arith.constant 0 : index
    %8 = vector.load %arg2[%c0_9, %c0_10] : memref<256x1xbf16, #tpu.memory_space<vmem>>, vector<256x1xbf16>
    %c0_11 = arith.constant 0 : index
    %c0_12 = arith.constant 0 : index
    %9 = vector.load %arg3[%c0_11, %c0_12] : memref<256x1xbf16, #tpu.memory_space<vmem>>, vector<256x1xbf16>
    %c0_13 = arith.constant 0 : index
    %c0_14 = arith.constant 0 : index
    %c0_15 = arith.constant 0 : index
    %10 = vector.load %arg1[%c0_13, %c0_14, %c0_15] : memref<1x256x128xf32, #tpu.memory_space<vmem>>, vector<1x256x128xf32>
    %11 = vector.shape_cast %10 : vector<1x256x128xf32> to vector<256x128xf32>
    %12 = arith.truncf %11 : vector<256x128xf32> to vector<256x128xbf16>
    %c32 = arith.constant 32 : index
    %c0_16 = arith.constant 0 : index
    %13 = vector.load %arg21[%c32, %c0_16] : memref<320x128xbf16, #tpu.memory_space<vmem>>, vector<256x128xbf16>
    tpu.vector_store %arg21[%c32, %c0_16], %12 {strides = array<i32>} : memref<320x128xbf16, #tpu.memory_space<vmem>>, vector<256x128xbf16>,
    %c15 = arith.constant 15 : index
    %c0_17 = arith.constant 0 : index
    %14 = vector.load %arg21[%c15, %c0_17] : memref<320x128xbf16, #tpu.memory_space<vmem>>, vector<256x128xbf16>
    %15 = vector.broadcast %8 : vector<256x1xbf16> to vector<256x128xbf16>
    %16 = arith.mulf %14, %15 : vector<256x128xbf16>
    %c0_18 = arith.constant 0 : index
    %c0_19 = arith.constant 0 : index
    %c0_20 = arith.constant 0 : index
    %17 = vector.load %arg4[%c0_18, %c0_19, %c0_20] : memref<9x128x64xbf16, #tpu.memory_space<vmem>>, vector<1x128x64xbf16>
    %18 = vector.shape_cast %17 : vector<1x128x64xbf16> to vector<128x64xbf16>
    %cst_21 = arith.constant dense<0.000000e+00> : vector<256x64xf32>
    %19 = tpu.matmul %16, %18, %cst_21 {dimension_numbers = #tpu.dot_dimension_numbers<[1], [0], [0], [1], [0, 0, 1, 1], [], []>} : vector<256x128xbf16>, vector<128x64xbf16>, vector<256x64xf32> -> vector<256x64xf32>
    %c16 = arith.constant 16 : index
    %c0_22 = arith.constant 0 : index
    %20 = vector.load %arg21[%c16, %c0_22] : memref<320x128xbf16, #tpu.memory_space<vmem>>, vector<256x128xbf16>
    %c1 = arith.constant 1 : index
    %c0_23 = arith.constant 0 : index
    %c0_24 = arith.constant 0 : index
    %21 = vector.load %arg4[%c1, %c0_23, %c0_24] : memref<9x128x64xbf16, #tpu.memory_space<vmem>>, vector<1x128x64xbf16>
    %22 = vector.shape_cast %21 : vector<1x128x64xbf16> to vector<128x64xbf16>
    %cst_25 = arith.constant dense<0.000000e+00> : vector<256x64xf32>
    %23 = tpu.matmul %20, %22, %cst_25 {dimension_numbers = #tpu.dot_dimension_numbers<[1], [0], [0], [1], [0, 0, 1, 1], [], []>} : vector<256x128xbf16>, vector<128x64xbf16>, vector<256x64xf32> -> vector<256x64xf32>
    %24 = arith.addf %19, %23 : vector<256x64xf32>
    %c17 = arith.constant 17 : index
    %c0_26 = arith.constant 0 : index
    %25 = vector.load %arg21[%c17, %c0_26] : memref<320x128xbf16, #tpu.memory_space<vmem>>, vector<256x128xbf16>
    %26 = vector.broadcast %9 : vector<256x1xbf16> to vector<256x128xbf16>
    %27 = arith.mulf %25, %26 : vector<256x128xbf16>
    %c2 = arith.constant 2 : index
    %c0_27 = arith.constant 0 : index
    %c0_28 = arith.constant 0 : index
    %28 = vector.load %arg4[%c2, %c0_27, %c0_28] : memref<9x128x64xbf16, #tpu.memory_space<vmem>>, vector<1x128x64xbf16>
    %29 = vector.shape_cast %28 : vector<1x128x64xbf16> to vector<128x64xbf16>
    %cst_29 = arith.constant dense<0.000000e+00> : vector<256x64xf32>
    %30 = tpu.matmul %27, %29, %cst_29 {dimension_numbers = #tpu.dot_dimension_numbers<[1], [0], [0], [1], [0, 0, 1, 1], [], []>} : vector<256x128xbf16>, vector<128x64xbf16>, vector<256x64xf32> -> vector<256x64xf32>
    %31 = arith.addf %24, %30 : vector<256x64xf32>
    %c31 = arith.constant 31 : index
    %c0_30 = arith.constant 0 : index
    %32 = vector.load %arg21[%c31, %c0_30] : memref<320x128xbf16, #tpu.memory_space<vmem>>, vector<256x128xbf16>
    %33 = vector.broadcast %8 : vector<256x1xbf16> to vector<256x128xbf16>
    %34 = arith.mulf %32, %33 : vector<256x128xbf16>
    %c3 = arith.constant 3 : index
    %c0_31 = arith.constant 0 : index
    %c0_32 = arith.constant 0 : index
    %35 = vector.load %arg4[%c3, %c0_31, %c0_32] : memref<9x128x64xbf16, #tpu.memory_space<vmem>>, vector<1x128x64xbf16>
    %36 = vector.shape_cast %35 : vector<1x128x64xbf16> to vector<128x64xbf16>
    %cst_33 = arith.constant dense<0.000000e+00> : vector<256x64xf32>
    %37 = tpu.matmul %34, %36, %cst_33 {dimension_numbers = #tpu.dot_dimension_numbers<[1], [0], [0], [1], [0, 0, 1, 1], [], []>} : vector<256x128xbf16>, vector<128x64xbf16>, vector<256x64xf32> -> vector<256x64xf32>
    %38 = arith.addf %31, %37 : vector<256x64xf32>
    %c32_34 = arith.constant 32 : index
    %c0_35 = arith.constant 0 : index
    %39 = vector.load %arg21[%c32_34, %c0_35] : memref<320x128xbf16, #tpu.memory_space<vmem>>, vector<256x128xbf16>
    %c4 = arith.constant 4 : index
    %c0_36 = arith.constant 0 : index
    %c0_37 = arith.constant 0 : index
    %40 = vector.load %arg4[%c4, %c0_36, %c0_37] : memref<9x128x64xbf16, #tpu.memory_space<vmem>>, vector<1x128x64xbf16>
    %41 = vector.shape_cast %40 : vector<1x128x64xbf16> to vector<128x64xbf16>
    %cst_38 = arith.constant dense<0.000000e+00> : vector<256x64xf32>
    %42 = tpu.matmul %39, %41, %cst_38 {dimension_numbers = #tpu.dot_dimension_numbers<[1], [0], [0], [1], [0, 0, 1, 1], [], []>} : vector<256x128xbf16>, vector<128x64xbf16>, vector<256x64xf32> -> vector<256x64xf32>
    %43 = arith.addf %38, %42 : vector<256x64xf32>
    %c33 = arith.constant 33 : index
    %c0_39 = arith.constant 0 : index
    %44 = vector.load %arg21[%c33, %c0_39] : memref<320x128xbf16, #tpu.memory_space<vmem>>, vector<256x128xbf16>
    %45 = vector.broadcast %9 : vector<256x1xbf16> to vector<256x128xbf16>
    %46 = arith.mulf %44, %45 : vector<256x128xbf16>
    %c5 = arith.constant 5 : index
    %c0_40 = arith.constant 0 : index
    %c0_41 = arith.constant 0 : index
    %47 = vector.load %arg4[%c5, %c0_40, %c0_41] : memref<9x128x64xbf16, #tpu.memory_space<vmem>>, vector<1x128x64xbf16>
    %48 = vector.shape_cast %47 : vector<1x128x64xbf16> to vector<128x64xbf16>
    %cst_42 = arith.constant dense<0.000000e+00> : vector<256x64xf32>
    %49 = tpu.matmul %46, %48, %cst_42 {dimension_numbers = #tpu.dot_dimension_numbers<[1], [0], [0], [1], [0, 0, 1, 1], [], []>} : vector<256x128xbf16>, vector<128x64xbf16>, vector<256x64xf32> -> vector<256x64xf32>
    %50 = arith.addf %43, %49 : vector<256x64xf32>
    %c47 = arith.constant 47 : index
    %c0_43 = arith.constant 0 : index
    %51 = vector.load %arg21[%c47, %c0_43] : memref<320x128xbf16, #tpu.memory_space<vmem>>, vector<256x128xbf16>
    %52 = vector.broadcast %8 : vector<256x1xbf16> to vector<256x128xbf16>
    %53 = arith.mulf %51, %52 : vector<256x128xbf16>
    %c6 = arith.constant 6 : index
    %c0_44 = arith.constant 0 : index
    %c0_45 = arith.constant 0 : index
    %54 = vector.load %arg4[%c6, %c0_44, %c0_45] : memref<9x128x64xbf16, #tpu.memory_space<vmem>>, vector<1x128x64xbf16>
    %55 = vector.shape_cast %54 : vector<1x128x64xbf16> to vector<128x64xbf16>
    %cst_46 = arith.constant dense<0.000000e+00> : vector<256x64xf32>
    %56 = tpu.matmul %53, %55, %cst_46 {dimension_numbers = #tpu.dot_dimension_numbers<[1], [0], [0], [1], [0, 0, 1, 1], [], []>} : vector<256x128xbf16>, vector<128x64xbf16>, vector<256x64xf32> -> vector<256x64xf32>
    %57 = arith.addf %50, %56 : vector<256x64xf32>
    %c48 = arith.constant 48 : index
    %c0_47 = arith.constant 0 : index
    %58 = vector.load %arg21[%c48, %c0_47] : memref<320x128xbf16, #tpu.memory_space<vmem>>, vector<256x128xbf16>
    %c7 = arith.constant 7 : index
    %c0_48 = arith.constant 0 : index
    %c0_49 = arith.constant 0 : index
    %59 = vector.load %arg4[%c7, %c0_48, %c0_49] : memref<9x128x64xbf16, #tpu.memory_space<vmem>>, vector<1x128x64xbf16>
    %60 = vector.shape_cast %59 : vector<1x128x64xbf16> to vector<128x64xbf16>
    %cst_50 = arith.constant dense<0.000000e+00> : vector<256x64xf32>
    %61 = tpu.matmul %58, %60, %cst_50 {dimension_numbers = #tpu.dot_dimension_numbers<[1], [0], [0], [1], [0, 0, 1, 1], [], []>} : vector<256x128xbf16>, vector<128x64xbf16>, vector<256x64xf32> -> vector<256x64xf32>
    %62 = arith.addf %57, %61 : vector<256x64xf32>
    %c49 = arith.constant 49 : index
    %c0_51 = arith.constant 0 : index
    %63 = vector.load %arg21[%c49, %c0_51] : memref<320x128xbf16, #tpu.memory_space<vmem>>, vector<256x128xbf16>
    %64 = vector.broadcast %9 : vector<256x1xbf16> to vector<256x128xbf16>
    %65 = arith.mulf %63, %64 : vector<256x128xbf16>
    %c8 = arith.constant 8 : index
    %c0_52 = arith.constant 0 : index
    %c0_53 = arith.constant 0 : index
    %66 = vector.load %arg4[%c8, %c0_52, %c0_53] : memref<9x128x64xbf16, #tpu.memory_space<vmem>>, vector<1x128x64xbf16>
    %67 = vector.shape_cast %66 : vector<1x128x64xbf16> to vector<128x64xbf16>
    %cst_54 = arith.constant dense<0.000000e+00> : vector<256x64xf32>
    %68 = tpu.matmul %65, %67, %cst_54 {dimension_numbers = #tpu.dot_dimension_numbers<[1], [0], [0], [1], [0, 0, 1, 1], [], []>} : vector<256x128xbf16>, vector<128x64xbf16>, vector<256x64xf32> -> vector<256x64xf32>
    %69 = arith.addf %62, %68 : vector<256x64xf32>
    %c0_55 = arith.constant 0 : index
    %c0_56 = arith.constant 0 : index
    %70 = vector.load %arg5[%c0_55, %c0_56] : memref<1x64xf32, #tpu.memory_space<vmem>>, vector<1x64xf32>
    %71 = vector.broadcast %70 : vector<1x64xf32> to vector<256x64xf32>
    %72 = arith.addf %69, %71 : vector<256x64xf32>
    %cst_57 = arith.constant 0.000000e+00 : f32
    %73 = vector.broadcast %cst_57 : f32 to vector<256x64xf32>
    %74 = arith.cmpf oge, %72, %73 : vector<256x64xf32>
    %cst_58 = arith.constant 5.000000e-02 : f32
    %75 = vector.broadcast %cst_58 : f32 to vector<256x64xf32>
    %76 = arith.mulf %75, %72 : vector<256x64xf32>
    %77 = arith.select %74, %72, %76 : vector<256x64xi1>, vector<256x64xf32>
    %78 = arith.truncf %77 : vector<256x64xf32> to vector<256x64xbf16>
    %c32_59 = arith.constant 32 : index
    %c0_60 = arith.constant 0 : index
    %79 = vector.load %arg22[%c32_59, %c0_60] : memref<320x64xbf16, #tpu.memory_space<vmem>>, vector<256x64xbf16>
    tpu.vector_store %arg22[%c32_59, %c0_60], %78 {strides = array<i32>} : memref<320x64xbf16, #tpu.memory_space<vmem>>, vector<256x64xbf16>,
    %c15_61 = arith.constant 15 : index
    %c0_62 = arith.constant 0 : index
    %80 = vector.load %arg22[%c15_61, %c0_62] : memref<320x64xbf16, #tpu.memory_space<vmem>>, vector<256x64xbf16>
    %81 = vector.broadcast %8 : vector<256x1xbf16> to vector<256x64xbf16>
    %82 = arith.mulf %80, %81 : vector<256x64xbf16>
    %c0_63 = arith.constant 0 : index
    %c0_64 = arith.constant 0 : index
    %c0_65 = arith.constant 0 : index
    %83 = vector.load %arg6[%c0_63, %c0_64, %c0_65] : memref<9x64x128xbf16, #tpu.memory_space<vmem>>, vector<1x64x128xbf16>
    %84 = vector.shape_cast %83 : vector<1x64x128xbf16> to vector<64x128xbf16>
    %cst_66 = arith.constant dense<0.000000e+00> : vector<256x128xf32>
    %85 = tpu.matmul %82, %84, %cst_66 {dimension_numbers = #tpu.dot_dimension_numbers<[1], [0], [0], [1], [0, 0, 1, 1], [], []>} : vector<256x64xbf16>, vector<64x128xbf16>, vector<256x128xf32> -> vector<256x128xf32>
    %c16_67 = arith.constant 16 : index
    %c0_68 = arith.constant 0 : index
    %86 = vector.load %arg22[%c16_67, %c0_68] : memref<320x64xbf16, #tpu.memory_space<vmem>>, vector<256x64xbf16>
    %c1_69 = arith.constant 1 : index
    %c0_70 = arith.constant 0 : index
    %c0_71 = arith.constant 0 : index
    %87 = vector.load %arg6[%c1_69, %c0_70, %c0_71] : memref<9x64x128xbf16, #tpu.memory_space<vmem>>, vector<1x64x128xbf16>
    %88 = vector.shape_cast %87 : vector<1x64x128xbf16> to vector<64x128xbf16>
    %cst_72 = arith.constant dense<0.000000e+00> : vector<256x128xf32>
    %89 = tpu.matmul %86, %88, %cst_72 {dimension_numbers = #tpu.dot_dimension_numbers<[1], [0], [0], [1], [0, 0, 1, 1], [], []>} : vector<256x64xbf16>, vector<64x128xbf16>, vector<256x128xf32> -> vector<256x128xf32>
    %90 = arith.addf %85, %89 : vector<256x128xf32>
    %c17_73 = arith.constant 17 : index
    %c0_74 = arith.constant 0 : index
    %91 = vector.load %arg22[%c17_73, %c0_74] : memref<320x64xbf16, #tpu.memory_space<vmem>>, vector<256x64xbf16>
    %92 = vector.broadcast %9 : vector<256x1xbf16> to vector<256x64xbf16>
    %93 = arith.mulf %91, %92 : vector<256x64xbf16>
    %c2_75 = arith.constant 2 : index
    %c0_76 = arith.constant 0 : index
    %c0_77 = arith.constant 0 : index
    %94 = vector.load %arg6[%c2_75, %c0_76, %c0_77] : memref<9x64x128xbf16, #tpu.memory_space<vmem>>, vector<1x64x128xbf16>
    %95 = vector.shape_cast %94 : vector<1x64x128xbf16> to vector<64x128xbf16>
    %cst_78 = arith.constant dense<0.000000e+00> : vector<256x128xf32>
    %96 = tpu.matmul %93, %95, %cst_78 {dimension_numbers = #tpu.dot_dimension_numbers<[1], [0], [0], [1], [0, 0, 1, 1], [], []>} : vector<256x64xbf16>, vector<64x128xbf16>, vector<256x128xf32> -> vector<256x128xf32>
    %97 = arith.addf %90, %96 : vector<256x128xf32>
    %c31_79 = arith.constant 31 : index
    %c0_80 = arith.constant 0 : index
    %98 = vector.load %arg22[%c31_79, %c0_80] : memref<320x64xbf16, #tpu.memory_space<vmem>>, vector<256x64xbf16>
    %99 = vector.broadcast %8 : vector<256x1xbf16> to vector<256x64xbf16>
    %100 = arith.mulf %98, %99 : vector<256x64xbf16>
    %c3_81 = arith.constant 3 : index
    %c0_82 = arith.constant 0 : index
    %c0_83 = arith.constant 0 : index
    %101 = vector.load %arg6[%c3_81, %c0_82, %c0_83] : memref<9x64x128xbf16, #tpu.memory_space<vmem>>, vector<1x64x128xbf16>
    %102 = vector.shape_cast %101 : vector<1x64x128xbf16> to vector<64x128xbf16>
    %cst_84 = arith.constant dense<0.000000e+00> : vector<256x128xf32>
    %103 = tpu.matmul %100, %102, %cst_84 {dimension_numbers = #tpu.dot_dimension_numbers<[1], [0], [0], [1], [0, 0, 1, 1], [], []>} : vector<256x64xbf16>, vector<64x128xbf16>, vector<256x128xf32> -> vector<256x128xf32>
    %104 = arith.addf %97, %103 : vector<256x128xf32>
    %c32_85 = arith.constant 32 : index
    %c0_86 = arith.constant 0 : index
    %105 = vector.load %arg22[%c32_85, %c0_86] : memref<320x64xbf16, #tpu.memory_space<vmem>>, vector<256x64xbf16>
    %c4_87 = arith.constant 4 : index
    %c0_88 = arith.constant 0 : index
    %c0_89 = arith.constant 0 : index
    %106 = vector.load %arg6[%c4_87, %c0_88, %c0_89] : memref<9x64x128xbf16, #tpu.memory_space<vmem>>, vector<1x64x128xbf16>
    %107 = vector.shape_cast %106 : vector<1x64x128xbf16> to vector<64x128xbf16>
    %cst_90 = arith.constant dense<0.000000e+00> : vector<256x128xf32>
    %108 = tpu.matmul %105, %107, %cst_90 {dimension_numbers = #tpu.dot_dimension_numbers<[1], [0], [0], [1], [0, 0, 1, 1], [], []>} : vector<256x64xbf16>, vector<64x128xbf16>, vector<256x128xf32> -> vector<256x128xf32>
    %109 = arith.addf %104, %108 : vector<256x128xf32>
    %c33_91 = arith.constant 33 : index
    %c0_92 = arith.constant 0 : index
    %110 = vector.load %arg22[%c33_91, %c0_92] : memref<320x64xbf16, #tpu.memory_space<vmem>>, vector<256x64xbf16>
    %111 = vector.broadcast %9 : vector<256x1xbf16> to vector<256x64xbf16>
    %112 = arith.mulf %110, %111 : vector<256x64xbf16>
    %c5_93 = arith.constant 5 : index
    %c0_94 = arith.constant 0 : index
    %c0_95 = arith.constant 0 : index
    %113 = vector.load %arg6[%c5_93, %c0_94, %c0_95] : memref<9x64x128xbf16, #tpu.memory_space<vmem>>, vector<1x64x128xbf16>
    %114 = vector.shape_cast %113 : vector<1x64x128xbf16> to vector<64x128xbf16>
    %cst_96 = arith.constant dense<0.000000e+00> : vector<256x128xf32>
    %115 = tpu.matmul %112, %114, %cst_96 {dimension_numbers = #tpu.dot_dimension_numbers<[1], [0], [0], [1], [0, 0, 1, 1], [], []>} : vector<256x64xbf16>, vector<64x128xbf16>, vector<256x128xf32> -> vector<256x128xf32>
    %116 = arith.addf %109, %115 : vector<256x128xf32>
    %c47_97 = arith.constant 47 : index
    %c0_98 = arith.constant 0 : index
    %117 = vector.load %arg22[%c47_97, %c0_98] : memref<320x64xbf16, #tpu.memory_space<vmem>>, vector<256x64xbf16>
    %118 = vector.broadcast %8 : vector<256x1xbf16> to vector<256x64xbf16>
    %119 = arith.mulf %117, %118 : vector<256x64xbf16>
    %c6_99 = arith.constant 6 : index
    %c0_100 = arith.constant 0 : index
    %c0_101 = arith.constant 0 : index
    %120 = vector.load %arg6[%c6_99, %c0_100, %c0_101] : memref<9x64x128xbf16, #tpu.memory_space<vmem>>, vector<1x64x128xbf16>
    %121 = vector.shape_cast %120 : vector<1x64x128xbf16> to vector<64x128xbf16>
    %cst_102 = arith.constant dense<0.000000e+00> : vector<256x128xf32>
    %122 = tpu.matmul %119, %121, %cst_102 {dimension_numbers = #tpu.dot_dimension_numbers<[1], [0], [0], [1], [0, 0, 1, 1], [], []>} : vector<256x64xbf16>, vector<64x128xbf16>, vector<256x128xf32> -> vector<256x128xf32>
    %123 = arith.addf %116, %122 : vector<256x128xf32>
    %c48_103 = arith.constant 48 : index
    %c0_104 = arith.constant 0 : index
    %124 = vector.load %arg22[%c48_103, %c0_104] : memref<320x64xbf16, #tpu.memory_space<vmem>>, vector<256x64xbf16>
    %c7_105 = arith.constant 7 : index
    %c0_106 = arith.constant 0 : index
    %c0_107 = arith.constant 0 : index
    %125 = vector.load %arg6[%c7_105, %c0_106, %c0_107] : memref<9x64x128xbf16, #tpu.memory_space<vmem>>, vector<1x64x128xbf16>
    %126 = vector.shape_cast %125 : vector<1x64x128xbf16> to vector<64x128xbf16>
    %cst_108 = arith.constant dense<0.000000e+00> : vector<256x128xf32>
    %127 = tpu.matmul %124, %126, %cst_108 {dimension_numbers = #tpu.dot_dimension_numbers<[1], [0], [0], [1], [0, 0, 1, 1], [], []>} : vector<256x64xbf16>, vector<64x128xbf16>, vector<256x128xf32> -> vector<256x128xf32>
    %128 = arith.addf %123, %127 : vector<256x128xf32>
    %c49_109 = arith.constant 49 : index
    %c0_110 = arith.constant 0 : index
    %129 = vector.load %arg22[%c49_109, %c0_110] : memref<320x64xbf16, #tpu.memory_space<vmem>>, vector<256x64xbf16>
    %130 = vector.broadcast %9 : vector<256x1xbf16> to vector<256x64xbf16>
    %131 = arith.mulf %129, %130 : vector<256x64xbf16>
    %c8_111 = arith.constant 8 : index
    %c0_112 = arith.constant 0 : index
    %c0_113 = arith.constant 0 : index
    %132 = vector.load %arg6[%c8_111, %c0_112, %c0_113] : memref<9x64x128xbf16, #tpu.memory_space<vmem>>, vector<1x64x128xbf16>
    %133 = vector.shape_cast %132 : vector<1x64x128xbf16> to vector<64x128xbf16>
    %cst_114 = arith.constant dense<0.000000e+00> : vector<256x128xf32>
    %134 = tpu.matmul %131, %133, %cst_114 {dimension_numbers = #tpu.dot_dimension_numbers<[1], [0], [0], [1], [0, 0, 1, 1], [], []>} : vector<256x64xbf16>, vector<64x128xbf16>, vector<256x128xf32> -> vector<256x128xf32>
    %135 = arith.addf %128, %134 : vector<256x128xf32>
    %c0_115 = arith.constant 0 : index
    %c0_116 = arith.constant 0 : index
    %136 = vector.load %arg7[%c0_115, %c0_116] : memref<1x128xf32, #tpu.memory_space<vmem>>, vector<1x128xf32>
    %137 = vector.broadcast %136 : vector<1x128xf32> to vector<256x128xf32>
    %138 = arith.addf %135, %137 : vector<256x128xf32>
    %139 = vector.extract_strided_slice %138 {offsets = [0, 0], sizes = [256, 64], strides = [1, 1]} : vector<256x128xf32> to vector<256x64xf32>
    %140 = vector.extract_strided_slice %138 {offsets = [0, 64], sizes = [256, 64], strides = [1, 1]} : vector<256x128xf32> to vector<256x64xf32>
    %cst_117 = arith.constant dense<0.000000e+00> : vector<64xf32>
    %141 = vector.multi_reduction <add>, %139, %cst_117 [0] : vector<256x64xf32> to vector<64xf32>
    %142 = vector.shape_cast %141 : vector<64xf32> to vector<1x64xf32>
    %cst_118 = arith.constant 2.560000e+02 : f32
    %143 = vector.broadcast %cst_118 : f32 to vector<1x64xf32>
    %144 = arith.divf %142, %143 : vector<1x64xf32>
    %145 = arith.negf %139 : vector<256x64xf32>
    %146 = math.exp %145 : vector<256x64xf32>
    %cst_119 = arith.constant 1.000000e+00 : f32
    %147 = vector.broadcast %cst_119 : f32 to vector<256x64xf32>
    %148 = arith.addf %147, %146 : vector<256x64xf32>
    %149 = arith.divf %147, %148 : vector<256x64xf32>
    %150 = arith.mulf %149, %140 : vector<256x64xf32>
    %151 = arith.truncf %150 : vector<256x64xf32> to vector<256x64xbf16>
    %c32_120 = arith.constant 32 : index
    %c0_121 = arith.constant 0 : index
    %152 = vector.load %arg22[%c32_120, %c0_121] : memref<320x64xbf16, #tpu.memory_space<vmem>>, vector<256x64xbf16>
    tpu.vector_store %arg22[%c32_120, %c0_121], %151 {strides = array<i32>} : memref<320x64xbf16, #tpu.memory_space<vmem>>, vector<256x64xbf16>,
    %c15_122 = arith.constant 15 : index
    %c0_123 = arith.constant 0 : index
    %153 = vector.load %arg22[%c15_122, %c0_123] : memref<320x64xbf16, #tpu.memory_space<vmem>>, vector<256x64xbf16>
    %154 = vector.broadcast %8 : vector<256x1xbf16> to vector<256x64xbf16>
    %155 = arith.mulf %153, %154 : vector<256x64xbf16>
    %c0_124 = arith.constant 0 : index
    %c0_125 = arith.constant 0 : index
    %c0_126 = arith.constant 0 : index
    %156 = vector.load %arg8[%c0_124, %c0_125, %c0_126] : memref<9x64x64xbf16, #tpu.memory_space<vmem>>, vector<1x64x64xbf16>
    %157 = vector.shape_cast %156 : vector<1x64x64xbf16> to vector<64x64xbf16>
    %cst_127 = arith.constant dense<0.000000e+00> : vector<256x64xf32>
    %158 = tpu.matmul %155, %157, %cst_127 {dimension_numbers = #tpu.dot_dimension_numbers<[1], [0], [0], [1], [0, 0, 1, 1], [], []>} : vector<256x64xbf16>, vector<64x64xbf16>, vector<256x64xf32> -> vector<256x64xf32>
    %c16_128 = arith.constant 16 : index
    %c0_129 = arith.constant 0 : index
    %159 = vector.load %arg22[%c16_128, %c0_129] : memref<320x64xbf16, #tpu.memory_space<vmem>>, vector<256x64xbf16>
    %c1_130 = arith.constant 1 : index
    %c0_131 = arith.constant 0 : index
    %c0_132 = arith.constant 0 : index
    %160 = vector.load %arg8[%c1_130, %c0_131, %c0_132] : memref<9x64x64xbf16, #tpu.memory_space<vmem>>, vector<1x64x64xbf16>
    %161 = vector.shape_cast %160 : vector<1x64x64xbf16> to vector<64x64xbf16>
    %cst_133 = arith.constant dense<0.000000e+00> : vector<256x64xf32>
    %162 = tpu.matmul %159, %161, %cst_133 {dimension_numbers = #tpu.dot_dimension_numbers<[1], [0], [0], [1], [0, 0, 1, 1], [], []>} : vector<256x64xbf16>, vector<64x64xbf16>, vector<256x64xf32> -> vector<256x64xf32>
    %163 = arith.addf %158, %162 : vector<256x64xf32>
    %c17_134 = arith.constant 17 : index
    %c0_135 = arith.constant 0 : index
    %164 = vector.load %arg22[%c17_134, %c0_135] : memref<320x64xbf16, #tpu.memory_space<vmem>>, vector<256x64xbf16>
    %165 = vector.broadcast %9 : vector<256x1xbf16> to vector<256x64xbf16>
    %166 = arith.mulf %164, %165 : vector<256x64xbf16>
    %c2_136 = arith.constant 2 : index
    %c0_137 = arith.constant 0 : index
    %c0_138 = arith.constant 0 : index
    %167 = vector.load %arg8[%c2_136, %c0_137, %c0_138] : memref<9x64x64xbf16, #tpu.memory_space<vmem>>, vector<1x64x64xbf16>
    %168 = vector.shape_cast %167 : vector<1x64x64xbf16> to vector<64x64xbf16>
    %cst_139 = arith.constant dense<0.000000e+00> : vector<256x64xf32>
    %169 = tpu.matmul %166, %168, %cst_139 {dimension_numbers = #tpu.dot_dimension_numbers<[1], [0], [0], [1], [0, 0, 1, 1], [], []>} : vector<256x64xbf16>, vector<64x64xbf16>, vector<256x64xf32> -> vector<256x64xf32>
    %170 = arith.addf %163, %169 : vector<256x64xf32>
    %c31_140 = arith.constant 31 : index
    %c0_141 = arith.constant 0 : index
    %171 = vector.load %arg22[%c31_140, %c0_141] : memref<320x64xbf16, #tpu.memory_space<vmem>>, vector<256x64xbf16>
    %172 = vector.broadcast %8 : vector<256x1xbf16> to vector<256x64xbf16>
    %173 = arith.mulf %171, %172 : vector<256x64xbf16>
    %c3_142 = arith.constant 3 : index
    %c0_143 = arith.constant 0 : index
    %c0_144 = arith.constant 0 : index
    %174 = vector.load %arg8[%c3_142, %c0_143, %c0_144] : memref<9x64x64xbf16, #tpu.memory_space<vmem>>, vector<1x64x64xbf16>
    %175 = vector.shape_cast %174 : vector<1x64x64xbf16> to vector<64x64xbf16>
    %cst_145 = arith.constant dense<0.000000e+00> : vector<256x64xf32>
    %176 = tpu.matmul %173, %175, %cst_145 {dimension_numbers = #tpu.dot_dimension_numbers<[1], [0], [0], [1], [0, 0, 1, 1], [], []>} : vector<256x64xbf16>, vector<64x64xbf16>, vector<256x64xf32> -> vector<256x64xf32>
    %177 = arith.addf %170, %176 : vector<256x64xf32>
    %c32_146 = arith.constant 32 : index
    %c0_147 = arith.constant 0 : index
    %178 = vector.load %arg22[%c32_146, %c0_147] : memref<320x64xbf16, #tpu.memory_space<vmem>>, vector<256x64xbf16>
    %c4_148 = arith.constant 4 : index
    %c0_149 = arith.constant 0 : index
    %c0_150 = arith.constant 0 : index
    %179 = vector.load %arg8[%c4_148, %c0_149, %c0_150] : memref<9x64x64xbf16, #tpu.memory_space<vmem>>, vector<1x64x64xbf16>
    %180 = vector.shape_cast %179 : vector<1x64x64xbf16> to vector<64x64xbf16>
    %cst_151 = arith.constant dense<0.000000e+00> : vector<256x64xf32>
    %181 = tpu.matmul %178, %180, %cst_151 {dimension_numbers = #tpu.dot_dimension_numbers<[1], [0], [0], [1], [0, 0, 1, 1], [], []>} : vector<256x64xbf16>, vector<64x64xbf16>, vector<256x64xf32> -> vector<256x64xf32>
    %182 = arith.addf %177, %181 : vector<256x64xf32>
    %c33_152 = arith.constant 33 : index
    %c0_153 = arith.constant 0 : index
    %183 = vector.load %arg22[%c33_152, %c0_153] : memref<320x64xbf16, #tpu.memory_space<vmem>>, vector<256x64xbf16>
    %184 = vector.broadcast %9 : vector<256x1xbf16> to vector<256x64xbf16>
    %185 = arith.mulf %183, %184 : vector<256x64xbf16>
    %c5_154 = arith.constant 5 : index
    %c0_155 = arith.constant 0 : index
    %c0_156 = arith.constant 0 : index
    %186 = vector.load %arg8[%c5_154, %c0_155, %c0_156] : memref<9x64x64xbf16, #tpu.memory_space<vmem>>, vector<1x64x64xbf16>
    %187 = vector.shape_cast %186 : vector<1x64x64xbf16> to vector<64x64xbf16>
    %cst_157 = arith.constant dense<0.000000e+00> : vector<256x64xf32>
    %188 = tpu.matmul %185, %187, %cst_157 {dimension_numbers = #tpu.dot_dimension_numbers<[1], [0], [0], [1], [0, 0, 1, 1], [], []>} : vector<256x64xbf16>, vector<64x64xbf16>, vector<256x64xf32> -> vector<256x64xf32>
    %189 = arith.addf %182, %188 : vector<256x64xf32>
    %c47_158 = arith.constant 47 : index
    %c0_159 = arith.constant 0 : index
    %190 = vector.load %arg22[%c47_158, %c0_159] : memref<320x64xbf16, #tpu.memory_space<vmem>>, vector<256x64xbf16>
    %191 = vector.broadcast %8 : vector<256x1xbf16> to vector<256x64xbf16>
    %192 = arith.mulf %190, %191 : vector<256x64xbf16>
    %c6_160 = arith.constant 6 : index
    %c0_161 = arith.constant 0 : index
    %c0_162 = arith.constant 0 : index
    %193 = vector.load %arg8[%c6_160, %c0_161, %c0_162] : memref<9x64x64xbf16, #tpu.memory_space<vmem>>, vector<1x64x64xbf16>
    %194 = vector.shape_cast %193 : vector<1x64x64xbf16> to vector<64x64xbf16>
    %cst_163 = arith.constant dense<0.000000e+00> : vector<256x64xf32>
    %195 = tpu.matmul %192, %194, %cst_163 {dimension_numbers = #tpu.dot_dimension_numbers<[1], [0], [0], [1], [0, 0, 1, 1], [], []>} : vector<256x64xbf16>, vector<64x64xbf16>, vector<256x64xf32> -> vector<256x64xf32>
    %196 = arith.addf %189, %195 : vector<256x64xf32>
    %c48_164 = arith.constant 48 : index
    %c0_165 = arith.constant 0 : index
    %197 = vector.load %arg22[%c48_164, %c0_165] : memref<320x64xbf16, #tpu.memory_space<vmem>>, vector<256x64xbf16>
    %c7_166 = arith.constant 7 : index
    %c0_167 = arith.constant 0 : index
    %c0_168 = arith.constant 0 : index
    %198 = vector.load %arg8[%c7_166, %c0_167, %c0_168] : memref<9x64x64xbf16, #tpu.memory_space<vmem>>, vector<1x64x64xbf16>
    %199 = vector.shape_cast %198 : vector<1x64x64xbf16> to vector<64x64xbf16>
    %cst_169 = arith.constant dense<0.000000e+00> : vector<256x64xf32>
    %200 = tpu.matmul %197, %199, %cst_169 {dimension_numbers = #tpu.dot_dimension_numbers<[1], [0], [0], [1], [0, 0, 1, 1], [], []>} : vector<256x64xbf16>, vector<64x64xbf16>, vector<256x64xf32> -> vector<256x64xf32>
    %201 = arith.addf %196, %200 : vector<256x64xf32>
    %c49_170 = arith.constant 49 : index
    %c0_171 = arith.constant 0 : index
    %202 = vector.load %arg22[%c49_170, %c0_171] : memref<320x64xbf16, #tpu.memory_space<vmem>>, vector<256x64xbf16>
    %203 = vector.broadcast %9 : vector<256x1xbf16> to vector<256x64xbf16>
    %204 = arith.mulf %202, %203 : vector<256x64xbf16>
    %c8_172 = arith.constant 8 : index
    %c0_173 = arith.constant 0 : index
    %c0_174 = arith.constant 0 : index
    %205 = vector.load %arg8[%c8_172, %c0_173, %c0_174] : memref<9x64x64xbf16, #tpu.memory_space<vmem>>, vector<1x64x64xbf16>
    %206 = vector.shape_cast %205 : vector<1x64x64xbf16> to vector<64x64xbf16>
    %cst_175 = arith.constant dense<0.000000e+00> : vector<256x64xf32>
    %207 = tpu.matmul %204, %206, %cst_175 {dimension_numbers = #tpu.dot_dimension_numbers<[1], [0], [0], [1], [0, 0, 1, 1], [], []>} : vector<256x64xbf16>, vector<64x64xbf16>, vector<256x64xf32> -> vector<256x64xf32>
    %208 = arith.addf %201, %207 : vector<256x64xf32>
    %c0_176 = arith.constant 0 : index
    %c0_177 = arith.constant 0 : index
    %209 = vector.load %arg9[%c0_176, %c0_177] : memref<1x64xf32, #tpu.memory_space<vmem>>, vector<1x64xf32>
    %210 = vector.broadcast %209 : vector<1x64xf32> to vector<256x64xf32>
    %211 = arith.addf %208, %210 : vector<256x64xf32>
    %cst_178 = arith.constant dense<0.000000e+00> : vector<64xf32>
    %212 = vector.multi_reduction <add>, %211, %cst_178 [0] : vector<256x64xf32> to vector<64xf32>
    %213 = vector.shape_cast %212 : vector<64xf32> to vector<1x64xf32>
    %cst_179 = arith.constant 2.560000e+02 : f32
    %214 = vector.broadcast %cst_179 : f32 to vector<1x64xf32>
    %215 = arith.divf %213, %214 : vector<1x64xf32>
    %c0_180 = arith.constant 0 : index
    %c0_181 = arith.constant 0 : index
    %216 = vector.load %arg13[%c0_180, %c0_181] : memref<64x8xf32, #tpu.memory_space<vmem>>, vector<64x8xf32>
    %cst_182 = arith.constant dense<0.000000e+00> : vector<1x8xf32>
    %217 = tpu.matmul %144, %216, %cst_182 {dimension_numbers = #tpu.dot_dimension_numbers<[1], [0], [0], [1], [0, 0, 1, 1], [], []>} : vector<1x64xf32>, vector<64x8xf32>, vector<1x8xf32> -> vector<1x8xf32>
    %c0_183 = arith.constant 0 : index
    %c0_184 = arith.constant 0 : index
    %218 = vector.load %arg14[%c0_183, %c0_184] : memref<64x8xf32, #tpu.memory_space<vmem>>, vector<64x8xf32>
    %cst_185 = arith.constant dense<0.000000e+00> : vector<1x8xf32>
    %219 = tpu.matmul %215, %218, %cst_185 {dimension_numbers = #tpu.dot_dimension_numbers<[1], [0], [0], [1], [0, 0, 1, 1], [], []>} : vector<1x64xf32>, vector<64x8xf32>, vector<1x8xf32> -> vector<1x8xf32>
    %220 = arith.addf %217, %219 : vector<1x8xf32>
    %c0_186 = arith.constant 0 : index
    %c0_187 = arith.constant 0 : index
    %221 = vector.load %arg15[%c0_186, %c0_187] : memref<1x8xf32, #tpu.memory_space<vmem>>, vector<1x8xf32>
    %222 = arith.addf %220, %221 : vector<1x8xf32>
    %cst_188 = arith.constant 0.000000e+00 : f32
    %223 = vector.broadcast %cst_188 : f32 to vector<1x8xf32>
    %224 = arith.maximumf %222, %223 : vector<1x8xf32>
    %c0_189 = arith.constant 0 : index
    %c0_190 = arith.constant 0 : index
    %225 = vector.load %arg16[%c0_189, %c0_190] : memref<8x64xf32, #tpu.memory_space<vmem>>, vector<8x64xf32>
    %cst_191 = arith.constant dense<0.000000e+00> : vector<1x64xf32>
    %226 = tpu.matmul %224, %225, %cst_191 {dimension_numbers = #tpu.dot_dimension_numbers<[1], [0], [0], [1], [0, 0, 1, 1], [], []>} : vector<1x8xf32>, vector<8x64xf32>, vector<1x64xf32> -> vector<1x64xf32>
    %c0_192 = arith.constant 0 : index
    %c0_193 = arith.constant 0 : index
    %227 = vector.load %arg17[%c0_192, %c0_193] : memref<1x64xf32, #tpu.memory_space<vmem>>, vector<1x64xf32>
    %228 = arith.addf %226, %227 : vector<1x64xf32>
    %229 = arith.negf %228 : vector<1x64xf32>
    %230 = math.exp %229 : vector<1x64xf32>
    %cst_194 = arith.constant 1.000000e+00 : f32
    %231 = vector.broadcast %cst_194 : f32 to vector<1x64xf32>
    %232 = arith.addf %231, %230 : vector<1x64xf32>
    %233 = arith.divf %231, %232 : vector<1x64xf32>
    %c0_195 = arith.constant 0 : index
    %c0_196 = arith.constant 0 : index
    %234 = vector.load %arg18[%c0_195, %c0_196] : memref<8x64xf32, #tpu.memory_space<vmem>>, vector<8x64xf32>
    %cst_197 = arith.constant dense<0.000000e+00> : vector<1x64xf32>
    %235 = tpu.matmul %224, %234, %cst_197 {dimension_numbers = #tpu.dot_dimension_numbers<[1], [0], [0], [1], [0, 0, 1, 1], [], []>} : vector<1x8xf32>, vector<8x64xf32>, vector<1x64xf32> -> vector<1x64xf32>
    %c0_198 = arith.constant 0 : index
    %c0_199 = arith.constant 0 : index
    %236 = vector.load %arg19[%c0_198, %c0_199] : memref<1x64xf32, #tpu.memory_space<vmem>>, vector<1x64xf32>
    %237 = arith.addf %235, %236 : vector<1x64xf32>
    %238 = arith.negf %237 : vector<1x64xf32>
    %239 = math.exp %238 : vector<1x64xf32>
    %cst_200 = arith.constant 1.000000e+00 : f32
    %240 = vector.broadcast %cst_200 : f32 to vector<1x64xf32>
    %241 = arith.addf %240, %239 : vector<1x64xf32>
    %242 = arith.divf %240, %241 : vector<1x64xf32>
    %243 = tpu.iota {dimensions = array<i32: 0>} : vector<64x64xi32>
    %244 = tpu.iota {dimensions = array<i32: 1>} : vector<64x64xi32>
    %245 = arith.cmpi eq, %243, %244 : vector<64x64xi32>
    %246 = arith.extui %245 : vector<64x64xi1> to vector<64x64xi32>
    %247 = arith.sitofp %246 : vector<64x64xi32> to vector<64x64xf32>
    %248 = vector.broadcast %233 : vector<1x64xf32> to vector<64x64xf32>
    %249 = arith.mulf %247, %248 : vector<64x64xf32>
    %c0_201 = arith.constant 0 : index
    %c0_202 = arith.constant 0 : index
    %250 = vector.load %arg10[%c0_201, %c0_202] : memref<64x128xf32, #tpu.memory_space<vmem>>, vector<64x128xf32>
    %cst_203 = arith.constant dense<0.000000e+00> : vector<64x128xf32>
    %251 = tpu.matmul %249, %250, %cst_203 {dimension_numbers = #tpu.dot_dimension_numbers<[1], [0], [0], [1], [0, 0, 1, 1], [], []>} : vector<64x64xf32>, vector<64x128xf32>, vector<64x128xf32> -> vector<64x128xf32>
    %252 = vector.broadcast %242 : vector<1x64xf32> to vector<64x64xf32>
    %253 = arith.mulf %247, %252 : vector<64x64xf32>
    %c0_204 = arith.constant 0 : index
    %c0_205 = arith.constant 0 : index
    %254 = vector.load %arg11[%c0_204, %c0_205] : memref<64x128xf32, #tpu.memory_space<vmem>>, vector<64x128xf32>
    %cst_206 = arith.constant dense<0.000000e+00> : vector<64x128xf32>
    %255 = tpu.matmul %253, %254, %cst_206 {dimension_numbers = #tpu.dot_dimension_numbers<[1], [0], [0], [1], [0, 0, 1, 1], [], []>} : vector<64x64xf32>, vector<64x128xf32>, vector<64x128xf32> -> vector<64x128xf32>
    %cst_207 = arith.constant dense<0.000000e+00> : vector<256x128xf32>
    %256 = tpu.matmul %139, %251, %cst_207 {dimension_numbers = #tpu.dot_dimension_numbers<[1], [0], [0], [1], [0, 0, 1, 1], [], []>} : vector<256x64xf32>, vector<64x128xf32>, vector<256x128xf32> -> vector<256x128xf32>
    %cst_208 = arith.constant dense<0.000000e+00> : vector<256x128xf32>
    %257 = tpu.matmul %211, %255, %cst_208 {dimension_numbers = #tpu.dot_dimension_numbers<[1], [0], [0], [1], [0, 0, 1, 1], [], []>} : vector<256x64xf32>, vector<64x128xf32>, vector<256x128xf32> -> vector<256x128xf32>
    %258 = arith.addf %256, %257 : vector<256x128xf32>
    %c0_209 = arith.constant 0 : index
    %c0_210 = arith.constant 0 : index
    %259 = vector.load %arg12[%c0_209, %c0_210] : memref<1x128xf32, #tpu.memory_space<vmem>>, vector<1x128xf32>
    %260 = vector.broadcast %259 : vector<1x128xf32> to vector<256x128xf32>
    %261 = arith.addf %258, %260 : vector<256x128xf32>
    %cst_211 = arith.constant 0.000000e+00 : f32
    %262 = vector.broadcast %cst_211 : f32 to vector<256x128xf32>
    %263 = arith.cmpf oge, %261, %262 : vector<256x128xf32>
    %cst_212 = arith.constant 5.000000e-02 : f32
    %264 = vector.broadcast %cst_212 : f32 to vector<256x128xf32>
    %265 = arith.mulf %264, %261 : vector<256x128xf32>
    %266 = arith.select %263, %261, %265 : vector<256x128xi1>, vector<256x128xf32>
    %c0_213 = arith.constant 0 : index
    %c0_214 = arith.constant 0 : index
    %c0_215 = arith.constant 0 : index
    %267 = vector.load %arg1[%c0_213, %c0_214, %c0_215] : memref<1x256x128xf32, #tpu.memory_space<vmem>>, vector<1x256x128xf32>
    %268 = vector.shape_cast %267 : vector<1x256x128xf32> to vector<256x128xf32>
    %269 = arith.addf %266, %268 : vector<256x128xf32>
    %c0_216 = arith.constant 0 : index
    %c0_217 = arith.constant 0 : index
    %c0_218 = arith.constant 0 : index
    %270 = vector.load %arg20[%c0_216, %c0_217, %c0_218] : memref<1x256x128xf32, #tpu.memory_space<vmem>>, vector<1x256x128xf32>
    %271 = vector.shape_cast %270 : vector<1x256x128xf32> to vector<256x128xf32>
    %272 = vector.shape_cast %269 : vector<256x128xf32> to vector<1x256x128xf32>
    tpu.vector_store %arg20[%c0_216, %c0_217, %c0_218], %272 {strides = array<i32>} : memref<1x256x128xf32, #tpu.memory_space<vmem>>, vector<1x256x128xf32>,
    return
  }
  func.func @transform_0(%arg0: i32) -> (i32, i32, i32) {
    %c0_i32 = arith.constant 0 : i32
    %c0_i32_0 = arith.constant 0 : i32
    %c0_i32_1 = arith.constant 0 : i32
    return %arg0, %c0_i32, %c0_i32_0 : i32, i32, i32
  }
  func.func @transform_1(%arg0: i32) -> (i32, i32) {
    %c0_i32 = arith.constant 0 : i32
    %c0_i32_0 = arith.constant 0 : i32
    %c0_i32_1 = arith.constant 0 : i32
    return %c0_i32, %c0_i32_0 : i32, i32
  }
  func.func @transform_2(%arg0: i32) -> (i32, i32) {
    %c0_i32 = arith.constant 0 : i32
    %c0_i32_0 = arith.constant 0 : i32
    %c0_i32_1 = arith.constant 0 : i32
    return %c0_i32, %c0_i32_0 : i32, i32
  }
  func.func @transform_3(%arg0: i32) -> (i32, i32, i32) {
    %c0_i32 = arith.constant 0 : i32
    %c0_i32_0 = arith.constant 0 : i32
    %c0_i32_1 = arith.constant 0 : i32
    %c0_i32_2 = arith.constant 0 : i32
    return %c0_i32, %c0_i32_0, %c0_i32_1 : i32, i32, i32
  }
  func.func @transform_4(%arg0: i32) -> (i32, i32) {
    %c0_i32 = arith.constant 0 : i32
    %c0_i32_0 = arith.constant 0 : i32
    %c0_i32_1 = arith.constant 0 : i32
    return %c0_i32, %c0_i32_0 : i32, i32
  }
  func.func @transform_5(%arg0: i32) -> (i32, i32, i32) {
    %c0_i32 = arith.constant 0 : i32
    %c0_i32_0 = arith.constant 0 : i32
    %c0_i32_1 = arith.constant 0 : i32
    %c0_i32_2 = arith.constant 0 : i32
    return %c0_i32, %c0_i32_0, %c0_i32_1 : i32, i32, i32
  }
  func.func @transform_6(%arg0: i32) -> (i32, i32) {
    %c0_i32 = arith.constant 0 : i32
    %c0_i32_0 = arith.constant 0 : i32
    %c0_i32_1 = arith.constant 0 : i32
    return %c0_i32, %c0_i32_0 : i32, i32
  }
  func.func @transform_7(%arg0: i32) -> (i32, i32, i32) {
    %c0_i32 = arith.constant 0 : i32
    %c0_i32_0 = arith.constant 0 : i32
    %c0_i32_1 = arith.constant 0 : i32
    %c0_i32_2 = arith.constant 0 : i32
    return %c0_i32, %c0_i32_0, %c0_i32_1 : i32, i32, i32
  }
  func.func @transform_8(%arg0: i32) -> (i32, i32) {
    %c0_i32 = arith.constant 0 : i32
    %c0_i32_0 = arith.constant 0 : i32
    %c0_i32_1 = arith.constant 0 : i32
    return %c0_i32, %c0_i32_0 : i32, i32
  }
  func.func @transform_9(%arg0: i32) -> (i32, i32) {
    %c0_i32 = arith.constant 0 : i32
    %c0_i32_0 = arith.constant 0 : i32
    %c0_i32_1 = arith.constant 0 : i32
    return %c0_i32, %c0_i32_0 : i32, i32
  }
  func.func @transform_10(%arg0: i32) -> (i32, i32) {
    %c0_i32 = arith.constant 0 : i32
    %c0_i32_0 = arith.constant 0 : i32
    %c0_i32_1 = arith.constant 0 : i32
    return %c0_i32, %c0_i32_0 : i32, i32
  }
  func.func @transform_11(%arg0: i32) -> (i32, i32) {
    %c0_i32 = arith.constant 0 : i32
    %c0_i32_0 = arith.constant 0 : i32
    %c0_i32_1 = arith.constant 0 : i32
    return %c0_i32, %c0_i32_0 : i32, i32
  }
  func.func @transform_12(%arg0: i32) -> (i32, i32) {
    %c0_i32 = arith.constant 0 : i32
    %c0_i32_0 = arith.constant 0 : i32
    %c0_i32_1 = arith.constant 0 : i32
    return %c0_i32, %c0_i32_0 : i32, i32
  }
  func.func @transform_13(%arg0: i32) -> (i32, i32) {
    %c0_i32 = arith.constant 0 : i32
    %c0_i32_0 = arith.constant 0 : i32
    %c0_i32_1 = arith.constant 0 : i32
    return %c0_i32, %c0_i32_0 : i32, i32
  }
  func.func @transform_14(%arg0: i32) -> (i32, i32) {
    %c0_i32 = arith.constant 0 : i32
    %c0_i32_0 = arith.constant 0 : i32
    %c0_i32_1 = arith.constant 0 : i32
    return %c0_i32, %c0_i32_0 : i32, i32
  }
  func.func @transform_15(%arg0: i32) -> (i32, i32) {
    %c0_i32 = arith.constant 0 : i32
    %c0_i32_0 = arith.constant 0 : i32
    %c0_i32_1 = arith.constant 0 : i32
    return %c0_i32, %c0_i32_0 : i32, i32
  }
  func.func @transform_16(%arg0: i32) -> (i32, i32) {
    %c0_i32 = arith.constant 0 : i32
    %c0_i32_0 = arith.constant 0 : i32
    %c0_i32_1 = arith.constant 0 : i32
    return %c0_i32, %c0_i32_0 : i32, i32
  }
  func.func @transform_17(%arg0: i32) -> (i32, i32) {
    %c0_i32 = arith.constant 0 : i32
    %c0_i32_0 = arith.constant 0 : i32
    %c0_i32_1 = arith.constant 0 : i32
    return %c0_i32, %c0_i32_0 : i32, i32
  }
  func.func @transform_18(%arg0: i32) -> (i32, i32) {
    %c0_i32 = arith.constant 0 : i32
    %c0_i32_0 = arith.constant 0 : i32
    %c0_i32_1 = arith.constant 0 : i32
    return %c0_i32, %c0_i32_0 : i32, i32
  }
  func.func @transform_19(%arg0: i32) -> (i32, i32, i32) {
    %c0_i32 = arith.constant 0 : i32
    %c0_i32_0 = arith.constant 0 : i32
    %c0_i32_1 = arith.constant 0 : i32
    return %arg0, %c0_i32, %c0_i32_0 : i32, i32, i32
  }
}

</mosaic_0001>

<bundles_post_ra>
// kernel: tpu_custom_call.1
= control target key start
LH: loop header
LB: loop body
LE: loop exit
PB: predicated region body
PF: predicated region fallthrough
CT: control target
= control target key end

     0   :  { %s23083_s0 = inlined_call_operand.hbm [shape: f32[2,256,128], index: 0, kind: input, shape index: {}]   ;;  %s23084_s1 = inlined_call_operand.hbm [shape: bf16[256,1], index: 1, kind: input, shape index: {}]   ;;  %s23085_s2 = inlined_call_operand.hbm [shape: bf16[256,1], index: 2, kind: input, shape index: {}]   ;;  %s23086_s3 = inlined_call_operand.hbm [shape: bf16[9,128,64], index: 3, kind: input, shape index: {}]   ;;  %s23087_s4 = inlined_call_operand.hbm [shape: f32[1,64], index: 4, kind: input, shape index: {}]   ;;  %s23088_s5 = inlined_call_operand.hbm [shape: bf16[9,64,128], index: 5, kind: input, shape index: {}]   ;;  %s23089_s6 = inlined_call_operand.hbm [shape: f32[1,128], index: 6, kind: input, shape index: {}]   ;;  %s23090_s7 = inlined_call_operand.hbm [shape: bf16[9,64,64], index: 7, kind: input, shape index: {}]   ;;  %s23091_s8 = inlined_call_operand.hbm [shape: f32[1,64], index: 8, kind: input, shape index: {}]   ;;  %s23092_s9 = inlined_call_operand.hbm [shape: f32[64,128], index: 9, kind: input, shape index: {}]   ;;  %s23093_s10 = inlined_call_operand.hbm [shape: f32[64,128], index: 10, kind: input, shape index: {}]   ;;  %s23094_s11 = inlined_call_operand.hbm [shape: f32[1,128], index: 11, kind: input, shape index: {}]   ;;  %s23095_s12 = inlined_call_operand.hbm [shape: f32[64,8], index: 12, kind: input, shape index: {}]   ;;  %s23096_s13 = inlined_call_operand.hbm [shape: f32[64,8], index: 13, kind: input, shape index: {}]   ;;  %s23097_s14 = inlined_call_operand.hbm [shape: f32[1,8], index: 14, kind: input, shape index: {}]   ;;  %s23098_s15 = inlined_call_operand.hbm [shape: f32[8,64], index: 15, kind: input, shape index: {}]   ;;  %s23099_s16 = inlined_call_operand.hbm [shape: f32[1,64], index: 16, kind: input, shape index: {}]   ;;  %s23100_s17 = inlined_call_operand.hbm [shape: f32[8,64], index: 17, kind: input, shape index: {}]   ;;  %s23101_s18 = inlined_call_operand.hbm [shape: f32[1,64], index: 18, kind: input, shape index: {}]   ;;  %s23102_s19 = inlined_call_operand.hbm [shape: f32[2,256,128], index: 19, kind: output, shape index: {}]  }
   0x1   :  { %23293 = sst [smem:[#allocation110_spill]] %s23083_s0 }
   0x2   :  { %23294 = sst [smem:[#allocation111_spill]] %s23084_s1 }
   0x3   :  { %23295 = sst [smem:[#allocation112_spill]] %s23085_s2 }
   0x4   :  { %23296 = sst [smem:[#allocation113_spill]] %s23086_s3 }
   0x5   :  { %23297 = sst [smem:[#allocation114_spill]] %s23087_s4 }
   0x6   :  { %23298 = sst [smem:[#allocation115_spill]] %s23088_s5 }
   0x7   :  { %23299 = sst [smem:[#allocation116_spill]] %s23089_s6 }
   0x8   :  { %23300 = sst [smem:[#allocation117_spill]] %s23097_s14 }
   0x9   :  { %23301 = sst [smem:[#allocation118_spill]] %s23099_s16 }
   0xa   :  { %23302 = sst [smem:[#allocation119_spill]] %s23101_s18 }
   0xb   :  { %23303 = sst [smem:[#allocation120_spill]] %s23102_s19 }
   0xc   :  { %24 = vsyncpa [#allocation5], 0 }
   0xd   :  { %26 = vsyncpa [#allocation5 + $0x1], 0 }
   0xe   :  { %27 = vsyncpa [#allocation8], 0 }
   0xf   :  { %28 = vsyncpa [#allocation11], 0 }
  0x10   :  { %29 = vsyncpa [#allocation14], 0 }
  0x11   :  { %30 = vsyncpa [#allocation17], 0 }
  0x12   :  { %31 = vsyncpa [#allocation20], 0 }
  0x13   :  { %32 = vsyncpa [#allocation23], 0 }
  0x14   :  { %33 = vsyncpa [#allocation26], 0 }
  0x15   :  { %34 = vsyncpa [#allocation29], 0 }
  0x16   :  { %35 = vsyncpa [#allocation32], 0 }
  0x17   :  { %36 = vsyncpa [#allocation6], 0 }
  0x18   :  { %38 = vsyncpa [#allocation6 + $0x1], 0  ;;  %s19768_s0 = smov 0   ;;  %s19770_s30 = smov 0  }
  0x19   :  { %s19772_s20 = smov 0   ;;  %s19774_s21 = smov 0  }
  0x1a LB: > { %23304 = sst [smem:[#allocation46_spill]] %s19622_s0  ;;  %s19636_s1 = smov [#allocation7]   ;;  %s19634_s21 = sphi %s19774_s21, %s23593_s21   ;;  %s19630_s20 = sphi %s19772_s20, %s23592_s20   ;;  %s19626_s30 = sphi %s19770_s30, %s23591_s30   ;;  %s19622_s0 = sphi %s19768_s0, %s23590_s0  }
  0x1b   : > { %23305 = sst [smem:[#allocation47_spill]] %s19626_s30  ;;  %s491_s22 = sshll.u32 %s19636_s1, 4  ;;  %s19794_s22 = int_to_ptr.vmem [resolvable:$true] %s491_s22 }
  0x1c   : > { %23306 = sst [smem:[#allocation48_spill]] %s19630_s20  ;;  %s19789_s2 = sadd.s32 4294967295, %s19634_s21  }
  0x1d   : > { %23307 = sst [smem:[#allocation49_spill]] %s19634_s21  ;;  %p14801_p0 = scmp.ge.s32.totalorder %s19634_s21, 1 }
  0x1e   : > { %23308 = sst [smem:[#allocation50_spill]] %s19789_s2  ;;  %p23119_p1 = scmp.eq.s32.totalorder %s19789_s2, 0 }
  0x1f   : > { %p479_p2 = scmp.lt.s32.totalorder %s19634_s21, 3  ;;  %s19637_s24 = smov [#allocation10]  }
  0x20   : > { %s517_s25 = sshll.u32 %s19637_s24, 4  ;;  %s19638_s26 = smov [#allocation13]   ;;  %s19809_s25 = int_to_ptr.vmem [resolvable:$true] %s517_s25 }
  0x21   : > { %p19796_p3 = pnand %p14801_p0, %p479_p2  ;;  %s541_s27 = sshll.u32 %s19638_s26, 4  ;;  %s19811_s27 = int_to_ptr.vmem [resolvable:$true] %s541_s27 }
  0x22   : > { %s23312_s1 = sld [smem:[#allocation111_spill]] }
  0x23   : > { %s23309_s23 = scalar_select %p19796_p3, 1, 0 }
  0x24   : > { %p18512_p5 = pneg %p19796_p3 }
  0x25   : > { %23310 = sst [smem:[#allocation51_spill]] %s23309_s23 }
  0x26   : > { %p19805_p6 = pnand %p18512_p5, %p23119_p1 }
  0x28   : > { %s18998_s19 = scalar_lea.hbm %s23312_s1, 2048  ;;  %p19821_p8 = pneg %p19805_p6 }
  0x29   : > { %p18999_p7 = scmp.ne.s32.totalorder %s23312_s1, %s18998_s19  ;;  %p19005_p11 = scmp.lt.u32.totalorder %s18998_s19, %s23312_s1 }
  0x2b   : > { %p19001_p9 = pnand %p19821_p8, %p18999_p7 }
  0x2d   : > { %p19002_p10 = pneg %p19001_p9 }
  0x2f   : > { %p19007_p12 = pnand %p19005_p11, %p19002_p10 }
  0x31   : > { %19010 = shalt.err (!%p19007_p12)
}
  0x32   : > { %s19011_s0 = scalar_lea.vmem %s19794_s22, 2048  ;;  %p19019_p5 = scmp.lt.s32.totalorder %s19794_s22, %s19794_s22 }
  0x33   : > { %p19012_p13 = scmp.ne.s32.totalorder %s19794_s22, %s19011_s0  ;;  %p19020_p4 = scmp.lt.s32.totalorder %s19011_s0, %s19011_s0 }
  0x35   : > { %p19014_p0 = pnand %p19012_p13, %p19821_p8  ;;  %p19021_p7 = por %p19020_p4, %p19019_p5 }
  0x37   : > { %p19015_p2 = pneg %p19014_p0 }
  0x39   : > { %p19022_p9 = pnand %p19021_p7, %p19015_p2 }
  0x3b   : > { %19025 = shalt.err (!%p19022_p9)
}
  0x3c   : > { %s23121_s23 = smov 64   ;;  %s23122_s19 = smov 4  }
  0x3d   : > { %18515 = dma.hbm_to_vmem [thread:$0]  (!%p19805_p6), %s23312_s1, 2048, %s19794_s22, [#allocation8], %s23121_s23, %s23121_s23, %s23122_s19  }
  0x3e   : > { %s23314_s30 = sld [smem:[#allocation113_spill]] }
  0x44   : > { %s23315_s18 = smov %s23314_s30  ;;  %s19026_s0 = scalar_lea.hbm %s23314_s30, 9216 }
  0x45   : > { %p19027_p4 = scmp.ne.s32.totalorder %s23315_s18, %s19026_s0  ;;  %p19033_p12 = scmp.lt.u32.totalorder %s19026_s0, %s23315_s18 }
  0x47   : > { %p19029_p10 = pnand %p19027_p4, %p19821_p8 }
  0x49   : > { %p19030_p11 = pneg %p19029_p10 }
  0x4b   : > { %p19035_p13 = pnand %p19033_p12, %p19030_p11 }
  0x4d   : > { %19038 = shalt.err (!%p19035_p13)
}
  0x4e   : > { %s19039_s22 = scalar_lea.vmem %s19809_s25, 9216  ;;  %p19047_p7 = scmp.lt.s32.totalorder %s19809_s25, %s19809_s25 }
  0x4f   : > { %p19040_p0 = scmp.ne.s32.totalorder %s19809_s25, %s19039_s22  ;;  %p19048_p9 = scmp.lt.s32.totalorder %s19039_s22, %s19039_s22 }
  0x51   : > { %p19042_p2 = pnand %p19040_p0, %p19821_p8  ;;  %p19049_p4 = por %p19048_p9, %p19047_p7 }
  0x53   : > { %p19043_p5 = pneg %p19042_p2 }
  0x55   : > { %p19050_p10 = pnand %p19049_p4, %p19043_p5 }
  0x57   : > { %19053 = shalt.err (!%p19050_p10)
}
  0x58   : > { %18521 = dma.hbm_to_vmem [thread:$0]  (!%p19805_p6), %s23315_s18, 9216, %s19809_s25, [#allocation11], %s23121_s23, %s23121_s23, %s23122_s19  }
  0x59   : > { %s23316_s5 = sld [smem:[#allocation115_spill]] }
  0x5f   : > { %s19054_s21 = scalar_lea.hbm %s23316_s5, 4608 }
  0x60   : > { %p19055_p11 = scmp.ne.s32.totalorder %s23316_s5, %s19054_s21  ;;  %p19061_p0 = scmp.lt.u32.totalorder %s19054_s21, %s23316_s5 }
  0x62   : > { %p19057_p12 = pnand %p19055_p11, %p19821_p8 }
  0x64   : > { %p19058_p13 = pneg %p19057_p12 }
  0x66   : > { %p19063_p2 = pnand %p19061_p0, %p19058_p13 }
  0x68   : > { %19066 = shalt.err (!%p19063_p2)
}
  0x69   : > { %s19067_s25 = scalar_lea.vmem %s19811_s27, 4608  ;;  %p19075_p4 = scmp.lt.s32.totalorder %s19811_s27, %s19811_s27 }
  0x6a   : > { %p19068_p5 = scmp.ne.s32.totalorder %s19811_s27, %s19067_s25  ;;  %p19076_p10 = scmp.lt.s32.totalorder %s19067_s25, %s19067_s25 }
  0x6c   : > { %p19070_p7 = pnand %p19068_p5, %p19821_p8  ;;  %p19077_p11 = por %p19076_p10, %p19075_p4 }
  0x6e   : > { %p19071_p9 = pneg %p19070_p7 }
  0x70   : > { %p19078_p12 = pnand %p19077_p11, %p19071_p9 }
  0x72   : > { %19081 = shalt.err (!%p19078_p12)
}
  0x73   : > { %18527 = dma.hbm_to_vmem [thread:$0]  (!%p19805_p6), %s23316_s5, 4608, %s19811_s27, [#allocation14], %s23121_s23, %s23121_s23, %s23122_s19  }
  0x74   : > { %s19641_s14 = smov [#allocation16]   ;;  %s19642_s30 = smov [#allocation19]  }
  0x75   : > { %s565_s16 = sshll.u32 %s19641_s14, 4  ;;  %s589_s20 = sshll.u32 %s19642_s30, 4  ;;  %s566_s16 = int_to_ptr.vmem [resolvable:$true] %s565_s16  ;;  %s590_s20 = int_to_ptr.vmem [resolvable:$true] %s589_s20 }
  0x76   : > { %s19082_s28 = scalar_lea.hbm %s23090_s7, 4608 }
  0x77   : > { %p19083_p13 = scmp.ne.s32.totalorder %s23090_s7, %s19082_s28  ;;  %p19089_p5 = scmp.lt.u32.totalorder %s19082_s28, %s23090_s7 }
  0x79   : > { %p19085_p0 = pnand %p19083_p13, %p19821_p8 }
  0x7b   : > { %p19086_p2 = pneg %p19085_p0 }
  0x7d   : > { %p19091_p7 = pnand %p19089_p5, %p19086_p2 }
  0x7f   : > { %19094 = shalt.err (!%p19091_p7)
}
  0x80   : > { %s19095_s27 = scalar_lea.vmem %s566_s16, 4608  ;;  %p19103_p11 = scmp.lt.s32.totalorder %s566_s16, %s566_s16 }
  0x81   : > { %p19096_p9 = scmp.ne.s32.totalorder %s566_s16, %s19095_s27  ;;  %p19104_p12 = scmp.lt.s32.totalorder %s19095_s27, %s19095_s27 }
  0x83   : > { %p19098_p4 = pnand %p19096_p9, %p19821_p8  ;;  %p19105_p1 = por %p19104_p12, %p19103_p11 }
  0x85   : > { %p19099_p10 = pneg %p19098_p4 }
  0x87   : > { %p19106_p3 = pnand %p19105_p1, %p19099_p10 }
  0x89   : > { %19109 = shalt.err (!%p19106_p3)
}
  0x8a   : > { %18533 = dma.hbm_to_vmem [thread:$0]  (!%p19805_p6), %s23090_s7, 4608, %s566_s16, [#allocation17], %s23121_s23, %s23121_s23, %s23122_s19  }
  0x8b   : > { %s19110_s2 = scalar_lea.hbm %s23092_s9, 1024 }
  0x8c   : > { %p19111_p1 = scmp.ne.s32.totalorder %s23092_s9, %s19110_s2  ;;  %p19117_p0 = scmp.lt.u32.totalorder %s19110_s2, %s23092_s9 }
  0x8e   : > { %p19113_p3 = pnand %p19111_p1, %p19821_p8 }
  0x90   : > { %p19114_p13 = pneg %p19113_p3 }
  0x92   : > { %p19119_p2 = pnand %p19117_p0, %p19114_p13 }
  0x94   : > { %19122 = shalt.err (!%p19119_p2)
}
  0x95   : > { %s19123_s0 = scalar_lea.vmem %s590_s20, 1024  ;;  %p19131_p4 = scmp.lt.s32.totalorder %s590_s20, %s590_s20 }
  0x96   : > { %p19124_p5 = scmp.ne.s32.totalorder %s590_s20, %s19123_s0  ;;  %p19132_p10 = scmp.lt.s32.totalorder %s19123_s0, %s19123_s0 }
  0x98   : > { %p19126_p7 = pnand %p19124_p5, %p19821_p8  ;;  %p19133_p11 = por %p19132_p10, %p19131_p4 }
  0x9a   : > { %p19127_p9 = pneg %p19126_p7 }
  0x9c   : > { %p19134_p12 = pnand %p19133_p11, %p19127_p9 }
  0x9e   : > { %19137 = shalt.err (!%p19134_p12)
}
  0x9f   : > { %s23124_s16 = smov 128   ;;  %s23127_s27 = smov 8  }
  0xa0   : > { %18539 = dma.hbm_to_vmem [thread:$0]  (!%p19805_p6), %s23092_s9, 1024, %s590_s20, [#allocation20], %s23124_s16, %s23124_s16, %s23127_s27  }
  0xa1   : > { %s19645_s30 = smov [#allocation22]   ;;  %s19646_s2 = smov [#allocation25]  }
  0xa2   : > { %s616_s21 = sshll.u32 %s19645_s30, 4  ;;  %s639_s28 = sshll.u32 %s19646_s2, 4  ;;  %s617_s21 = int_to_ptr.vmem [resolvable:$true] %s616_s21  ;;  %s640_s28 = int_to_ptr.vmem [resolvable:$true] %s639_s28 }
  0xa3   : > { %s19138_s25 = scalar_lea.hbm %s23094_s11, 16 }
  0xa4   : > { %p19139_p1 = scmp.ne.s32.totalorder %s23094_s11, %s19138_s25  ;;  %p19145_p0 = scmp.lt.u32.totalorder %s19138_s25, %s23094_s11 }
  0xa6   : > { %p19141_p3 = pnand %p19139_p1, %p19821_p8 }
  0xa8   : > { %p19142_p13 = pneg %p19141_p3 }
  0xaa   : > { %p19147_p2 = pnand %p19145_p0, %p19142_p13 }
  0xac   : > { %19150 = shalt.err (!%p19147_p2)
}
  0xad   : > { %s19151_s20 = scalar_lea.vmem %s617_s21, 16  ;;  %s19158_s22 = scalar_lea.vmem %s617_s21, 32 }
  0xae   : > { %p19152_p5 = scmp.ne.s32.totalorder %s617_s21, %s19151_s20  ;;  %p19159_p4 = scmp.lt.s32.totalorder %s617_s21, %s617_s21 }
  0xaf   : > { %p19160_p10 = scmp.lt.s32.totalorder %s19158_s22, %s19151_s20 }
  0xb0   : > { %p19154_p7 = pnand %p19152_p5, %p19821_p8 }
  0xb1   : > { %p19161_p11 = por %p19160_p10, %p19159_p4 }
  0xb2   : > { %p19155_p9 = pneg %p19154_p7 }
  0xb4   : > { %p19162_p12 = pnand %p19161_p11, %p19155_p9 }
  0xb6   : > { %19165 = shalt.err (!%p19162_p12)
}
  0xb7   : > { %18545 = dma.hbm_to_vmem [thread:$0]  (!%p19805_p6), %s23094_s11, 16, %s617_s21, [#allocation23]  }
  0xb8   : > { %s19166_s30 = scalar_lea.hbm %s23096_s13, 1024 }
  0xb9   : > { %p19167_p1 = scmp.ne.s32.totalorder %s23096_s13, %s19166_s30  ;;  %p19173_p0 = scmp.lt.u32.totalorder %s19166_s30, %s23096_s13 }
  0xbb   : > { %p19169_p3 = pnand %p19167_p1, %p19821_p8 }
  0xbd   : > { %p19170_p13 = pneg %p19169_p3 }
  0xbf   : > { %p19175_p2 = pnand %p19173_p0, %p19170_p13 }
  0xc1   : > { %19178 = shalt.err (!%p19175_p2)
}
  0xc2   : > { %s19179_s0 = scalar_lea.vmem %s640_s28, 1024  ;;  %p19187_p4 = scmp.lt.s32.totalorder %s640_s28, %s640_s28 }
  0xc3   : > { %p19180_p5 = scmp.ne.s32.totalorder %s640_s28, %s19179_s0  ;;  %p19188_p10 = scmp.lt.s32.totalorder %s19179_s0, %s19179_s0 }
  0xc5   : > { %p19182_p7 = pnand %p19180_p5, %p19821_p8  ;;  %p19189_p11 = por %p19188_p10, %p19187_p4 }
  0xc7   : > { %p19183_p9 = pneg %p19182_p7 }
  0xc9   : > { %p19190_p12 = pnand %p19189_p11, %p19183_p9 }
  0xcb   : > { %19193 = shalt.err (!%p19190_p12)
}
  0xcc   : > { %18551 = dma.hbm_to_vmem [thread:$0]  (!%p19805_p6), %s23096_s13, 1024, %s640_s28, [#allocation26], %s23124_s16, %s23124_s16, %s23127_s27  }
  0xcd   : > { %s19647_s22 = smov [#allocation28]   ;;  %s19648_s14 = smov [#allocation31]  }
  0xce   : > { %s664_s23 = sshll.u32 %s19647_s22, 4  ;;  %s686_s1 = sshll.u32 %s19648_s14, 4  ;;  %s665_s23 = int_to_ptr.vmem [resolvable:$true] %s664_s23  ;;  %s687_s1 = int_to_ptr.vmem [resolvable:$true] %s686_s1 }
  0xcf   : > { %s19194_s2 = scalar_lea.hbm %s23098_s15, 128 }
  0xd0   : > { %p19195_p1 = scmp.ne.s32.totalorder %s23098_s15, %s19194_s2  ;;  %p19201_p0 = scmp.lt.u32.totalorder %s19194_s2, %s23098_s15 }
  0xd2   : > { %p19197_p3 = pnand %p19195_p1, %p19821_p8 }
  0xd4   : > { %p19198_p13 = pneg %p19197_p3 }
  0xd6   : > { %p19203_p2 = pnand %p19201_p0, %p19198_p13 }
  0xd8   : > { %19206 = shalt.err (!%p19203_p2)
}
  0xd9   : > { %s19207_s28 = scalar_lea.vmem %s665_s23, 128  ;;  %p19215_p4 = scmp.lt.s32.totalorder %s665_s23, %s665_s23 }
  0xda   : > { %p19208_p5 = scmp.ne.s32.totalorder %s665_s23, %s19207_s28  ;;  %p19216_p10 = scmp.lt.s32.totalorder %s19207_s28, %s19207_s28 }
  0xdc   : > { %p19210_p7 = pnand %p19208_p5, %p19821_p8  ;;  %p19217_p11 = por %p19216_p10, %p19215_p4 }
  0xde   : > { %p19211_p9 = pneg %p19210_p7 }
  0xe0   : > { %p19218_p12 = pnand %p19217_p11, %p19211_p9 }
  0xe2   : > { %19221 = shalt.err (!%p19218_p12)
}
  0xe3   : > { %18557 = dma.hbm_to_vmem [thread:$0]  (!%p19805_p6), %s23098_s15, 128, %s665_s23, [#allocation29]  }
  0xe4   : > { %s19222_s19 = scalar_lea.hbm %s23100_s17, 128 }
  0xe5   : > { %p19223_p1 = scmp.ne.s32.totalorder %s23100_s17, %s19222_s19  ;;  %p19229_p0 = scmp.lt.u32.totalorder %s19222_s19, %s23100_s17 }
  0xe7   : > { %p19225_p3 = pnand %p19223_p1, %p19821_p8 }
  0xe9   : > { %p19226_p13 = pneg %p19225_p3 }
  0xeb   : > { %p19231_p2 = pnand %p19229_p0, %p19226_p13 }
  0xed   : > { %19234 = shalt.err (!%p19231_p2)
}
  0xee   : > { %s19235_s25 = scalar_lea.vmem %s687_s1, 128  ;;  %p19243_p4 = scmp.lt.s32.totalorder %s687_s1, %s687_s1 }
  0xef   : > { %p19236_p5 = scmp.ne.s32.totalorder %s687_s1, %s19235_s25  ;;  %p19244_p10 = scmp.lt.s32.totalorder %s19235_s25, %s19235_s25 }
  0xf1   : > { %p19238_p7 = pnand %p19236_p5, %p19821_p8  ;;  %p19245_p11 = por %p19244_p10, %p19243_p4 }
  0xf3   : > { %p19239_p9 = pneg %p19238_p7 }
  0xf5   : > { %p19246_p12 = pnand %p19245_p11, %p19239_p9 }
  0xf7   : > { %19249 = shalt.err (!%p19246_p12)
}
  0xf8   : > { %18563 = dma.hbm_to_vmem [thread:$0]  (!%p19805_p6), %s23100_s17, 128, %s687_s1, [#allocation32]  }
  0xf9   : > { %s19649_s28 = smov [#allocation9]   ;;  %s19650_s20 = smov [#allocation12]  }
  0xfa   : > { %s504_s21 = sshll.u32 %s19649_s28, 4  ;;  %s531_s22 = sshll.u32 %s19650_s20, 4  ;;  %s505_s21 = int_to_ptr.vmem [resolvable:$true] %s504_s21  ;;  %s532_s22 = int_to_ptr.vmem [resolvable:$true] %s531_s22 }
  0xfb   : > { %s23317_s30 = sld [smem:[#allocation112_spill]] }
 0x101   : > { %s23318_s2 = smov %s23317_s30  ;;  %s19250_s29 = scalar_lea.hbm %s23317_s30, 2048 }
 0x102   : > { %p19251_p1 = scmp.ne.s32.totalorder %s23318_s2, %s19250_s29  ;;  %p19257_p0 = scmp.lt.u32.totalorder %s19250_s29, %s23318_s2 }
 0x104   : > { %p19253_p3 = pnand %p19251_p1, %p19821_p8 }
 0x106   : > { %p19254_p13 = pneg %p19253_p3 }
 0x108   : > { %p19259_p2 = pnand %p19257_p0, %p19254_p13 }
 0x10a   : > { %19262 = shalt.err (!%p19259_p2)
}
 0x10b   : > { %s19263_s1 = scalar_lea.vmem %s505_s21, 2048  ;;  %p19271_p4 = scmp.lt.s32.totalorder %s505_s21, %s505_s21 }
 0x10c   : > { %p19264_p5 = scmp.ne.s32.totalorder %s505_s21, %s19263_s1  ;;  %p19272_p10 = scmp.lt.s32.totalorder %s19263_s1, %s19263_s1 }
 0x10e   : > { %p19266_p7 = pnand %p19264_p5, %p19821_p8  ;;  %p19273_p11 = por %p19272_p10, %p19271_p4 }
 0x110   : > { %p19267_p9 = pneg %p19266_p7 }
 0x112   : > { %p19274_p12 = pnand %p19273_p11, %p19267_p9 }
 0x114   : > { %19277 = shalt.err (!%p19274_p12)
}
 0x115   : > { %s23319_s0 = smov 4   ;;  %s23320_s28 = smov 64  }
 0x116   : > { %18518 = dma.hbm_to_vmem [thread:$0]  (!%p19805_p6), %s23318_s2, 2048, %s505_s21, [#allocation8], %s23320_s28, %s23320_s28, %s23319_s0  }
 0x117   : > { %s23321_s4 = sld [smem:[#allocation114_spill]] }
 0x11d   : > { %s19278_s30 = scalar_lea.hbm %s23321_s4, 16 }
 0x11e   : > { %p19279_p1 = scmp.ne.s32.totalorder %s23321_s4, %s19278_s30  ;;  %p19285_p0 = scmp.lt.u32.totalorder %s19278_s30, %s23321_s4 }
 0x120   : > { %p19281_p3 = pnand %p19279_p1, %p19821_p8 }
 0x122   : > { %p19282_p13 = pneg %p19281_p3 }
 0x124   : > { %p19287_p2 = pnand %p19285_p0, %p19282_p13 }
 0x126   : > { %19290 = shalt.err (!%p19287_p2)
}
 0x127   : > { %s19291_s1 = scalar_lea.vmem %s532_s22, 16  ;;  %s19298_s21 = scalar_lea.vmem %s532_s22, 32 }
 0x128   : > { %p19292_p5 = scmp.ne.s32.totalorder %s532_s22, %s19291_s1  ;;  %p19299_p4 = scmp.lt.s32.totalorder %s532_s22, %s532_s22 }
 0x129   : > { %p19300_p10 = scmp.lt.s32.totalorder %s19298_s21, %s19291_s1 }
 0x12a   : > { %p19294_p7 = pnand %p19292_p5, %p19821_p8 }
 0x12b   : > { %p19301_p11 = por %p19300_p10, %p19299_p4 }
 0x12c   : > { %p19295_p9 = pneg %p19294_p7 }
 0x12e   : > { %p19302_p12 = pnand %p19301_p11, %p19295_p9 }
 0x130   : > { %19305 = shalt.err (!%p19302_p12)
}
 0x131   : > { %18524 = dma.hbm_to_vmem [thread:$0]  (!%p19805_p6), %s23321_s4, 16, %s532_s22, [#allocation11]  }
 0x132   : > { %s19651_s16 = smov [#allocation15]   ;;  %s19652_s14 = smov [#allocation18]  }
 0x133   : > { %s555_s20 = sshll.u32 %s19651_s16, 4  ;;  %s579_s19 = sshll.u32 %s19652_s14, 4  ;;  %s556_s20 = int_to_ptr.vmem [resolvable:$true] %s555_s20  ;;  %s580_s19 = int_to_ptr.vmem [resolvable:$true] %s579_s19 }
 0x134   : > { %s23322_s6 = sld [smem:[#allocation116_spill]] }
 0x13a   : > { %s19306_s26 = scalar_lea.hbm %s23322_s6, 16 }
 0x13b   : > { %p19307_p1 = scmp.ne.s32.totalorder %s23322_s6, %s19306_s26  ;;  %p19313_p0 = scmp.lt.u32.totalorder %s19306_s26, %s23322_s6 }
 0x13d   : > { %p19309_p3 = pnand %p19307_p1, %p19821_p8 }
 0x13f   : > { %p19310_p13 = pneg %p19309_p3 }
 0x141   : > { %p19315_p2 = pnand %p19313_p0, %p19310_p13 }
 0x143   : > { %19318 = shalt.err (!%p19315_p2)
}
 0x144   : > { %s19319_s22 = scalar_lea.vmem %s556_s20, 16  ;;  %s19326_s0 = scalar_lea.vmem %s556_s20, 32 }
 0x145   : > { %p19320_p5 = scmp.ne.s32.totalorder %s556_s20, %s19319_s22  ;;  %p19327_p4 = scmp.lt.s32.totalorder %s556_s20, %s556_s20 }
 0x146   : > { %p19328_p10 = scmp.lt.s32.totalorder %s19326_s0, %s19319_s22 }
 0x147   : > { %p19322_p7 = pnand %p19320_p5, %p19821_p8 }
 0x148   : > { %p19329_p11 = por %p19328_p10, %p19327_p4 }
 0x149   : > { %p19323_p9 = pneg %p19322_p7 }
 0x14b   : > { %p19330_p12 = pnand %p19329_p11, %p19323_p9 }
 0x14d   : > { %19333 = shalt.err (!%p19330_p12)
}
 0x14e   : > { %18530 = dma.hbm_to_vmem [thread:$0]  (!%p19805_p6), %s23322_s6, 16, %s556_s20, [#allocation14]  }
 0x14f   : > { %s19334_s29 = scalar_lea.hbm %s23091_s8, 16 }
 0x150   : > { %p19335_p1 = scmp.ne.s32.totalorder %s23091_s8, %s19334_s29  ;;  %p19341_p0 = scmp.lt.u32.totalorder %s19334_s29, %s23091_s8 }
 0x152   : > { %p19337_p3 = pnand %p19335_p1, %p19821_p8 }
 0x154   : > { %p19338_p13 = pneg %p19337_p3 }
 0x156   : > { %p19343_p2 = pnand %p19341_p0, %p19338_p13 }
 0x158   : > { %19346 = shalt.err (!%p19343_p2)
}
 0x159   : > { %s19347_s21 = scalar_lea.vmem %s580_s19, 16  ;;  %s19354_s20 = scalar_lea.vmem %s580_s19, 32 }
 0x15a   : > { %p19348_p5 = scmp.ne.s32.totalorder %s580_s19, %s19347_s21  ;;  %p19355_p4 = scmp.lt.s32.totalorder %s580_s19, %s580_s19 }
 0x15b   : > { %p19356_p10 = scmp.lt.s32.totalorder %s19354_s20, %s19347_s21 }
 0x15c   : > { %p19350_p7 = pnand %p19348_p5, %p19821_p8 }
 0x15d   : > { %p19357_p11 = por %p19356_p10, %p19355_p4 }
 0x15e   : > { %p19351_p9 = pneg %p19350_p7 }
 0x160   : > { %p19358_p12 = pnand %p19357_p11, %p19351_p9 }
 0x162   : > { %19361 = shalt.err (!%p19358_p12)
}
 0x163   : > { %18536 = dma.hbm_to_vmem [thread:$0]  (!%p19805_p6), %s23091_s8, 16, %s580_s19, [#allocation17]  }
 0x164   : > { %s19653_s28 = smov [#allocation21]   ;;  %s19654_s14 = smov [#allocation24]  }
 0x165   : > { %s602_s16 = sshll.u32 %s19653_s28, 4  ;;  %s626_s30 = sshll.u32 %s19654_s14, 4  ;;  %s603_s16 = int_to_ptr.vmem [resolvable:$true] %s602_s16  ;;  %s627_s30 = int_to_ptr.vmem [resolvable:$true] %s626_s30 }
 0x166   : > { %s19362_s25 = scalar_lea.hbm %s23093_s10, 1024 }
 0x167   : > { %p19363_p1 = scmp.ne.s32.totalorder %s23093_s10, %s19362_s25  ;;  %p19369_p0 = scmp.lt.u32.totalorder %s19362_s25, %s23093_s10 }
 0x169   : > { %p19365_p3 = pnand %p19363_p1, %p19821_p8 }
 0x16b   : > { %p19366_p13 = pneg %p19365_p3 }
 0x16d   : > { %p19371_p2 = pnand %p19369_p0, %p19366_p13 }
 0x16f   : > { %19374 = shalt.err (!%p19371_p2)
}
 0x170   : > { %s19375_s19 = scalar_lea.vmem %s603_s16, 1024  ;;  %p19383_p4 = scmp.lt.s32.totalorder %s603_s16, %s603_s16 }
 0x171   : > { %p19376_p5 = scmp.ne.s32.totalorder %s603_s16, %s19375_s19  ;;  %p19384_p10 = scmp.lt.s32.totalorder %s19375_s19, %s19375_s19 }
 0x173   : > { %p19378_p7 = pnand %p19376_p5, %p19821_p8  ;;  %p19385_p11 = por %p19384_p10, %p19383_p4 }
 0x175   : > { %p19379_p9 = pneg %p19378_p7 }
 0x177   : > { %p19386_p12 = pnand %p19385_p11, %p19379_p9 }
 0x179   : > { %19389 = shalt.err (!%p19386_p12)
}
 0x17a   : > { %s23323_s22 = smov 128   ;;  %s19390_s26 = scalar_lea.hbm %s23095_s12, 1024 }
 0x17b   : > { %18542 = dma.hbm_to_vmem [thread:$0]  (!%p19805_p6), %s23093_s10, 1024, %s603_s16, [#allocation20], %s23323_s22, %s23323_s22, %s23127_s27  }
 0x17c   : > { %p19391_p1 = scmp.ne.s32.totalorder %s23095_s12, %s19390_s26  ;;  %p19397_p0 = scmp.lt.u32.totalorder %s19390_s26, %s23095_s12 }
 0x17e   : > { %p19393_p3 = pnand %p19391_p1, %p19821_p8 }
 0x180   : > { %p19394_p13 = pneg %p19393_p3 }
 0x182   : > { %p19399_p2 = pnand %p19397_p0, %p19394_p13 }
 0x184   : > { %19402 = shalt.err (!%p19399_p2)
}
 0x185   : > { %s19403_s20 = scalar_lea.vmem %s627_s30, 1024  ;;  %p19411_p4 = scmp.lt.s32.totalorder %s627_s30, %s627_s30 }
 0x186   : > { %p19404_p5 = scmp.ne.s32.totalorder %s627_s30, %s19403_s20  ;;  %p19412_p10 = scmp.lt.s32.totalorder %s19403_s20, %s19403_s20 }
 0x188   : > { %p19406_p7 = pnand %p19404_p5, %p19821_p8  ;;  %p19413_p11 = por %p19412_p10, %p19411_p4 }
 0x18a   : > { %p19407_p9 = pneg %p19406_p7 }
 0x18c   : > { %p19414_p12 = pnand %p19413_p11, %p19407_p9 }
 0x18e   : > { %19417 = shalt.err (!%p19414_p12)
}
 0x18f   : > { %18548 = dma.hbm_to_vmem [thread:$0]  (!%p19805_p6), %s23095_s12, 1024, %s627_s30, [#allocation23], %s23323_s22, %s23323_s22, %s23127_s27  }
 0x190   : > { %s19655_s0 = smov [#allocation27]   ;;  %s19656_s14 = smov [#allocation30]  }
 0x191   : > { %s653_s28 = sshll.u32 %s19655_s0, 4  ;;  %s675_s29 = sshll.u32 %s19656_s14, 4  ;;  %s654_s28 = int_to_ptr.vmem [resolvable:$true] %s653_s28  ;;  %s676_s29 = int_to_ptr.vmem [resolvable:$true] %s675_s29 }
 0x192   : > { %s23324_s23 = sld [smem:[#allocation117_spill]] }
 0x198   : > { %s19418_s1 = scalar_lea.hbm %s23324_s23, 16 }
 0x199   : > { %p19419_p1 = scmp.ne.s32.totalorder %s23324_s23, %s19418_s1  ;;  %p19425_p0 = scmp.lt.u32.totalorder %s19418_s1, %s23324_s23 }
 0x19b   : > { %p19421_p3 = pnand %p19419_p1, %p19821_p8 }
 0x19d   : > { %p19422_p13 = pneg %p19421_p3 }
 0x19f   : > { %p19427_p2 = pnand %p19425_p0, %p19422_p13 }
 0x1a1   : > { %19430 = shalt.err (!%p19427_p2)
}
 0x1a2   : > { %s19431_s30 = scalar_lea.vmem %s654_s28, 16  ;;  %s19438_s19 = scalar_lea.vmem %s654_s28, 32 }
 0x1a3   : > { %p19432_p5 = scmp.ne.s32.totalorder %s654_s28, %s19431_s30  ;;  %p19439_p4 = scmp.lt.s32.totalorder %s654_s28, %s654_s28 }
 0x1a4   : > { %p19440_p10 = scmp.lt.s32.totalorder %s19438_s19, %s19431_s30 }
 0x1a5   : > { %p19434_p7 = pnand %p19432_p5, %p19821_p8 }
 0x1a6   : > { %p19441_p11 = por %p19440_p10, %p19439_p4 }
 0x1a7   : > { %p19435_p9 = pneg %p19434_p7 }
 0x1a9   : > { %p19442_p12 = pnand %p19441_p11, %p19435_p9 }
 0x1ab   : > { %19445 = shalt.err (!%p19442_p12)
}
 0x1ac   : > { %18554 = dma.hbm_to_vmem [thread:$0]  (!%p19805_p6), %s23324_s23, 16, %s654_s28, [#allocation26]  }
 0x1ad   : > { %s23325_s25 = sld [smem:[#allocation118_spill]] }
 0x1b3   : > { %s19446_s1 = scalar_lea.hbm %s23325_s25, 16 }
 0x1b4   : > { %p19447_p1 = scmp.ne.s32.totalorder %s23325_s25, %s19446_s1  ;;  %p19453_p0 = scmp.lt.u32.totalorder %s19446_s1, %s23325_s25 }
 0x1b6   : > { %p19449_p3 = pnand %p19447_p1, %p19821_p8 }
 0x1b8   : > { %p19450_p13 = pneg %p19449_p3 }
 0x1ba   : > { %p19455_p2 = pnand %p19453_p0, %p19450_p13 }
 0x1bc   : > { %19458 = shalt.err (!%p19455_p2)
}
 0x1bd   : > { %s19459_s19 = scalar_lea.vmem %s676_s29, 16  ;;  %s19466_s28 = scalar_lea.vmem %s676_s29, 32 }
 0x1be   : > { %p19460_p5 = scmp.ne.s32.totalorder %s676_s29, %s19459_s19  ;;  %p19467_p4 = scmp.lt.s32.totalorder %s676_s29, %s676_s29 }
 0x1bf   : > { %p19468_p10 = scmp.lt.s32.totalorder %s19466_s28, %s19459_s19 }
 0x1c0   : > { %p19462_p7 = pnand %p19460_p5, %p19821_p8 }
 0x1c1   : > { %p19469_p11 = por %p19468_p10, %p19467_p4 }
 0x1c2   : > { %p19463_p9 = pneg %p19462_p7 }
 0x1c4   : > { %p19470_p12 = pnand %p19469_p11, %p19463_p9 }
 0x1c6   : > { %19473 = shalt.err (!%p19470_p12)
}
 0x1c7   : > { %18560 = dma.hbm_to_vmem [thread:$0]  (!%p19805_p6), %s23325_s25, 16, %s676_s29, [#allocation29]  }
 0x1c8   : > { %s19657_s2 = smov [#allocation33]   ;;  %s23326_s20 = sld [smem:[#allocation119_spill]] }
 0x1c9   : > { %s697_s26 = sshll.u32 %s19657_s2, 4  ;;  %s698_s26 = int_to_ptr.vmem [resolvable:$true] %s697_s26 }
 0x1ce   : > { %s23327_s16 = smov %s23326_s20  ;;  %s19474_s30 = scalar_lea.hbm %s23326_s20, 16 }
 0x1cf   : > { %p19475_p1 = scmp.ne.s32.totalorder %s23327_s16, %s19474_s30  ;;  %p19481_p0 = scmp.lt.u32.totalorder %s19474_s30, %s23327_s16 }
 0x1d1   : > { %p19477_p3 = pnand %p19475_p1, %p19821_p8 }
 0x1d3   : > { %p19478_p13 = pneg %p19477_p3 }
 0x1d5   : > { %p19483_p2 = pnand %p19481_p0, %p19478_p13 }
 0x1d7   : > { %19486 = shalt.err (!%p19483_p2)
}
 0x1d8   : > { %s19487_s29 = scalar_lea.vmem %s698_s26, 16  ;;  %s19494_s0 = scalar_lea.vmem %s698_s26, 32 }
 0x1d9   : > { %p19488_p5 = scmp.ne.s32.totalorder %s698_s26, %s19487_s29  ;;  %p19495_p4 = scmp.lt.s32.totalorder %s698_s26, %s698_s26 }
 0x1da   : > { %p19496_p10 = scmp.lt.s32.totalorder %s19494_s0, %s19487_s29 }
 0x1db   : > { %p19490_p7 = pnand %p19488_p5, %p19821_p8 }
 0x1dc   : > { %p19497_p11 = por %p19496_p10, %p19495_p4 }
 0x1dd   : > { %p19491_p9 = pneg %p19490_p7 }
 0x1df   : > { %p19498_p12 = pnand %p19497_p11, %p19491_p9 }
 0x1e1   : > { %19501 = shalt.err (!%p19498_p12)
}
 0x1e2   : > { %s23328_s14 = sld [smem:[#allocation49_spill]]  ;;  %s23329_s2 = sld [smem:[#allocation48_spill]] }
 0x1e3   : > { %s23330_s1 = sld [smem:[#allocation47_spill]]  ;;  %s23331_s24 = sld [smem:[#allocation46_spill]] }
 0x1e4   : > { %s23332_s21 = sld [smem:[#allocation50_spill]]  ;;  %s23338_s5 = sld [smem:[#allocation110_spill]] }
 0x1e5   : > { %18566 = dma.hbm_to_vmem [thread:$0]  (!%p19805_p6), %s23327_s16, 16, %s698_s26, [#allocation32]  }
 0x1e8   : > { %s14800_s20 = sadd.s32 4294967294, %s23328_s14   ;;  %s20187_s3 = sadd.s32 1, %s23328_s14  }
 0x1e9   : > { %s48_s30 = ssub.s32 %s23328_s14, %s20187_s3  ;;  %s51_s19 = sadd.s32 1, %s23329_s2 }
 0x1ea   : > { %p49_p8 = scmp.eq.s32.totalorder %s48_s30, 0  ;;  %p58_p1 = scmp.ne.s32.totalorder %s23329_s2, %s23330_s1 }
 0x1eb   : > { %p59_p3 = scmp.eq.s32.totalorder %s23328_s14, 0  ;;  %p64_p13 = scmp.ne.s32.totalorder %s23330_s1, %s23331_s24 }
 0x1ec   : > { %s20198_s28 = scalar_select %p49_p8, %s23329_s2, %s51_s19  }
 0x1ed   : > { %p20200_p0 = por %p59_p3, %p58_p1  ;;  %p23334_p2 = scmp.eq.s32.totalorder %s23332_s21, 0 }
 0x1ee   : > { %p466_p5 = scmp.eq.s32.totalorder %s23332_s21, 1  ;;  %p472_p7 = scmp.eq.s32.totalorder %s14800_s20, 1 }
 0x1ef   : > { %p20206_p6 = por %p23334_p2, %p64_p13  ;;  %p18593_p9 = scmp.lt.s32.totalorder %s23328_s14, 2 }
 0x1f0   : > { %s708_s0 = sand.u32 1, %s23329_s2   ;;  %p20213_p4 = por %p466_p5, %p58_p1 }
 0x1f1   : > { %p20217_p10 = por %p472_p7, %p64_p13  ;;  %s14821_s1 = sshll.u32 %s708_s0, 8 }
 0x1f2   : > { %s23336_s4 = scalar_select %p20213_p4, 1, 0 }
 0x1f3   : > { %s23337_s27 = scalar_select %p20217_p10, 1, 0 }
 0x1f4   : > { %s15444_s24 = sshll.u32 %s23328_s14, 12  ;;  %s712_s2 = scalar_lea.vmem [#allocation4], %s14821_s1 }
 0x1f5   : > { %s20225_s6 = scalar_lea.hbm %s23338_s5, %s15444_s24  ;;  %s719_s21 = sshll.u32 %s712_s2, 4  ;;  %s20227_s21 = int_to_ptr.vmem [resolvable:$true] %s719_s21 }
 0x1f6   : > { %p20231_p11 = pnand %p18593_p9, %p20200_p0  ;;  %s20235_s14 = scalar_lea.sflag [#allocation5], %s708_s0 }
 0x1f7   : > { %s19502_s30 = scalar_lea.hbm %s20225_s6, 4096  ;;  %s19507_s29 = scalar_lea.hbm %s23338_s5, 8192 }
 0x1f8   : > { %p19503_p12 = scmp.ne.s32.totalorder %s20225_s6, %s19502_s30  ;;  %p19504_p8 = pneg %p20231_p11 }
 0x1f9   : > { %p19508_p13 = scmp.lt.u32.totalorder %s20225_s6, %s23338_s5  ;;  %p19509_p0 = scmp.lt.u32.totalorder %s19507_s29, %s19502_s30 }
 0x1fa   : > { %p19505_p1 = pnand %p19504_p8, %p19503_p12  ;;  %p19511_p5 = scmp.lt.u32.totalorder %s19502_s30, %s20225_s6 }
 0x1fb   : > { %p19510_p2 = por %p19509_p0, %p19508_p13 }
 0x1fc   : > { %p19506_p3 = pneg %p19505_p1 }
 0x1fd   : > { %p19512_p7 = por %p19511_p5, %p19510_p2 }
 0x1ff   : > { %p19513_p9 = pnand %p19512_p7, %p19506_p3 }
 0x201   : > { %19516 = shalt.err (!%p19513_p9)
}
 0x202   : > { %s19517_s0 = scalar_lea.vmem %s20227_s21, 4096  ;;  %s19658_s1 = smov [#allocation4]  }
 0x203   : > { %p19518_p12 = scmp.ne.s32.totalorder %s20227_s21, %s19517_s0  ;;  %s19522_s24 = sshll.u32 %s19658_s1, 4  ;;  %s19523_s24 = int_to_ptr.vmem [resolvable:$false] %s19522_s24 }
 0x204   : > { %s19524_s19 = scalar_lea.vmem %s19523_s24, 8192  ;;  %p19525_p4 = scmp.lt.s32.totalorder %s20227_s21, %s19523_s24 }
 0x205   : > { %p19520_p1 = pnand %p19518_p12, %p19504_p8  ;;  %p19526_p13 = scmp.lt.s32.totalorder %s19524_s19, %s19517_s0 }
 0x207   : > { %p19521_p10 = pneg %p19520_p1  ;;  %p19527_p0 = por %p19526_p13, %p19525_p4 }
 0x209   : > { %p19528_p2 = pnand %p19527_p0, %p19521_p10 }
 0x20b   : > { %19531 = shalt.err (!%p19528_p2)
}
 0x20c   : > { %s23340_s30 = smov 8   ;;  %s23341_s29 = sld [smem:[#allocation51_spill]] }
 0x20d   : > { %18570 = dma.hbm_to_vmem [thread:$0]  (!%p20231_p11), %s20225_s6, 4096, %s20227_s21, %s20235_s14, %s23323_s22, %s23323_s22, %s23340_s30  }
 0x212   : > { %p23342_p8 = scmp.ne.s32.totalorder %s23341_s29, 0 }
 0x214   : > { %731 = sbr.rel (%p23342_p8) target bundleno = 4048 (0xfd0), region = 96 }
 0x21b   : > { %s23343_s2 = sld [smem:[#allocation47_spill]] }
 0x221   : > { %s20269_s1 = sand.u32 1, %s23343_s2  }
 0x222   : > { %s14825_s0 = sshll.u32 %s20269_s1, 8  ;;  %s734_s24 = scalar_lea.sflag [#allocation5], %s20269_s1 }
 0x223   : > { %s20275_s20 = scalar_lea.vmem [#allocation4], %s14825_s0 }
 0x224   : > { %19577 = dma.done.wait (%p20206_p6), %s734_s24, 4096  }
 0x225   : > { %19579 = vsyncadd (%p20206_p6), %s734_s24, 4294963200  ;;  %s23344_s6 = sld [smem:[#allocation50_spill]] }
 0x22b   : > { %p23345_p4 = scmp.eq.s32.totalorder %s23344_s6, 0 }
 0x22d   : > { %19581 = dma.done.wait (%p23345_p4), [#allocation8], 4096   ;;  %p23346_p10 = pmov %p23345_p4 }
 0x22e   : > { %p23347_p11 = pmov %p23345_p4 }
 0x22f   : > { %19583 = vsyncadd (%p23346_p10), [#allocation8], 4294963200 }
 0x230   : > { %19585 = dma.done.wait (%p23347_p11), [#allocation11], 9232   ;;  %p23348_p3 = pmov %p23345_p4 }
 0x232   : > { %19587 = vsyncadd (%p23348_p3), [#allocation11], 4294958064  ;;  %p23349_p5 = pmov %p23348_p3 }
 0x233   : > { %p23350_p7 = pmov %p23348_p3 }
 0x234   : > { %19589 = dma.done.wait (%p23349_p5), [#allocation14], 4624  }
 0x235   : > { %19591 = vsyncadd (%p23350_p7), [#allocation14], 4294962672  ;;  %p23351_p6 = pmov %p23348_p3 }
 0x236   : > { %p23352_p9 = pmov %p23348_p3 }
 0x237   : > { %19593 = dma.done.wait (%p23351_p6), [#allocation17], 4624  }
 0x238   : > { %19595 = vsyncadd (%p23352_p9), [#allocation17], 4294962672  ;;  %p23353_p12 = pmov %p23348_p3 }
 0x239   : > { %p23354_p1 = pmov %p23348_p3 }
 0x23a   : > { %19597 = dma.done.wait (%p23353_p12), [#allocation20], 2048  }
 0x23b   : > { %19599 = vsyncadd (%p23354_p1), [#allocation20], 4294965248  ;;  %p23355_p13 = pmov %p23354_p1 }
 0x23c   : > { %p23356_p0 = pmov %p23354_p1 }
 0x23d   : > { %19601 = dma.done.wait (%p23355_p13), [#allocation23], 1040  }
 0x23e   : > { %19603 = vsyncadd (%p23356_p0), [#allocation23], 4294966256  ;;  %p23357_p2 = pmov %p23356_p0 }
 0x23f   : > { %p23358_p8 = pmov %p23356_p0 }
 0x240   : > { %19605 = dma.done.wait (%p23357_p2), [#allocation26], 1040  }
 0x241   : > { %19607 = vsyncadd (%p23358_p8), [#allocation26], 4294966256  ;;  %p23359_p4 = pmov %p23356_p0 }
 0x242   : > { %p23360_p10 = pmov %p23356_p0 }
 0x243   : > { %19609 = dma.done.wait (%p23359_p4), [#allocation29], 144  }
 0x244   : > { %19611 = vsyncadd (%p23360_p10), [#allocation29], 4294967152  ;;  %p23361_p11 = pmov %p23356_p0 }
 0x245   : > { %p23362_p3 = pmov %p23356_p0 }
 0x246   : > { %19613 = dma.done.wait (%p23361_p11), [#allocation32], 144  }
 0x247   : > { %19615 = vsyncadd (%p23362_p3), [#allocation32], 4294967152  ;;  %v19659_v0 = vmov 0   ;;  %v876_v1 = vld [vmem:[#allocation7 + $0x8] sm:$0xf]  ;;  %v18677_v9 = vld [vmem:[#allocation10 + $0x40] sm:$0xff]  }
 0x248   : > { %18676 = vset.pattern.permute.xlu1 %v19659_v0  ;;  %865 = vst [vmem:[#allocation2] sm:$0xff] %v19659_v0  ;;  %866 = vst [vmem:[#allocation2 + $0x8] sm:$0xff] %v19659_v0  ;;  %18675 = vset.pattern.permute.xlu0 %v19659_v0  ;;  %v874_v2 = vld [vmem:[#allocation7] sm:$0xf]  ;;  %v877_v3 = vld [vmem:[#allocation7 + $0xc] sm:$0xf] }
 0x249   : > { %867 = vst [vmem:[#allocation2 + $0x90] sm:$0xff] %v19659_v0  ;;  %868 = vst [vmem:[#allocation2 + $0x98] sm:$0xff] %v19659_v0  ;;  %16172 = vmatprep.mubr.bf16.mxu0 %v19659_v0  ;;  %1045 = vperm.xlu1 %18676, %v876_v1   ;;  %v875_v4 = vld [vmem:[#allocation7 + $0x4] sm:$0xf]  ;;  %v879_v5 = vld [vmem:[#allocation7 + $0x14] sm:$0xf] }
 0x24a   : > { %1021 = vperm.xlu0 %18675, %v874_v2   ;;  %v878_v6 = vld [vmem:[#allocation7 + $0x10] sm:$0xf]  ;;  %v881_v7 = vld [vmem:[#allocation7 + $0x1c] sm:$0xf]  ;;  %v880_v8 = vld [vmem:[#allocation7 + $0x18] sm:$0xf]  ;;  %16156 = vmatprep.subr.bf16.mxu0 %v18677_v9 }
 0x24b   : > { %v18678_v10 = vld [vmem:[#allocation10 + $0x48] sm:$0xff]   ;;  %v883_v11 = vld [vmem:[#allocation7 + $0x24] sm:$0xf]  ;;  %v882_v12 = vld [vmem:[#allocation7 + $0x20] sm:$0xf]  ;;  %16157 = vmatpush3.bf16.msra.mxu0 %v18677_v9  ;;  %vm869_vm2 = vcmask 523264  }
 0x24c   : > { %16158 = vmatprep.subr.bf16.mxu0 %v18678_v10  ;;  %v18679_v13 = vld [vmem:[#allocation10 + $0x50] sm:$0xff]   ;;  %v885_v14 = vld [vmem:[#allocation7 + $0x2c] sm:$0xf]  ;;  %v884_v15 = vld [vmem:[#allocation7 + $0x28] sm:$0xf]  ;;  %s19661_s22 = smov 64  }
 0x24d   : > { %1057 = vperm.xlu1 %18676, %v877_v3   ;;  %v18680_v16 = vld [vmem:[#allocation10 + $0x58] sm:$0xff]   ;;  %v887_v17 = vld [vmem:[#allocation7 + $0x34] sm:$0xf]  ;;  %v886_v18 = vld [vmem:[#allocation7 + $0x30] sm:$0xf]  ;;  %s22941_s26 = scalar_lea.vmem [#allocation34], %s14825_s0 }
 0x24e   : > { %1033 = vperm.xlu0 %18675, %v875_v4   ;;  %v18681_v19 = vld [vmem:[#allocation10 + $0x60] sm:$0xff]   ;;  %v939_v21 = vld [vmem:[%s20275_s20 + $0x8] sm:$0xff]  ;;  %v889_v23 = vld [vmem:[#allocation7 + $0x3c] sm:$0xf]  ;;  %vm1483_vm0 = vsmask.f32 7424 }
 0x24f   : > { %16159 = vmatpush3.bf16.msra.mxu0 %v18678_v10  ;;  %v938_v20 = vld [vmem:[%s20275_s20] sm:$0xff]  ;;  %v888_v24 = vld [vmem:[#allocation7 + $0x38] sm:$0xf]  ;;  %v18682_v25 = vld [vmem:[#allocation10 + $0x68] sm:$0xff]   ;;  %vm1887_vm1 = vsmask.f32 256 }
 0x250   : > { %16160 = vmatprep.subr.bf16.mxu0 %v18679_v13  ;;  %v20319_v22 = vpack.c.bf16 %v939_v21, %v938_v20  ;;  %v940_v26 = vld [vmem:[%s20275_s20 + $0x10] sm:$0xff]  ;;  %v941_v27 = vld [vmem:[%s20275_s20 + $0x18] sm:$0xff]  ;;  %v942_v29 = vld [vmem:[%s20275_s20 + $0x20] sm:$0xff]  ;;  %s15445_s21 = sshll.u32 %s23344_s6, 12  ;;  %s14556_s14 = sshll.u32 %s22941_s26, 4  ;;  %s23037_s14 = int_to_ptr.vmem [resolvable:$true] %s14556_s14 }
 0x251   : > { %1081 = vperm.xlu1 %18676, %v879_v5   ;;  %v20324_v28 = vpack.c.bf16 %v941_v27, %v940_v26  ;;  %v943_v30 = vld [vmem:[%s20275_s20 + $0x28] sm:$0xff]  ;;  %v891_v32 = vld [vmem:[#allocation7 + $0x44] sm:$0xf]  ;;  %v890_v33 = vld [vmem:[#allocation7 + $0x40] sm:$0xf]  ;;  %s23584_s29 = sld [smem:[#allocation120_spill]] }
 0x252   : > { %1069 = vperm.xlu0 %18675, %v878_v6   ;;  %986 = vst [vmem:[#allocation2 + $0x10] sm:$0xff] %v20319_v22  ;;  %v20328_v31 = vpack.c.bf16 %v943_v30, %v942_v29  ;;  %v18683_v34 = vld [vmem:[#allocation10 + $0x70] sm:$0xff]   ;;  %v945_v36 = vld [vmem:[%s20275_s20 + $0x38] sm:$0xff]  ;;  %v946_v37 = vld [vmem:[%s20275_s20 + $0x40] sm:$0xff]  ;;  %s14543_s0 = scalar_lea.sflag [#allocation6], %s20269_s1  ;;  %s19532_s24 = scalar_lea.vmem %s23037_s14, 4096 }
 0x253   : > { %16161 = vmatpush3.bf16.msra.mxu0 %v18679_v13  ;;  %987 = vst [vmem:[#allocation2 + $0x18] sm:$0xff] %v20324_v28  ;;  %v944_v35 = vld [vmem:[%s20275_s20 + $0x30] sm:$0xff]  ;;  %v947_v39 = vld [vmem:[%s20275_s20 + $0x48] sm:$0xff]  ;;  %v949_v44 = vld [vmem:[%s20275_s20 + $0x58] sm:$0xff]  ;;  %p19533_p5 = scmp.ne.s32.totalorder %s23037_s14, %s19532_s24  ;;  %p23585_p7 = scmp.ne.s32.totalorder %s23336_s4, 0 }
 0x254   : > { %16162 = vmatprep.subr.bf16.mxu0 %v18680_v16  ;;  %988 = vst [vmem:[#allocation2 + $0x20] sm:$0xff] %v20328_v31  ;;  %v20335_v38 = vpack.c.bf16 %v945_v36, %v944_v35  ;;  %v20338_v40 = vpack.c.bf16 %v947_v39, %v946_v37  ;;  %v893_v41 = vld [vmem:[#allocation7 + $0x4c] sm:$0xf]  ;;  %v892_v42 = vld [vmem:[#allocation7 + $0x48] sm:$0xf]  ;;  %v948_v43 = vld [vmem:[%s20275_s20 + $0x50] sm:$0xff] }
 0x255   : > { %1105 = vperm.xlu1 %18676, %v881_v7   ;;  %v950_v45 = vld [vmem:[%s20275_s20 + $0x60] sm:$0xff]  ;;  %v951_v46 = vld [vmem:[%s20275_s20 + $0x68] sm:$0xff]  ;;  %v18684_v47 = vld [vmem:[#allocation10 + $0x78] sm:$0xff]   ;;  %v20346_v48 = vpack.c.bf16 %v949_v44, %v948_v43  ;;  %p19534_p6 = pnand %p19533_p5, %p23585_p7 }
 0x256   : > { %1093 = vperm.xlu0 %18675, %v880_v8   ;;  %989 = vst [vmem:[#allocation2 + $0x28] sm:$0xff] %v20335_v38  ;;  %990 = vst [vmem:[#allocation2 + $0x30] sm:$0xff] %v20338_v40  ;;  %v20348_v49 = vpack.c.bf16 %v951_v46, %v950_v45  ;;  %v895_v50 = vld [vmem:[#allocation7 + $0x54] sm:$0xf]  ;;  %v894_v51 = vld [vmem:[#allocation7 + $0x50] sm:$0xf] }
 0x257   : > { %16163 = vmatpush3.bf16.msra.mxu0 %v18680_v16  ;;  %991 = vst [vmem:[#allocation2 + $0x38] sm:$0xff] %v20346_v48  ;;  %v952_v52 = vld [vmem:[%s20275_s20 + $0x70] sm:$0xff]  ;;  %v953_v53 = vld [vmem:[%s20275_s20 + $0x78] sm:$0xff]  ;;  %v954_v55 = vld [vmem:[%s20275_s20 + $0x80] sm:$0xff]  ;;  %s23035_s2 = scalar_lea.hbm %s23584_s29, %s15445_s21  ;;  %p19535_p9 = pneg %p19534_p6 }
 0x258   : > { %16164 = vmatprep.subr.bf16.mxu0 %v18681_v19  ;;  %992 = vst [vmem:[#allocation2 + $0x40] sm:$0xff] %v20348_v49  ;;  %v20354_v54 = vpack.c.bf16 %v953_v53, %v952_v52  ;;  %v955_v56 = vld [vmem:[%s20275_s20 + $0x88] sm:$0xff]  ;;  %v18685_v57 = vld [vmem:[#allocation10] sm:$0xff]   ;;  %v897_v59 = vld [vmem:[#allocation7 + $0x5c] sm:$0xf] }
 0x259   : > { %1129 = vperm.xlu1 %18676, %v883_v11   ;;  %v20358_v58 = vpack.c.bf16 %v955_v56, %v954_v55  ;;  %v956_v60 = vld [vmem:[%s20275_s20 + $0x90] sm:$0xff]  ;;  %v957_v61 = vld [vmem:[%s20275_s20 + $0x98] sm:$0xff]  ;;  %v958_v63 = vld [vmem:[%s20275_s20 + $0xa0] sm:$0xff] }
 0x25a   : > { %1117 = vperm.xlu0 %18675, %v882_v12   ;;  %993 = vst [vmem:[#allocation2 + $0x48] sm:$0xff] %v20354_v54  ;;  %v20364_v62 = vpack.c.bf16 %v957_v61, %v956_v60  ;;  %v959_v0 = vld [vmem:[%s20275_s20 + $0xa8] sm:$0xff]  ;;  %v896_v1 = vld [vmem:[#allocation7 + $0x58] sm:$0xf]  ;;  %v960_v3 = vld [vmem:[%s20275_s20 + $0xb0] sm:$0xff] }
 0x25b   : > { %16165 = vmatpush3.bf16.msra.mxu0 %v18681_v19  ;;  %994 = vst [vmem:[#allocation2 + $0x50] sm:$0xff] %v20358_v58  ;;  %v20368_v2 = vpack.c.bf16 %v959_v0, %v958_v63  ;;  %v961_v4 = vld [vmem:[%s20275_s20 + $0xb8] sm:$0xff]  ;;  %v962_v5 = vld [vmem:[%s20275_s20 + $0xc0] sm:$0xff]  ;;  %v963_v6 = vld [vmem:[%s20275_s20 + $0xc8] sm:$0xff]  ;;  %v23129_v0 = vlaneseq }
 0x25c   : > { %16166 = vmatprep.subr.bf16.mxu0 %v18682_v25  ;;  %995 = vst [vmem:[#allocation2 + $0x58] sm:$0xff] %v20364_v62  ;;  %v899_v7 = vld [vmem:[#allocation7 + $0x64] sm:$0xf]  ;;  %v898_v8 = vld [vmem:[#allocation7 + $0x60] sm:$0xf]  ;;  %v18686_v9 = vld [vmem:[#allocation10 + $0x8] sm:$0xff]   ;;  %v20376_v10 = vpack.c.bf16 %v961_v4, %v960_v3  ;;  %v20378_v11 = vpack.c.bf16 %v963_v6, %v962_v5 }
 0x25d   : > { %1153 = vperm.xlu1 %18676, %v885_v14   ;;  %996 = vst [vmem:[#allocation2 + $0x60] sm:$0xff] %v20368_v2  ;;  %v964_v12 = vld [vmem:[%s20275_s20 + $0xd0] sm:$0xff]  ;;  %v965_v13 = vld [vmem:[%s20275_s20 + $0xd8] sm:$0xff]  ;;  %v966_v14 = vld [vmem:[%s20275_s20 + $0xe0] sm:$0xff]  ;;  %v19660_v3 = vmov 839922192  }
 0x25e   : > { %1141 = vperm.xlu0 %18675, %v884_v15   ;;  %997 = vst [vmem:[#allocation2 + $0x68] sm:$0xff] %v20376_v10  ;;  %998 = vst [vmem:[#allocation2 + $0x70] sm:$0xff] %v20378_v11  ;;  %v20386_v15 = vpack.c.bf16 %v965_v13, %v964_v12  ;;  %v967_v16 = vld [vmem:[%s20275_s20 + $0xe8] sm:$0xff]  ;;  %v18687_v19 = vld [vmem:[#allocation10 + $0x10] sm:$0xff]   ;;  %v1025_v4 = vunpack.c.l.s4 %v19660_v3  ;;  %v20413_v5 = vshrl.u32 %v23129_v0, 7 }
 0x25f   : > { %16167 = vmatpush3.bf16.msra.mxu0 %v18682_v25  ;;  %v900_v20 = vld [vmem:[#allocation7 + $0x68] sm:$0xf]  ;;  %v18688_v21 = vld [vmem:[#allocation10 + $0x18] sm:$0xff]   ;;  %v906_v29 = vld [vmem:[#allocation9] sm:$0xf] }
 0x260   : > { %16168 = vmatprep.subr.bf16.mxu0 %v18683_v34  ;;  %999 = vst [vmem:[#allocation2 + $0x78] sm:$0xff] %v20386_v15  ;;  %v905_v25 = vld [vmem:[#allocation7 + $0x7c] sm:$0xf]  ;;  %v904_v26 = vld [vmem:[#allocation7 + $0x78] sm:$0xf]  ;;  %v18690_v27 = vld [vmem:[#allocation10 + $0x28] sm:$0xff]   ;;  %v1026_v6 = vunpack.c.0.s8 %v1025_v4 }
 0x261   : > { %1177 = vperm.xlu1 %18676, %v887_v17   ;;  %v20390_v17 = vpack.c.bf16 %v967_v16, %v966_v14  ;;  %v909_v30 = vld [vmem:[#allocation9 + $0xc] sm:$0xf]  ;;  %v910_v35 = vld [vmem:[#allocation9 + $0x10] sm:$0xf]  ;;  %v20399_v36 = vld [vmem:[#allocation10 + $0x80] sm:$0xff]   ;;  %23363 = vst [vmem:[#allocation52_spill] sm:$0xff] %v20413_v5 }
 0x262   : > { %1165 = vperm.xlu0 %18675, %v886_v18   ;;  %v901_v18 = vld [vmem:[#allocation7 + $0x6c] sm:$0xf]  ;;  %v968_v37 = vld [vmem:[%s20275_s20 + $0xf0] sm:$0xff]  ;;  %v913_v39 = vld [vmem:[#allocation9 + $0x1c] sm:$0xf] }
 0x263   : > { %16169 = vmatpush3.bf16.msra.mxu0 %v18683_v34  ;;  %1000 = vst [vmem:[#allocation2 + $0x80] sm:$0xff] %v20390_v17  ;;  %v911_v34 = vld [vmem:[#allocation9 + $0x14] sm:$0xf]  ;;  %v914_v43 = vld [vmem:[#allocation9 + $0x20] sm:$0xf] }
 0x264   : > { %16170 = vmatprep.subr.bf16.mxu0 %v18684_v47  ;;  %v917_v44 = vld [vmem:[#allocation9 + $0x2c] sm:$0xf]  ;;  %v916_v45 = vld [vmem:[#allocation9 + $0x28] sm:$0xf]  ;;  %v919_v46 = vld [vmem:[#allocation9 + $0x34] sm:$0xf] }
 0x265   : > { %1201 = vperm.xlu1 %18676, %v889_v23   ;;  %v902_v23 = vld [vmem:[#allocation7 + $0x70] sm:$0xf]  ;;  %v925_v52 = vld [vmem:[#allocation9 + $0x4c] sm:$0xf]  ;;  %v924_v53 = vld [vmem:[#allocation9 + $0x48] sm:$0xf] }
 0x266   : > { %1189 = vperm.xlu0 %18675, %v888_v24   ;;  %v18689_v24 = vld [vmem:[#allocation10 + $0x20] sm:$0xff]   ;;  %v926_v55 = vld [vmem:[#allocation9 + $0x50] sm:$0xf]  ;;  %v929_v56 = vld [vmem:[#allocation9 + $0x5c] sm:$0xf] }
 0x267   : > { %16171 = vmatpush3.bf16.msra.mxu0 %v18684_v47  ;;  %v918_v47 = vld [vmem:[#allocation9 + $0x30] sm:$0xf]  ;;  %v933_v60 = vld [vmem:[#allocation9 + $0x6c] sm:$0xf]  ;;  %v932_v61 = vld [vmem:[#allocation9 + $0x68] sm:$0xf] }
 0x268   : > { %16204 = vmatprep.subr.bf16.mxu0 %v18685_v57  ;;  %v934_v63 = vld [vmem:[#allocation9 + $0x70] sm:$0xf] }
 0x269   : > { %1225 = vperm.xlu1 %18676, %v891_v32   ;;  %v908_v32 = vld [vmem:[#allocation9 + $0x8] sm:$0xf] }
 0x26a   : > { %1213 = vperm.xlu0 %18675, %v890_v33   ;;  %16173 = vmatmul.mubr.bf16.vlgmr.msra.gmra.mrb[0].mxu0 %v20319_v22  ;;  %v903_v22 = vld [vmem:[#allocation7 + $0x74] sm:$0xf]  ;;  %v18692_v33 = vld [vmem:[#allocation10 + $0x38] sm:$0xff]  }
 0x26b   : > { %16205 = vmatpush3.bf16.msra.mxu0 %v18685_v57  ;;  %16176 = vmatprep.mubr.bf16.mxu0 %v20324_v28  ;;  %v907_v28 = vld [vmem:[#allocation9 + $0x4] sm:$0xf]  ;;  %v928_v57 = vld [vmem:[#allocation9 + $0x58] sm:$0xf] }
 0x26c   : > { %16206 = vmatprep.subr.bf16.mxu0 %v18686_v9 }
 0x26d   : > { %1249 = vperm.xlu1 %18676, %v893_v41   ;;  %v912_v41 = vld [vmem:[#allocation9 + $0x18] sm:$0xf] }
 0x26e   : > { %1237 = vperm.xlu0 %18675, %v892_v42   ;;  %v915_v42 = vld [vmem:[#allocation9 + $0x24] sm:$0xf] }
 0x26f   : > { %16207 = vmatpush3.bf16.msra.mxu0 %v18686_v9  ;;  %v20416_v9 = vsub.s32 %v1026_v6, %v20413_v5 }
 0x270   : > { %16208 = vmatprep.subr.bf16.mxu0 %v18687_v19 }
 0x271   : > { %1273 = vperm.xlu1 %18676, %v895_v50   ;;  %v923_v50 = vld [vmem:[#allocation9 + $0x44] sm:$0xf] }
 0x272   : > { %1261 = vperm.xlu0 %18675, %v894_v51   ;;  %16177 = vmatmul.mubr.bf16.gmra.mrb[4].mxu0 %v20328_v31  ;;  %v18691_v31 = vld [vmem:[#allocation10 + $0x30] sm:$0xff]   ;;  %v922_v51 = vld [vmem:[#allocation9 + $0x40] sm:$0xf] }
 0x273   : > { %16180 = vmatprep.mubr.bf16.mxu0 %v20335_v38  ;;  %16209 = vmatpush3.bf16.msra.mxu0 %v18687_v19  ;;  %v969_v38 = vld [vmem:[%s20275_s20 + $0xf8] sm:$0xff] }
 0x274   : > { %16210 = vmatprep.subr.bf16.mxu0 %v18688_v21 }
 0x275   : > { %1297 = vperm.xlu1 %18676, %v897_v59   ;;  %v930_v59 = vld [vmem:[#allocation9 + $0x60] sm:$0xf] }
 0x276   : > { %1285 = vperm.xlu0 %18675, %v896_v1   ;;  %v937_v1 = vld [vmem:[#allocation9 + $0x7c] sm:$0xf] }
 0x277   : > { %16211 = vmatpush3.bf16.msra.mxu0 %v18688_v21 }
 0x278   : > { %16212 = vmatprep.subr.bf16.mxu0 %v18689_v24 }
 0x279   : > { %1321 = vperm.xlu1 %18676, %v899_v7  }
 0x27a   : > { %1309 = vperm.xlu0 %18675, %v898_v8   ;;  %16181 = vmatmul.mubr.bf16.gmra.mrb[8].mxu0 %v20338_v40  ;;  %v985_v40 = vpack.c.bf16 %v969_v38, %v968_v37 }
 0x27b   : > { %16184 = vmatprep.mubr.bf16.mxu0 %v20346_v48  ;;  %16213 = vmatpush3.bf16.msra.mxu0 %v18689_v24  ;;  %v921_v48 = vld [vmem:[#allocation9 + $0x3c] sm:$0xf] }
 0x27c   : > { %16214 = vmatprep.subr.bf16.mxu0 %v18690_v27  ;;  %1001 = vst [vmem:[#allocation2 + $0x88] sm:$0xff] %v985_v40 }
 0x27d   : > { %1345 = vperm.xlu1 %18676, %v901_v18  }
 0x27e   : > { %1333 = vperm.xlu0 %18675, %v900_v20  }
 0x27f   : > { %16215 = vmatpush3.bf16.msra.mxu0 %v18690_v27 }
 0x280   : > { %16216 = vmatprep.subr.bf16.mxu0 %v18691_v31 }
 0x281   : > { %1369 = vperm.xlu1 %18676, %v903_v22  }
 0x282   : > { %1357 = vperm.xlu0 %18675, %v902_v23   ;;  %16185 = vmatmul.mubr.bf16.gmra.mrb[12].mxu0 %v20348_v49  ;;  %v920_v49 = vld [vmem:[#allocation9 + $0x38] sm:$0xf]  ;;  %v1002_v23 = vld [vmem:[#allocation2] sm:$0x80] }
 0x283   : > { %16188 = vmatprep.mubr.bf16.mxu0 %v20354_v54  ;;  %16217 = vmatpush3.bf16.msra.mxu0 %v18691_v31  ;;  %v927_v54 = vld [vmem:[#allocation9 + $0x54] sm:$0xf] }
 0x284   : > { %16218 = vmatprep.subr.bf16.mxu0 %v18692_v33 }
 0x285   : > { %1393 = vperm.xlu1 %18676, %v905_v25  }
 0x286   : > { %1381 = vperm.xlu0 %18675, %v904_v26  }
 0x287   : > { %16219 = vmatpush3.bf16.msra.mxu0 %v18692_v33 }
 0x288   : > { %16252 = vmatprep.subr.bf16.mxu0 %v20399_v36 }
 0x289   : > { %2276 = vperm.xlu1 %18676, %v907_v28  }
 0x28a   : > { %2264 = vperm.xlu0 %18675, %v906_v29   ;;  %16189 = vmatmul.mubr.bf16.gmra.mrb[16].mxu0 %v20358_v58  ;;  %v931_v58 = vld [vmem:[#allocation9 + $0x64] sm:$0xf] }
 0x28b   : > { %16192 = vmatprep.mubr.bf16.mxu0 %v20364_v62  ;;  %v935_v62 = vld [vmem:[#allocation9 + $0x74] sm:$0xf] }
 0x28d   : > { %2300 = vperm.xlu1 %18676, %v909_v30  }
 0x28e   : > { %2288 = vperm.xlu0 %18675, %v908_v32  }
 0x291   : > { %2324 = vperm.xlu1 %18676, %v911_v34  }
 0x292   : > { %2312 = vperm.xlu0 %18675, %v910_v35   ;;  %16193 = vmatmul.mubr.bf16.gmra.mrb[20].mxu0 %v20368_v2  ;;  %v936_v2 = vld [vmem:[#allocation9 + $0x78] sm:$0xf] }
 0x293   : > { %16196 = vmatprep.mubr.bf16.mxu0 %v20376_v10 }
 0x295   : > { %2348 = vperm.xlu1 %18676, %v913_v39  }
 0x296   : > { %2336 = vperm.xlu0 %18675, %v912_v41  }
 0x299   : > { %2372 = vperm.xlu1 %18676, %v915_v42  }
 0x29a   : > { %2360 = vperm.xlu0 %18675, %v914_v43   ;;  %16197 = vmatmul.mubr.bf16.gmra.mrb[24].mxu0 %v20378_v11 }
 0x29b   : > { %16200 = vmatprep.mubr.bf16.mxu0 %v20386_v15 }
 0x29d   : > { %2396 = vperm.xlu1 %18676, %v917_v44  }
 0x29e   : > { %2384 = vperm.xlu0 %18675, %v916_v45   ;;  %v20433_v45 = vld [vmem:[#allocation2] sm:$0xff] }
 0x2a1   : > { %2420 = vperm.xlu1 %18676, %v919_v46  }
 0x2a2   : > { %2408 = vperm.xlu0 %18675, %v918_v47   ;;  %16201 = vmatmul.mubr.bf16.gmra.mrb[28].mxu0 %v20390_v17 }
 0x2a5   : > { %2444 = vperm.xlu1 %18676, %v921_v48  }
 0x2a6   : > { %2432 = vperm.xlu0 %18675, %v920_v49  }
 0x2a9   : > { %2468 = vperm.xlu1 %18676, %v923_v50  }
 0x2aa   : > { %2456 = vperm.xlu0 %18675, %v922_v51  }
 0x2ad   : > { %2492 = vperm.xlu1 %18676, %v925_v52  }
 0x2ae   : > { %2480 = vperm.xlu0 %18675, %v924_v53  }
 0x2b1   : > { %2516 = vperm.xlu1 %18676, %v927_v54  }
 0x2b2   : > { %2504 = vperm.xlu0 %18675, %v926_v55  }
 0x2b5   : > { %2540 = vperm.xlu1 %18676, %v929_v56   ;;  %v18958_v56 = vld [vmem:[#allocation2 + $0x10] sm:$0xff] }
 0x2b6   : > { %2528 = vperm.xlu0 %18675, %v928_v57  }
 0x2b9   : > { %2564 = vperm.xlu1 %18676, %v931_v58  }
 0x2ba   : > { %2552 = vperm.xlu0 %18675, %v930_v59  }
 0x2bd   : > { %2588 = vperm.xlu1 %18676, %v933_v60  }
 0x2be   : > { %2576 = vperm.xlu0 %18675, %v932_v61  }
 0x2c1   : > { %2612 = vperm.xlu1 %18676, %v935_v62  }
 0x2c2   : > { %2600 = vperm.xlu0 %18675, %v934_v63  }
 0x2c5   : > { %2636 = vperm.xlu1 %18676, %v937_v1  }
 0x2c6   : > { %2624 = vperm.xlu0 %18675, %v936_v2  }
 0x2c8   : > { %v1046_v7 = vpop.permute.xlu1 %1045 }
 0x2c9   : > { %v1022_v8 = vpop.permute.xlu0 %1021  ;;  %v1054_v12 = vrot.slane %v1046_v7, %v20416_v9 }
 0x2ca   : > { %v1030_v13 = vrot.slane %v1022_v8, %v20416_v9 }
 0x2cc   : > { %v1058_v10 = vpop.permute.xlu1 %1057 }
 0x2cd   : > { %v1034_v11 = vpop.permute.xlu0 %1033  ;;  %v1066_v14 = vrot.slane %v1058_v10, %v20416_v9 }
 0x2ce   : > { %v1042_v15 = vrot.slane %v1034_v11, %v20416_v9  ;;  %v18959_v11 = vld [vmem:[#allocation2 + $0x18] sm:$0xff] }
 0x2cf   : > { %v14846_v16 = vcombine.low %v1054_v12, %v1066_v14 }
 0x2d0   : > { %v14845_v17 = vcombine.low %v1030_v13, %v1042_v15  ;;  %v1082_v18 = vpop.permute.xlu1 %1081 }
 0x2d1   : > { %v1070_v19 = vpop.permute.xlu0 %1069  ;;  %v1492_v20 = vshll.u32 %v14846_v16, 16  ;;  %v1090_v24 = vrot.slane %v1082_v18, %v20416_v9  ;;  %v1496_v34 = vshrl.u32 %v14846_v16, 16 }
 0x2d2   : > { %v1485_v21 = vshll.u32 %v14845_v17, 16  ;;  %v1488_v22 = vshrl.u32 %v14845_v17, 16  ;;  %v1078_v25 = vrot.slane %v1070_v19, %v20416_v9 }
 0x2d3   : > { %v1494_v26 = vrot.slane %v1492_v20, 1 }
 0x2d4   : > { %v20424_v27 = vrot.slane %v1485_v21, 1  ;;  %v14847_v28 = vcombine.low %v1078_v25, %v1090_v24  ;;  %v1106_v29 = vpop.permute.xlu1 %1105 }
 0x2d5   : > { %v1094_v30 = vpop.permute.xlu0 %1093  ;;  %v1114_v32 = vrot.slane %v1106_v29, %v20416_v9  ;;  %v1498_v40 = vor.u32 %v1496_v34, %v1494_v26  ;;  %v18960_v29 = vld [vmem:[#allocation2 + $0x20] sm:$0xff] }
 0x2d6   : > { %23364 = vst [vmem:[#allocation53_spill] sm:$0xff] %v20424_v27  ;;  %v1490_v31 = vor.u32 %v1488_v22, %v20424_v27  ;;  %v1102_v33 = vrot.slane %v1094_v30, %v20416_v9  ;;  %v1500_v35 = vshll.u32 %v14847_v28, 16  ;;  %v1628_v37 = vmul.bf16 %v20424_v27, %v1002_v23 }
 0x2d7   : > { %v1504_v42 = vshrl.u32 %v14847_v28, 16 }
 0x2d8   : > { %v20431_v38 = vsel %vm1483_vm0, %v1490_v31, %v1494_v26  ;;  %v14848_v39 = vcombine.low %v1102_v33, %v1114_v32  ;;  %v1502_v41 = vrot.slane %v1500_v35, 1  ;;  %v1130_v43 = vpop.permute.xlu1 %1129  ;;  %v1889_v50 = vshrl.u32 %v1628_v37, 16  ;;  %v18694_v31 = vld [vmem:[#allocation10 + $0x88] sm:$0xff]  }
 0x2d9   : > { %23365 = vst [vmem:[#allocation54_spill] sm:$0xff] %v20431_v38  ;;  %v1118_v44 = vpop.permute.xlu0 %1117  ;;  %v1629_v46 = vmul.bf16 %v20433_v45, %v20431_v38  ;;  %v1138_v48 = vrot.slane %v1130_v43, %v20416_v9 }
 0x2da   : > { %v1508_v47 = vshll.u32 %v14848_v39, 16  ;;  %v1126_v49 = vrot.slane %v1118_v44, %v20416_v9  ;;  %v20440_v51 = vsel %vm1483_vm0, %v1498_v40, %v1502_v41  ;;  %v1506_v53 = vor.u32 %v1504_v42, %v1502_v41 }
 0x2db   : > { %23366 = vst [vmem:[#allocation55_spill] sm:$0xff] %v20440_v51  ;;  %v1893_v52 = vshrl.u32 %v1629_v46, 16  ;;  %v1630_v57 = vmul.bf16 %v18958_v56, %v20440_v51  ;;  %v1896_v61 = vshll.u32 %v1629_v46, 16  ;;  %v1512_v63 = vshrl.u32 %v14848_v39, 16 }
 0x2dc   : > { %v1510_v54 = vrot.slane %v1508_v47, 1  ;;  %v14849_v55 = vcombine.low %v1126_v49, %v1138_v48  ;;  %v1154_v58 = vpop.permute.xlu1 %1153  ;;  %v1891_v2 = vrot.slane %v1889_v50, 7 }
 0x2dd   : > { %v1142_v59 = vpop.permute.xlu0 %1141  ;;  %v1895_v60 = vrot.slane %v1893_v52, 7  ;;  %v1162_v3 = vrot.slane %v1154_v58, %v20416_v9  ;;  %v1901_v7 = vshrl.u32 %v1630_v57, 16  ;;  %v1904_v18 = vshll.u32 %v1630_v57, 16  ;;  %v18961_v52 = vld [vmem:[#allocation2 + $0x28] sm:$0xff] }
 0x2de   : > { %v20444_v62 = vsel %vm1483_vm0, %v1506_v53, %v1510_v54  ;;  %v1516_v1 = vshll.u32 %v14849_v55, 16  ;;  %v1150_v4 = vrot.slane %v1142_v59, %v20416_v9  ;;  %v1514_v8 = vor.u32 %v1512_v63, %v1510_v54  ;;  %v18695_v54 = vld [vmem:[#allocation10 + $0x90] sm:$0xff]  }
 0x2df   : > { %23367 = vst [vmem:[#allocation56_spill] sm:$0xff] %v20444_v62  ;;  %v1898_v6 = vor.u32 %v1896_v61, %v1895_v60  ;;  %v1631_v12 = vmul.bf16 %v18959_v11, %v20444_v62  ;;  %v1903_v17 = vrot.slane %v1901_v7, 7  ;;  %v1520_v20 = vshrl.u32 %v14849_v55, 16  ;;  %v18962_v7 = vld [vmem:[#allocation2 + $0x30] sm:$0xff] }
 0x2e0   : > { %v1518_v10 = vrot.slane %v1516_v1, 1  ;;  %v14850_v13 = vcombine.low %v1150_v4, %v1162_v3  ;;  %v1178_v14 = vpop.permute.xlu1 %1177 }
 0x2e1   : > { %v1166_v15 = vpop.permute.xlu0 %1165  ;;  %v1899_v16 = vsel %vm1887_vm1, %v1891_v2, %v1898_v6  ;;  %v1186_v21 = vrot.slane %v1178_v14, %v20416_v9  ;;  %v1906_v24 = vor.u32 %v1904_v18, %v1903_v17  ;;  %v1909_v25 = vshrl.u32 %v1631_v12, 16 }
 0x2e2   : > { %v20451_v19 = vsel %vm1483_vm0, %v1514_v8, %v1518_v10  ;;  %v1174_v22 = vrot.slane %v1166_v15, %v20416_v9  ;;  %16220 = vmatprep.mubr.bf16.mxu0 %v1899_v16  ;;  %v1524_v23 = vshll.u32 %v14850_v13, 16  ;;  %v1522_v26 = vor.u32 %v1520_v20, %v1518_v10  ;;  %v18696_v10 = vld [vmem:[#allocation10 + $0x98] sm:$0xff]  }
 0x2e3   : > { %23368 = vst [vmem:[#allocation57_spill] sm:$0xff] %v20451_v19  ;;  %v1632_v30 = vmul.bf16 %v18960_v29, %v20451_v19  ;;  %v1907_v33 = vsel %vm1887_vm1, %v1895_v60, %v1906_v24  ;;  %v1911_v37 = vrot.slane %v1909_v25, 7  ;;  %v1912_v39 = vshll.u32 %v1631_v12, 16 }
 0x2e4   : > { %v14851_v28 = vcombine.low %v1174_v22, %v1186_v21  ;;  %v1526_v32 = vrot.slane %v1524_v23, 1  ;;  %v1202_v34 = vpop.permute.xlu1 %1201  ;;  %v1528_v40 = vshrl.u32 %v14850_v13, 16  ;;  %16221 = vmatmul.mubr.bf16.vlgmr.msra.gmra.mrb[0].mxu0 %v1907_v33 }
 0x2e5   : > { %v1190_v35 = vpop.permute.xlu0 %1189  ;;  %v1210_v42 = vrot.slane %v1202_v34, %v20416_v9  ;;  %16253 = vmatpush3.bf16.msra.mxu0 %v20399_v36  ;;  %v1914_v46 = vor.u32 %v1912_v39, %v1911_v37  ;;  %v1917_v47 = vshrl.u32 %v1632_v30, 16  ;;  %v1920_v59 = vshll.u32 %v1632_v30, 16  ;;  %v18697_v30 = vld [vmem:[#allocation10 + $0xa0] sm:$0xff]  }
 0x2e6   : > { %v1532_v41 = vshll.u32 %v14851_v28, 16  ;;  %v1198_v43 = vrot.slane %v1190_v35, %v20416_v9  ;;  %v20460_v44 = vsel %vm1483_vm0, %v1522_v26, %v1526_v32  ;;  %v1530_v48 = vor.u32 %v1528_v40, %v1526_v32  ;;  %16254 = vmatprep.subr.bf16.mxu0 %v18694_v31 }
 0x2e7   : > { %23369 = vst [vmem:[#allocation58_spill] sm:$0xff] %v20460_v44  ;;  %v1633_v53 = vmul.bf16 %v18961_v52, %v20460_v44  ;;  %v1915_v55 = vsel %vm1887_vm1, %v1903_v17, %v1914_v46  ;;  %v1919_v58 = vrot.slane %v1917_v47, 7  ;;  %v1536_v36 = vshrl.u32 %v14851_v28, 16  ;;  %v18963_v28 = vld [vmem:[#allocation2 + $0x38] sm:$0xff]  ;;  %v18964_v52 = vld [vmem:[#allocation2 + $0x40] sm:$0xff] }
 0x2e8   : > { %v1534_v49 = vrot.slane %v1532_v41, 1  ;;  %v14852_v50 = vcombine.low %v1198_v43, %v1210_v42  ;;  %v1226_v56 = vpop.permute.xlu1 %1225  ;;  %16224 = vmatprep.mubr.bf16.mxu0 %v1915_v55 }
 0x2e9   : > { %v1214_v57 = vpop.permute.xlu0 %1213  ;;  %v1234_v63 = vrot.slane %v1226_v56, %v20416_v9  ;;  %v1922_v2 = vor.u32 %v1920_v59, %v1919_v58  ;;  %16255 = vmatpush3.bf16.msra.mxu0 %v18694_v31  ;;  %v1925_v3 = vshrl.u32 %v1633_v53, 16  ;;  %v1928_v16 = vshll.u32 %v1633_v53, 16 }
 0x2ea   : > { %v20466_v60 = vsel %vm1483_vm0, %v1530_v48, %v1534_v49  ;;  %v1540_v61 = vshll.u32 %v14852_v50, 16  ;;  %v1222_v1 = vrot.slane %v1214_v57, %v20416_v9  ;;  %v1538_v4 = vor.u32 %v1536_v36, %v1534_v49  ;;  %16256 = vmatprep.subr.bf16.mxu0 %v18695_v54 }
 0x2eb   : > { %23370 = vst [vmem:[#allocation59_spill] sm:$0xff] %v20466_v60  ;;  %v1634_v8 = vmul.bf16 %v18962_v7, %v20466_v60  ;;  %v1923_v12 = vsel %vm1887_vm1, %v1911_v37, %v1922_v2  ;;  %v1927_v15 = vrot.slane %v1925_v3, 7  ;;  %v1544_v18 = vshrl.u32 %v14852_v50, 16 }
 0x2ec   : > { %v1542_v6 = vrot.slane %v1540_v61, 1  ;;  %v14853_v11 = vcombine.low %v1222_v1, %v1234_v63  ;;  %v1250_v13 = vpop.permute.xlu1 %1249  ;;  %16225 = vmatmul.mubr.bf16.gmra.mrb[4].mxu0 %v1923_v12 }
 0x2ed   : > { %v1238_v14 = vpop.permute.xlu0 %1237  ;;  %v1258_v20 = vrot.slane %v1250_v13, %v20416_v9  ;;  %v1930_v23 = vor.u32 %v1928_v16, %v1927_v15  ;;  %v1933_v24 = vshrl.u32 %v1634_v8, 16  ;;  %16257 = vmatpush3.bf16.msra.mxu0 %v18695_v54  ;;  %v1936_v37 = vshll.u32 %v1634_v8, 16  ;;  %v18698_v54 = vld [vmem:[#allocation10 + $0xa8] sm:$0xff]  }
 0x2ee   : > { %v20473_v17 = vsel %vm1483_vm0, %v1538_v4, %v1542_v6  ;;  %v1246_v21 = vrot.slane %v1238_v14, %v20416_v9  ;;  %v1548_v22 = vshll.u32 %v14853_v11, 16  ;;  %v1546_v25 = vor.u32 %v1544_v18, %v1542_v6  ;;  %16258 = vmatprep.subr.bf16.mxu0 %v18696_v10  ;;  %v18965_v8 = vld [vmem:[#allocation2 + $0x48] sm:$0xff] }
 0x2ef   : > { %23371 = vst [vmem:[#allocation60_spill] sm:$0xff] %v20473_v17  ;;  %v1635_v29 = vmul.bf16 %v18963_v28, %v20473_v17  ;;  %v1931_v32 = vsel %vm1887_vm1, %v1919_v58, %v1930_v23  ;;  %v1935_v35 = vrot.slane %v1933_v24, 7  ;;  %v1552_v39 = vshrl.u32 %v14853_v11, 16  ;;  %v18699_v11 = vld [vmem:[#allocation10 + $0xb0] sm:$0xff]  }
 0x2f0   : > { %v14854_v26 = vcombine.low %v1246_v21, %v1258_v20  ;;  %v1550_v31 = vrot.slane %v1548_v22, 1  ;;  %v1274_v33 = vpop.permute.xlu1 %1273  ;;  %16228 = vmatprep.mubr.bf16.mxu0 %v1931_v32  ;;  %v18700_v32 = vld [vmem:[#allocation10 + $0xb8] sm:$0xff]  }
 0x2f1   : > { %v1262_v34 = vpop.permute.xlu0 %1261  ;;  %v1282_v41 = vrot.slane %v1274_v33, %v20416_v9  ;;  %v1938_v46 = vor.u32 %v1936_v37, %v1935_v35  ;;  %v1941_v47 = vshrl.u32 %v1635_v29, 16  ;;  %16259 = vmatpush3.bf16.msra.mxu0 %v18696_v10  ;;  %v1944_v59 = vshll.u32 %v1635_v29, 16 }
 0x2f2   : > { %v1556_v40 = vshll.u32 %v14854_v26, 16  ;;  %v1270_v42 = vrot.slane %v1262_v34, %v20416_v9  ;;  %v20482_v43 = vsel %vm1483_vm0, %v1546_v25, %v1550_v31  ;;  %v1554_v48 = vor.u32 %v1552_v39, %v1550_v31  ;;  %16260 = vmatprep.subr.bf16.mxu0 %v18697_v30 }
 0x2f3   : > { %23372 = vst [vmem:[#allocation61_spill] sm:$0xff] %v20482_v43  ;;  %v1636_v53 = vmul.bf16 %v18964_v52, %v20482_v43  ;;  %v1939_v55 = vsel %vm1887_vm1, %v1927_v15, %v1938_v46  ;;  %v1943_v58 = vrot.slane %v1941_v47, 7  ;;  %v1560_v61 = vshrl.u32 %v14854_v26, 16 }
 0x2f4   : > { %v1558_v49 = vrot.slane %v1556_v40, 1  ;;  %v14855_v50 = vcombine.low %v1270_v42, %v1282_v41  ;;  %v1298_v56 = vpop.permute.xlu1 %1297  ;;  %16229 = vmatmul.mubr.bf16.gmra.mrb[8].mxu0 %v1939_v55  ;;  %v18967_v55 = vld [vmem:[#allocation2 + $0x58] sm:$0xff] }
 0x2f5   : > { %v1286_v57 = vpop.permute.xlu0 %1285  ;;  %v1306_v1 = vrot.slane %v1298_v56, %v20416_v9  ;;  %v1946_v3 = vor.u32 %v1944_v59, %v1943_v58  ;;  %v1949_v4 = vshrl.u32 %v1636_v53, 16  ;;  %16261 = vmatpush3.bf16.msra.mxu0 %v18697_v30  ;;  %v1952_v18 = vshll.u32 %v1636_v53, 16  ;;  %v18966_v30 = vld [vmem:[#allocation2 + $0x50] sm:$0xff] }
 0x2f6   : > { %v20487_v36 = vsel %vm1483_vm0, %v1554_v48, %v1558_v49  ;;  %v1564_v63 = vshll.u32 %v14855_v50, 16  ;;  %v1294_v2 = vrot.slane %v1286_v57, %v20416_v9  ;;  %v1562_v6 = vor.u32 %v1560_v61, %v1558_v49  ;;  %16262 = vmatprep.subr.bf16.mxu0 %v18698_v54  ;;  %v20506_v57 = vld [vmem:[#allocation10 + $0xc0] sm:$0xff]  }
 0x2f7   : > { %23373 = vst [vmem:[#allocation62_spill] sm:$0xff] %v20487_v36  ;;  %v1637_v10 = vmul.bf16 %v18965_v8, %v20487_v36  ;;  %v1947_v13 = vsel %vm1887_vm1, %v1935_v35, %v1946_v3  ;;  %v1951_v16 = vrot.slane %v1949_v4, 7  ;;  %v1568_v21 = vshrl.u32 %v14855_v50, 16 }
 0x2f8   : > { %v1566_v7 = vrot.slane %v1564_v63, 1  ;;  %v14856_v12 = vcombine.low %v1294_v2, %v1306_v1  ;;  %v1322_v14 = vpop.permute.xlu1 %1321  ;;  %16232 = vmatprep.mubr.bf16.mxu0 %v1947_v13  ;;  %v18968_v13 = vld [vmem:[#allocation2 + $0x60] sm:$0xff] }
 0x2f9   : > { %v1310_v15 = vpop.permute.xlu0 %1309  ;;  %v1330_v22 = vrot.slane %v1322_v14, %v20416_v9  ;;  %v1954_v25 = vor.u32 %v1952_v18, %v1951_v16  ;;  %v1957_v26 = vshrl.u32 %v1637_v10, 16  ;;  %16263 = vmatpush3.bf16.msra.mxu0 %v18698_v54  ;;  %v1960_v40 = vshll.u32 %v1637_v10, 16 }
 0x2fa   : > { %v20494_v20 = vsel %vm1483_vm0, %v1562_v6, %v1566_v7  ;;  %v1318_v23 = vrot.slane %v1310_v15, %v20416_v9  ;;  %v1572_v24 = vshll.u32 %v14856_v12, 16  ;;  %v1570_v28 = vor.u32 %v1568_v21, %v1566_v7  ;;  %16264 = vmatprep.subr.bf16.mxu0 %v18699_v11 }
 0x2fb   : > { %23374 = vst [vmem:[#allocation63_spill] sm:$0xff] %v20494_v20  ;;  %v1638_v31 = vmul.bf16 %v18966_v30, %v20494_v20  ;;  %v1955_v34 = vsel %vm1887_vm1, %v1943_v58, %v1954_v25  ;;  %v1959_v39 = vrot.slane %v1957_v26, 7  ;;  %v1576_v41 = vshrl.u32 %v14856_v12, 16 }
 0x2fc   : > { %v14857_v29 = vcombine.low %v1318_v23, %v1330_v22  ;;  %v1574_v33 = vrot.slane %v1572_v24, 1  ;;  %v1346_v35 = vpop.permute.xlu1 %1345  ;;  %16233 = vmatmul.mubr.bf16.gmra.mrb[12].mxu0 %v1955_v34  ;;  %v18969_v34 = vld [vmem:[#allocation2 + $0x68] sm:$0xff] }
 0x2fd   : > { %v1334_v37 = vpop.permute.xlu0 %1333  ;;  %v1354_v46 = vrot.slane %v1346_v35, %v20416_v9  ;;  %v1962_v49 = vor.u32 %v1960_v40, %v1959_v39  ;;  %v1965_v50 = vshrl.u32 %v1638_v31, 16  ;;  %16265 = vmatpush3.bf16.msra.mxu0 %v18699_v11  ;;  %v1968_v1 = vshll.u32 %v1638_v31, 16 }
 0x2fe   : > { %v1580_v42 = vshll.u32 %v14857_v29, 16  ;;  %v1342_v47 = vrot.slane %v1334_v37, %v20416_v9  ;;  %v20503_v48 = vsel %vm1483_vm0, %v1570_v28, %v1574_v33  ;;  %v1578_v52 = vor.u32 %v1576_v41, %v1574_v33  ;;  %16266 = vmatprep.subr.bf16.mxu0 %v18700_v32 }
 0x2ff   : > { %23375 = vst [vmem:[#allocation64_spill] sm:$0xff] %v20503_v48  ;;  %v1639_v56 = vmul.bf16 %v18967_v55, %v20503_v48  ;;  %v1963_v58 = vsel %vm1887_vm1, %v1951_v16, %v1962_v49  ;;  %v1967_v63 = vrot.slane %v1965_v50, 7  ;;  %v1584_v3 = vshrl.u32 %v14857_v29, 16 }
 0x300   : > { %v1582_v53 = vrot.slane %v1580_v42, 1  ;;  %v14858_v54 = vcombine.low %v1342_v47, %v1354_v46  ;;  %v1370_v59 = vpop.permute.xlu1 %1369  ;;  %16236 = vmatprep.mubr.bf16.mxu0 %v1963_v58 }
 0x301   : > { %v1358_v61 = vpop.permute.xlu0 %1357  ;;  %v1378_v6 = vrot.slane %v1370_v59, %v20416_v9  ;;  %v1970_v8 = vor.u32 %v1968_v1, %v1967_v63  ;;  %v1973_v10 = vshrl.u32 %v1639_v56, 16  ;;  %16267 = vmatpush3.bf16.msra.mxu0 %v18700_v32  ;;  %v1976_v23 = vshll.u32 %v1639_v56, 16 }
 0x302   : > { %v20510_v2 = vsel %vm1483_vm0, %v1578_v52, %v1582_v53  ;;  %v1588_v4 = vshll.u32 %v14858_v54, 16  ;;  %v1366_v7 = vrot.slane %v1358_v61, %v20416_v9  ;;  %v1586_v11 = vor.u32 %v1584_v3, %v1582_v53  ;;  %16300 = vmatprep.subr.bf16.mxu0 %v20506_v57 }
 0x303   : > { %23376 = vst [vmem:[#allocation65_spill] sm:$0xff] %v20510_v2  ;;  %v1640_v14 = vmul.bf16 %v18968_v13, %v20510_v2  ;;  %v1971_v16 = vsel %vm1887_vm1, %v1959_v39, %v1970_v8  ;;  %v1975_v22 = vrot.slane %v1973_v10, 7  ;;  %v1592_v25 = vshrl.u32 %v14858_v54, 16 }
 0x304   : > { %v1590_v12 = vrot.slane %v1588_v4, 1  ;;  %v14859_v15 = vcombine.low %v1366_v7, %v1378_v6  ;;  %v1394_v18 = vpop.permute.xlu1 %1393  ;;  %16237 = vmatmul.mubr.bf16.gmra.mrb[16].mxu0 %v1971_v16 }
 0x305   : > { %v1382_v21 = vpop.permute.xlu0 %1381  ;;  %v1402_v26 = vrot.slane %v1394_v18, %v20416_v9  ;;  %v1978_v30 = vor.u32 %v1976_v23, %v1975_v22  ;;  %v1981_v31 = vshrl.u32 %v1640_v14, 16  ;;  %v1984_v46 = vshll.u32 %v1640_v14, 16 }
 0x306   : > { %v20518_v24 = vsel %vm1483_vm0, %v1586_v11, %v1590_v12  ;;  %v1390_v28 = vrot.slane %v1382_v21, %v20416_v9  ;;  %v1596_v29 = vshll.u32 %v14859_v15, 16  ;;  %v1594_v32 = vor.u32 %v1592_v25, %v1590_v12  ;;  %v18972_v25 = vld [vmem:[#allocation2 + $0x80] sm:$0xff] }
 0x307   : > { %23377 = vst [vmem:[#allocation66_spill] sm:$0xff] %v20518_v24  ;;  %v1641_v35 = vmul.bf16 %v18969_v34, %v20518_v24  ;;  %v1979_v39 = vsel %vm1887_vm1, %v1967_v63, %v1978_v30  ;;  %v1983_v42 = vrot.slane %v1981_v31, 7  ;;  %v1600_v47 = vshrl.u32 %v14859_v15, 16  ;;  %v18970_v63 = vld [vmem:[#allocation2 + $0x70] sm:$0xff] }
 0x308   : > { %v14860_v33 = vcombine.low %v1390_v28, %v1402_v26  ;;  %v1598_v37 = vrot.slane %v1596_v29, 1  ;;  %v2277_v40 = vpop.permute.xlu1 %2276  ;;  %16240 = vmatprep.mubr.bf16.mxu0 %v1979_v39 }
 0x309   : > { %v2265_v41 = vpop.permute.xlu0 %2264  ;;  %v2285_v50 = vrot.slane %v2277_v40, %v20416_v9  ;;  %v1986_v55 = vor.u32 %v1984_v46, %v1983_v42  ;;  %v1989_v56 = vshrl.u32 %v1641_v35, 16  ;;  %v1992_v8 = vshll.u32 %v1641_v35, 16 }
 0x30a   : > { %v1604_v49 = vshll.u32 %v14860_v33, 16  ;;  %v2273_v52 = vrot.slane %v2265_v41, %v20416_v9  ;;  %v20527_v53 = vsel %vm1483_vm0, %v1594_v32, %v1598_v37  ;;  %v1608_v54 = vshrl.u32 %v14860_v33, 16 }
 0x30b   : > { %23378 = vst [vmem:[#allocation67_spill] sm:$0xff] %v20527_v53  ;;  %v1602_v58 = vor.u32 %v1600_v47, %v1598_v37  ;;  %v1642_v1 = vmul.bf16 %v18970_v63, %v20527_v53  ;;  %v1987_v3 = vsel %vm1887_vm1, %v1975_v22, %v1986_v55  ;;  %v1991_v7 = vrot.slane %v1989_v56, 7  ;;  %v18971_v22 = vld [vmem:[#allocation2 + $0x78] sm:$0xff] }
 0x30c   : > { %v1606_v59 = vrot.slane %v1604_v49, 1  ;;  %v14877_v61 = vcombine.low %v2273_v52, %v2285_v50  ;;  %v2301_v4 = vpop.permute.xlu1 %2300  ;;  %16241 = vmatmul.mubr.bf16.gmra.mrb[20].mxu0 %v1987_v3 }
 0x30d   : > { %v2289_v6 = vpop.permute.xlu0 %2288  ;;  %v2309_v13 = vrot.slane %v2301_v4, %v20416_v9  ;;  %v1994_v15 = vor.u32 %v1992_v8, %v1991_v7  ;;  %v1997_v16 = vshrl.u32 %v1642_v1, 16  ;;  %v2000_v33 = vshll.u32 %v1642_v1, 16 }
 0x30e   : > { %v20532_v10 = vsel %vm1483_vm0, %v1602_v58, %v1606_v59  ;;  %v20534_v11 = vor.u32 %v1608_v54, %v1606_v59  ;;  %v2727_v12 = vshrl.u32 %v14877_v61, 16  ;;  %v2297_v14 = vrot.slane %v2289_v6, %v20416_v9 }
 0x30f   : > { %23379 = vst [vmem:[#allocation68_spill] sm:$0xff] %v20532_v10  ;;  %v2730_v21 = vshll.u32 %v14877_v61, 16  ;;  %v1643_v23 = vmul.bf16 %v18971_v22, %v20532_v10  ;;  %v1995_v29 = vsel %vm1887_vm1, %v1983_v42, %v1994_v15  ;;  %v1999_v32 = vrot.slane %v1997_v16, 7 }
 0x310   : > { %23380 = vst [vmem:[#allocation69_spill] sm:$0xff] %v20534_v11  ;;  %v2729_v18 = vrot.slane %v2727_v12, 7  ;;  %v1644_v26 = vmul.bf16 %v18972_v25, %v20534_v11  ;;  %v14878_v28 = vcombine.low %v2297_v14, %v2309_v13  ;;  %v2325_v30 = vpop.permute.xlu1 %2324  ;;  %16244 = vmatprep.mubr.bf16.mxu0 %v1995_v29 }
 0x311   : > { %v2313_v31 = vpop.permute.xlu0 %2312  ;;  %v2333_v35 = vrot.slane %v2325_v30, %v20416_v9  ;;  %v2005_v39 = vshrl.u32 %v1643_v23, 16  ;;  %v2002_v41 = vor.u32 %v2000_v33, %v1999_v32  ;;  %v2008_v56 = vshll.u32 %v1643_v23, 16 }
 0x312   : > { %v20541_v34 = vor.u32 %v2730_v21, %v2729_v18  ;;  %v2321_v37 = vrot.slane %v2313_v31, %v20416_v9  ;;  %v2734_v40 = vshrl.u32 %v14878_v28, 16  ;;  %v2737_v46 = vshll.u32 %v14878_v28, 16  ;;  %v20555_v28 = vld [vmem:[#allocation2 + $0x10] sm:$0xff] }
 0x313   : > { %v2007_v49 = vrot.slane %v2005_v39, 7  ;;  %v2013_v50 = vshrl.u32 %v1644_v26, 16  ;;  %v2003_v42 = vsel %vm1887_vm1, %v1991_v7, %v2002_v41  ;;  %v2016_v6 = vshll.u32 %v1644_v26, 16 }
 0x314   : > { %23381 = vst [vmem:[#allocation70_spill] sm:$0xff] %v20541_v34  ;;  %v14879_v47 = vcombine.low %v2321_v37, %v2333_v35  ;;  %v2736_v52 = vrot.slane %v2734_v40, 7  ;;  %v2349_v54 = vpop.permute.xlu1 %2348  ;;  %v2870_v58 = vmul.bf16 %v20433_v45, %v20541_v34  ;;  %16245 = vmatmul.mubr.bf16.gmra.mrb[24].mxu0 %v2003_v42 }
 0x315   : > { %v2337_v55 = vpop.permute.xlu0 %2336  ;;  %v2357_v61 = vrot.slane %v2349_v54, %v20416_v9  ;;  %v2010_v3 = vor.u32 %v2008_v56, %v2007_v49  ;;  %v2015_v4 = vrot.slane %v2013_v50, 7 }
 0x316   : > { %v2742_v59 = vshrl.u32 %v14879_v47, 16  ;;  %v2345_v63 = vrot.slane %v2337_v55, %v20416_v9  ;;  %v2739_v1 = vor.u32 %v2737_v46, %v2736_v52  ;;  %v2745_v12 = vshll.u32 %v14879_v47, 16  ;;  %v20564_v46 = vld [vmem:[#allocation2 + $0x18] sm:$0xff] }
 0x317   : > { %v2907_v7 = vshll.u32 %v2870_v58, 16  ;;  %v2011_v15 = vsel %vm1887_vm1, %v1999_v32, %v2010_v3  ;;  %v2018_v21 = vor.u32 %v2016_v6, %v2015_v4  ;;  %v2905_v40 = vshrl.u32 %v2870_v58, 16 }
 0x318   : > { %v2744_v8 = vrot.slane %v2742_v59, 7  ;;  %v14880_v13 = vcombine.low %v2345_v63, %v2357_v61  ;;  %v20551_v14 = vsel %vm1887_vm1, %v2729_v18, %v2739_v1  ;;  %v2373_v45 = vpop.permute.xlu1 %2372  ;;  %16248 = vmatprep.mubr.bf16.mxu0 %v2011_v15  ;;  %v20573_v63 = vld [vmem:[#allocation2 + $0x20] sm:$0xff] }
 0x319   : > { %23382 = vst [vmem:[#allocation71_spill] sm:$0xff] %v20551_v14  ;;  %v2361_v16 = vpop.permute.xlu0 %2360  ;;  %v2381_v25 = vrot.slane %v2373_v45, %v20416_v9  ;;  %v2871_v29 = vmul.bf16 %v20551_v14, %v20555_v28  ;;  %v2909_v30 = vrot.slane %v2907_v7, 1  ;;  %v2019_v35 = vsel %vm1887_vm1, %v2007_v49, %v2018_v21 }
 0x31a   : > { %v2747_v22 = vor.u32 %v2745_v12, %v2744_v8  ;;  %v2750_v23 = vshrl.u32 %v14880_v13, 16  ;;  %v2369_v26 = vrot.slane %v2361_v16, %v20416_v9  ;;  %v2753_v32 = vshll.u32 %v14880_v13, 16 }
 0x31b   : > { %v2912_v41 = vshll.u32 %v2871_v29, 16  ;;  %v2910_v55 = vor.u32 %v2909_v30, %v2905_v40  ;;  %v2916_v58 = vshrl.u32 %v2871_v29, 16  ;;  %v18702_v30 = vld [vmem:[#allocation10 + $0xc8] sm:$0xff]  }
 0x31c   : > { %v20561_v18 = vsel %vm1887_vm1, %v2736_v52, %v2747_v22  ;;  %v2752_v31 = vrot.slane %v2750_v23, 7  ;;  %v14881_v33 = vcombine.low %v2369_v26, %v2381_v25  ;;  %v2397_v37 = vpop.permute.xlu1 %2396  ;;  %16249 = vmatmul.mubr.bf16.gmra.mrb[28].mxu0 %v2019_v35 }
 0x31d   : > { %23383 = vst [vmem:[#allocation72_spill] sm:$0xff] %v20561_v18  ;;  %v2385_v39 = vpop.permute.xlu0 %2384  ;;  %v2405_v50 = vrot.slane %v2397_v37, %v20416_v9  ;;  %v2872_v52 = vmul.bf16 %v20561_v18, %v20564_v46  ;;  %v2914_v56 = vrot.slane %v2912_v41, 1 }
 0x31e   : > { %v2755_v47 = vor.u32 %v2753_v32, %v2752_v31  ;;  %v2393_v42 = vrot.slane %v2385_v39, %v20416_v9  ;;  %v2758_v54 = vshrl.u32 %v14881_v33, 16  ;;  %v2761_v3 = vshll.u32 %v14881_v33, 16 }
 0x31f   : > { %v2920_v61 = vshll.u32 %v2872_v52, 16  ;;  %v2915_v4 = vsel %vm1483_vm0, %v2910_v55, %v2914_v56  ;;  %v2924_v45 = vshrl.u32 %v2872_v52, 16  ;;  %v2918_v21 = vor.u32 %v2916_v58, %v2914_v56 }
 0x320   : > { %v20571_v49 = vsel %vm1887_vm1, %v2744_v8, %v2755_v47  ;;  %v14882_v59 = vcombine.low %v2393_v42, %v2405_v50  ;;  %v2760_v1 = vrot.slane %v2758_v54, 7  ;;  %v2421_v6 = vpop.permute.xlu1 %2420  ;;  %16268 = vmatprep.mubr.bf16.mxu0 %v2915_v4  ;;  %v20585_v42 = vld [vmem:[#allocation2 + $0x28] sm:$0xff] }
 0x321   : > { %23384 = vst [vmem:[#allocation73_spill] sm:$0xff] %v20571_v49  ;;  %v2409_v12 = vpop.permute.xlu0 %2408  ;;  %v2873_v13 = vmul.bf16 %v20571_v49, %v20573_v63  ;;  %v2429_v15 = vrot.slane %v2421_v6, %v20416_v9  ;;  %v2922_v22 = vrot.slane %v2920_v61, 1  ;;  %v20595_v61 = vld [vmem:[#allocation2 + $0x30] sm:$0xff] }
 0x322   : > { %v2766_v7 = vshrl.u32 %v14882_v59, 16  ;;  %v2417_v8 = vrot.slane %v2409_v12, %v20416_v9  ;;  %v2763_v16 = vor.u32 %v2761_v3, %v2760_v1  ;;  %v2769_v26 = vshll.u32 %v14882_v59, 16  ;;  %v18703_v3 = vld [vmem:[#allocation10 + $0xd0] sm:$0xff]  }
 0x323   : > { %v2928_v23 = vshll.u32 %v2873_v13, 16  ;;  %v2923_v33 = vsel %vm1483_vm0, %v2918_v21, %v2922_v22  ;;  %v2926_v39 = vor.u32 %v2924_v45, %v2922_v22  ;;  %v2932_v58 = vshrl.u32 %v2873_v13, 16 }
 0x324   : > { %v2768_v25 = vrot.slane %v2766_v7, 7  ;;  %v14883_v29 = vcombine.low %v2417_v8, %v2429_v15  ;;  %v20581_v32 = vsel %vm1887_vm1, %v2752_v31, %v2763_v16  ;;  %v2445_v35 = vpop.permute.xlu1 %2444  ;;  %16269 = vmatmul.mubr.bf16.vlgmr.msra.gmra.mrb[0].mxu0 %v2923_v33  ;;  %v18704_v33 = vld [vmem:[#allocation10 + $0xd8] sm:$0xff]  }
 0x325   : > { %23385 = vst [vmem:[#allocation74_spill] sm:$0xff] %v20581_v32  ;;  %v2433_v37 = vpop.permute.xlu0 %2432  ;;  %v2930_v40 = vrot.slane %v2928_v23, 1  ;;  %v2453_v50 = vrot.slane %v2445_v35, %v20416_v9  ;;  %16301 = vmatpush3.bf16.msra.mxu0 %v20506_v57  ;;  %v2874_v54 = vmul.bf16 %v20581_v32, %v20585_v42 }
 0x326   : > { %v2771_v41 = vor.u32 %v2769_v26, %v2768_v25  ;;  %v2774_v47 = vshrl.u32 %v14883_v29, 16  ;;  %v2441_v52 = vrot.slane %v2433_v37, %v20416_v9  ;;  %v2777_v59 = vshll.u32 %v14883_v29, 16  ;;  %16302 = vmatprep.subr.bf16.mxu0 %v18702_v30 }
 0x327   : > { %v2931_v31 = vsel %vm1483_vm0, %v2926_v39, %v2930_v40  ;;  %v2936_v57 = vshll.u32 %v2874_v54, 16  ;;  %v2934_v45 = vor.u32 %v2932_v58, %v2930_v40  ;;  %v2940_v13 = vshrl.u32 %v2874_v54, 16 }
 0x328   : > { %v20593_v55 = vsel %vm1887_vm1, %v2760_v1, %v2771_v41  ;;  %v2776_v56 = vrot.slane %v2774_v47, 7  ;;  %16272 = vmatprep.mubr.bf16.mxu0 %v2931_v31  ;;  %v14884_v4 = vcombine.low %v2441_v52, %v2453_v50  ;;  %v2469_v6 = vpop.permute.xlu1 %2468  ;;  %v20607_v31 = vld [vmem:[#allocation2 + $0x38] sm:$0xff] }
 0x329   : > { %23386 = vst [vmem:[#allocation75_spill] sm:$0xff] %v20593_v55  ;;  %v2457_v12 = vpop.permute.xlu0 %2456  ;;  %v2875_v7 = vmul.bf16 %v20593_v55, %v20595_v61  ;;  %v2477_v8 = vrot.slane %v2469_v6, %v20416_v9  ;;  %v2938_v21 = vrot.slane %v2936_v57, 1  ;;  %16303 = vmatpush3.bf16.msra.mxu0 %v18702_v30 }
 0x32a   : > { %v2779_v15 = vor.u32 %v2777_v59, %v2776_v56  ;;  %v2465_v1 = vrot.slane %v2457_v12, %v20416_v9  ;;  %v2782_v16 = vshrl.u32 %v14884_v4, 16  ;;  %v2785_v26 = vshll.u32 %v14884_v4, 16  ;;  %16304 = vmatprep.subr.bf16.mxu0 %v18703_v3  ;;  %v18705_v12 = vld [vmem:[#allocation10 + $0xe0] sm:$0xff]  }
 0x32b   : > { %v2944_v22 = vshll.u32 %v2875_v7, 16  ;;  %v2939_v37 = vsel %vm1483_vm0, %v2934_v45, %v2938_v21  ;;  %v2942_v47 = vor.u32 %v2940_v13, %v2938_v21 }
 0x32c   : > { %v20602_v23 = vsel %vm1887_vm1, %v2768_v25, %v2779_v15  ;;  %v14885_v29 = vcombine.low %v2465_v1, %v2477_v8  ;;  %v2784_v35 = vrot.slane %v2782_v16, 7  ;;  %v2493_v39 = vpop.permute.xlu1 %2492  ;;  %16273 = vmatmul.mubr.bf16.gmra.mrb[4].mxu0 %v2939_v37  ;;  %v2948_v1 = vshrl.u32 %v2875_v7, 16 }
 0x32d   : > { %23387 = vst [vmem:[#allocation76_spill] sm:$0xff] %v20602_v23  ;;  %v2481_v41 = vpop.permute.xlu0 %2480  ;;  %v2946_v50 = vrot.slane %v2944_v22, 1  ;;  %v2501_v30 = vrot.slane %v2493_v39, %v20416_v9  ;;  %v2876_v59 = vmul.bf16 %v20602_v23, %v20607_v31  ;;  %16305 = vmatpush3.bf16.msra.mxu0 %v18703_v3  ;;  %v20616_v22 = vld [vmem:[#allocation2 + $0x40] sm:$0xff] }
 0x32e   : > { %v2790_v40 = vshrl.u32 %v14885_v29, 16  ;;  %v2489_v52 = vrot.slane %v2481_v41, %v20416_v9  ;;  %v2787_v25 = vor.u32 %v2785_v26, %v2784_v35  ;;  %v2793_v4 = vshll.u32 %v14885_v29, 16  ;;  %16306 = vmatprep.subr.bf16.mxu0 %v18704_v33  ;;  %v18706_v41 = vld [vmem:[#allocation10 + $0xe8] sm:$0xff]  }
 0x32f   : > { %v2947_v54 = vsel %vm1483_vm0, %v2942_v47, %v2946_v50  ;;  %v2952_v45 = vshll.u32 %v2876_v59, 16  ;;  %v2950_v26 = vor.u32 %v2948_v1, %v2946_v50  ;;  %v20625_v50 = vld [vmem:[#allocation2 + $0x48] sm:$0xff] }
 0x330   : > { %v2792_v58 = vrot.slane %v2790_v40, 7  ;;  %v14886_v6 = vcombine.low %v2489_v52, %v2501_v30  ;;  %16276 = vmatprep.mubr.bf16.mxu0 %v2947_v54  ;;  %v20613_v57 = vsel %vm1887_vm1, %v2776_v56, %v2787_v25  ;;  %v2517_v15 = vpop.permute.xlu1 %2516  ;;  %v2956_v25 = vshrl.u32 %v2876_v59, 16 }
 0x331   : > { %23388 = vst [vmem:[#allocation77_spill] sm:$0xff] %v20613_v57  ;;  %v2505_v8 = vpop.permute.xlu0 %2504  ;;  %v2525_v13 = vrot.slane %v2517_v15, %v20416_v9  ;;  %v2954_v29 = vrot.slane %v2952_v45, 1  ;;  %v2877_v37 = vmul.bf16 %v20613_v57, %v20616_v22  ;;  %16307 = vmatpush3.bf16.msra.mxu0 %v18704_v33 }
 0x332   : > { %v2795_v16 = vor.u32 %v2793_v4, %v2792_v58  ;;  %v2798_v21 = vshrl.u32 %v14886_v6, 16  ;;  %v2513_v3 = vrot.slane %v2505_v8, %v20416_v9  ;;  %v2801_v7 = vshll.u32 %v14886_v6, 16  ;;  %16308 = vmatprep.subr.bf16.mxu0 %v18705_v12 }
 0x333   : > { %v2955_v40 = vsel %vm1483_vm0, %v2950_v26, %v2954_v29  ;;  %v2960_v54 = vshll.u32 %v2877_v37, 16  ;;  %v2958_v8 = vor.u32 %v2956_v25, %v2954_v29 }
 0x334   : > { %v20622_v56 = vsel %vm1887_vm1, %v2784_v35, %v2795_v16  ;;  %v2800_v39 = vrot.slane %v2798_v21, 7  ;;  %v14887_v47 = vcombine.low %v2513_v3, %v2525_v13  ;;  %v2541_v30 = vpop.permute.xlu1 %2540  ;;  %16277 = vmatmul.mubr.bf16.gmra.mrb[8].mxu0 %v2955_v40  ;;  %v20634_v13 = vld [vmem:[#allocation2 + $0x50] sm:$0xff] }
 0x335   : > { %23389 = vst [vmem:[#allocation78_spill] sm:$0xff] %v20622_v56  ;;  %v2529_v52 = vpop.permute.xlu0 %2528  ;;  %v2549_v33 = vrot.slane %v2541_v30, %v20416_v9  ;;  %v2878_v6 = vmul.bf16 %v20622_v56, %v20625_v50  ;;  %v2962_v1 = vrot.slane %v2960_v54, 1  ;;  %16309 = vmatpush3.bf16.msra.mxu0 %v18705_v12  ;;  %v18707_v3 = vld [vmem:[#allocation10 + $0xf0] sm:$0xff]  }
 0x336   : > { %v2803_v4 = vor.u32 %v2801_v7, %v2800_v39  ;;  %v2537_v35 = vrot.slane %v2529_v52, %v20416_v9  ;;  %v2806_v15 = vshrl.u32 %v14887_v47, 16  ;;  %v2809_v59 = vshll.u32 %v14887_v47, 16  ;;  %16310 = vmatprep.subr.bf16.mxu0 %v18706_v41 }
 0x337   : > { %v2968_v21 = vshll.u32 %v2878_v6, 16  ;;  %v2963_v7 = vsel %vm1483_vm0, %v2958_v8, %v2962_v1  ;;  %v2964_v52 = vshrl.u32 %v2877_v37, 16  ;;  %v2972_v25 = vshrl.u32 %v2878_v6, 16  ;;  %v18708_v37 = vld [vmem:[#allocation10 + $0xf8] sm:$0xff]  }
 0x338   : > { %v20632_v45 = vsel %vm1887_vm1, %v2792_v58, %v2803_v4  ;;  %v14888_v16 = vcombine.low %v2537_v35, %v2549_v33  ;;  %v2808_v26 = vrot.slane %v2806_v15, 7  ;;  %v2565_v40 = vpop.permute.xlu1 %2564  ;;  %16280 = vmatprep.mubr.bf16.mxu0 %v2963_v7 }
 0x339   : > { %23390 = vst [vmem:[#allocation79_spill] sm:$0xff] %v20632_v45  ;;  %v2553_v30 = vpop.permute.xlu0 %2552  ;;  %v2879_v29 = vmul.bf16 %v20632_v45, %v20634_v13  ;;  %v2573_v58 = vrot.slane %v2565_v40, %v20416_v9  ;;  %v2966_v4 = vor.u32 %v2964_v52, %v2962_v1  ;;  %v2970_v33 = vrot.slane %v2968_v21, 1  ;;  %16311 = vmatpush3.bf16.msra.mxu0 %v18706_v41  ;;  %v20646_v41 = vld [vmem:[#allocation2 + $0x58] sm:$0xff] }
 0x33a   : > { %v2814_v12 = vshrl.u32 %v14888_v16, 16  ;;  %v2561_v47 = vrot.slane %v2553_v30, %v20416_v9  ;;  %v2811_v54 = vor.u32 %v2809_v59, %v2808_v26  ;;  %v2817_v8 = vshll.u32 %v14888_v16, 16  ;;  %16312 = vmatprep.subr.bf16.mxu0 %v18707_v3 }
 0x33b   : > { %v2976_v35 = vshll.u32 %v2879_v29, 16  ;;  %v2971_v7 = vsel %vm1483_vm0, %v2966_v4, %v2970_v33  ;;  %v2974_v56 = vor.u32 %v2972_v25, %v2970_v33  ;;  %v20655_v25 = vld [vmem:[#allocation2 + $0x60] sm:$0xff] }
 0x33c   : > { %v2816_v15 = vrot.slane %v2814_v12, 7  ;;  %v14889_v0 = vcombine.low %v2561_v47, %v2573_v58  ;;  %v20642_v5 = vsel %vm1887_vm1, %v2800_v39, %v2811_v54  ;;  %v2589_v45 = vpop.permute.xlu1 %2588  ;;  %16281 = vmatmul.mubr.bf16.gmra.mrb[12].mxu0 %v2971_v7  ;;  %v2980_v47 = vshrl.u32 %v2879_v29, 16 }
 0x33d   : > { %23391 = vst [vmem:[#allocation80_spill] sm:$0xff] %v20642_v5  ;;  %v2577_v40 = vpop.permute.xlu0 %2576  ;;  %v2978_v30 = vrot.slane %v2976_v35, 1  ;;  %v2597_v1 = vrot.slane %v2589_v45, %v20416_v9  ;;  %v2880_v39 = vmul.bf16 %v20642_v5, %v20646_v41  ;;  %16313 = vmatpush3.bf16.msra.mxu0 %v18707_v3  ;;  %v20657_v45 = vld [vmem:[#allocation10 + $0x100] sm:$0xff]  }
 0x33e   : > { %v2819_v6 = vor.u32 %v2817_v8, %v2816_v15  ;;  %v2822_v59 = vshrl.u32 %v14889_v0, 16  ;;  %v2585_v16 = vrot.slane %v2577_v40, %v20416_v9  ;;  %v2825_v58 = vshll.u32 %v14889_v0, 16  ;;  %16314 = vmatprep.subr.bf16.mxu0 %v18708_v37 }
 0x33f   : > { %v2979_v21 = vsel %vm1483_vm0, %v2974_v56, %v2978_v30  ;;  %v2984_v56 = vshll.u32 %v2880_v39, 16  ;;  %v2982_v0 = vor.u32 %v2980_v47, %v2978_v30  ;;  %v2988_v40 = vshrl.u32 %v2880_v39, 16  ;;  %v20670_v47 = vld [vmem:[#allocation2 + $0x68] sm:$0xff] }
 0x340   : > { %v20653_v52 = vsel %vm1887_vm1, %v2808_v26, %v2819_v6  ;;  %v2824_v12 = vrot.slane %v2822_v59, 7  ;;  %16284 = vmatprep.mubr.bf16.mxu0 %v2979_v21  ;;  %v14890_v54 = vcombine.low %v2585_v16, %v2597_v1  ;;  %v2613_v4 = vpop.permute.xlu1 %2612 }
 0x341   : > { %23392 = vst [vmem:[#allocation81_spill] sm:$0xff] %v20653_v52  ;;  %v2601_v33 = vpop.permute.xlu0 %2600  ;;  %v2881_v35 = vmul.bf16 %v20653_v52, %v20655_v25  ;;  %v2621_v26 = vrot.slane %v2613_v4, %v20416_v9  ;;  %v2986_v29 = vrot.slane %v2984_v56, 1  ;;  %16315 = vmatpush3.bf16.msra.mxu0 %v18708_v37 }
 0x342   : > { %v2827_v3 = vor.u32 %v2825_v58, %v2824_v12  ;;  %v2609_v8 = vrot.slane %v2601_v33, %v20416_v9  ;;  %v2830_v7 = vshrl.u32 %v14890_v54, 16  ;;  %v2833_v1 = vshll.u32 %v14890_v54, 16  ;;  %16348 = vmatprep.subr.bf16.mxu0 %v20657_v45 }
 0x343   : > { %v2992_v6 = vshll.u32 %v2881_v35, 16  ;;  %v2987_v58 = vsel %vm1483_vm0, %v2982_v0, %v2986_v29  ;;  %v2990_v5 = vor.u32 %v2988_v40, %v2986_v29 }
 0x344   : > { %v20664_v59 = vsel %vm1887_vm1, %v2816_v15, %v2827_v3  ;;  %v14891_v16 = vcombine.low %v2609_v8, %v2621_v26  ;;  %v2832_v21 = vrot.slane %v2830_v7, 7  ;;  %v2637_v52 = vpop.permute.xlu1 %2636  ;;  %16285 = vmatmul.mubr.bf16.gmra.mrb[16].mxu0 %v2987_v58  ;;  %v2996_v7 = vshrl.u32 %v2881_v35, 16 }
 0x345   : > { %23393 = vst [vmem:[#allocation82_spill] sm:$0xff] %v20664_v59  ;;  %v2625_v4 = vpop.permute.xlu0 %2624  ;;  %v2994_v33 = vrot.slane %v2992_v6, 1  ;;  %v2645_v39 = vrot.slane %v2637_v52, %v20416_v9  ;;  %v2882_v56 = vmul.bf16 %v20664_v59, %v20670_v47  ;;  %v20678_v52 = vld [vmem:[#allocation2 + $0x70] sm:$0xff] }
 0x346   : > { %v2838_v30 = vshrl.u32 %v14891_v16, 16  ;;  %v2633_v37 = vrot.slane %v2625_v4, %v20416_v9  ;;  %v2835_v15 = vor.u32 %v2833_v1, %v2832_v21  ;;  %v2841_v26 = vshll.u32 %v14891_v16, 16 }
 0x347   : > { %v2995_v54 = vsel %vm1483_vm0, %v2990_v5, %v2994_v33  ;;  %v3000_v29 = vshll.u32 %v2882_v56, 16  ;;  %v2998_v5 = vor.u32 %v2996_v7, %v2994_v33  ;;  %v3004_v58 = vshrl.u32 %v2882_v56, 16 }
 0x348   : > { %v2840_v3 = vrot.slane %v2838_v30, 7  ;;  %v14892_v8 = vcombine.low %v2633_v37, %v2645_v39  ;;  %16288 = vmatprep.mubr.bf16.mxu0 %v2995_v54  ;;  %v20676_v0 = vsel %vm1887_vm1, %v2824_v12, %v2835_v15  ;;  %v20687_v39 = vld [vmem:[#allocation2 + $0x78] sm:$0xff] }
 0x349   : > { %23394 = vst [vmem:[#allocation83_spill] sm:$0xff] %v20676_v0  ;;  %v2883_v6 = vmul.bf16 %v20676_v0, %v20678_v52  ;;  %v3002_v1 = vrot.slane %v3000_v29, 1  ;;  %v20699_v29 = vld [vmem:[#allocation2 + $0x80] sm:$0xff] }
 0x34a   : > { %v2843_v9 = vor.u32 %v2841_v26, %v2840_v3  ;;  %v2846_v40 = vshrl.u32 %v14892_v8, 16  ;;  %v2849_v30 = vshll.u32 %v14892_v8, 16 }
 0x34b   : > { %v3008_v12 = vshll.u32 %v2883_v6, 16  ;;  %v3003_v35 = vsel %vm1483_vm0, %v2998_v5, %v3002_v1  ;;  %v3006_v33 = vor.u32 %v3004_v58, %v3002_v1  ;;  %v3012_v56 = vshrl.u32 %v2883_v6, 16  ;;  %v3293_v58 = vld [vmem:[#allocation2 + $0x8] sm:$0x80] }
 0x34c   : > { %v20683_v4 = vsel %vm1887_vm1, %v2832_v21, %v2843_v9  ;;  %v20685_v16 = vrot.slane %v2846_v40, 7  ;;  %16289 = vmatmul.mubr.bf16.gmra.mrb[20].mxu0 %v3003_v35  ;;  %v3296_v21 = vmul.bf16 %v20555_v28, %v20431_v38  ;;  %v2261_v9 = vld [vmem:[#allocation2 + $0x88] sm:$0x1] }
 0x34d   : > { %23395 = vst [vmem:[#allocation84_spill] sm:$0xff] %v20683_v4  ;;  %v2884_v37 = vmul.bf16 %v20683_v4, %v20687_v39  ;;  %v3010_v54 = vrot.slane %v3008_v12, 1 }
 0x34e   : > { %23396 = vst [vmem:[#allocation85_spill] sm:$0xff] %v20685_v16  ;;  %v2851_v15 = vor.u32 %v2849_v30, %v20685_v16  ;;  %v3334_v30 = vshrl.u32 %v3296_v21, 16  ;;  %v3337_v4 = vshll.u32 %v3296_v21, 16 }
 0x34f   : > { %v3016_v26 = vshll.u32 %v2884_v37, 16  ;;  %v3011_v7 = vsel %vm1483_vm0, %v3006_v33, %v3010_v54  ;;  %v3014_v40 = vor.u32 %v3012_v56, %v3010_v54  ;;  %v3020_v6 = vshrl.u32 %v2884_v37, 16 }
 0x350   : > { %v20696_v8 = vsel %vm1887_vm1, %v2840_v3, %v2851_v15  ;;  %16292 = vmatprep.mubr.bf16.mxu0 %v3011_v7  ;;  %v2886_v3 = vmul.bf16 %v20685_v16, %v2261_v9  ;;  %v3295_v15 = vmul.bf16 %v3293_v58, %v20424_v27  ;;  %v3297_v7 = vmul.bf16 %v20564_v46, %v20440_v51 }
 0x351   : > { %23397 = vst [vmem:[#allocation86_spill] sm:$0xff] %v20696_v8  ;;  %v3018_v5 = vrot.slane %v3016_v26, 1  ;;  %v2885_v1 = vmul.bf16 %v20696_v8, %v20699_v29  ;;  %v3336_v54 = vrot.slane %v3334_v30, 7  ;;  %v3298_v56 = vmul.bf16 %v20573_v63, %v20444_v62 }
 0x352   : > { %v3330_v37 = vshrl.u32 %v3295_v15, 16  ;;  %v3342_v16 = vshrl.u32 %v3297_v7, 16  ;;  %v3299_v30 = vmul.bf16 %v20585_v42, %v20451_v19 }
 0x353   : > { %v3019_v12 = vsel %vm1483_vm0, %v3014_v40, %v3018_v5  ;;  %v3024_v35 = vshll.u32 %v2885_v1, 16  ;;  %v3022_v33 = vor.u32 %v3020_v6, %v3018_v5  ;;  %v3028_v8 = vshrl.u32 %v2885_v1, 16 }
 0x354   : > { %16293 = vmatmul.mubr.bf16.gmra.mrb[24].mxu0 %v3019_v12  ;;  %v3032_v40 = vshll.u32 %v2886_v3, 16  ;;  %v3339_v58 = vor.u32 %v3337_v4, %v3336_v54  ;;  %v3350_v5 = vshrl.u32 %v3298_v56, 16  ;;  %v3344_v12 = vrot.slane %v3342_v16, 7 }
 0x355   : > { %v3026_v38 = vrot.slane %v3024_v35, 1  ;;  %v3332_v35 = vrot.slane %v3330_v37, 7  ;;  %v3300_v3 = vmul.bf16 %v20595_v61, %v20460_v44  ;;  %v3353_v21 = vshll.u32 %v3298_v56, 16 }
 0x356   : > { %v3034_v6 = vrot.slane %v3032_v40, 1  ;;  %v3352_v1 = vrot.slane %v3350_v5, 7  ;;  %v18710_v40 = vld [vmem:[#allocation10 + $0x108] sm:$0xff]   ;;  %v3302_v5 = vmul.bf16 %v20616_v22, %v20473_v17 }
 0x357   : > { %v3027_v26 = vsel %vm1483_vm0, %v3022_v33, %v3026_v38  ;;  %v3030_v9 = vor.u32 %v3028_v8, %v3026_v38  ;;  %v3340_v33 = vsel %vm1887_vm1, %v3332_v35, %v3339_v58  ;;  %v3345_v38 = vshll.u32 %v3297_v7, 16 }
 0x358   : > { %16296 = vmatprep.mubr.bf16.mxu0 %v3027_v26  ;;  %v3358_v8 = vshrl.u32 %v3299_v30, 16  ;;  %v3355_v15 = vor.u32 %v3353_v21, %v3352_v1  ;;  %v3366_v26 = vshrl.u32 %v3300_v3, 16  ;;  %v3361_v7 = vshll.u32 %v3299_v30, 16  ;;  %v18712_v21 = vld [vmem:[#allocation10 + $0x118] sm:$0xff]  }
 0x359   : > { %v3035_v51 = vsel %vm1483_vm0, %v3030_v9, %v3034_v6  ;;  %v3347_v4 = vor.u32 %v3345_v38, %v3344_v12  ;;  %v3369_v56 = vshll.u32 %v3300_v3, 16  ;;  %v18711_v6 = vld [vmem:[#allocation10 + $0x110] sm:$0xff]   ;;  %v3382_v38 = vshrl.u32 %v3302_v5, 16 }
 0x35a   : > { %v3360_v37 = vrot.slane %v3358_v8, 7  ;;  %v3356_v9 = vsel %vm1887_vm1, %v3344_v12, %v3355_v15  ;;  %v3368_v58 = vrot.slane %v3366_v26, 7  ;;  %v3303_v8 = vmul.bf16 %v20625_v50, %v20482_v43 }
 0x35b   : > { %v3348_v16 = vsel %vm1887_vm1, %v3336_v54, %v3347_v4  ;;  %v3384_v30 = vrot.slane %v3382_v38, 7  ;;  %v3304_v3 = vmul.bf16 %v20634_v13, %v20487_v36  ;;  %v3385_v26 = vshll.u32 %v3302_v5, 16 }
 0x35c   : > { %16297 = vmatmul.mubr.bf16.gmra.mrb[28].mxu0 %v3035_v51  ;;  %v3301_v51 = vmul.bf16 %v20607_v31, %v20466_v60  ;;  %v3363_v35 = vor.u32 %v3361_v7, %v3360_v37  ;;  %v3306_v5 = vmul.bf16 %v20655_v25, %v20503_v48 }
 0x35d   : > { %16316 = vmatprep.mubr.bf16.mxu0 %v3340_v33  ;;  %v3371_v33 = vor.u32 %v3369_v56, %v3368_v58  ;;  %v3398_v7 = vshrl.u32 %v3304_v3, 16  ;;  %v18714_v56 = vld [vmem:[#allocation10 + $0x128] sm:$0xff]   ;;  %v3401_v38 = vshll.u32 %v3304_v3, 16  ;;  %v3308_v3 = vmul.bf16 %v20678_v52, %v20518_v24 }
 0x35e   : > { %v3374_v54 = vshrl.u32 %v3301_v51, 16  ;;  %v3364_v12 = vsel %vm1887_vm1, %v3352_v1, %v3363_v35  ;;  %v3377_v15 = vshll.u32 %v3301_v51, 16  ;;  %v3387_v1 = vor.u32 %v3385_v26, %v3384_v30  ;;  %v18716_v26 = vld [vmem:[#allocation10 + $0x138] sm:$0xff]  }
 0x360   : > { %v3376_v4 = vrot.slane %v3374_v54, 7  ;;  %v3305_v54 = vmul.bf16 %v20646_v41, %v20494_v20 }
 0x362   : > { %v3388_v51 = vsel %vm1887_vm1, %v3376_v4, %v3387_v1  ;;  %v3409_v1 = vshll.u32 %v3305_v54, 16 }
 0x364   : > { %16317 = vmatmul.mubr.bf16.vlgmr.msra.gmra.mrb[0].mxu0 %v3348_v16  ;;  %v3379_v16 = vor.u32 %v3377_v15, %v3376_v4  ;;  %v3414_v15 = vshrl.u32 %v3306_v5, 16 }
 0x365   : > { %16320 = vmatprep.mubr.bf16.mxu0 %v3356_v9  ;;  %16349 = vmatpush3.bf16.msra.mxu0 %v20657_v45  ;;  %v3372_v45 = vsel %vm1887_vm1, %v3360_v37, %v3371_v33  ;;  %v3390_v9 = vshrl.u32 %v3303_v8, 16  ;;  %v3393_v33 = vshll.u32 %v3303_v8, 16 }
 0x366   : > { %16350 = vmatprep.subr.bf16.mxu0 %v18710_v40  ;;  %v3380_v35 = vsel %vm1887_vm1, %v3368_v58, %v3379_v16 }
 0x367   : > { %v3392_v37 = vrot.slane %v3390_v9, 7  ;;  %v3307_v9 = vmul.bf16 %v20670_v47, %v20510_v2 }
 0x369   : > { %16351 = vmatpush3.bf16.msra.mxu0 %v18710_v40  ;;  %v18713_v40 = vld [vmem:[#allocation10 + $0x120] sm:$0xff]  }
 0x36a   : > { %16352 = vmatprep.subr.bf16.mxu0 %v18711_v6 }
 0x36c   : > { %16321 = vmatmul.mubr.bf16.gmra.mrb[4].mxu0 %v3364_v12  ;;  %v3395_v12 = vor.u32 %v3393_v33, %v3392_v37  ;;  %v3430_v33 = vshrl.u32 %v3308_v3, 16 }
 0x36d   : > { %16324 = vmatprep.mubr.bf16.mxu0 %v3372_v45  ;;  %16353 = vmatpush3.bf16.msra.mxu0 %v18711_v6  ;;  %v3400_v6 = vrot.slane %v3398_v7, 7  ;;  %v3406_v45 = vshrl.u32 %v3305_v54, 16  ;;  %v3417_v7 = vshll.u32 %v3306_v5, 16  ;;  %v3310_v5 = vmul.bf16 %v20699_v29, %v20532_v10 }
 0x36e   : > { %16354 = vmatprep.subr.bf16.mxu0 %v18712_v21  ;;  %v3396_v16 = vsel %vm1887_vm1, %v3384_v30, %v3395_v12  ;;  %v3432_v54 = vrot.slane %v3430_v33, 7 }
 0x36f   : > { %v3403_v58 = vor.u32 %v3401_v38, %v3400_v6  ;;  %v3408_v4 = vrot.slane %v3406_v45, 7 }
 0x371   : > { %16355 = vmatpush3.bf16.msra.mxu0 %v18712_v21  ;;  %v18715_v21 = vld [vmem:[#allocation10 + $0x130] sm:$0xff]   ;;  %v3404_v8 = vsel %vm1887_vm1, %v3392_v37, %v3403_v58  ;;  %v3309_v37 = vmul.bf16 %v20687_v39, %v20527_v53  ;;  %v3433_v58 = vshll.u32 %v3308_v3, 16 }
 0x372   : > { %16356 = vmatprep.subr.bf16.mxu0 %v18713_v40 }
 0x374   : > { %16325 = vmatmul.mubr.bf16.gmra.mrb[8].mxu0 %v3380_v35  ;;  %v3411_v35 = vor.u32 %v3409_v1, %v3408_v4 }
 0x375   : > { %16328 = vmatprep.mubr.bf16.mxu0 %v3388_v51  ;;  %16357 = vmatpush3.bf16.msra.mxu0 %v18713_v40  ;;  %v3416_v40 = vrot.slane %v3414_v15, 7  ;;  %v3422_v51 = vshrl.u32 %v3307_v9, 16 }
 0x376   : > { %16358 = vmatprep.subr.bf16.mxu0 %v18714_v56  ;;  %v3412_v38 = vsel %vm1887_vm1, %v3400_v6, %v3411_v35 }
 0x377   : > { %v3419_v30 = vor.u32 %v3417_v7, %v3416_v40  ;;  %v3424_v12 = vrot.slane %v3422_v51, 7  ;;  %v20749_v7 = vld [vmem:[#allocation2 + $0x88] sm:$0xff] }
 0x378   : > { %v3311_v35 = vmul.bf16 %v20749_v7, %v20534_v11 }
 0x379   : > { %16359 = vmatpush3.bf16.msra.mxu0 %v18714_v56  ;;  %v18717_v56 = vld [vmem:[#allocation10 + $0x140] sm:$0xff]   ;;  %v3420_v45 = vsel %vm1887_vm1, %v3408_v4, %v3419_v30  ;;  %v3441_v30 = vshll.u32 %v3309_v37, 16 }
 0x37a   : > { %16360 = vmatprep.subr.bf16.mxu0 %v18715_v21  ;;  %v3454_v33 = vshrl.u32 %v3311_v35, 16 }
 0x37c   : > { %16329 = vmatmul.mubr.bf16.gmra.mrb[12].mxu0 %v3396_v16  ;;  %v3438_v16 = vshrl.u32 %v3309_v37, 16  ;;  %v20758_v37 = vld [vmem:[#allocation2] sm:$0xff] }
 0x37d   : > { %16332 = vmatprep.mubr.bf16.mxu0 %v3404_v8  ;;  %16361 = vmatpush3.bf16.msra.mxu0 %v18715_v21  ;;  %v3425_v21 = vshll.u32 %v3307_v9, 16  ;;  %v3446_v8 = vshrl.u32 %v3310_v5, 16  ;;  %v3449_v9 = vshll.u32 %v3310_v5, 16  ;;  %870 = vst.msk [vmem:[#allocation3] sm:$0xff] %vm869_vm2, %v20758_v37  ;;  %871 = vst.msk [vmem:[#allocation3 + $0x8] sm:$0xff] %vm869_vm2, %v20758_v37  ;;  %v18720_v5 = vld [vmem:[#allocation10 + $0x158] sm:$0xff]  }
 0x37e   : > { %16362 = vmatprep.subr.bf16.mxu0 %v18716_v26  ;;  %v3440_v1 = vrot.slane %v3438_v16, 7  ;;  %872 = vst.msk [vmem:[#allocation3 + $0x90] sm:$0xff] %vm869_vm2, %v20758_v37  ;;  %873 = vst.msk [vmem:[#allocation3 + $0x98] sm:$0xff] %vm869_vm2, %v20758_v37 }
 0x37f   : > { %v3427_v15 = vor.u32 %v3425_v21, %v3424_v12  ;;  %v3448_v51 = vrot.slane %v3446_v8, 7  ;;  %v3456_v21 = vrot.slane %v3454_v33, 7  ;;  %v18722_v8 = vld [vmem:[#allocation10 + $0x168] sm:$0xff]  }
 0x380   : > { %v3443_v3 = vor.u32 %v3441_v30, %v3440_v1 }
 0x381   : > { %16363 = vmatpush3.bf16.msra.mxu0 %v18716_v26  ;;  %v3435_v26 = vor.u32 %v3433_v58, %v3432_v54  ;;  %v3428_v6 = vsel %vm1887_vm1, %v3416_v40, %v3427_v15  ;;  %v3457_v58 = vshll.u32 %v3311_v35, 16  ;;  %v3993_v35 = vmul.bf16 %v20541_v34, %v20555_v28 }
 0x382   : > { %16396 = vmatprep.subr.bf16.mxu0 %v18717_v56 }
 0x383   : > { %v3436_v4 = vsel %vm1887_vm1, %v3424_v12, %v3435_v26  ;;  %v3459_v15 = vor.u32 %v3457_v58, %v3456_v21  ;;  %v18718_v12 = vld [vmem:[#allocation10 + $0x148] sm:$0xff]   ;;  %v18721_v26 = vld [vmem:[#allocation10 + $0x160] sm:$0xff]   ;;  %v4028_v33 = vshrl.u32 %v3993_v35, 16 }
 0x384   : > { %16333 = vmatmul.mubr.bf16.gmra.mrb[16].mxu0 %v3412_v38  ;;  %v3451_v38 = vor.u32 %v3449_v9, %v3448_v51 }
 0x385   : > { %16336 = vmatprep.mubr.bf16.mxu0 %v3420_v45  ;;  %v3444_v45 = vsel %vm1887_vm1, %v3432_v54, %v3443_v3  ;;  %v3460_v16 = vsel %vm1887_vm1, %v3448_v51, %v3459_v15  ;;  %v18719_v54 = vld [vmem:[#allocation10 + $0x150] sm:$0xff]   ;;  %v4030_v51 = vshll.u32 %v3993_v35, 16  ;;  %v3995_v3 = vmul.bf16 %v20561_v18, %v20573_v63 }
 0x386   : > { %v3452_v40 = vsel %vm1887_vm1, %v3440_v1, %v3451_v38  ;;  %v18725_v1 = vld [vmem:[#allocation10 + $0x180] sm:$0xff]   ;;  %v3997_v15 = vmul.bf16 %v20581_v32, %v20595_v61 }
 0x387   : > { %v4032_v9 = vrot.slane %v4030_v51, 1 }
 0x389   : > { %v4033_v21 = vor.u32 %v4032_v9, %v4028_v33 }
 0x38c   : > { %16337 = vmatmul.mubr.bf16.gmra.mrb[20].mxu0 %v3428_v6  ;;  %v18724_v6 = vld [vmem:[#allocation10 + $0x178] sm:$0xff]  }
 0x38d   : > { %16340 = vmatprep.mubr.bf16.mxu0 %v3436_v4  ;;  %v3994_v4 = vmul.bf16 %v20551_v14, %v20564_v46 }
 0x38f   : > { %v4035_v30 = vshll.u32 %v3994_v4, 16 }
 0x391   : > { %v4037_v38 = vrot.slane %v4035_v30, 1 }
 0x394   : > { %16341 = vmatmul.mubr.bf16.gmra.mrb[24].mxu0 %v3444_v45  ;;  %v3996_v45 = vmul.bf16 %v20571_v49, %v20585_v42 }
 0x395   : > { %16344 = vmatprep.mubr.bf16.mxu0 %v3452_v40 }
 0x396   : > { %v4051_v40 = vshll.u32 %v3996_v45, 16  ;;  %v4055_v30 = vshrl.u32 %v3996_v45, 16  ;;  %v23398_v45 = vld [vmem:[#allocation78_spill] sm:$0xff] }
 0x39c   : > { %16345 = vmatmul.mubr.bf16.gmra.mrb[28].mxu0 %v3460_v16  ;;  %v4039_v16 = vshrl.u32 %v3994_v4, 16  ;;  %v18727_v4 = vld [vmem:[#allocation10 + $0x190] sm:$0xff]  }
 0x39d   : > { %16364 = vmatprep.mubr.bf16.mxu0 %v20555_v28  ;;  %v4043_v28 = vshll.u32 %v3995_v3, 16 }
 0x39f   : > { %v4045_v58 = vrot.slane %v4043_v28, 1  ;;  %v18728_v28 = vld [vmem:[#allocation10 + $0x198] sm:$0xff]  }
 0x3a4   : > { %16365 = vmatmul.mubr.bf16.vlgmr.msra.gmra.mrb[0].mxu0 %v20564_v46  ;;  %v4038_v46 = vsel %vm1483_vm0, %v4033_v21, %v4037_v38 }
 0x3a5   : > { %16397 = vmatpush3.bf16.msra.mxu0 %v18717_v56  ;;  %16368 = vmatprep.mubr.bf16.mxu0 %v20573_v63  ;;  %v18723_v56 = vld [vmem:[#allocation10 + $0x170] sm:$0xff]   ;;  %v4053_v63 = vrot.slane %v4051_v40, 1 }
 0x3a6   : > { %16398 = vmatprep.subr.bf16.mxu0 %v18718_v12 }
 0x3a7   : > { %v4057_v33 = vor.u32 %v4055_v30, %v4053_v63 }
 0x3a9   : > { %16399 = vmatpush3.bf16.msra.mxu0 %v18718_v12  ;;  %v4047_v12 = vshrl.u32 %v3995_v3, 16  ;;  %v4000_v3 = vmul.bf16 %v20613_v57, %v20625_v50 }
 0x3aa   : > { %16400 = vmatprep.subr.bf16.mxu0 %v18719_v54 }
 0x3ab   : > { %v4083_v40 = vshll.u32 %v4000_v3, 16 }
 0x3ac   : > { %16369 = vmatmul.mubr.bf16.gmra.mrb[4].mxu0 %v20585_v42  ;;  %v4049_v42 = vor.u32 %v4047_v12, %v4045_v58 }
 0x3ad   : > { %16372 = vmatprep.mubr.bf16.mxu0 %v20595_v61  ;;  %16401 = vmatpush3.bf16.msra.mxu0 %v18719_v54  ;;  %v3998_v54 = vmul.bf16 %v20593_v55, %v20607_v31  ;;  %v3999_v61 = vmul.bf16 %v20602_v23, %v20616_v22 }
 0x3ae   : > { %16402 = vmatprep.subr.bf16.mxu0 %v18720_v5 }
 0x3af   : > { %v4067_v35 = vshll.u32 %v3998_v54, 16  ;;  %v4075_v21 = vshll.u32 %v3999_v61, 16  ;;  %v4079_v12 = vshrl.u32 %v3999_v61, 16  ;;  %v23400_v61 = vld [vmem:[#allocation80_spill] sm:$0xff] }
 0x3b0   : > { %v4003_v30 = vmul.bf16 %v23400_v61, %v20655_v25 }
 0x3b1   : > { %16403 = vmatpush3.bf16.msra.mxu0 %v18720_v5  ;;  %v4041_v5 = vor.u32 %v4039_v16, %v4037_v38  ;;  %v4069_v9 = vrot.slane %v4067_v35, 1  ;;  %v4071_v16 = vshrl.u32 %v3998_v54, 16 }
 0x3b2   : > { %16404 = vmatprep.subr.bf16.mxu0 %v18721_v26 }
 0x3b4   : > { %16373 = vmatmul.mubr.bf16.gmra.mrb[8].mxu0 %v20607_v31  ;;  %v4063_v31 = vshrl.u32 %v3997_v15, 16 }
 0x3b5   : > { %16376 = vmatprep.mubr.bf16.mxu0 %v20616_v22  ;;  %16405 = vmatpush3.bf16.msra.mxu0 %v18721_v26  ;;  %v4059_v26 = vshll.u32 %v3997_v15, 16  ;;  %v4077_v22 = vrot.slane %v4075_v21, 1  ;;  %v18729_v15 = vld [vmem:[#allocation10 + $0x1a0] sm:$0xff]  }
 0x3b6   : > { %16406 = vmatprep.subr.bf16.mxu0 %v18722_v8  ;;  %v23401_v21 = vld [vmem:[#allocation81_spill] sm:$0xff] }
 0x3b7   : > { %v4061_v51 = vrot.slane %v4059_v26, 1  ;;  %v4073_v26 = vor.u32 %v4071_v16, %v4069_v9 }
 0x3b9   : > { %16407 = vmatpush3.bf16.msra.mxu0 %v18722_v8  ;;  %v18726_v8 = vld [vmem:[#allocation10 + $0x188] sm:$0xff]   ;;  %v4065_v38 = vor.u32 %v4063_v31, %v4061_v51  ;;  %v4078_v35 = vsel %vm1483_vm0, %v4073_v26, %v4077_v22  ;;  %v18731_v31 = vld [vmem:[#allocation10 + $0x1b0] sm:$0xff]   ;;  %v20818_v26 = vld [vmem:[#allocation10 + $0x1c0] sm:$0xff]  }
 0x3ba   : > { %16408 = vmatprep.subr.bf16.mxu0 %v18723_v56 }
 0x3bc   : > { %16377 = vmatmul.mubr.bf16.gmra.mrb[12].mxu0 %v20625_v50 }
 0x3bd   : > { %16380 = vmatprep.mubr.bf16.mxu0 %v20634_v13  ;;  %16409 = vmatpush3.bf16.msra.mxu0 %v18723_v56  ;;  %v4046_v56 = vsel %vm1483_vm0, %v4041_v5, %v4045_v58  ;;  %v4001_v58 = vmul.bf16 %v23398_v45, %v20634_v13  ;;  %v23399_v5 = vld [vmem:[#allocation79_spill] sm:$0xff] }
 0x3be   : > { %16410 = vmatprep.subr.bf16.mxu0 %v18724_v6 }
 0x3c1   : > { %16411 = vmatpush3.bf16.msra.mxu0 %v18724_v6  ;;  %v4054_v6 = vsel %vm1483_vm0, %v4049_v42, %v4053_v63  ;;  %v4085_v63 = vrot.slane %v4083_v40, 1  ;;  %v4002_v42 = vmul.bf16 %v23399_v5, %v20646_v41  ;;  %v4107_v40 = vshll.u32 %v4003_v30, 16 }
 0x3c2   : > { %16444 = vmatprep.subr.bf16.mxu0 %v18725_v1 }
 0x3c4   : > { %16381 = vmatmul.mubr.bf16.gmra.mrb[16].mxu0 %v20646_v41 }
 0x3c5   : > { %16384 = vmatprep.mubr.bf16.mxu0 %v20655_v25 }
 0x3cc   : > { %16385 = vmatmul.mubr.bf16.gmra.mrb[20].mxu0 %v20670_v47 }
 0x3cd   : > { %16388 = vmatprep.mubr.bf16.mxu0 %v20678_v52 }
 0x3d4   : > { %16389 = vmatmul.mubr.bf16.gmra.mrb[24].mxu0 %v20687_v39 }
 0x3d5   : > { %16392 = vmatprep.mubr.bf16.mxu0 %v20699_v29 }
 0x3dc   : > { %16393 = vmatmul.mubr.bf16.gmra.mrb[28].mxu0 %v20749_v7 }
 0x3dd   : > { %16412 = vmatprep.mubr.bf16.mxu0 %v4038_v46  ;;  %v4070_v46 = vsel %vm1483_vm0, %v4065_v38, %v4069_v9  ;;  %v4087_v9 = vshrl.u32 %v4000_v3, 16  ;;  %v4109_v3 = vrot.slane %v4107_v40, 1 }
 0x3e4   : > { %16413 = vmatmul.mubr.bf16.vlgmr.msra.gmra.mrb[0].mxu0 %v4046_v56  ;;  %v4091_v56 = vshll.u32 %v4001_v58, 16 }
 0x3e5   : > { %16416 = vmatprep.mubr.bf16.mxu0 %v4054_v6  ;;  %16445 = vmatpush3.bf16.msra.mxu0 %v18725_v1  ;;  %v4062_v1 = vsel %vm1483_vm0, %v4057_v33, %v4061_v51  ;;  %v18730_v6 = vld [vmem:[#allocation10 + $0x1a8] sm:$0xff]   ;;  %v4095_v33 = vshrl.u32 %v4001_v58, 16  ;;  %v4005_v58 = vmul.bf16 %v20664_v59, %v20678_v52 }
 0x3e6   : > { %16446 = vmatprep.subr.bf16.mxu0 %v18726_v8  ;;  %v4093_v54 = vrot.slane %v4091_v56, 1 }
 0x3e9   : > { %16447 = vmatpush3.bf16.msra.mxu0 %v18726_v8  ;;  %v4081_v8 = vor.u32 %v4079_v12, %v4077_v22  ;;  %v18732_v22 = vld [vmem:[#allocation10 + $0x1b8] sm:$0xff]  }
 0x3ea   : > { %16448 = vmatprep.subr.bf16.mxu0 %v18727_v4 }
 0x3eb   : > { %v4086_v51 = vsel %vm1483_vm0, %v4081_v8, %v4085_v63  ;;  %v4111_v8 = vshrl.u32 %v4003_v30, 16 }
 0x3ec   : > { %16417 = vmatmul.mubr.bf16.gmra.mrb[4].mxu0 %v4062_v1  ;;  %v4089_v1 = vor.u32 %v4087_v9, %v4085_v63  ;;  %v4103_v63 = vshrl.u32 %v4002_v42, 16 }
 0x3ed   : > { %16420 = vmatprep.mubr.bf16.mxu0 %v4070_v46  ;;  %16449 = vmatpush3.bf16.msra.mxu0 %v18727_v4  ;;  %v4099_v4 = vshll.u32 %v4002_v42, 16  ;;  %v4097_v46 = vor.u32 %v4095_v33, %v4093_v54  ;;  %v23402_v42 = vld [vmem:[#allocation84_spill] sm:$0xff] }
 0x3ee   : > { %16450 = vmatprep.subr.bf16.mxu0 %v18728_v28  ;;  %v4007_v30 = vmul.bf16 %v23402_v42, %v20699_v29  ;;  %v20838_v42 = vld [vmem:[#allocation2 + $0x20] sm:$0xff] }
 0x3ef   : > { %v4101_v38 = vrot.slane %v4099_v4, 1  ;;  %v4123_v4 = vshll.u32 %v4005_v58, 16 }
 0x3f1   : > { %16451 = vmatpush3.bf16.msra.mxu0 %v18728_v28  ;;  %v4004_v28 = vmul.bf16 %v23401_v21, %v20670_v47  ;;  %v4102_v16 = vsel %vm1483_vm0, %v4097_v46, %v4101_v38  ;;  %v4125_v33 = vrot.slane %v4123_v4, 1  ;;  %v4127_v46 = vshrl.u32 %v4005_v58, 16  ;;  %v3992_v58 = vld [vmem:[#allocation2 + $0x90] sm:$0x1] }
 0x3f2   : > { %16452 = vmatprep.subr.bf16.mxu0 %v18729_v15 }
 0x3f3   : > { %v4115_v12 = vshll.u32 %v4004_v28, 16 }
 0x3f4   : > { %16421 = vmatmul.mubr.bf16.gmra.mrb[8].mxu0 %v4078_v35  ;;  %v4105_v35 = vor.u32 %v4103_v63, %v4101_v38  ;;  %v23403_v38 = vld [vmem:[#allocation86_spill] sm:$0xff] }
 0x3f5   : > { %16424 = vmatprep.mubr.bf16.mxu0 %v4086_v51  ;;  %16453 = vmatpush3.bf16.msra.mxu0 %v18729_v15  ;;  %v4094_v15 = vsel %vm1483_vm0, %v4089_v1, %v4093_v54  ;;  %v4117_v56 = vrot.slane %v4115_v12, 1  ;;  %v4113_v51 = vor.u32 %v4111_v8, %v4109_v3  ;;  %v4119_v1 = vshrl.u32 %v4004_v28, 16 }
 0x3f6   : > { %16454 = vmatprep.subr.bf16.mxu0 %v18730_v6  ;;  %v4110_v54 = vsel %vm1483_vm0, %v4105_v35, %v4109_v3  ;;  %v4139_v12 = vshll.u32 %v4007_v30, 16  ;;  %v20831_v35 = vld [vmem:[#allocation2 + $0x18] sm:$0xff] }
 0x3f8   : > { %v4141_v28 = vrot.slane %v4139_v12, 1 }
 0x3f9   : > { %16455 = vmatpush3.bf16.msra.mxu0 %v18730_v6  ;;  %v4006_v6 = vmul.bf16 %v20676_v0, %v20687_v39  ;;  %v23406_v0 = vld [vmem:[#allocation55_spill] sm:$0xff] }
 0x3fa   : > { %16456 = vmatprep.subr.bf16.mxu0 %v18731_v31 }
 0x3fb   : > { %v4131_v9 = vshll.u32 %v4006_v6, 16 }
 0x3fc   : > { %16425 = vmatmul.mubr.bf16.gmra.mrb[12].mxu0 %v4094_v15  ;;  %v4121_v15 = vor.u32 %v4119_v1, %v4117_v56 }
 0x3fd   : > { %16428 = vmatprep.mubr.bf16.mxu0 %v4102_v16  ;;  %16457 = vmatpush3.bf16.msra.mxu0 %v18731_v31  ;;  %v4118_v31 = vsel %vm1483_vm0, %v4113_v51, %v4117_v56  ;;  %v4133_v40 = vrot.slane %v4131_v9, 1  ;;  %v4129_v16 = vor.u32 %v4127_v46, %v4125_v33  ;;  %v23404_v51 = vld [vmem:[#allocation54_spill] sm:$0xff]  ;;  %v4143_v9 = vshrl.u32 %v4007_v30, 16 }
 0x3fe   : > { %16458 = vmatprep.subr.bf16.mxu0 %v18732_v22  ;;  %v4126_v3 = vsel %vm1483_vm0, %v4121_v15, %v4125_v33  ;;  %v4419_v4 = vmul.bf16 %v20831_v35, %v23404_v51  ;;  %v20843_v30 = vld [vmem:[#allocation2 + $0x28] sm:$0xff] }
 0x3ff   : > { %v4134_v63 = vsel %vm1483_vm0, %v4129_v16, %v4133_v40  ;;  %v4145_v15 = vor.u32 %v4143_v9, %v4141_v28 }
 0x400   : > { %v4457_v1 = vshrl.u32 %v4419_v4, 16 }
 0x401   : > { %16459 = vmatpush3.bf16.msra.mxu0 %v18732_v22  ;;  %v4008_v22 = vmul.bf16 %v20749_v7, %v23403_v38  ;;  %v23405_v38 = vld [vmem:[#allocation85_spill] sm:$0xff] }
 0x402   : > { %16492 = vmatprep.subr.bf16.mxu0 %v20818_v26  ;;  %v4009_v33 = vmul.bf16 %v3992_v58, %v23405_v38  ;;  %v4459_v12 = vrot.slane %v4457_v1, 7  ;;  %v20848_v1 = vld [vmem:[#allocation2 + $0x30] sm:$0xff] }
 0x403   : > { %v4147_v8 = vshll.u32 %v4008_v22, 16  ;;  %v4422_v38 = vmul.bf16 %v20848_v1, %v20451_v19 }
 0x404   : > { %16429 = vmatmul.mubr.bf16.gmra.mrb[16].mxu0 %v4110_v54  ;;  %v4135_v54 = vshrl.u32 %v4006_v6, 16  ;;  %v4155_v58 = vshll.u32 %v4009_v33, 16 }
 0x405   : > { %16432 = vmatprep.mubr.bf16.mxu0 %v4118_v31  ;;  %v4416_v31 = vld [vmem:[#allocation2 + $0x10] sm:$0x80]  ;;  %v4149_v56 = vrot.slane %v4147_v8, 1  ;;  %v4151_v8 = vshrl.u32 %v4008_v22, 16 }
 0x406   : > { %v4137_v46 = vor.u32 %v4135_v54, %v4133_v40  ;;  %v4418_v16 = vmul.bf16 %v4416_v31, %v20424_v27  ;;  %v4421_v40 = vmul.bf16 %v20843_v30, %v20444_v62  ;;  %v4460_v31 = vshll.u32 %v4419_v4, 16 }
 0x407   : > { %v4150_v6 = vsel %vm1483_vm0, %v4145_v15, %v4149_v56  ;;  %v4157_v51 = vrot.slane %v4155_v58, 1 }
 0x408   : > { %v4453_v54 = vshrl.u32 %v4418_v16, 16  ;;  %v4473_v27 = vshrl.u32 %v4421_v40, 16  ;;  %v20853_v16 = vld [vmem:[#allocation2 + $0x38] sm:$0xff] }
 0x409   : > { %v4423_v4 = vmul.bf16 %v20853_v16, %v20460_v44 }
 0x40a   : > { %v4475_v33 = vrot.slane %v4473_v27, 7 }
 0x40c   : > { %16433 = vmatmul.mubr.bf16.gmra.mrb[20].mxu0 %v4126_v3  ;;  %v4142_v3 = vsel %vm1483_vm0, %v4137_v46, %v4141_v28  ;;  %v4153_v28 = vor.u32 %v4151_v8, %v4149_v56  ;;  %v4462_v46 = vor.u32 %v4460_v31, %v4459_v12  ;;  %v18734_v31 = vld [vmem:[#allocation10 + $0x1c8] sm:$0xff]  }
 0x40d   : > { %16436 = vmatprep.mubr.bf16.mxu0 %v4134_v63  ;;  %v4420_v63 = vmul.bf16 %v20838_v42, %v23406_v0  ;;  %v4455_v0 = vrot.slane %v4453_v54, 7  ;;  %v4489_v54 = vshrl.u32 %v4423_v4, 16 }
 0x40f   : > { %v4465_v9 = vshrl.u32 %v4420_v63, 16  ;;  %v4463_v22 = vsel %vm1887_vm1, %v4455_v0, %v4462_v46  ;;  %v4468_v56 = vshll.u32 %v4420_v63, 16  ;;  %v4491_v46 = vrot.slane %v4489_v54, 7 }
 0x410   : > { %v4425_v63 = vmul.bf16 %v20625_v50, %v20473_v17  ;;  %v4426_v50 = vmul.bf16 %v20634_v13, %v20482_v43  ;;  %v18738_v13 = vld [vmem:[#allocation10 + $0x1e8] sm:$0xff]  }
 0x411   : > { %v4467_v15 = vrot.slane %v4465_v9, 7 }
 0x413   : > { %v4470_v8 = vor.u32 %v4468_v56, %v4467_v15 }
 0x414   : > { %16437 = vmatmul.mubr.bf16.gmra.mrb[24].mxu0 %v4142_v3  ;;  %v4158_v3 = vsel %vm1483_vm0, %v4153_v28, %v4157_v51  ;;  %v4481_v51 = vshrl.u32 %v4422_v38, 16 }
 0x415   : > { %16440 = vmatprep.mubr.bf16.mxu0 %v4150_v6  ;;  %v4476_v6 = vshll.u32 %v4421_v40, 16  ;;  %v4471_v28 = vsel %vm1887_vm1, %v4459_v12, %v4470_v8  ;;  %v4484_v40 = vshll.u32 %v4422_v38, 16  ;;  %v18735_v12 = vld [vmem:[#allocation10 + $0x1d0] sm:$0xff]  }
 0x416   : > { %v4483_v9 = vrot.slane %v4481_v51, 7  ;;  %v4505_v51 = vshrl.u32 %v4425_v63, 16 }
 0x417   : > { %v4478_v58 = vor.u32 %v4476_v6, %v4475_v33 }
 0x418   : > { %v4486_v56 = vor.u32 %v4484_v40, %v4483_v9  ;;  %v4507_v38 = vrot.slane %v4505_v51, 7 }
 0x419   : > { %v4479_v0 = vsel %vm1887_vm1, %v4467_v15, %v4478_v58 }
 0x41a   : > { %v4487_v15 = vsel %vm1887_vm1, %v4475_v33, %v4486_v56 }
 0x41c   : > { %16441 = vmatmul.mubr.bf16.gmra.mrb[28].mxu0 %v4158_v3  ;;  %v20858_v3 = vld [vmem:[#allocation2 + $0x40] sm:$0xff] }
 0x41d   : > { %16460 = vmatprep.mubr.bf16.mxu0 %v4463_v22  ;;  %v4424_v27 = vmul.bf16 %v20858_v3, %v20466_v60  ;;  %v4492_v22 = vshll.u32 %v4423_v4, 16  ;;  %v4427_v4 = vmul.bf16 %v20646_v41, %v20487_v36 }
 0x41f   : > { %v4497_v6 = vshrl.u32 %v4424_v27, 16  ;;  %v4494_v8 = vor.u32 %v4492_v22, %v4491_v46  ;;  %v4500_v54 = vshll.u32 %v4424_v27, 16  ;;  %v4513_v22 = vshrl.u32 %v4426_v50, 16 }
 0x420   : > { %v4521_v56 = vshrl.u32 %v4427_v4, 16  ;;  %v4524_v51 = vshll.u32 %v4427_v4, 16  ;;  %v4431_v4 = vmul.bf16 %v20687_v39, %v20518_v24 }
 0x421   : > { %v4499_v58 = vrot.slane %v4497_v6, 7 }
 0x422   : > { %v4523_v27 = vrot.slane %v4521_v56, 7 }
 0x423   : > { %v4502_v40 = vor.u32 %v4500_v54, %v4499_v58 }
 0x424   : > { %16461 = vmatmul.mubr.bf16.vlgmr.msra.gmra.mrb[0].mxu0 %v4471_v28  ;;  %v18736_v28 = vld [vmem:[#allocation10 + $0x1d8] sm:$0xff]  }
 0x425   : > { %16464 = vmatprep.mubr.bf16.mxu0 %v4479_v0  ;;  %16493 = vmatpush3.bf16.msra.mxu0 %v20818_v26  ;;  %v4495_v26 = vsel %vm1887_vm1, %v4483_v9, %v4494_v8  ;;  %v4508_v0 = vshll.u32 %v4425_v63, 16  ;;  %v4503_v6 = vsel %vm1887_vm1, %v4491_v46, %v4502_v40  ;;  %v4515_v9 = vrot.slane %v4513_v22, 7 }
 0x426   : > { %16494 = vmatprep.subr.bf16.mxu0 %v18734_v31  ;;  %v4428_v8 = vmul.bf16 %v20655_v25, %v20494_v20  ;;  %v4429_v63 = vmul.bf16 %v20670_v47, %v20503_v48  ;;  %v4526_v46 = vor.u32 %v4524_v51, %v4523_v27  ;;  %v18740_v25 = vld [vmem:[#allocation10 + $0x1f8] sm:$0xff]   ;;  %v4430_v40 = vmul.bf16 %v20678_v52, %v20510_v2 }
 0x427   : > { %v4510_v33 = vor.u32 %v4508_v0, %v4507_v38  ;;  %v4556_v51 = vshll.u32 %v4431_v4, 16 }
 0x428   : > { %v4537_v54 = vshrl.u32 %v4429_v63, 16  ;;  %v4527_v47 = vsel %vm1887_vm1, %v4515_v9, %v4526_v46  ;;  %v4540_v22 = vshll.u32 %v4429_v63, 16  ;;  %v4433_v63 = vmul.bf16 %v20749_v7, %v20532_v10 }
 0x429   : > { %16495 = vmatpush3.bf16.msra.mxu0 %v18734_v31  ;;  %v18737_v31 = vld [vmem:[#allocation10 + $0x1e0] sm:$0xff]   ;;  %v4511_v41 = vsel %vm1887_vm1, %v4499_v58, %v4510_v33 }
 0x42a   : > { %16496 = vmatprep.subr.bf16.mxu0 %v18735_v12  ;;  %v18741_v33 = vld [vmem:[#allocation10 + $0x200] sm:$0xff]   ;;  %v4569_v46 = vshrl.u32 %v4433_v63, 16 }
 0x42c   : > { %16465 = vmatmul.mubr.bf16.gmra.mrb[4].mxu0 %v4487_v15 }
 0x42d   : > { %16468 = vmatprep.mubr.bf16.mxu0 %v4495_v26  ;;  %16497 = vmatpush3.bf16.msra.mxu0 %v18735_v12  ;;  %v4516_v12 = vshll.u32 %v4426_v50, 16  ;;  %v4529_v26 = vshrl.u32 %v4428_v8, 16  ;;  %v4539_v50 = vrot.slane %v4537_v54, 7 }
 0x42e   : > { %16498 = vmatprep.subr.bf16.mxu0 %v18736_v28 }
 0x42f   : > { %v4518_v15 = vor.u32 %v4516_v12, %v4515_v9  ;;  %v4531_v58 = vrot.slane %v4529_v26, 7  ;;  %v4432_v9 = vmul.bf16 %v20699_v29, %v20527_v53  ;;  %v4548_v12 = vshll.u32 %v4430_v40, 16 }
 0x430   : > { %v4434_v29 = vmul.bf16 %v20758_v37, %v20534_v11 }
 0x431   : > { %16499 = vmatpush3.bf16.msra.mxu0 %v18736_v28  ;;  %v18739_v28 = vld [vmem:[#allocation10 + $0x1f0] sm:$0xff]   ;;  %v4519_v0 = vsel %vm1887_vm1, %v4507_v38, %v4518_v15  ;;  %v4542_v38 = vor.u32 %v4540_v22, %v4539_v50  ;;  %v4561_v15 = vshrl.u32 %v4432_v9, 16 }
 0x432   : > { %16500 = vmatprep.subr.bf16.mxu0 %v18737_v31 }
 0x433   : > { %v4543_v39 = vsel %vm1887_vm1, %v4531_v58, %v4542_v38  ;;  %v4563_v54 = vrot.slane %v4561_v15, 7 }
 0x434   : > { %16469 = vmatmul.mubr.bf16.gmra.mrb[8].mxu0 %v4503_v6  ;;  %v4553_v6 = vshrl.u32 %v4431_v4, 16 }
 0x435   : > { %16472 = vmatprep.mubr.bf16.mxu0 %v4511_v41  ;;  %16501 = vmatpush3.bf16.msra.mxu0 %v18737_v31  ;;  %v4532_v31 = vshll.u32 %v4428_v8, 16 }
 0x436   : > { %16502 = vmatprep.subr.bf16.mxu0 %v18738_v13  ;;  %v4555_v8 = vrot.slane %v4553_v6, 7 }
 0x437   : > { %v4534_v56 = vor.u32 %v4532_v31, %v4531_v58  ;;  %v4564_v58 = vshll.u32 %v4432_v9, 16  ;;  %v18744_v9 = vld [vmem:[#allocation10 + $0x218] sm:$0xff]  }
 0x438   : > { %v4558_v26 = vor.u32 %v4556_v51, %v4555_v8  ;;  %v18987_v51 = vld [vmem:[#allocation2 + $0x78] sm:$0xff] }
 0x439   : > { %16503 = vmatpush3.bf16.msra.mxu0 %v18738_v13  ;;  %v4545_v13 = vshrl.u32 %v4430_v40, 16  ;;  %v4535_v52 = vsel %vm1887_vm1, %v4523_v27, %v4534_v56  ;;  %v4566_v31 = vor.u32 %v4564_v58, %v4563_v54  ;;  %v4577_v40 = vshrl.u32 %v4434_v29, 16 }
 0x43a   : > { %16504 = vmatprep.subr.bf16.mxu0 %v18739_v28 }
 0x43b   : > { %v4547_v41 = vrot.slane %v4545_v13, 7  ;;  %v4567_v22 = vsel %vm1887_vm1, %v4555_v8, %v4566_v31  ;;  %v4579_v56 = vrot.slane %v4577_v40, 7  ;;  %v4580_v13 = vshll.u32 %v4434_v29, 16  ;;  %v18982_v8 = vld [vmem:[#allocation2 + $0x50] sm:$0xff] }
 0x43c   : > { %16473 = vmatmul.mubr.bf16.gmra.mrb[12].mxu0 %v4519_v0  ;;  %v4571_v0 = vrot.slane %v4569_v46, 7 }
 0x43d   : > { %16476 = vmatprep.mubr.bf16.mxu0 %v4527_v47  ;;  %16505 = vmatpush3.bf16.msra.mxu0 %v18739_v28  ;;  %v4550_v28 = vor.u32 %v4548_v12, %v4547_v41  ;;  %v4572_v47 = vshll.u32 %v4433_v63, 16  ;;  %v4582_v38 = vor.u32 %v4580_v13, %v4579_v56  ;;  %v18985_v63 = vld [vmem:[#allocation2 + $0x68] sm:$0xff]  ;;  %v18986_v12 = vld [vmem:[#allocation2 + $0x70] sm:$0xff]  ;;  %v5103_v56 = vld [vmem:[#allocation2 + $0x38] sm:$0xff] }
 0x43e   : > { %16506 = vmatprep.subr.bf16.mxu0 %v18740_v25 }
 0x43f   : > { %v4551_v27 = vsel %vm1887_vm1, %v4539_v50, %v4550_v28  ;;  %v4574_v4 = vor.u32 %v4572_v47, %v4571_v0  ;;  %v4583_v6 = vsel %vm1887_vm1, %v4571_v0, %v4582_v38  ;;  %v5100_v28 = vld [vmem:[#allocation2 + $0x20] sm:$0xff] }
 0x440   : > { %v5104_v38 = vld [vmem:[#allocation2 + $0x40] sm:$0xff] }
 0x441   : > { %16507 = vmatpush3.bf16.msra.mxu0 %v18740_v25  ;;  %v4559_v25 = vsel %vm1887_vm1, %v4547_v41, %v4558_v26  ;;  %v4575_v50 = vsel %vm1887_vm1, %v4563_v54, %v4574_v4  ;;  %v18743_v41 = vld [vmem:[#allocation10 + $0x210] sm:$0xff]   ;;  %v5117_v26 = vmul.bf16 %v5100_v28, %v20551_v14  ;;  %v18988_v54 = vld [vmem:[#allocation2 + $0x80] sm:$0xff] }
 0x442   : > { %16540 = vmatprep.subr.bf16.mxu0 %v18741_v33 }
 0x443   : > { %v5158_v29 = vshll.u32 %v5117_v26, 16 }
 0x444   : > { %16477 = vmatmul.mubr.bf16.gmra.mrb[16].mxu0 %v4535_v52  ;;  %v18742_v52 = vld [vmem:[#allocation10 + $0x208] sm:$0xff]  }
 0x445   : > { %16480 = vmatprep.mubr.bf16.mxu0 %v4543_v39  ;;  %v18745_v39 = vld [vmem:[#allocation10 + $0x220] sm:$0xff]   ;;  %v5160_v31 = vrot.slane %v5158_v29, 1 }
 0x44c   : > { %16481 = vmatmul.mubr.bf16.gmra.mrb[20].mxu0 %v4551_v27  ;;  %v5101_v27 = vld [vmem:[#allocation2 + $0x28] sm:$0xff] }
 0x44d   : > { %16484 = vmatprep.mubr.bf16.mxu0 %v4559_v25  ;;  %v5102_v25 = vld [vmem:[#allocation2 + $0x30] sm:$0xff]  ;;  %v5118_v58 = vmul.bf16 %v5101_v27, %v20561_v18 }
 0x44e   : > { %v5119_v40 = vmul.bf16 %v5102_v25, %v20571_v49  ;;  %v5107_v25 = vld [vmem:[#allocation2 + $0x58] sm:$0xff] }
 0x44f   : > { %v23416_v49 = vld [vmem:[#allocation55_spill] sm:$0xff] }
 0x450   : > { %v5174_v13 = vshll.u32 %v5119_v40, 16 }
 0x454   : > { %16485 = vmatmul.mubr.bf16.gmra.mrb[24].mxu0 %v4567_v22  ;;  %v5166_v22 = vshll.u32 %v5118_v58, 16 }
 0x455   : > { %16488 = vmatprep.mubr.bf16.mxu0 %v4575_v50 }
 0x45c   : > { %16489 = vmatmul.mubr.bf16.gmra.mrb[28].mxu0 %v4583_v6  ;;  %v5168_v6 = vrot.slane %v5166_v22, 1 }
 0x45d   : > { %16508 = vmatprep.mubr.bf16.mxu0 %v20831_v35  ;;  %v18746_v35 = vld [vmem:[#allocation10 + $0x228] sm:$0xff]  }
 0x464   : > { %16509 = vmatmul.mubr.bf16.vlgmr.msra.gmra.mrb[0].mxu0 %v20838_v42  ;;  %v18981_v42 = vld [vmem:[#allocation2 + $0x48] sm:$0xff] }
 0x465   : > { %16541 = vmatpush3.bf16.msra.mxu0 %v18741_v33  ;;  %16512 = vmatprep.mubr.bf16.mxu0 %v20843_v30  ;;  %v18747_v30 = vld [vmem:[#allocation10 + $0x230] sm:$0xff]   ;;  %v18748_v33 = vld [vmem:[#allocation10 + $0x238] sm:$0xff]  }
 0x466   : > { %16542 = vmatprep.subr.bf16.mxu0 %v18742_v52 }
 0x469   : > { %16543 = vmatpush3.bf16.msra.mxu0 %v18742_v52  ;;  %v5162_v52 = vshrl.u32 %v5117_v26, 16 }
 0x46a   : > { %16544 = vmatprep.subr.bf16.mxu0 %v18743_v41 }
 0x46c   : > { %16513 = vmatmul.mubr.bf16.gmra.mrb[4].mxu0 %v20848_v1  ;;  %v18983_v1 = vld [vmem:[#allocation2 + $0x58] sm:$0xff] }
 0x46d   : > { %16516 = vmatprep.mubr.bf16.mxu0 %v20853_v16  ;;  %16545 = vmatpush3.bf16.msra.mxu0 %v18743_v41  ;;  %v18984_v16 = vld [vmem:[#allocation2 + $0x60] sm:$0xff]  ;;  %v5170_v41 = vshrl.u32 %v5118_v58, 16 }
 0x46e   : > { %16546 = vmatprep.subr.bf16.mxu0 %v18744_v9 }
 0x471   : > { %16547 = vmatpush3.bf16.msra.mxu0 %v18744_v9  ;;  %v5176_v9 = vrot.slane %v5174_v13, 1 }
 0x472   : > { %16548 = vmatprep.subr.bf16.mxu0 %v18745_v39 }
 0x474   : > { %16517 = vmatmul.mubr.bf16.gmra.mrb[8].mxu0 %v20858_v3  ;;  %v5099_v3 = vld [vmem:[#allocation2 + $0x18] sm:$0xff] }
 0x475   : > { %16520 = vmatprep.mubr.bf16.mxu0 %v18981_v42  ;;  %16549 = vmatpush3.bf16.msra.mxu0 %v18745_v39  ;;  %v5116_v15 = vmul.bf16 %v5099_v3, %v20541_v34  ;;  %v5121_v39 = vmul.bf16 %v5104_v38, %v20593_v55  ;;  %v5172_v42 = vor.u32 %v5170_v41, %v5168_v6 }
 0x476   : > { %16550 = vmatprep.subr.bf16.mxu0 %v18746_v35 }
 0x477   : > { %v5153_v46 = vshll.u32 %v5116_v15, 16  ;;  %v5151_v47 = vshrl.u32 %v5116_v15, 16 }
 0x479   : > { %16551 = vmatpush3.bf16.msra.mxu0 %v18746_v35  ;;  %v5155_v0 = vrot.slane %v5153_v46, 1  ;;  %v5164_v35 = vor.u32 %v5162_v52, %v5160_v31  ;;  %v5109_v52 = vld [vmem:[#allocation2 + $0x68] sm:$0xff] }
 0x47a   : > { %16552 = vmatprep.subr.bf16.mxu0 %v18747_v30 }
 0x47b   : > { %v5156_v4 = vor.u32 %v5155_v0, %v5151_v47  ;;  %v5108_v47 = vld [vmem:[#allocation2 + $0x60] sm:$0xff] }
 0x47c   : > { %16521 = vmatmul.mubr.bf16.gmra.mrb[12].mxu0 %v18982_v8  ;;  %v5105_v8 = vld [vmem:[#allocation2 + $0x48] sm:$0xff] }
 0x47d   : > { %16524 = vmatprep.mubr.bf16.mxu0 %v18983_v1  ;;  %16553 = vmatpush3.bf16.msra.mxu0 %v18747_v30  ;;  %v5161_v50 = vsel %vm1483_vm0, %v5156_v4, %v5160_v31  ;;  %v5177_v1 = vsel %vm1483_vm0, %v5172_v42, %v5176_v9  ;;  %v5124_v4 = vmul.bf16 %v5107_v25, %v23398_v45 }
 0x47e   : > { %16554 = vmatprep.subr.bf16.mxu0 %v18748_v33 }
 0x481   : > { %16555 = vmatpush3.bf16.msra.mxu0 %v18748_v33  ;;  %v5169_v33 = vsel %vm1483_vm0, %v5164_v35, %v5168_v6  ;;  %v5214_v6 = vshll.u32 %v5124_v4, 16  ;;  %v5110_v35 = vld [vmem:[#allocation2 + $0x70] sm:$0xff] }
 0x483   : > { %v5216_v42 = vrot.slane %v5214_v6, 1  ;;  %v23408_v6 = vld [vmem:[#allocation84_spill] sm:$0xff] }
 0x484   : > { %16525 = vmatmul.mubr.bf16.gmra.mrb[16].mxu0 %v18984_v16  ;;  %v5190_v16 = vshll.u32 %v5121_v39, 16 }
 0x485   : > { %16528 = vmatprep.mubr.bf16.mxu0 %v18985_v63  ;;  %v5106_v63 = vld [vmem:[#allocation2 + $0x50] sm:$0xff] }
 0x486   : > { %v5192_v15 = vrot.slane %v5190_v16, 1  ;;  %v5123_v26 = vmul.bf16 %v5106_v63, %v20613_v57 }
 0x488   : > { %v5206_v58 = vshll.u32 %v5123_v26, 16 }
 0x48c   : > { %16529 = vmatmul.mubr.bf16.gmra.mrb[20].mxu0 %v18986_v12  ;;  %v5122_v12 = vmul.bf16 %v5105_v8, %v20602_v23 }
 0x48d   : > { %16532 = vmatprep.mubr.bf16.mxu0 %v18987_v51  ;;  %v5178_v51 = vshrl.u32 %v5119_v40, 16  ;;  %v5194_v40 = vshrl.u32 %v5121_v39, 16  ;;  %v5210_v39 = vshrl.u32 %v5123_v26, 16 }
 0x48e   : > { %v5202_v22 = vshrl.u32 %v5122_v12, 16 }
 0x48f   : > { %v5180_v46 = vor.u32 %v5178_v51, %v5176_v9  ;;  %v5196_v13 = vor.u32 %v5194_v40, %v5192_v15  ;;  %v5111_v51 = vld [vmem:[#allocation2 + $0x78] sm:$0xff] }
 0x494   : > { %16533 = vmatmul.mubr.bf16.gmra.mrb[24].mxu0 %v18988_v54  ;;  %v5198_v54 = vshll.u32 %v5122_v12, 16 }
 0x495   : > { %16536 = vmatprep.mubr.bf16.mxu0 %v20749_v7  ;;  %v5120_v7 = vmul.bf16 %v5103_v56, %v20581_v32  ;;  %v5208_v56 = vrot.slane %v5206_v58, 1  ;;  %v6795_v32 = vld [vmem:[#allocation3 + $0x8] sm:$0x80] }
 0x496   : > { %v5200_v31 = vrot.slane %v5198_v54, 1  ;;  %v5128_v54 = vmul.bf16 %v5111_v51, %v20664_v59 }
 0x497   : > { %v5182_v30 = vshll.u32 %v5120_v7, 16  ;;  %v5186_v28 = vshrl.u32 %v5120_v7, 16  ;;  %v5212_v16 = vor.u32 %v5210_v39, %v5208_v56 }
 0x498   : > { %v5204_v38 = vor.u32 %v5202_v22, %v5200_v31  ;;  %v5201_v7 = vsel %vm1483_vm0, %v5196_v13, %v5200_v31  ;;  %v5113_v22 = vld [vmem:[#allocation2 + $0x88] sm:$0xff] }
 0x499   : > { %v5184_v3 = vrot.slane %v5182_v30, 1  ;;  %v5126_v30 = vmul.bf16 %v5109_v52, %v23400_v61  ;;  %v5217_v12 = vsel %vm1483_vm0, %v5212_v16, %v5216_v42 }
 0x49a   : > { %v5209_v41 = vsel %vm1483_vm0, %v5204_v38, %v5208_v56 }
 0x49b   : > { %v5188_v27 = vor.u32 %v5186_v28, %v5184_v3  ;;  %v5185_v29 = vsel %vm1483_vm0, %v5180_v46, %v5184_v3  ;;  %v5230_v3 = vshll.u32 %v5126_v30, 16  ;;  %v5112_v46 = vld [vmem:[#allocation2 + $0x80] sm:$0xff] }
 0x49c   : > { %16537 = vmatmul.mubr.bf16.gmra.mrb[28].mxu0 %v20758_v37 }
 0x49d   : > { %16556 = vmatprep.mubr.bf16.mxu0 %v5161_v50  ;;  %v5193_v0 = vsel %vm1483_vm0, %v5188_v27, %v5192_v15  ;;  %v5125_v50 = vmul.bf16 %v5108_v47, %v23399_v5  ;;  %v5232_v27 = vrot.slane %v5230_v3, 1  ;;  %v5115_v3 = vld [vmem:[#allocation2 + $0x98] sm:$0x1] }
 0x49f   : > { %v5222_v9 = vshll.u32 %v5125_v50, 16  ;;  %v5226_v26 = vshrl.u32 %v5125_v50, 16  ;;  %v5250_v50 = vshrl.u32 %v5128_v54, 16 }
 0x4a1   : > { %v5224_v8 = vrot.slane %v5222_v9, 1  ;;  %v23409_v9 = vld [vmem:[#allocation86_spill] sm:$0xff] }
 0x4a3   : > { %v5228_v47 = vor.u32 %v5226_v26, %v5224_v8 }
 0x4a4   : > { %16557 = vmatmul.mubr.bf16.vlgmr.msra.gmra.mrb[0].mxu0 %v5169_v33  ;;  %v5218_v33 = vshrl.u32 %v5124_v4, 16  ;;  %v5246_v4 = vshll.u32 %v5128_v54, 16 }
 0x4a5   : > { %16560 = vmatprep.mubr.bf16.mxu0 %v5177_v1  ;;  %v5127_v1 = vmul.bf16 %v5110_v35, %v23401_v21  ;;  %v5233_v40 = vsel %vm1483_vm0, %v5228_v47, %v5232_v27  ;;  %v5131_v35 = vmul.bf16 %v20758_v37, %v23409_v9 }
 0x4a6   : > { %v5220_v63 = vor.u32 %v5218_v33, %v5216_v42  ;;  %v5248_v38 = vrot.slane %v5246_v4, 1  ;;  %v18749_v4 = vld [vmem:[#allocation13 + $0x20] sm:$0xff]  }
 0x4a7   : > { %v5238_v15 = vshll.u32 %v5127_v1, 16  ;;  %v5242_v52 = vshrl.u32 %v5127_v1, 16  ;;  %v5270_v16 = vshll.u32 %v5131_v35, 16  ;;  %v5274_v26 = vshrl.u32 %v5131_v35, 16  ;;  %16588 = vmatprep.subr.bf16.mxu0 %v18749_v4  ;;  %v20965_v35 = vld [vmem:[#allocation12] ss:$0 sm:$0xff] }
 0x4a8   : > { %v5225_v28 = vsel %vm1483_vm0, %v5220_v63, %v5224_v8  ;;  %16589 = vmatpush3.bf16.msra.mxu0 %v18749_v4 }
 0x4a9   : > { %v5240_v25 = vrot.slane %v5238_v15, 1  ;;  %v5272_v1 = vrot.slane %v5270_v16, 1  ;;  %v23410_v15 = vld [vmem:[#allocation85_spill] sm:$0xff] }
 0x4ab   : > { %v5244_v42 = vor.u32 %v5242_v52, %v5240_v25  ;;  %v20952_v52 = vld [vmem:[#allocation13 + $0x50] sm:$0xff]  }
 0x4ac   : > { %16561 = vmatmul.mubr.bf16.gmra.mrb[4].mxu0 %v5185_v29  ;;  %v5234_v29 = vshrl.u32 %v5126_v30, 16  ;;  %v5252_v30 = vor.u32 %v5250_v50, %v5248_v38  ;;  %v20957_v50 = vld [vmem:[#allocation13 + $0x58] sm:$0xff]  }
 0x4ad   : > { %16564 = vmatprep.mubr.bf16.mxu0 %v5193_v0  ;;  %v23407_v0 = vld [vmem:[#allocation83_spill] sm:$0xff]  ;;  %v5249_v33 = vsel %vm1483_vm0, %v5244_v42, %v5248_v38  ;;  %v20945_v38 = vld [vmem:[#allocation13 + $0x48] sm:$0xff]  }
 0x4ae   : > { %v5129_v58 = vmul.bf16 %v5112_v46, %v23407_v0  ;;  %v5236_v31 = vor.u32 %v5234_v29, %v5232_v27  ;;  %v5132_v46 = vmul.bf16 %v5115_v3, %v23410_v15 }
 0x4b0   : > { %v5241_v56 = vsel %vm1483_vm0, %v5236_v31, %v5240_v25  ;;  %v5254_v13 = vshll.u32 %v5129_v58, 16  ;;  %v5278_v29 = vshll.u32 %v5132_v46, 16  ;;  %v5276_v25 = vor.u32 %v5274_v26, %v5272_v1 }
 0x4b2   : > { %v5280_v47 = vrot.slane %v5278_v29, 1 }
 0x4b4   : > { %16565 = vmatmul.mubr.bf16.gmra.mrb[8].mxu0 %v5201_v7  ;;  %v5130_v7 = vmul.bf16 %v5113_v22, %v23408_v6  ;;  %v5281_v31 = vsel %vm1483_vm0, %v5276_v25, %v5280_v47  ;;  %v18751_v22 = vld [vmem:[#allocation13 + $0x30] sm:$0xff]  }
 0x4b5   : > { %16568 = vmatprep.mubr.bf16.mxu0 %v5209_v41  ;;  %v5256_v41 = vrot.slane %v5254_v13, 1  ;;  %v20943_v13 = vld [vmem:[#allocation13 + $0x40] sm:$0xff]  }
 0x4b6   : > { %v5262_v39 = vshll.u32 %v5130_v7, 16  ;;  %v5266_v51 = vshrl.u32 %v5130_v7, 16  ;;  %17628 = vmatprep.subr.bf16.mxu1 %v20943_v13  ;;  %v20950_v7 = vld [vmem:[#allocation13] sm:$0xff]  }
 0x4b7   : > { %v5257_v8 = vsel %vm1483_vm0, %v5252_v30, %v5256_v41  ;;  %17632 = vmatpush3.bf16.msra.mxu1 %v20943_v13 }
 0x4b8   : > { %v5264_v63 = vrot.slane %v5262_v39, 1  ;;  %17629 = vmatprep.subr.bf16.mxu1 %v20945_v38 }
 0x4ba   : > { %v5268_v27 = vor.u32 %v5266_v51, %v5264_v63 }
 0x4bb   : > { %17633 = vmatpush3.bf16.msra.mxu1 %v20945_v38 }
 0x4bc   : > { %16569 = vmatmul.mubr.bf16.gmra.mrb[12].mxu0 %v5217_v12  ;;  %v5258_v12 = vshrl.u32 %v5129_v58, 16  ;;  %v5273_v54 = vsel %vm1483_vm0, %v5268_v27, %v5272_v1  ;;  %v20939_v58 = vld [vmem:[#allocation3 + $0x8] sm:$0xff]  ;;  %17630 = vmatprep.subr.bf16.mxu1 %v20952_v52 }
 0x4bd   : > { %16572 = vmatprep.mubr.bf16.mxu0 %v5225_v28 }
 0x4be   : > { %v5260_v28 = vor.u32 %v5258_v12, %v5256_v41  ;;  %v20961_v41 = vld [vmem:[#allocation13 + $0x60] sm:$0xff]  }
 0x4bf   : > { %17634 = vmatpush3.bf16.msra.mxu1 %v20952_v52 }
 0x4c0   : > { %v5265_v37 = vsel %vm1483_vm0, %v5260_v28, %v5264_v63  ;;  %17631 = vmatprep.subr.bf16.mxu1 %v20957_v50 }
 0x4c3   : > { %17635 = vmatpush3.bf16.msra.mxu1 %v20957_v50 }
 0x4c4   : > { %16573 = vmatmul.mubr.bf16.gmra.mrb[16].mxu0 %v5233_v40  ;;  %v18750_v40 = vld [vmem:[#allocation13 + $0x28] sm:$0xff]   ;;  %16708 = vmatprep.subr.bf16.mxu1 %v20961_v41 }
 0x4c5   : > { %16576 = vmatprep.mubr.bf16.mxu0 %v5241_v56  ;;  %16590 = vmatprep.subr.bf16.mxu0 %v18750_v40  ;;  %v18752_v56 = vld [vmem:[#allocation13 + $0x38] sm:$0xff]  }
 0x4c6   : > { %16591 = vmatpush3.bf16.msra.mxu0 %v18750_v40 }
 0x4c7   : > { %16592 = vmatprep.subr.bf16.mxu0 %v18751_v22 }
 0x4ca   : > { %16593 = vmatpush3.bf16.msra.mxu0 %v18751_v22 }
 0x4cb   : > { %16594 = vmatprep.subr.bf16.mxu0 %v18752_v56 }
 0x4cc   : > { %16577 = vmatmul.mubr.bf16.gmra.mrb[20].mxu0 %v5249_v33 }
 0x4cd   : > { %16580 = vmatprep.mubr.bf16.mxu0 %v5257_v8 }
 0x4ce   : > { %16595 = vmatpush3.bf16.msra.mxu0 %v18752_v56 }
 0x4cf   : > { %16628 = vmatprep.subr.bf16.mxu0 %v20950_v7 }
 0x4d4   : > { %16581 = vmatmul.mubr.bf16.gmra.mrb[24].mxu0 %v5265_v37 }
 0x4d5   : > { %16584 = vmatprep.mubr.bf16.mxu0 %v5273_v54 }
 0x4dc   : > { %16585 = vmatmul.mubr.bf16.gmra.mrb[28].mxu0 %v5281_v31 }
 0x4dd   : > { %16596 = vmatprep.mubr.msk.bf16.mxu0 %vm869_vm2, %v20939_v58 }
 0x577   : > { %v16558_v42 = vpop.f32.mrb[0].mxu0 }
 0x578   : > { %v5548_v30 = vadd.f32 %v16558_v42, %v20965_v35  ;;  %v5380_v39 = vpop.f32.mrb[1].mxu0 }
 0x579   : > { %v5546_v33 = vadd.f32 %v20965_v35, %v5380_v39  ;;  %v16559_v8 = vpop.f32.mrb[2].mxu0 }
 0x57a   : > { %v5612_v16 = vmul.f32 0.05, %v5548_v30  ;;  %v5549_v63 = vadd.f32 %v16559_v8, %v20965_v35  ;;  %v5383_v3 = vpop.f32.mrb[3].mxu0  ;;  %vm5580_vm3 = vcmp.ge.f32.partialorder %v5548_v30, 0.0 }
 0x57b   : > { %v5610_v12 = vmul.f32 0.05, %v5546_v33  ;;  %v5547_v51 = vadd.f32 %v20965_v35, %v5383_v3  ;;  %vm5578_vm4 = vcmp.ge.f32.partialorder %v5546_v33, 0.0 }
 0x57c   : > { %vm5581_vm5 = vcmp.ge.f32.partialorder %v5549_v63, 0.0  ;;  %v5613_v1 = vmul.f32 0.05, %v5549_v63  ;;  %v5644_v46 = vsel %vm5580_vm3, %v5548_v30, %v5612_v16 }
 0x57d   : > { %vm5579_vm6 = vcmp.ge.f32.partialorder %v5547_v51, 0.0  ;;  %v5611_v28 = vmul.f32 0.05, %v5547_v51  ;;  %v5642_v37 = vsel %vm5578_vm4, %v5546_v33, %v5610_v12 }
 0x57e   : > { %v5645_v27 = vsel %vm5581_vm5, %v5549_v63, %v5613_v1 }
 0x57f   : > { %v5675_v54 = vpack.c.bf16 %v5645_v27, %v5644_v46  ;;  %v5643_v26 = vsel %vm5579_vm6, %v5547_v51, %v5611_v28  ;;  %v16562_v29 = vpop.f32.mrb[4].mxu0 }
 0x580   : > { %v5674_v25 = vpack.c.bf16 %v5643_v26, %v5642_v37  ;;  %v5552_v47 = vadd.f32 %v16562_v29, %v20965_v35  ;;  %v5396_v31 = vpop.f32.mrb[5].mxu0  ;;  %v18757_v37 = vld [vmem:[#allocation13 + $0x8] sm:$0xff]  }
 0x581   : > { %5691 = vst.msk [vmem:[#allocation3 + $0x18] sm:$0xff] %vm869_vm2, %v5675_v54  ;;  %v5550_v4 = vadd.f32 %v20965_v35, %v5396_v31  ;;  %v16563_v40 = vpop.f32.mrb[6].mxu0 }
 0x582   : > { %5690 = vst.msk [vmem:[#allocation3 + $0x10] sm:$0xff] %vm869_vm2, %v5674_v25  ;;  %v5616_v22 = vmul.f32 0.05, %v5552_v47  ;;  %v5553_v56 = vadd.f32 %v16563_v40, %v20965_v35  ;;  %v5399_v42 = vpop.f32.mrb[7].mxu0  ;;  %vm5584_vm7 = vcmp.ge.f32.partialorder %v5552_v47, 0.0 }
 0x583   : > { %v5614_v30 = vmul.f32 0.05, %v5550_v4  ;;  %v5551_v39 = vadd.f32 %v20965_v35, %v5399_v42  ;;  %vm5582_vm8 = vcmp.ge.f32.partialorder %v5550_v4, 0.0  ;;  %v18759_v42 = vld [vmem:[#allocation13 + $0x10] sm:$0xff]  }
 0x584   : > { %vm5585_vm9 = vcmp.ge.f32.partialorder %v5553_v56, 0.0  ;;  %v5617_v33 = vmul.f32 0.05, %v5553_v56  ;;  %v5648_v16 = vsel %vm5584_vm7, %v5552_v47, %v5616_v22 }
 0x585   : > { %vm5583_vm10 = vcmp.ge.f32.partialorder %v5551_v39, 0.0  ;;  %v5615_v8 = vmul.f32 0.05, %v5551_v39  ;;  %v5646_v3 = vsel %vm5582_vm8, %v5550_v4, %v5614_v30 }
 0x586   : > { %v5649_v63 = vsel %vm5585_vm9, %v5553_v56, %v5617_v33 }
 0x587   : > { %v5677_v12 = vpack.c.bf16 %v5649_v63, %v5648_v16  ;;  %v5647_v51 = vsel %vm5583_vm10, %v5551_v39, %v5615_v8  ;;  %v16566_v1 = vpop.f32.mrb[8].mxu0 }
 0x588   : > { %v5676_v28 = vpack.c.bf16 %v5647_v51, %v5646_v3  ;;  %v5556_v46 = vadd.f32 %v16566_v1, %v20965_v35  ;;  %v5412_v27 = vpop.f32.mrb[9].mxu0  ;;  %v20986_v4 = vld [vmem:[#allocation3 + $0x18] sm:$0xff] }
 0x589   : > { %5693 = vst.msk [vmem:[#allocation3 + $0x28] sm:$0xff] %vm869_vm2, %v5677_v12  ;;  %v5554_v54 = vadd.f32 %v20965_v35, %v5412_v27  ;;  %v16567_v26 = vpop.f32.mrb[10].mxu0  ;;  %v20980_v29 = vld [vmem:[#allocation3 + $0x10] sm:$0xff]  ;;  %23412 = vst [vmem:[#allocation88_spill] sm:$0xff] %v20986_v4 }
 0x58a   : > { %23411 = vst [vmem:[#allocation87_spill] sm:$0xff] %v20980_v29  ;;  %5692 = vst.msk [vmem:[#allocation3 + $0x20] sm:$0xff] %vm869_vm2, %v5676_v28  ;;  %v5620_v25 = vmul.f32 0.05, %v5556_v46  ;;  %v5557_v47 = vadd.f32 %v16567_v26, %v20965_v35  ;;  %v5415_v31 = vpop.f32.mrb[11].mxu0  ;;  %16597 = vmatmul.mubr.msk.bf16.vlgmr.msra.gmra.mrb[32].mxu0 %vm869_vm2, %v20980_v29  ;;  %vm5588_vm11 = vcmp.ge.f32.partialorder %v5556_v46, 0.0  ;;  %v5725_v18 = vmul.bf16 %v20980_v29, %v23416_v49 }
 0x58b   : > { %v5618_v40 = vmul.f32 0.05, %v5554_v54  ;;  %v5555_v22 = vadd.f32 %v20965_v35, %v5415_v31  ;;  %16600 = vmatprep.mubr.msk.bf16.mxu0 %vm869_vm2, %v20986_v4  ;;  %16629 = vmatpush3.bf16.msra.mxu0 %v20950_v7  ;;  %vm5586_vm12 = vcmp.ge.f32.partialorder %v5554_v54, 0.0  ;;  %v18761_v7 = vld [vmem:[#allocation13 + $0x18] sm:$0xff]  }
 0x58c   : > { %vm5589_vm13 = vcmp.ge.f32.partialorder %v5557_v47, 0.0  ;;  %v5621_v56 = vmul.f32 0.05, %v5557_v47  ;;  %16630 = vmatprep.subr.bf16.mxu0 %v18757_v37  ;;  %v5652_v39 = vsel %vm5588_vm11, %v5556_v46, %v5620_v25 }
 0x58d   : > { %vm5587_vm14 = vcmp.ge.f32.partialorder %v5555_v22, 0.0  ;;  %v5619_v30 = vmul.f32 0.05, %v5555_v22  ;;  %v5650_v8 = vsel %vm5586_vm12, %v5554_v54, %v5618_v40 }
 0x58e   : > { %v5653_v33 = vsel %vm5589_vm13, %v5557_v47, %v5621_v56 }
 0x58f   : > { %v5679_v16 = vpack.c.bf16 %v5653_v33, %v5652_v39  ;;  %v5651_v63 = vsel %vm5587_vm14, %v5555_v22, %v5619_v30  ;;  %v16570_v3 = vpop.f32.mrb[12].mxu0  ;;  %16631 = vmatpush3.bf16.msra.mxu0 %v18757_v37 }
 0x590   : > { %v5678_v12 = vpack.c.bf16 %v5651_v63, %v5650_v8  ;;  %v5560_v51 = vadd.f32 %v16570_v3, %v20965_v35  ;;  %v5428_v1 = vpop.f32.mrb[13].mxu0  ;;  %16632 = vmatprep.subr.bf16.mxu0 %v18759_v42  ;;  %v21001_v37 = vld [vmem:[#allocation3 + $0x28] sm:$0xff] }
 0x591   : > { %5695 = vst.msk [vmem:[#allocation3 + $0x38] sm:$0xff] %vm869_vm2, %v5679_v16  ;;  %v5558_v28 = vadd.f32 %v20965_v35, %v5428_v1  ;;  %v16571_v27 = vpop.f32.mrb[14].mxu0  ;;  %v20995_v26 = vld [vmem:[#allocation3 + $0x20] sm:$0xff] }
 0x592   : > { %23413 = vst [vmem:[#allocation89_spill] sm:$0xff] %v20995_v26  ;;  %5694 = vst.msk [vmem:[#allocation3 + $0x30] sm:$0xff] %vm869_vm2, %v5678_v12  ;;  %v5624_v46 = vmul.f32 0.05, %v5560_v51  ;;  %v5561_v54 = vadd.f32 %v16571_v27, %v20965_v35  ;;  %v5431_v25 = vpop.f32.mrb[15].mxu0  ;;  %16601 = vmatmul.mubr.msk.bf16.gmra.mrb[36].mxu0 %vm869_vm2, %v20995_v26  ;;  %vm5592_vm15 = vcmp.ge.f32.partialorder %v5560_v51, 0.0 }
 0x593   : > { %v5622_v47 = vmul.f32 0.05, %v5558_v28  ;;  %v5559_v31 = vadd.f32 %v20965_v35, %v5431_v25  ;;  %16604 = vmatprep.mubr.msk.bf16.mxu0 %vm869_vm2, %v21001_v37  ;;  %16633 = vmatpush3.bf16.msra.mxu0 %v18759_v42  ;;  %vm5590_vm3 = vcmp.ge.f32.partialorder %v5558_v28, 0.0 }
 0x594   : > { %vm5593_vm4 = vcmp.ge.f32.partialorder %v5561_v54, 0.0  ;;  %v5625_v40 = vmul.f32 0.05, %v5561_v54  ;;  %16634 = vmatprep.subr.bf16.mxu0 %v18761_v7  ;;  %v5656_v56 = vsel %vm5592_vm15, %v5560_v51, %v5624_v46 }
 0x595   : > { %vm5591_vm5 = vcmp.ge.f32.partialorder %v5559_v31, 0.0  ;;  %v5623_v22 = vmul.f32 0.05, %v5559_v31  ;;  %v5654_v39 = vsel %vm5590_vm3, %v5558_v28, %v5622_v47 }
 0x596   : > { %v5657_v30 = vsel %vm5593_vm4, %v5561_v54, %v5625_v40 }
 0x597   : > { %v5681_v33 = vpack.c.bf16 %v5657_v30, %v5656_v56  ;;  %v5655_v8 = vsel %vm5591_vm5, %v5559_v31, %v5623_v22  ;;  %v16574_v16 = vpop.f32.mrb[16].mxu0  ;;  %16635 = vmatpush3.bf16.msra.mxu0 %v18761_v7 }
 0x598   : > { %v5680_v63 = vpack.c.bf16 %v5655_v8, %v5654_v39  ;;  %v5564_v3 = vadd.f32 %v16574_v16, %v20965_v35  ;;  %v5444_v12 = vpop.f32.mrb[17].mxu0  ;;  %16668 = vmatprep.subr.bf16.mxu0 %v20943_v13  ;;  %v21016_v7 = vld [vmem:[#allocation3 + $0x38] sm:$0xff] }
 0x599   : > { %5697 = vst.msk [vmem:[#allocation3 + $0x48] sm:$0xff] %vm869_vm2, %v5681_v33  ;;  %v5562_v42 = vadd.f32 %v20965_v35, %v5444_v12  ;;  %v16575_v1 = vpop.f32.mrb[18].mxu0  ;;  %v21010_v27 = vld [vmem:[#allocation3 + $0x30] sm:$0xff] }
 0x59a   : > { %5696 = vst.msk [vmem:[#allocation3 + $0x40] sm:$0xff] %vm869_vm2, %v5680_v63  ;;  %v5628_v51 = vmul.f32 0.05, %v5564_v3  ;;  %v5565_v28 = vadd.f32 %v16575_v1, %v20965_v35  ;;  %v5447_v46 = vpop.f32.mrb[19].mxu0  ;;  %16605 = vmatmul.mubr.msk.bf16.gmra.mrb[40].mxu0 %vm869_vm2, %v21010_v27  ;;  %vm5596_vm6 = vcmp.ge.f32.partialorder %v5564_v3, 0.0 }
 0x59b   : > { %v5626_v54 = vmul.f32 0.05, %v5562_v42  ;;  %v5563_v25 = vadd.f32 %v20965_v35, %v5447_v46  ;;  %16608 = vmatprep.mubr.msk.bf16.mxu0 %vm869_vm2, %v21016_v7  ;;  %vm5594_vm7 = vcmp.ge.f32.partialorder %v5562_v42, 0.0 }
 0x59c   : > { %vm5597_vm8 = vcmp.ge.f32.partialorder %v5565_v28, 0.0  ;;  %v5629_v47 = vmul.f32 0.05, %v5565_v28  ;;  %v5660_v40 = vsel %vm5596_vm6, %v5564_v3, %v5628_v51 }
 0x59d   : > { %vm5595_vm9 = vcmp.ge.f32.partialorder %v5563_v25, 0.0  ;;  %v5627_v31 = vmul.f32 0.05, %v5563_v25  ;;  %v5658_v56 = vsel %vm5594_vm7, %v5562_v42, %v5626_v54 }
 0x59e   : > { %v5661_v22 = vsel %vm5597_vm8, %v5565_v28, %v5629_v47 }
 0x59f   : > { %v5683_v30 = vpack.c.bf16 %v5661_v22, %v5660_v40  ;;  %v5659_v39 = vsel %vm5595_vm9, %v5563_v25, %v5627_v31  ;;  %v16578_v33 = vpop.f32.mrb[20].mxu0 }
 0x5a0   : > { %v5682_v8 = vpack.c.bf16 %v5659_v39, %v5658_v56  ;;  %v5568_v16 = vadd.f32 %v16578_v33, %v20965_v35  ;;  %v5460_v63 = vpop.f32.mrb[21].mxu0  ;;  %v21030_v51 = vld [vmem:[#allocation3 + $0x48] sm:$0xff] }
 0x5a1   : > { %5699 = vst.msk [vmem:[#allocation3 + $0x58] sm:$0xff] %vm869_vm2, %v5683_v30  ;;  %v5566_v12 = vadd.f32 %v20965_v35, %v5460_v63  ;;  %v16579_v1 = vpop.f32.mrb[22].mxu0  ;;  %v21024_v46 = vld [vmem:[#allocation3 + $0x40] sm:$0xff] }
 0x5a2   : > { %5698 = vst.msk [vmem:[#allocation3 + $0x50] sm:$0xff] %vm869_vm2, %v5682_v8  ;;  %v5632_v21 = vmul.f32 0.05, %v5568_v16  ;;  %v5569_v3 = vadd.f32 %v16579_v1, %v20965_v35  ;;  %v5463_v42 = vpop.f32.mrb[23].mxu0  ;;  %16609 = vmatmul.mubr.msk.bf16.gmra.mrb[44].mxu0 %vm869_vm2, %v21024_v46  ;;  %vm5600_vm10 = vcmp.ge.f32.partialorder %v5568_v16, 0.0 }
 0x5a3   : > { %v5630_v28 = vmul.f32 0.05, %v5566_v12  ;;  %v5567_v54 = vadd.f32 %v20965_v35, %v5463_v42  ;;  %16612 = vmatprep.mubr.msk.bf16.mxu0 %vm869_vm2, %v21030_v51  ;;  %vm5598_vm11 = vcmp.ge.f32.partialorder %v5566_v12, 0.0 }
 0x5a4   : > { %vm5601_vm12 = vcmp.ge.f32.partialorder %v5569_v3, 0.0  ;;  %v5633_v25 = vmul.f32 0.05, %v5569_v3  ;;  %v5664_v31 = vsel %vm5600_vm10, %v5568_v16, %v5632_v21 }
 0x5a5   : > { %vm5599_vm13 = vcmp.ge.f32.partialorder %v5567_v54, 0.0  ;;  %v5631_v47 = vmul.f32 0.05, %v5567_v54  ;;  %v5662_v22 = vsel %vm5598_vm11, %v5566_v12, %v5630_v28 }
 0x5a6   : > { %v5665_v40 = vsel %vm5601_vm12, %v5569_v3, %v5633_v25 }
 0x5a7   : > { %v5685_v56 = vpack.c.bf16 %v5665_v40, %v5664_v31  ;;  %v5663_v30 = vsel %vm5599_vm13, %v5567_v54, %v5631_v47  ;;  %v16582_v39 = vpop.f32.mrb[24].mxu0 }
 0x5a8   : > { %v5684_v33 = vpack.c.bf16 %v5663_v30, %v5662_v22  ;;  %v5572_v8 = vadd.f32 %v16582_v39, %v20965_v35  ;;  %v5476_v63 = vpop.f32.mrb[25].mxu0  ;;  %v21044_v12 = vld [vmem:[#allocation3 + $0x58] sm:$0xff] }
 0x5a9   : > { %5701 = vst.msk [vmem:[#allocation3 + $0x68] sm:$0xff] %vm869_vm2, %v5685_v56  ;;  %v5570_v1 = vadd.f32 %v20965_v35, %v5476_v63  ;;  %v16583_v42 = vpop.f32.mrb[26].mxu0  ;;  %v21038_v61 = vld [vmem:[#allocation3 + $0x50] sm:$0xff] }
 0x5aa   : > { %5700 = vst.msk [vmem:[#allocation3 + $0x60] sm:$0xff] %vm869_vm2, %v5684_v33  ;;  %v5636_v5 = vmul.f32 0.05, %v5572_v8  ;;  %v5573_v21 = vadd.f32 %v16583_v42, %v20965_v35  ;;  %v5479_v16 = vpop.f32.mrb[27].mxu0  ;;  %16613 = vmatmul.mubr.msk.bf16.gmra.mrb[48].mxu0 %vm869_vm2, %v21038_v61  ;;  %vm5604_vm14 = vcmp.ge.f32.partialorder %v5572_v8, 0.0 }
 0x5ab   : > { %v5634_v3 = vmul.f32 0.05, %v5570_v1  ;;  %v5571_v28 = vadd.f32 %v20965_v35, %v5479_v16  ;;  %16616 = vmatprep.mubr.msk.bf16.mxu0 %vm869_vm2, %v21044_v12  ;;  %vm5602_vm15 = vcmp.ge.f32.partialorder %v5570_v1, 0.0  ;;  %v23414_v16 = vld [vmem:[#allocation54_spill] sm:$0xff] }
 0x5ac   : > { %vm5605_vm3 = vcmp.ge.f32.partialorder %v5573_v21, 0.0  ;;  %v5637_v54 = vmul.f32 0.05, %v5573_v21  ;;  %v5668_v47 = vsel %vm5604_vm14, %v5572_v8, %v5636_v5  ;;  %v5724_v45 = vmul.bf16 %v20939_v58, %v23414_v16 }
 0x5ad   : > { %vm5603_vm4 = vcmp.ge.f32.partialorder %v5571_v28, 0.0  ;;  %v5635_v25 = vmul.f32 0.05, %v5571_v28  ;;  %v5666_v40 = vsel %vm5602_vm15, %v5570_v1, %v5634_v3 }
 0x5ae   : > { %v5669_v31 = vsel %vm5605_vm3, %v5573_v21, %v5637_v54  ;;  %v5706_v54 = vld [vmem:[#allocation3] sm:$0x80] }
 0x5af   : > { %v5687_v22 = vpack.c.bf16 %v5669_v31, %v5668_v47  ;;  %v5667_v56 = vsel %vm5603_vm4, %v5571_v28, %v5635_v25  ;;  %v16586_v30 = vpop.f32.mrb[28].mxu0  ;;  %v5995_v47 = vshrl.u32 %v5724_v45, 16 }
 0x5b0   : > { %v5686_v39 = vpack.c.bf16 %v5667_v56, %v5666_v40  ;;  %v5576_v33 = vadd.f32 %v16586_v30, %v20965_v35  ;;  %v5492_v63 = vpop.f32.mrb[29].mxu0  ;;  %v21050_v42 = vld [vmem:[#allocation3 + $0x68] sm:$0xff] }
 0x5b1   : > { %5703 = vst.msk [vmem:[#allocation3 + $0x78] sm:$0xff] %vm869_vm2, %v5687_v22  ;;  %v5574_v57 = vadd.f32 %v20965_v35, %v5492_v63  ;;  %v16587_v23 = vpop.f32.mrb[30].mxu0  ;;  %v21056_v5 = vld [vmem:[#allocation3 + $0x60] sm:$0xff]  ;;  %v6384_v28 = vmul.bf16 %v21050_v42, %v20664_v59  ;;  %v21070_v59 = vrot.slane %v5995_v47, 7 }
 0x5b2   : > { %5702 = vst.msk [vmem:[#allocation3 + $0x70] sm:$0xff] %vm869_vm2, %v5686_v39  ;;  %v5640_v8 = vmul.f32 0.05, %v5576_v33  ;;  %v5577_v1 = vadd.f32 %v16587_v23, %v20965_v35  ;;  %v5495_v21 = vpop.f32.mrb[31].mxu0  ;;  %16617 = vmatmul.mubr.msk.bf16.gmra.mrb[52].mxu0 %vm869_vm2, %v21056_v5  ;;  %vm5608_vm5 = vcmp.ge.f32.partialorder %v5576_v33, 0.0  ;;  %v23415_v22 = vld [vmem:[#allocation53_spill] sm:$0xff] }
 0x5b3   : > { %v5638_v3 = vmul.f32 0.05, %v5574_v57  ;;  %v5575_v58 = vadd.f32 %v20965_v35, %v5495_v21  ;;  %16620 = vmatprep.mubr.msk.bf16.mxu0 %vm869_vm2, %v21050_v42  ;;  %vm5606_vm6 = vcmp.ge.f32.partialorder %v5574_v57, 0.0  ;;  %v5723_v56 = vmul.bf16 %v5706_v54, %v23415_v22 }
 0x5b4   : > { %vm5609_vm7 = vcmp.ge.f32.partialorder %v5577_v1, 0.0  ;;  %v5641_v25 = vmul.f32 0.05, %v5577_v1  ;;  %v5672_v31 = vsel %vm5608_vm5, %v5576_v33, %v5640_v8  ;;  %v6494_v63 = vshll.u32 %v6384_v28, 16 }
 0x5b5   : > { %vm5607_vm8 = vcmp.ge.f32.partialorder %v5575_v58, 0.0  ;;  %v5639_v23 = vmul.f32 0.05, %v5575_v58  ;;  %v5670_v30 = vsel %vm5606_vm6, %v5574_v57, %v5638_v3  ;;  %v5726_v57 = vmul.bf16 %v20986_v4, %v20444_v62 }
 0x5b6   : > { %v5673_v40 = vsel %vm5609_vm7, %v5577_v1, %v5641_v25  ;;  %v21086_v1 = vrot.slane %v6494_v63, 1  ;;  %v5998_v3 = vshll.u32 %v5724_v45, 16  ;;  %v6797_v54 = vmul.bf16 %v6795_v32, %v23415_v22 }
 0x5b7   : > { %v5689_v39 = vpack.c.bf16 %v5673_v40, %v5672_v31  ;;  %v5671_v35 = vsel %vm5607_vm8, %v5575_v58, %v5639_v23  ;;  %v5991_v58 = vshrl.u32 %v5723_v56, 16  ;;  %v6798_v25 = vmul.bf16 %v20980_v29, %v23414_v16 }
 0x5b8   : > { %v5688_v21 = vpack.c.bf16 %v5671_v35, %v5670_v30  ;;  %v21068_v55 = vld [vmem:[#allocation3 + $0x78] sm:$0xff]  ;;  %23417 = vst [vmem:[#allocation90_spill] sm:$0xff] %v21086_v1  ;;  %v6498_v47 = vshrl.u32 %v6384_v28, 16  ;;  %v6003_v40 = vshrl.u32 %v5725_v18, 16  ;;  %v6000_v30 = vor.u32 %v5998_v3, %v21070_v59 }
 0x5b9   : > { %5705 = vst.msk [vmem:[#allocation3 + $0x88] sm:$0xff] %vm869_vm2, %v5689_v39  ;;  %v21075_v14 = vld [vmem:[#allocation3 + $0x70] sm:$0xff]  ;;  %v6386_v33 = vmul.bf16 %v21068_v55, %v23408_v6  ;;  %v6011_v39 = vshrl.u32 %v5726_v57, 16  ;;  %v21095_v6 = vshrl.u32 %v6797_v54, 16  ;;  %v6828_v56 = vshrl.u32 %v6798_v25, 16 }
 0x5ba   : > { %5704 = vst.msk [vmem:[#allocation3 + $0x80] sm:$0xff] %vm869_vm2, %v5688_v21  ;;  %16621 = vmatmul.mubr.msk.bf16.gmra.mrb[56].mxu0 %vm869_vm2, %v21075_v14  ;;  %v6385_v8 = vmul.bf16 %v21075_v14, %v23407_v0  ;;  %v6500_v35 = vor.u32 %v6498_v47, %v21086_v1  ;;  %v5993_v21 = vrot.slane %v5991_v58, 7  ;;  %v21099_v32 = vmul.bf16 %v20995_v26, %v20451_v19  ;;  %v18762_v58 = vld [vmem:[#allocation13 + $0x68] sm:$0xff]  }
 0x5bb   : > { %16624 = vmatprep.mubr.msk.bf16.mxu0 %vm869_vm2, %v21068_v55  ;;  %v6510_v31 = vshll.u32 %v6386_v33, 16  ;;  %v6005_v29 = vrot.slane %v6003_v40, 7  ;;  %v21104_v3 = vmul.bf16 %v21001_v37, %v20460_v44  ;;  %v21112_v47 = vmul.bf16 %v20986_v4, %v23416_v49 }
 0x5bc   : > { %v6502_v23 = vshll.u32 %v6385_v8, 16  ;;  %v6506_v45 = vshrl.u32 %v6385_v8, 16  ;;  %v6826_v1 = vrot.slane %v21095_v6, 7 }
 0x5bd   : > { %v6512_v16 = vrot.slane %v6510_v31, 1  ;;  %v6001_v31 = vsel %vm1887_vm1, %v5993_v21, %v6000_v30  ;;  %v6514_v30 = vshrl.u32 %v6386_v33, 16  ;;  %v6027_v49 = vshrl.u32 %v21104_v3, 16 }
 0x5be   : > { %v6504_v63 = vrot.slane %v6502_v23, 1  ;;  %v21114_v23 = vrot.slane %v6011_v39, 7  ;;  %v6800_v39 = vmul.bf16 %v20995_v26, %v20444_v62 }
 0x5bf   : > { %v21136_v34 = vrot.slane %v6027_v49, 7 }
 0x5c0   : > { %v6505_v28 = vsel %vm1483_vm0, %v6500_v35, %v6504_v63  ;;  %v6508_v22 = vor.u32 %v6506_v45, %v6504_v63  ;;  %v6371_v0 = vld [vmem:[#allocation3 + $0x88] sm:$0x1]  ;;  %v6006_v63 = vshll.u32 %v5725_v18, 16  ;;  %v6014_v45 = vshll.u32 %v5726_v57, 16  ;;  %v18763_v57 = vld [vmem:[#allocation13 + $0x70] sm:$0xff]  }
 0x5c1   : > { %16700 = vmatprep.mubr.msk.bf16.mxu1 %vm869_vm2, %v6505_v28  ;;  %v21107_v8 = vld [vmem:[#allocation3 + $0x80] sm:$0xff]  ;;  %v6388_v54 = vmul.bf16 %v6371_v0, %v23410_v15  ;;  %v21124_v0 = vrot.slane %v6828_v56, 7  ;;  %v6019_v28 = vshrl.u32 %v21099_v32, 16  ;;  %v6516_v56 = vor.u32 %v6514_v30, %v6512_v16 }
 0x5c2   : > { %16625 = vmatmul.mubr.msk.bf16.gmra.mrb[60].mxu0 %vm869_vm2, %v21107_v8  ;;  %v6513_v40 = vsel %vm1483_vm0, %v6508_v22, %v6512_v16  ;;  %v6387_v35 = vmul.bf16 %v21107_v8, %v23409_v9  ;;  %v6008_v18 = vor.u32 %v6006_v63, %v6005_v29  ;;  %v6016_v9 = vor.u32 %v6014_v45, %v21114_v23 }
 0x5c3   : > { %16636 = vmatprep.mubr.msk.bf16.mxu0 %vm869_vm2, %v6001_v31  ;;  %16701 = vmatmul.mubr.msk.bf16.vlgmr.msra.gmra.mrb[0].mxu1 %vm869_vm2, %v6513_v40  ;;  %v6526_v21 = vshll.u32 %v6388_v54, 16  ;;  %v6831_v31 = vshll.u32 %v6798_v25, 16  ;;  %v6836_v40 = vshrl.u32 %v21112_v47, 16  ;;  %v6844_v33 = vshrl.u32 %v6800_v39, 16 }
 0x5c4   : > { %16709 = vmatpush3.bf16.msra.mxu1 %v20961_v41  ;;  %v6518_v22 = vshll.u32 %v6387_v35, 16  ;;  %v6522_v62 = vshrl.u32 %v6387_v35, 16  ;;  %v6021_v26 = vrot.slane %v6019_v28, 7  ;;  %v5729_v16 = vmul.bf16 %v21010_v27, %v20466_v60 }
 0x5c5   : > { %16710 = vmatprep.subr.bf16.mxu1 %v18762_v58  ;;  %v6833_v41 = vor.u32 %v6831_v31, %v21124_v0  ;;  %v6528_v63 = vrot.slane %v6526_v21, 1  ;;  %v21142_v25 = vmul.bf16 %v21016_v7, %v20473_v17  ;;  %v6009_v6 = vsel %vm1887_vm1, %v21070_v59, %v6008_v18  ;;  %v18765_v21 = vld [vmem:[#allocation13 + $0x80] sm:$0xff]  }
 0x5c6   : > { %v6520_v15 = vrot.slane %v6518_v22, 1  ;;  %v6801_v35 = vmul.bf16 %v21001_v37, %v20451_v19  ;;  %v6022_v45 = vshll.u32 %v21099_v32, 16  ;;  %v21156_v28 = vrot.slane %v6844_v33, 7  ;;  %v18766_v33 = vld [vmem:[#allocation13 + $0x88] sm:$0xff]  }
 0x5c7   : > { %v6834_v59 = vsel %vm1887_vm1, %v6826_v1, %v6833_v41  ;;  %v6802_v30 = vmul.bf16 %v21010_v27, %v20460_v44  ;;  %v6043_v32 = vshrl.u32 %v21142_v25, 16  ;;  %v6847_v18 = vshll.u32 %v6800_v39, 16 }
 0x5c8   : > { %16711 = vmatpush3.bf16.msra.mxu1 %v18762_v58  ;;  %v6521_v54 = vsel %vm1483_vm0, %v6516_v56, %v6520_v15  ;;  %v6524_v4 = vor.u32 %v6522_v62, %v6520_v15  ;;  %v18764_v58 = vld [vmem:[#allocation13 + $0x78] sm:$0xff]   ;;  %v6017_v62 = vsel %vm1887_vm1, %v6005_v29, %v6016_v9  ;;  %v6838_v15 = vrot.slane %v6836_v40, 7 }
 0x5c9   : > { %16704 = vmatprep.mubr.msk.bf16.mxu1 %vm869_vm2, %v6521_v54  ;;  %16712 = vmatprep.subr.bf16.mxu1 %v18763_v57  ;;  %v6030_v9 = vshll.u32 %v21104_v3, 16  ;;  %v6839_v29 = vshll.u32 %v21112_v47, 16  ;;  %v6024_v22 = vor.u32 %v6022_v45, %v6021_v26  ;;  %v6852_v40 = vshrl.u32 %v6801_v35, 16 }
 0x5ca   : > { %16637 = vmatmul.mubr.msk.bf16.vlgmr.msra.gmra.mrb[32].mxu0 %vm869_vm2, %v6009_v6  ;;  %v6529_v49 = vsel %vm1483_vm0, %v6524_v4, %v6528_v63  ;;  %v6035_v4 = vshrl.u32 %v5729_v16, 16  ;;  %v6849_v3 = vor.u32 %v6847_v18, %v21156_v28  ;;  %v21170_v47 = vmul.bf16 %v21024_v46, %v20482_v43 }
 0x5cb   : > { %16640 = vmatprep.mubr.msk.bf16.mxu0 %vm869_vm2, %v6017_v62  ;;  %16705 = vmatmul.mubr.msk.bf16.gmra.mrb[4].mxu1 %vm869_vm2, %v6529_v49  ;;  %v6032_v1 = vor.u32 %v6030_v9, %v21136_v34  ;;  %v6841_v31 = vor.u32 %v6839_v29, %v6838_v15  ;;  %v21172_v41 = vrot.slane %v6043_v32, 7  ;;  %v6025_v39 = vsel %vm1887_vm1, %v21114_v23, %v6024_v22  ;;  %v18767_v29 = vld [vmem:[#allocation13 + $0x90] sm:$0xff]  }
 0x5cc   : > { %16713 = vmatpush3.bf16.msra.mxu1 %v18763_v57  ;;  %16716 = vmatprep.mubr.msk.bf16.mxu1 %vm869_vm2, %v6834_v59  ;;  %v6860_v57 = vshrl.u32 %v6802_v30, 16  ;;  %v6037_v56 = vrot.slane %v6035_v4, 7  ;;  %v6854_v6 = vrot.slane %v6852_v40, 7  ;;  %v6038_v62 = vshll.u32 %v5729_v16, 16 }
 0x5cd   : > { %16714 = vmatprep.subr.bf16.mxu1 %v18764_v58  ;;  %16669 = vmatpush3.bf16.msra.mxu0 %v20943_v13  ;;  %v21176_v13 = vmul.bf16 %v21030_v51, %v20487_v36  ;;  %v6033_v54 = vsel %vm1887_vm1, %v6021_v26, %v6032_v1  ;;  %v6842_v63 = vsel %vm1887_vm1, %v21124_v0, %v6841_v31  ;;  %v6046_v0 = vshll.u32 %v21142_v25, 16  ;;  %v18768_v1 = vld [vmem:[#allocation13 + $0x98] sm:$0xff]  }
 0x5ce   : > { %16670 = vmatprep.subr.bf16.mxu0 %v20945_v38  ;;  %v21191_v23 = vrot.slane %v6860_v57, 7  ;;  %v6804_v26 = vmul.bf16 %v21024_v46, %v20473_v17  ;;  %v6051_v49 = vshrl.u32 %v21170_v47, 16  ;;  %v6855_v45 = vshll.u32 %v6801_v35, 16 }
 0x5cf   : > { %v6059_v16 = vshrl.u32 %v21176_v13, 16  ;;  %v6040_v59 = vor.u32 %v6038_v62, %v6037_v56  ;;  %v6863_v9 = vshll.u32 %v6802_v30, 16  ;;  %v5733_v30 = vmul.bf16 %v21038_v61, %v20494_v20 }
 0x5d0   : > { %16715 = vmatpush3.bf16.msra.mxu1 %v18764_v58  ;;  %v6803_v58 = vmul.bf16 %v21016_v7, %v20466_v60  ;;  %v6857_v4 = vor.u32 %v6855_v45, %v6854_v6  ;;  %v6876_v22 = vshrl.u32 %v6804_v26, 16  ;;  %v6053_v18 = vrot.slane %v6051_v49, 7 }
 0x5d1   : > { %16748 = vmatprep.subr.bf16.mxu1 %v18765_v21  ;;  %16671 = vmatpush3.bf16.msra.mxu0 %v20945_v38  ;;  %v6850_v38 = vsel %vm1887_vm1, %v6838_v15, %v6849_v3  ;;  %v6048_v15 = vor.u32 %v6046_v0, %v21172_v41  ;;  %v6865_v25 = vor.u32 %v6863_v9, %v21191_v23  ;;  %v21203_v35 = vrot.slane %v6059_v16, 7 }
 0x5d2   : > { %16641 = vmatmul.mubr.msk.bf16.gmra.mrb[36].mxu0 %vm869_vm2, %v6025_v39  ;;  %16672 = vmatprep.subr.bf16.mxu0 %v20952_v52  ;;  %v6868_v32 = vshrl.u32 %v6803_v58, 16  ;;  %v6858_v40 = vsel %vm1887_vm1, %v21156_v28, %v6857_v4  ;;  %v6805_v57 = vmul.bf16 %v21030_v51, %v20482_v43  ;;  %v6054_v39 = vshll.u32 %v21170_v47, 16 }
 0x5d3   : > { %16644 = vmatprep.mubr.msk.bf16.mxu0 %vm869_vm2, %v6033_v54  ;;  %16717 = vmatmul.mubr.msk.bf16.vlgmr.msra.gmra.mrb[8].mxu1 %vm869_vm2, %v6842_v63  ;;  %v6049_v31 = vsel %vm1887_vm1, %v6037_v56, %v6048_v15  ;;  %v6062_v56 = vshll.u32 %v21176_v13, 16  ;;  %v6871_v28 = vshll.u32 %v6803_v58, 16  ;;  %v6067_v54 = vshrl.u32 %v5733_v30, 16 }
 0x5d4   : > { %16720 = vmatprep.mubr.msk.bf16.mxu1 %vm869_vm2, %v6850_v38  ;;  %16749 = vmatpush3.bf16.msra.mxu1 %v18765_v21  ;;  %v5734_v21 = vmul.bf16 %v21044_v12, %v20503_v48  ;;  %v6870_v3 = vrot.slane %v6868_v32, 7  ;;  %v6056_v62 = vor.u32 %v6054_v39, %v6053_v18  ;;  %v6879_v47 = vshll.u32 %v6804_v26, 16  ;;  %v21226_v38 = vld [vmem:[#allocation13 + $0xa0] sm:$0xff]  }
 0x5d5   : > { %16750 = vmatprep.subr.bf16.mxu1 %v18766_v33  ;;  %16673 = vmatpush3.bf16.msra.mxu0 %v20952_v52  ;;  %v6041_v52 = vsel %vm1887_vm1, %v21136_v34, %v6040_v59  ;;  %v6866_v34 = vsel %vm1887_vm1, %v6854_v6, %v6865_v25  ;;  %v6064_v0 = vor.u32 %v6062_v56, %v21203_v35  ;;  %v6884_v49 = vshrl.u32 %v6805_v57, 16 }
 0x5d6   : > { %16674 = vmatprep.subr.bf16.mxu0 %v20957_v50  ;;  %v6075_v63 = vshrl.u32 %v5734_v21, 16  ;;  %v6873_v6 = vor.u32 %v6871_v28, %v6870_v3  ;;  %v5735_v13 = vmul.bf16 %v21056_v5, %v20510_v2  ;;  %v6069_v59 = vrot.slane %v6067_v54, 7 }
 0x5d7   : > { %v5736_v9 = vmul.bf16 %v21050_v42, %v20518_v24  ;;  %v6057_v26 = vsel %vm1887_vm1, %v21172_v41, %v6056_v62  ;;  %v6886_v4 = vrot.slane %v6884_v49, 7  ;;  %v6807_v32 = vmul.bf16 %v21044_v12, %v20494_v20 }
 0x5d8   : > { %16751 = vmatpush3.bf16.msra.mxu1 %v18766_v33  ;;  %v6806_v33 = vmul.bf16 %v21038_v61, %v20487_v36  ;;  %v6077_v58 = vrot.slane %v6075_v63, 7  ;;  %v6874_v15 = vsel %vm1887_vm1, %v21191_v23, %v6873_v6  ;;  %v6070_v25 = vshll.u32 %v5733_v30, 16 }
 0x5d9   : > { %16752 = vmatprep.subr.bf16.mxu1 %v18767_v29  ;;  %16675 = vmatpush3.bf16.msra.mxu0 %v20957_v50  ;;  %v6878_v50 = vrot.slane %v6876_v22, 7  ;;  %v6887_v23 = vshll.u32 %v6805_v57, 16  ;;  %v6900_v56 = vshrl.u32 %v6807_v32, 16  ;;  %v6809_v6 = vmul.bf16 %v21050_v42, %v20510_v2 }
 0x5da   : > { %16645 = vmatmul.mubr.msk.bf16.gmra.mrb[40].mxu0 %vm869_vm2, %v6041_v52  ;;  %v6892_v16 = vshrl.u32 %v6806_v33, 16  ;;  %v6808_v52 = vmul.bf16 %v21056_v5, %v20503_v48  ;;  %v6895_v39 = vshll.u32 %v6806_v33, 16  ;;  %v6086_v49 = vshll.u32 %v5735_v13, 16 }
 0x5db   : > { %16648 = vmatprep.mubr.msk.bf16.mxu0 %vm869_vm2, %v6049_v31  ;;  %16721 = vmatmul.mubr.msk.bf16.gmra.mrb[12].mxu1 %vm869_vm2, %v6858_v40  ;;  %v6881_v45 = vor.u32 %v6879_v47, %v6878_v50  ;;  %v6091_v31 = vshrl.u32 %v5736_v9, 16  ;;  %v6072_v40 = vor.u32 %v6070_v25, %v6069_v59  ;;  %v6889_v30 = vor.u32 %v6887_v23, %v6886_v4 }
 0x5dc   : > { %16724 = vmatprep.mubr.msk.bf16.mxu1 %vm869_vm2, %v6866_v34  ;;  %16753 = vmatpush3.bf16.msra.mxu1 %v18767_v29  ;;  %v6065_v29 = vsel %vm1887_vm1, %v6053_v18, %v6064_v0  ;;  %v6894_v22 = vrot.slane %v6892_v16, 7  ;;  %v6083_v18 = vshrl.u32 %v5735_v13, 16  ;;  %v6908_v54 = vshrl.u32 %v6808_v52, 16 }
 0x5dd   : > { %16754 = vmatprep.subr.bf16.mxu1 %v18768_v1  ;;  %v6882_v41 = vsel %vm1887_vm1, %v6870_v3, %v6881_v45  ;;  %v6093_v62 = vrot.slane %v6091_v31, 7  ;;  %v5737_v3 = vmul.bf16 %v21075_v14, %v20527_v53  ;;  %v6073_v47 = vsel %vm1887_vm1, %v21203_v35, %v6072_v40 }
 0x5de   : > { %v6897_v28 = vor.u32 %v6895_v39, %v6894_v22  ;;  %v6085_v63 = vrot.slane %v6083_v18, 7  ;;  %v6890_v33 = vsel %vm1887_vm1, %v6878_v50, %v6889_v30  ;;  %v6902_v0 = vrot.slane %v6900_v56, 7 }
 0x5df   : > { %v6910_v16 = vrot.slane %v6908_v54, 7  ;;  %v6810_v35 = vmul.bf16 %v21075_v14, %v20518_v24  ;;  %v6099_v50 = vshrl.u32 %v5737_v3, 16  ;;  %v6911_v25 = vshll.u32 %v6808_v52, 16 }
 0x5e0   : > { %16755 = vmatpush3.bf16.msra.mxu1 %v18768_v1  ;;  %v6078_v1 = vshll.u32 %v5734_v21, 16  ;;  %v5738_v21 = vmul.bf16 %v21068_v55, %v20532_v10  ;;  %v6898_v45 = vsel %vm1887_vm1, %v6886_v4, %v6897_v28  ;;  %v5739_v39 = vmul.bf16 %v21107_v8, %v20534_v11 }
 0x5e1   : > { %16788 = vmatprep.subr.bf16.mxu1 %v21226_v38  ;;  %v6913_v18 = vor.u32 %v6911_v25, %v6910_v16  ;;  %v6924_v23 = vshrl.u32 %v6810_v35, 16  ;;  %v6101_v40 = vrot.slane %v6099_v50, 7  ;;  %v6811_v30 = vmul.bf16 %v21068_v55, %v20527_v53  ;;  %v21282_v25 = vld [vmem:[#allocation3 + $0x88] sm:$0xff] }
 0x5e2   : > { %16649 = vmatmul.mubr.msk.bf16.gmra.mrb[44].mxu0 %vm869_vm2, %v6057_v26  ;;  %v6080_v34 = vor.u32 %v6078_v1, %v6077_v58  ;;  %v6094_v26 = vshll.u32 %v5736_v9, 16  ;;  %v6916_v1 = vshrl.u32 %v6809_v6, 16  ;;  %v6110_v31 = vshll.u32 %v5738_v21, 16 }
 0x5e3   : > { %16652 = vmatprep.mubr.msk.bf16.mxu0 %vm869_vm2, %v6065_v29  ;;  %16725 = vmatmul.mubr.msk.bf16.gmra.mrb[16].mxu1 %vm869_vm2, %v6874_v15  ;;  %v6107_v29 = vshrl.u32 %v5738_v21, 16  ;;  %v6088_v15 = vor.u32 %v6086_v49, %v6085_v63  ;;  %v6102_v56 = vshll.u32 %v5737_v3, 16  ;;  %v6914_v28 = vsel %vm1887_vm1, %v6902_v0, %v6913_v18  ;;  %v18989_v21 = vld [vmem:[#allocation3 + $0x8] sm:$0xff] }
 0x5e4   : > { %16728 = vmatprep.mubr.msk.bf16.mxu1 %vm869_vm2, %v6882_v41  ;;  %v6081_v57 = vsel %vm1887_vm1, %v6069_v59, %v6080_v34  ;;  %v6903_v59 = vshll.u32 %v6807_v32, 16  ;;  %v6096_v41 = vor.u32 %v6094_v26, %v6093_v62  ;;  %v6918_v52 = vrot.slane %v6916_v1, 7  ;;  %v23419_v26 = vld [vmem:[#allocation71_spill] sm:$0xff] }
 0x5e5   : > { %v6109_v4 = vrot.slane %v6107_v29, 7  ;;  %v6089_v9 = vsel %vm1887_vm1, %v6077_v58, %v6088_v15  ;;  %v6926_v54 = vrot.slane %v6924_v23, 7  ;;  %v6812_v58 = vmul.bf16 %v21107_v8, %v20532_v10 }
 0x5e6   : > { %v6905_v13 = vor.u32 %v6903_v59, %v6902_v0  ;;  %v6097_v32 = vsel %vm1887_vm1, %v6085_v63, %v6096_v41  ;;  %v6919_v63 = vshll.u32 %v6809_v6, 16  ;;  %v6927_v3 = vshll.u32 %v6810_v35, 16  ;;  %v23420_v59 = vld [vmem:[#allocation87_spill] sm:$0xff] }
 0x5e7   : > { %v6112_v49 = vor.u32 %v6110_v31, %v6109_v4  ;;  %v6373_v50 = vmul.bf16 %v23420_v59, %v23419_v26  ;;  %v6932_v29 = vshrl.u32 %v6811_v30, 16  ;;  %v6940_v15 = vshrl.u32 %v6812_v58, 16 }
 0x5e8   : > { %v6906_v34 = vsel %vm1887_vm1, %v6894_v22, %v6905_v13  ;;  %v23418_v22 = vld [vmem:[#allocation70_spill] sm:$0xff]  ;;  %v6929_v0 = vor.u32 %v6927_v3, %v6926_v54  ;;  %v6813_v31 = vmul.bf16 %v21282_v25, %v20534_v11  ;;  %v23424_v3 = vld [vmem:[#allocation89_spill] sm:$0xff] }
 0x5e9   : > { %v6113_v1 = vsel %vm1887_vm1, %v6101_v40, %v6112_v49  ;;  %v6406_v35 = vshll.u32 %v6373_v50, 16  ;;  %v6934_v23 = vrot.slane %v6932_v29, 7 }
 0x5ea   : > { %16653 = vmatmul.mubr.msk.bf16.gmra.mrb[48].mxu0 %vm869_vm2, %v6073_v47  ;;  %v6372_v47 = vmul.bf16 %v18989_v21, %v23418_v22  ;;  %v6948_v29 = vshrl.u32 %v6813_v31, 16 }
 0x5eb   : > { %16656 = vmatprep.mubr.msk.bf16.mxu0 %vm869_vm2, %v6081_v57  ;;  %16729 = vmatmul.mubr.msk.bf16.gmra.mrb[20].mxu1 %vm869_vm2, %v6890_v33  ;;  %v6115_v57 = vshrl.u32 %v5739_v39, 16  ;;  %v6104_v33 = vor.u32 %v6102_v56, %v6101_v40  ;;  %v6935_v40 = vshll.u32 %v6811_v30, 16  ;;  %v23421_v56 = vld [vmem:[#allocation72_spill] sm:$0xff] }
 0x5ec   : > { %16732 = vmatprep.mubr.msk.bf16.mxu1 %vm869_vm2, %v6898_v45  ;;  %v6921_v45 = vor.u32 %v6919_v63, %v6918_v52  ;;  %v6401_v41 = vshll.u32 %v6372_v47, 16  ;;  %v6399_v21 = vshrl.u32 %v6372_v47, 16  ;;  %v6950_v47 = vrot.slane %v6948_v29, 7  ;;  %v23427_v29 = vld [vmem:[#allocation76_spill] sm:$0xff] }
 0x5ed   : > { %v6117_v13 = vrot.slane %v6115_v57, 7  ;;  %v6105_v6 = vsel %vm1887_vm1, %v6093_v62, %v6104_v33  ;;  %v6943_v57 = vshll.u32 %v6812_v58, 16  ;;  %v6408_v33 = vrot.slane %v6406_v35, 1 }
 0x5ee   : > { %v6922_v18 = vsel %vm1887_vm1, %v6910_v16, %v6921_v45  ;;  %v6403_v62 = vrot.slane %v6401_v41, 1  ;;  %v6937_v49 = vor.u32 %v6935_v40, %v6934_v23  ;;  %v6410_v58 = vshrl.u32 %v6373_v50, 16 }
 0x5ef   : > { %v6951_v35 = vshll.u32 %v6813_v31, 16 }
 0x5f2   : > { %16657 = vmatmul.mubr.msk.bf16.gmra.mrb[52].mxu0 %vm869_vm2, %v6089_v9  ;;  %v6118_v9 = vshll.u32 %v5739_v39, 16  ;;  %v23423_v39 = vld [vmem:[#allocation73_spill] sm:$0xff] }
 0x5f3   : > { %16660 = vmatprep.mubr.msk.bf16.mxu0 %vm869_vm2, %v6097_v32  ;;  %16733 = vmatmul.mubr.msk.bf16.gmra.mrb[24].mxu1 %vm869_vm2, %v6906_v34  ;;  %v6930_v32 = vsel %vm1887_vm1, %v6918_v52, %v6929_v0  ;;  %v6942_v34 = vrot.slane %v6940_v15, 7  ;;  %v6375_v45 = vmul.bf16 %v23424_v3, %v23423_v39  ;;  %v6938_v15 = vsel %vm1887_vm1, %v6926_v54, %v6937_v49 }
 0x5f4   : > { %16736 = vmatprep.mubr.msk.bf16.mxu1 %vm869_vm2, %v6914_v28  ;;  %v23422_v28 = vld [vmem:[#allocation88_spill] sm:$0xff]  ;;  %v6120_v63 = vor.u32 %v6118_v9, %v6117_v13  ;;  %v6953_v54 = vor.u32 %v6951_v35, %v6950_v47 }
 0x5f5   : > { %v6374_v16 = vmul.bf16 %v23422_v28, %v23421_v56  ;;  %v6422_v41 = vshll.u32 %v6375_v45, 16  ;;  %v23426_v28 = vld [vmem:[#allocation75_spill] sm:$0xff] }
 0x5f6   : > { %v6121_v0 = vsel %vm1887_vm1, %v6109_v4, %v6120_v63  ;;  %v23425_v4 = vld [vmem:[#allocation74_spill] sm:$0xff]  ;;  %v6377_v50 = vmul.bf16 %v21010_v27, %v23426_v28  ;;  %v6954_v31 = vsel %vm1887_vm1, %v6942_v34, %v6953_v54 }
 0x5f7   : > { %v6414_v52 = vshll.u32 %v6374_v16, 16  ;;  %v6376_v9 = vmul.bf16 %v21001_v37, %v23425_v4  ;;  %v6424_v40 = vrot.slane %v6422_v41, 1 }
 0x5f8   : > { %v6438_v49 = vshll.u32 %v6377_v50, 16 }
 0x5fa   : > { %16661 = vmatmul.mubr.msk.bf16.gmra.mrb[56].mxu0 %vm869_vm2, %v6105_v6  ;;  %v6945_v6 = vor.u32 %v6943_v57, %v6942_v34 }
 0x5fb   : > { %16664 = vmatprep.mubr.msk.bf16.mxu0 %vm869_vm2, %v6113_v1  ;;  %16737 = vmatmul.mubr.msk.bf16.gmra.mrb[28].mxu1 %vm869_vm2, %v6922_v18  ;;  %v6404_v1 = vor.u32 %v6403_v62, %v6399_v21  ;;  %v6416_v18 = vrot.slane %v6414_v52, 1  ;;  %v6418_v62 = vshrl.u32 %v6374_v16, 16  ;;  %v6430_v21 = vshll.u32 %v6376_v9, 16 }
 0x5fc   : > { %16740 = vmatprep.mubr.msk.bf16.mxu1 %vm869_vm2, %v6930_v32  ;;  %v6946_v13 = vsel %vm1887_vm1, %v6934_v23, %v6945_v6  ;;  %v6412_v32 = vor.u32 %v6410_v58, %v6408_v33  ;;  %v6426_v16 = vshrl.u32 %v6375_v45, 16  ;;  %v6378_v6 = vmul.bf16 %v21016_v7, %v23427_v29  ;;  %v18770_v58 = vld [vmem:[#allocation13 + $0xa8] sm:$0xff]  }
 0x5fd   : > { %v6409_v30 = vsel %vm1483_vm0, %v6404_v1, %v6408_v33  ;;  %v6420_v63 = vor.u32 %v6418_v62, %v6416_v18  ;;  %v6432_v33 = vrot.slane %v6430_v21, 1  ;;  %v6434_v52 = vshrl.u32 %v6376_v9, 16  ;;  %v23429_v9 = vld [vmem:[#allocation78_spill] sm:$0xff]  ;;  %v23430_v21 = vld [vmem:[#allocation79_spill] sm:$0xff] }
 0x5fe   : > { %v6417_v57 = vsel %vm1483_vm0, %v6412_v32, %v6416_v18  ;;  %v6428_v1 = vor.u32 %v6426_v16, %v6424_v40  ;;  %v6446_v41 = vshll.u32 %v6378_v6, 16  ;;  %v6442_v18 = vshrl.u32 %v6377_v50, 16 }
 0x5ff   : > { %v6425_v23 = vsel %vm1483_vm0, %v6420_v63, %v6424_v40  ;;  %v6436_v34 = vor.u32 %v6434_v52, %v6432_v33  ;;  %v6380_v32 = vmul.bf16 %v21030_v51, %v23429_v9  ;;  %v18771_v40 = vld [vmem:[#allocation13 + $0xb0] sm:$0xff]   ;;  %v6450_v54 = vshrl.u32 %v6378_v6, 16  ;;  %v23431_v6 = vld [vmem:[#allocation80_spill] sm:$0xff] }
 0x600   : > { %v6433_v47 = vsel %vm1483_vm0, %v6428_v1, %v6432_v33  ;;  %v6448_v35 = vrot.slane %v6446_v41, 1  ;;  %v6382_v1 = vmul.bf16 %v21044_v12, %v23431_v6 }
 0x602   : > { %16665 = vmatmul.mubr.msk.bf16.gmra.mrb[60].mxu0 %vm869_vm2, %v6121_v0  ;;  %v6440_v0 = vrot.slane %v6438_v49, 1 }
 0x603   : > { %16676 = vmatprep.mubr.msk.bf16.mxu0 %vm869_vm2, %v6409_v30  ;;  %16741 = vmatmul.mubr.msk.bf16.gmra.mrb[0].mxu1 %vm869_vm2, %v6938_v15  ;;  %v23428_v30 = vld [vmem:[#allocation77_spill] sm:$0xff] }
 0x604   : > { %16744 = vmatprep.mubr.msk.bf16.mxu1 %vm869_vm2, %v6946_v13  ;;  %v6379_v15 = vmul.bf16 %v21024_v46, %v23428_v30  ;;  %v6441_v45 = vsel %vm1483_vm0, %v6436_v34, %v6440_v0  ;;  %v18990_v13 = vld [vmem:[#allocation3 + $0x18] sm:$0xff]  ;;  %v6444_v62 = vor.u32 %v6442_v18, %v6440_v0  ;;  %v21344_v0 = vld [vmem:[#allocation13 + $0xc0] sm:$0xff]   ;;  %v6466_v34 = vshrl.u32 %v6380_v32, 16 }
 0x606   : > { %v6449_v50 = vsel %vm1483_vm0, %v6444_v62, %v6448_v35  ;;  %v6458_v16 = vshrl.u32 %v6379_v15, 16 }
 0x60a   : > { %16677 = vmatmul.mubr.msk.bf16.vlgmr.msra.gmra.mrb[32].mxu0 %vm869_vm2, %v6417_v57  ;;  %v6381_v57 = vmul.bf16 %v21038_v61, %v23430_v21 }
 0x60b   : > { %16680 = vmatprep.mubr.msk.bf16.mxu0 %vm869_vm2, %v6425_v23  ;;  %16745 = vmatmul.mubr.msk.bf16.gmra.mrb[4].mxu1 %vm869_vm2, %v6954_v31  ;;  %v6452_v23 = vor.u32 %v6450_v54, %v6448_v35  ;;  %v6462_v31 = vshll.u32 %v6380_v32, 16  ;;  %v6482_v32 = vshrl.u32 %v6382_v1, 16 }
 0x60c   : > { %16756 = vmatprep.mubr.msk.bf16.mxu1 %vm869_vm2, %v23420_v59  ;;  %v6454_v59 = vshll.u32 %v6379_v15, 16  ;;  %v6470_v49 = vshll.u32 %v6381_v57, 16 }
 0x60d   : > { %v6464_v33 = vrot.slane %v6462_v31, 1  ;;  %v7494_v31 = vld [vmem:[#allocation3 + $0x10] sm:$0xff] }
 0x60e   : > { %v6456_v63 = vrot.slane %v6454_v59, 1  ;;  %v6472_v41 = vrot.slane %v6470_v49, 1  ;;  %v21389_v49 = vld [vmem:[#allocation3 + $0x28] sm:$0xff] }
 0x610   : > { %v6460_v52 = vor.u32 %v6458_v16, %v6456_v63 }
 0x612   : > { %16681 = vmatmul.mubr.msk.bf16.gmra.mrb[36].mxu0 %vm869_vm2, %v6433_v47  ;;  %v23432_v47 = vld [vmem:[#allocation81_spill] sm:$0xff]  ;;  %v6465_v15 = vsel %vm1483_vm0, %v6460_v52, %v6464_v33 }
 0x613   : > { %16684 = vmatprep.mubr.msk.bf16.mxu0 %vm869_vm2, %v6441_v45  ;;  %16757 = vmatmul.mubr.msk.bf16.vlgmr.msra.gmra.mrb[8].mxu1 %vm869_vm2, %v18990_v13  ;;  %v6468_v45 = vor.u32 %v6466_v34, %v6464_v33  ;;  %v6474_v13 = vshrl.u32 %v6381_v57, 16  ;;  %v23433_v57 = vld [vmem:[#allocation90_spill] sm:$0xff]  ;;  %v7514_v34 = vmul.bf16 %v21389_v49, %v23423_v39 }
 0x614   : > { %16760 = vmatprep.mubr.msk.bf16.mxu1 %vm869_vm2, %v23424_v3  ;;  %16789 = vmatpush3.bf16.msra.mxu1 %v21226_v38  ;;  %v18772_v3 = vld [vmem:[#allocation13 + $0xb8] sm:$0xff]   ;;  %v6457_v38 = vsel %vm1483_vm0, %v6452_v23, %v6456_v63 }
 0x615   : > { %16790 = vmatprep.subr.bf16.mxu1 %v18770_v58  ;;  %v6476_v35 = vor.u32 %v6474_v13, %v6472_v41 }
 0x618   : > { %16791 = vmatpush3.bf16.msra.mxu1 %v18770_v58  ;;  %v6383_v58 = vmul.bf16 %v21056_v5, %v23432_v47 }
 0x619   : > { %16792 = vmatprep.subr.bf16.mxu1 %v18771_v40 }
 0x61a   : > { %16685 = vmatmul.mubr.msk.bf16.gmra.mrb[40].mxu0 %vm869_vm2, %v6449_v50  ;;  %v6486_v59 = vshll.u32 %v6383_v58, 16 }
 0x61b   : > { %16688 = vmatprep.mubr.msk.bf16.mxu0 %vm869_vm2, %v6457_v38  ;;  %16761 = vmatmul.mubr.msk.bf16.gmra.mrb[12].mxu1 %vm869_vm2, %v21001_v37  ;;  %v6478_v37 = vshll.u32 %v6382_v1, 16  ;;  %v21391_v1 = vld [vmem:[#allocation3 + $0x30] sm:$0xff] }
 0x61c   : > { %16764 = vmatprep.mubr.msk.bf16.mxu1 %vm869_vm2, %v21010_v27  ;;  %16793 = vmatpush3.bf16.msra.mxu1 %v18771_v40  ;;  %v6473_v27 = vsel %vm1483_vm0, %v6468_v45, %v6472_v41  ;;  %v6488_v62 = vrot.slane %v6486_v59, 1 }
 0x61d   : > { %16794 = vmatprep.subr.bf16.mxu1 %v18772_v3  ;;  %v6480_v18 = vrot.slane %v6478_v37, 1  ;;  %v7561_v37 = vshll.u32 %v7514_v34, 16 }
 0x61f   : > { %v6484_v40 = vor.u32 %v6482_v32, %v6480_v18  ;;  %v6481_v54 = vsel %vm1483_vm0, %v6476_v35, %v6480_v18  ;;  %v21403_v35 = vld [vmem:[#allocation3 + $0x40] sm:$0xff]  ;;  %v7563_v32 = vrot.slane %v7561_v37, 1 }
 0x620   : > { %16795 = vmatpush3.bf16.msra.mxu1 %v18772_v3  ;;  %v21379_v3 = vld [vmem:[#allocation3 + $0x20] sm:$0xff] }
 0x621   : > { %16828 = vmatprep.subr.bf16.mxu1 %v21344_v0  ;;  %v6489_v63 = vsel %vm1483_vm0, %v6484_v40, %v6488_v62  ;;  %v18774_v40 = vld [vmem:[#allocation13 + $0xc8] sm:$0xff]  }
 0x622   : > { %16689 = vmatmul.mubr.msk.bf16.gmra.mrb[44].mxu0 %vm869_vm2, %v6465_v15 }
 0x623   : > { %16692 = vmatprep.mubr.msk.bf16.mxu0 %vm869_vm2, %v6473_v27  ;;  %16765 = vmatmul.mubr.msk.bf16.gmra.mrb[16].mxu1 %vm869_vm2, %v21016_v7  ;;  %v6490_v7 = vshrl.u32 %v6383_v58, 16  ;;  %v7515_v58 = vmul.bf16 %v21391_v1, %v23425_v4  ;;  %v21401_v27 = vld [vmem:[#allocation3 + $0x38] sm:$0xff] }
 0x624   : > { %16768 = vmatprep.mubr.msk.bf16.mxu1 %vm869_vm2, %v21024_v46 }
 0x625   : > { %v6492_v46 = vor.u32 %v6490_v7, %v6488_v62  ;;  %v7569_v13 = vshll.u32 %v7515_v58, 16  ;;  %v7516_v62 = vmul.bf16 %v21401_v27, %v23426_v28 }
 0x627   : > { %v6497_v23 = vsel %vm1483_vm0, %v6492_v46, %v23433_v57  ;;  %v7571_v7 = vrot.slane %v7569_v13, 1  ;;  %v7517_v46 = vmul.bf16 %v21403_v35, %v23427_v29  ;;  %v7573_v57 = vshrl.u32 %v7515_v58, 16 }
 0x628   : > { %v7581_v37 = vshrl.u32 %v7516_v62, 16 }
 0x62a   : > { %16693 = vmatmul.mubr.msk.bf16.gmra.mrb[48].mxu0 %vm869_vm2, %v6481_v54 }
 0x62b   : > { %16696 = vmatprep.mubr.msk.bf16.mxu0 %vm869_vm2, %v6489_v63  ;;  %16769 = vmatmul.mubr.msk.bf16.gmra.mrb[20].mxu1 %vm869_vm2, %v21030_v51  ;;  %v7511_v51 = vmul.bf16 %v7494_v31, %v23418_v22  ;;  %v18775_v31 = vld [vmem:[#allocation13 + $0xd0] sm:$0xff]  }
 0x62c   : > { %16772 = vmatprep.mubr.msk.bf16.mxu1 %vm869_vm2, %v21038_v61  ;;  %v21377_v61 = vld [vmem:[#allocation3 + $0x18] sm:$0xff] }
 0x62d   : > { %v7540_v50 = vshll.u32 %v7511_v51, 16  ;;  %v7538_v38 = vshrl.u32 %v7511_v51, 16  ;;  %v7565_v51 = vshrl.u32 %v7514_v34, 16 }
 0x632   : > { %16697 = vmatmul.mubr.msk.bf16.gmra.mrb[52].mxu0 %vm869_vm2, %v6497_v23  ;;  %v7577_v23 = vshll.u32 %v7516_v62, 16 }
 0x633   : > { %16773 = vmatmul.mubr.msk.bf16.gmra.mrb[24].mxu1 %vm869_vm2, %v21044_v12  ;;  %v7512_v12 = vmul.bf16 %v21377_v61, %v23419_v26 }
 0x634   : > { %16776 = vmatprep.mubr.msk.bf16.mxu1 %vm869_vm2, %v21056_v5  ;;  %v7542_v5 = vrot.slane %v7540_v50, 1  ;;  %v21414_v50 = vld [vmem:[#allocation3 + $0x48] sm:$0xff] }
 0x635   : > { %v7549_v15 = vshrl.u32 %v7512_v12, 16 }
 0x636   : > { %v7543_v16 = vor.u32 %v7542_v5, %v7538_v38  ;;  %v7585_v5 = vshll.u32 %v7517_v46, 16  ;;  %v21416_v38 = vld [vmem:[#allocation3 + $0x50] sm:$0xff] }
 0x638   : > { %v7587_v34 = vrot.slane %v7585_v5, 1 }
 0x63b   : > { %16777 = vmatmul.mubr.msk.bf16.gmra.mrb[28].mxu1 %vm869_vm2, %v21050_v42  ;;  %v7513_v42 = vmul.bf16 %v21379_v3, %v23421_v56 }
 0x63c   : > { %16780 = vmatprep.mubr.msk.bf16.mxu1 %vm869_vm2, %v21075_v14  ;;  %v7545_v14 = vshll.u32 %v7512_v12, 16  ;;  %v7575_v12 = vor.u32 %v7573_v57, %v7571_v7 }
 0x63d   : > { %v7553_v33 = vshll.u32 %v7513_v42, 16  ;;  %v7557_v45 = vshrl.u32 %v7513_v42, 16  ;;  %v7567_v42 = vor.u32 %v7565_v51, %v7563_v32  ;;  %v21441_v51 = vld [vmem:[#allocation3 + $0x68] sm:$0xff] }
 0x63e   : > { %v7547_v52 = vrot.slane %v7545_v14, 1  ;;  %v7579_v14 = vrot.slane %v7577_v23, 1 }
 0x63f   : > { %v7555_v41 = vrot.slane %v7553_v33, 1  ;;  %v18776_v33 = vld [vmem:[#allocation13 + $0xd8] sm:$0xff]  }
 0x640   : > { %v7551_v18 = vor.u32 %v7549_v15, %v7547_v52  ;;  %v21428_v15 = vld [vmem:[#allocation3 + $0x58] sm:$0xff] }
 0x641   : > { %v7559_v59 = vor.u32 %v7557_v45, %v7555_v41  ;;  %v21426_v45 = vld [vmem:[#allocation13 + $0xe0] sm:$0xff]  }
 0x642   : > { %v7556_v54 = vsel %vm1483_vm0, %v7551_v18, %v7555_v41  ;;  %v7589_v41 = vshrl.u32 %v7517_v46, 16  ;;  %v7583_v18 = vor.u32 %v7581_v37, %v7579_v14 }
 0x643   : > { %16781 = vmatmul.mubr.msk.bf16.gmra.mrb[0].mxu1 %vm869_vm2, %v21068_v55  ;;  %v7548_v55 = vsel %vm1483_vm0, %v7543_v16, %v7547_v52  ;;  %v7564_v63 = vsel %vm1483_vm0, %v7559_v59, %v7563_v32  ;;  %v7518_v16 = vmul.bf16 %v21414_v50, %v23428_v30  ;;  %v7580_v52 = vsel %vm1483_vm0, %v7575_v12, %v7579_v14  ;;  %v21430_v32 = vld [vmem:[#allocation3 + $0x60] sm:$0xff]  ;;  %v21443_v14 = vld [vmem:[#allocation3 + $0x70] sm:$0xff] }
 0x644   : > { %16784 = vmatprep.mubr.msk.bf16.mxu1 %vm869_vm2, %v21107_v8  ;;  %v7591_v59 = vor.u32 %v7589_v41, %v7587_v34  ;;  %v7521_v46 = vmul.bf16 %v21430_v32, %v23431_v6  ;;  %v23434_v41 = vld [vmem:[#allocation82_spill] sm:$0xff] }
 0x645   : > { %v7593_v58 = vshll.u32 %v7518_v16, 16 }
 0x646   : > { %v7617_v5 = vshll.u32 %v7521_v46, 16 }
 0x64b   : > { %16785 = vmatmul.mubr.msk.bf16.gmra.mrb[4].mxu1 %vm869_vm2, %v21282_v25 }
 0x64c   : > { %16796 = vmatprep.mubr.msk.bf16.mxu1 %vm869_vm2, %v7548_v55  ;;  %v7519_v55 = vmul.bf16 %v21416_v38, %v23429_v9 }
 0x64e   : > { %v7601_v13 = vshll.u32 %v7519_v55, 16  ;;  %v7605_v57 = vshrl.u32 %v7519_v55, 16  ;;  %v7619_v55 = vrot.slane %v7617_v5, 1  ;;  %v23436_v5 = vld [vmem:[#allocation84_spill] sm:$0xff] }
 0x653   : > { %16797 = vmatmul.mubr.msk.bf16.vlgmr.msra.gmra.mrb[8].mxu1 %vm869_vm2, %v7556_v54  ;;  %v7520_v54 = vmul.bf16 %v21428_v15, %v23430_v21 }
 0x654   : > { %16800 = vmatprep.mubr.msk.bf16.mxu1 %vm869_vm2, %v7564_v63  ;;  %16829 = vmatpush3.bf16.msra.mxu1 %v21344_v0  ;;  %v7572_v0 = vsel %vm1483_vm0, %v7567_v42, %v7571_v7  ;;  %v7588_v63 = vsel %vm1483_vm0, %v7583_v18, %v7587_v34  ;;  %v7603_v7 = vrot.slane %v7601_v13, 1  ;;  %v21453_v13 = vld [vmem:[#allocation3 + $0x78] sm:$0xff] }
 0x655   : > { %16830 = vmatprep.subr.bf16.mxu1 %v18774_v40  ;;  %v7609_v23 = vshll.u32 %v7520_v54, 16 }
 0x656   : > { %v7607_v12 = vor.u32 %v7605_v57, %v7603_v7 }
 0x658   : > { %16831 = vmatpush3.bf16.msra.mxu1 %v18774_v40  ;;  %v7595_v40 = vrot.slane %v7593_v58, 1  ;;  %v7621_v58 = vshrl.u32 %v7521_v46, 16  ;;  %v7525_v46 = vmul.bf16 %v21107_v8, %v23436_v5  ;;  %v23438_v8 = vld [vmem:[#allocation54_spill] sm:$0xff] }
 0x659   : > { %16832 = vmatprep.subr.bf16.mxu1 %v18775_v31 }
 0x65a   : > { %v7596_v62 = vsel %vm1483_vm0, %v7591_v59, %v7595_v40  ;;  %v7613_v59 = vshrl.u32 %v7520_v54, 16  ;;  %v7623_v18 = vor.u32 %v7621_v58, %v7619_v55 }
 0x65b   : > { %16801 = vmatmul.mubr.msk.bf16.gmra.mrb[12].mxu1 %vm869_vm2, %v7572_v0  ;;  %v7522_v0 = vmul.bf16 %v21441_v51, %v23432_v47 }
 0x65c   : > { %16804 = vmatprep.mubr.msk.bf16.mxu1 %vm869_vm2, %v7580_v52  ;;  %16833 = vmatpush3.bf16.msra.mxu1 %v18775_v31  ;;  %v7597_v31 = vshrl.u32 %v7518_v16, 16  ;;  %v7523_v16 = vmul.bf16 %v21443_v14, %v23434_v41 }
 0x65d   : > { %16834 = vmatprep.subr.bf16.mxu1 %v18776_v33  ;;  %v7625_v37 = vshll.u32 %v7522_v0, 16 }
 0x65e   : > { %v7599_v42 = vor.u32 %v7597_v31, %v7595_v40  ;;  %v7633_v40 = vshll.u32 %v7523_v16, 16  ;;  %v7637_v54 = vshrl.u32 %v7523_v16, 16  ;;  %v7653_v16 = vshrl.u32 %v7525_v46, 16 }
 0x660   : > { %16835 = vmatpush3.bf16.msra.mxu1 %v18776_v33  ;;  %v7611_v33 = vrot.slane %v7609_v23, 1  ;;  %v7604_v52 = vsel %vm1483_vm0, %v7599_v42, %v7603_v7  ;;  %v23435_v7 = vld [vmem:[#allocation83_spill] sm:$0xff] }
 0x661   : > { %16868 = vmatprep.subr.bf16.mxu1 %v21426_v45  ;;  %v7524_v57 = vmul.bf16 %v21453_v13, %v23435_v7 }
 0x662   : > { %v7612_v34 = vsel %vm1483_vm0, %v7607_v12, %v7611_v33  ;;  %v7635_v12 = vrot.slane %v7633_v40, 1 }
 0x663   : > { %16805 = vmatmul.mubr.msk.bf16.gmra.mrb[16].mxu1 %vm869_vm2, %v7588_v63  ;;  %v7615_v63 = vor.u32 %v7613_v59, %v7611_v33  ;;  %v7641_v42 = vshll.u32 %v7524_v57, 16  ;;  %v23437_v59 = vld [vmem:[#allocation86_spill] sm:$0xff] }
 0x664   : > { %16808 = vmatprep.mubr.msk.bf16.mxu1 %vm869_vm2, %v7596_v62  ;;  %v7627_v62 = vrot.slane %v7625_v37, 1  ;;  %v7639_v33 = vor.u32 %v7637_v54, %v7635_v12  ;;  %v7645_v54 = vshrl.u32 %v7524_v57, 16  ;;  %v23442_v57 = vld [vmem:[#allocation56_spill] sm:$0xff] }
 0x665   : > { %v7620_v23 = vsel %vm1483_vm0, %v7615_v63, %v7619_v55  ;;  %v7643_v37 = vrot.slane %v7641_v42, 1  ;;  %v7526_v55 = vmul.bf16 %v21282_v25, %v23437_v59 }
 0x666   : > { %v7628_v31 = vsel %vm1483_vm0, %v7623_v18, %v7627_v62 }
 0x667   : > { %v7644_v18 = vsel %vm1483_vm0, %v7639_v33, %v7643_v37 }
 0x66b   : > { %16809 = vmatmul.mubr.msk.bf16.gmra.mrb[20].mxu1 %vm869_vm2, %v7604_v52  ;;  %v7629_v52 = vshrl.u32 %v7522_v0, 16  ;;  %v7934_v0 = vld [vmem:[#allocation3 + $0x10] sm:$0x80] }
 0x66c   : > { %16812 = vmatprep.mubr.msk.bf16.mxu1 %vm869_vm2, %v7612_v34  ;;  %v7649_v34 = vshll.u32 %v7525_v46, 16 }
 0x66d   : > { %v7631_v58 = vor.u32 %v7629_v52, %v7627_v62  ;;  %v7510_v62 = vld [vmem:[#allocation3 + $0x90] sm:$0x1]  ;;  %v23439_v52 = vld [vmem:[#allocation53_spill] sm:$0xff] }
 0x66e   : > { %v7651_v40 = vrot.slane %v7649_v34, 1  ;;  %v7936_v59 = vmul.bf16 %v7934_v0, %v23439_v52  ;;  %v23441_v34 = vld [vmem:[#allocation55_spill] sm:$0xff] }
 0x66f   : > { %v7636_v63 = vsel %vm1483_vm0, %v7631_v58, %v7635_v12  ;;  %v7647_v12 = vor.u32 %v7645_v54, %v7643_v37  ;;  %v23440_v58 = vld [vmem:[#allocation85_spill] sm:$0xff]  ;;  %v7661_v37 = vshrl.u32 %v7526_v55, 16 }
 0x670   : > { %v7655_v42 = vor.u32 %v7653_v16, %v7651_v40  ;;  %v7939_v16 = vmul.bf16 %v21389_v49, %v23442_v57  ;;  %v8653_v57 = vmul.bf16 %v21391_v1, %v23423_v39 }
 0x671   : > { %v7652_v33 = vsel %vm1483_vm0, %v7647_v12, %v7651_v40 }
 0x672   : > { %v7983_v52 = vshrl.u32 %v7939_v16, 16 }
 0x673   : > { %16813 = vmatmul.mubr.msk.bf16.gmra.mrb[24].mxu1 %vm869_vm2, %v7620_v23  ;;  %v7937_v23 = vmul.bf16 %v21377_v61, %v23438_v8  ;;  %v7938_v8 = vmul.bf16 %v21379_v3, %v23441_v34 }
 0x674   : > { %16816 = vmatprep.mubr.msk.bf16.mxu1 %vm869_vm2, %v7628_v31  ;;  %v7657_v31 = vshll.u32 %v7526_v55, 16  ;;  %v7941_v55 = vmul.bf16 %v21401_v27, %v20460_v44 }
 0x675   : > { %v7967_v5 = vshrl.u32 %v7937_v23, 16  ;;  %v7975_v54 = vshrl.u32 %v7938_v8, 16 }
 0x676   : > { %v7659_v7 = vrot.slane %v7657_v31, 1 }
 0x677   : > { %v7969_v41 = vrot.slane %v7967_v5, 7  ;;  %v7940_v5 = vmul.bf16 %v21391_v1, %v20451_v19 }
 0x678   : > { %v7660_v46 = vsel %vm1483_vm0, %v7655_v42, %v7659_v7  ;;  %v7663_v31 = vor.u32 %v7661_v37, %v7659_v7  ;;  %v7985_v42 = vrot.slane %v7983_v52, 7  ;;  %v7978_v7 = vshll.u32 %v7938_v8, 16  ;;  %v18778_v37 = vld [vmem:[#allocation13 + $0xe8] sm:$0xff]  }
 0x679   : > { %v7943_v8 = vmul.bf16 %v21414_v50, %v20473_v17 }
 0x67b   : > { %16817 = vmatmul.mubr.msk.bf16.gmra.mrb[28].mxu1 %vm869_vm2, %v7636_v63  ;;  %v7527_v63 = vmul.bf16 %v7510_v62, %v23440_v58  ;;  %v7970_v62 = vshll.u32 %v7937_v23, 16  ;;  %v7977_v58 = vrot.slane %v7975_v54, 7  ;;  %v7986_v23 = vshll.u32 %v7939_v16, 16 }
 0x67c   : > { %16820 = vmatprep.mubr.msk.bf16.mxu1 %vm869_vm2, %v7644_v18  ;;  %v7963_v18 = vshrl.u32 %v7936_v59, 16  ;;  %v7994_v16 = vshll.u32 %v7940_v5, 16 }
 0x67d   : > { %v7665_v0 = vshll.u32 %v7527_v63, 16  ;;  %v7972_v12 = vor.u32 %v7970_v62, %v7969_v41  ;;  %v7980_v63 = vor.u32 %v7978_v7, %v7977_v58  ;;  %v8015_v7 = vshrl.u32 %v7943_v8, 16 }
 0x67e   : > { %v7965_v40 = vrot.slane %v7963_v18, 7  ;;  %v7988_v18 = vor.u32 %v7986_v23, %v7985_v42  ;;  %v18780_v23 = vld [vmem:[#allocation13 + $0xf8] sm:$0xff]  }
 0x67f   : > { %v7667_v34 = vrot.slane %v7665_v0, 1  ;;  %v7981_v0 = vsel %vm1887_vm1, %v7969_v41, %v7980_v63  ;;  %v18779_v41 = vld [vmem:[#allocation13 + $0xf0] sm:$0xff]  }
 0x680   : > { %v7973_v59 = vsel %vm1887_vm1, %v7965_v40, %v7972_v12  ;;  %v7989_v52 = vsel %vm1887_vm1, %v7977_v58, %v7988_v18  ;;  %v8002_v40 = vshll.u32 %v7941_v55, 16 }
 0x683   : > { %16821 = vmatmul.mubr.msk.bf16.gmra.mrb[0].mxu1 %vm869_vm2, %v7652_v33  ;;  %v7668_v33 = vsel %vm1483_vm0, %v7663_v31, %v7667_v34  ;;  %v7999_v34 = vshrl.u32 %v7941_v55, 16  ;;  %v7942_v31 = vmul.bf16 %v21403_v35, %v20466_v60  ;;  %v7945_v55 = vmul.bf16 %v21428_v15, %v20487_v36 }
 0x684   : > { %16824 = vmatprep.mubr.msk.bf16.mxu1 %vm869_vm2, %v7660_v46  ;;  %v7991_v46 = vshrl.u32 %v7940_v5, 16  ;;  %v8017_v5 = vrot.slane %v8015_v7, 7 }
 0x685   : > { %v8001_v54 = vrot.slane %v7999_v34, 7  ;;  %v8010_v18 = vshll.u32 %v7942_v31, 16  ;;  %v8018_v34 = vshll.u32 %v7943_v8, 16 }
 0x686   : > { %v7993_v62 = vrot.slane %v7991_v46, 7  ;;  %v7944_v46 = vmul.bf16 %v21416_v38, %v20482_v43 }
 0x688   : > { %v7996_v12 = vor.u32 %v7994_v16, %v7993_v62  ;;  %v8031_v16 = vshrl.u32 %v7945_v55, 16 }
 0x68a   : > { %v7997_v58 = vsel %vm1887_vm1, %v7985_v42, %v7996_v12  ;;  %v7946_v12 = vmul.bf16 %v21430_v32, %v20494_v20  ;;  %v8033_v8 = vrot.slane %v8031_v16, 7  ;;  %v8651_v20 = vmul.bf16 %v21379_v3, %v23419_v26 }
 0x68b   : > { %16825 = vmatmul.mubr.msk.bf16.gmra.mrb[4].mxu1 %vm869_vm2, %v7668_v33  ;;  %v8007_v33 = vshrl.u32 %v7942_v31, 16 }
 0x68c   : > { %16836 = vmatprep.mubr.msk.bf16.mxu1 %vm869_vm2, %v7973_v59  ;;  %v8004_v59 = vor.u32 %v8002_v40, %v8001_v54  ;;  %v8684_v17 = vshll.u32 %v8651_v20, 16 }
 0x68d   : > { %v8009_v63 = vrot.slane %v8007_v33, 7  ;;  %v8026_v33 = vshll.u32 %v7944_v46, 16 }
 0x68e   : > { %v8686_v26 = vrot.slane %v8684_v17, 1  ;;  %v8654_v17 = vmul.bf16 %v21401_v27, %v23425_v4 }
 0x68f   : > { %v8012_v42 = vor.u32 %v8010_v18, %v8009_v63 }
 0x690   : > { %v8708_v39 = vshll.u32 %v8654_v17, 16 }
 0x693   : > { %16837 = vmatmul.mubr.msk.bf16.vlgmr.msra.gmra.mrb[8].mxu1 %vm869_vm2, %v7981_v0  ;;  %v8023_v0 = vshrl.u32 %v7944_v46, 16  ;;  %v8042_v46 = vshll.u32 %v7946_v12, 16 }
 0x694   : > { %16840 = vmatprep.mubr.msk.bf16.mxu1 %vm869_vm2, %v7989_v52  ;;  %16869 = vmatpush3.bf16.msra.mxu1 %v21426_v45  ;;  %v8005_v45 = vsel %vm1887_vm1, %v7993_v62, %v8004_v59  ;;  %v8020_v52 = vor.u32 %v8018_v34, %v8017_v5  ;;  %v8013_v62 = vsel %vm1887_vm1, %v8001_v54, %v8012_v42  ;;  %v8034_v59 = vshll.u32 %v7945_v55, 16 }
 0x695   : > { %16870 = vmatprep.subr.bf16.mxu1 %v18778_v37  ;;  %v8025_v40 = vrot.slane %v8023_v0, 7  ;;  %v7948_v34 = vmul.bf16 %v21443_v14, %v20510_v2  ;;  %v7949_v0 = vmul.bf16 %v21453_v13, %v20518_v24  ;;  %v8650_v24 = vmul.bf16 %v21377_v61, %v23418_v22 }
 0x696   : > { %v8021_v31 = vsel %vm1887_vm1, %v8009_v63, %v8020_v52  ;;  %v8652_v22 = vmul.bf16 %v21389_v49, %v23421_v56 }
 0x697   : > { %v8028_v7 = vor.u32 %v8026_v33, %v8025_v40  ;;  %v8055_v16 = vshrl.u32 %v7948_v34, 16  ;;  %v8679_v43 = vshll.u32 %v8650_v24, 16 }
 0x698   : > { %16871 = vmatpush3.bf16.msra.mxu1 %v18778_v37  ;;  %v21506_v37 = vld [vmem:[#allocation13 + $0x100] sm:$0xff]  }
 0x699   : > { %16872 = vmatprep.subr.bf16.mxu1 %v18779_v41  ;;  %v8057_v33 = vrot.slane %v8055_v16, 7 }
 0x69b   : > { %16841 = vmatmul.mubr.msk.bf16.gmra.mrb[12].mxu1 %vm869_vm2, %v7997_v58  ;;  %v8036_v58 = vor.u32 %v8034_v59, %v8033_v8  ;;  %v21526_v59 = vld [vmem:[#allocation3 + $0x80] sm:$0xff] }
 0x69c   : > { %16844 = vmatprep.mubr.msk.bf16.mxu1 %vm869_vm2, %v8005_v45  ;;  %16873 = vmatpush3.bf16.msra.mxu1 %v18779_v41  ;;  %v7947_v41 = vmul.bf16 %v21441_v51, %v20503_v48  ;;  %v8029_v45 = vsel %vm1887_vm1, %v8017_v5, %v8028_v7  ;;  %v8063_v5 = vshrl.u32 %v7949_v0, 16 }
 0x69d   : > { %16874 = vmatprep.subr.bf16.mxu1 %v18780_v23  ;;  %v8037_v63 = vsel %vm1887_vm1, %v8025_v40, %v8036_v58  ;;  %v7950_v40 = vmul.bf16 %v21526_v59, %v20527_v53  ;;  %v8066_v58 = vshll.u32 %v7949_v0, 16 }
 0x69e   : > { %v8047_v54 = vshrl.u32 %v7947_v41, 16  ;;  %v8050_v55 = vshll.u32 %v7947_v41, 16  ;;  %v8058_v41 = vshll.u32 %v7948_v34, 16 }
 0x6a0   : > { %16875 = vmatpush3.bf16.msra.mxu1 %v18780_v23  ;;  %v8039_v23 = vshrl.u32 %v7946_v12, 16  ;;  %v8049_v42 = vrot.slane %v8047_v54, 7  ;;  %v7951_v12 = vmul.bf16 %v21282_v25, %v20532_v10  ;;  %v8060_v54 = vor.u32 %v8058_v41, %v8057_v33 }
 0x6a1   : > { %16908 = vmatprep.subr.bf16.mxu1 %v21506_v37 }
 0x6a2   : > { %v8041_v18 = vrot.slane %v8039_v23, 7  ;;  %v8065_v23 = vrot.slane %v8063_v5, 7  ;;  %v8082_v0 = vshll.u32 %v7951_v12, 16 }
 0x6a3   : > { %16845 = vmatmul.mubr.msk.bf16.gmra.mrb[16].mxu1 %vm869_vm2, %v8013_v62  ;;  %v8052_v62 = vor.u32 %v8050_v55, %v8049_v42  ;;  %v8061_v55 = vsel %vm1887_vm1, %v8049_v42, %v8060_v54 }
 0x6a4   : > { %16848 = vmatprep.mubr.msk.bf16.mxu1 %vm869_vm2, %v8021_v31  ;;  %v8044_v52 = vor.u32 %v8042_v46, %v8041_v18  ;;  %v21535_v46 = vld [vmem:[#allocation3 + $0x90] sm:$0xff] }
 0x6a5   : > { %v8053_v7 = vsel %vm1887_vm1, %v8041_v18, %v8052_v62  ;;  %v8074_v62 = vshll.u32 %v7950_v40, 16  ;;  %v7952_v34 = vmul.bf16 %v21535_v46, %v20534_v11 }
 0x6a6   : > { %v8045_v31 = vsel %vm1887_vm1, %v8033_v8, %v8044_v52  ;;  %v8071_v8 = vshrl.u32 %v7950_v40, 16 }
 0x6a8   : > { %v8073_v52 = vrot.slane %v8071_v8, 7 }
 0x6aa   : > { %v8076_v5 = vor.u32 %v8074_v62, %v8073_v52 }
 0x6ab   : > { %16849 = vmatmul.mubr.msk.bf16.gmra.mrb[20].mxu1 %vm869_vm2, %v8029_v45  ;;  %v8068_v45 = vor.u32 %v8066_v58, %v8065_v23  ;;  %v8090_v58 = vshll.u32 %v7952_v34, 16 }
 0x6ac   : > { %16852 = vmatprep.mubr.msk.bf16.mxu1 %vm869_vm2, %v8037_v63  ;;  %v8079_v63 = vshrl.u32 %v7951_v12, 16  ;;  %v8077_v41 = vsel %vm1887_vm1, %v8065_v23, %v8076_v5 }
 0x6ad   : > { %v8069_v18 = vsel %vm1887_vm1, %v8057_v33, %v8068_v45 }
 0x6ae   : > { %v8081_v16 = vrot.slane %v8079_v63, 7  ;;  %v18782_v63 = vld [vmem:[#allocation13 + $0x108] sm:$0xff]  }
 0x6b3   : > { %16853 = vmatmul.mubr.msk.bf16.gmra.mrb[24].mxu1 %vm869_vm2, %v8045_v31  ;;  %v8084_v31 = vor.u32 %v8082_v0, %v8081_v16 }
 0x6b4   : > { %16856 = vmatprep.mubr.msk.bf16.mxu1 %vm869_vm2, %v8053_v7  ;;  %v8087_v7 = vshrl.u32 %v7952_v34, 16  ;;  %v18784_v34 = vld [vmem:[#allocation13 + $0x118] sm:$0xff]  }
 0x6b5   : > { %v8085_v42 = vsel %vm1887_vm1, %v8073_v52, %v8084_v31  ;;  %v18783_v52 = vld [vmem:[#allocation13 + $0x110] sm:$0xff]  }
 0x6b6   : > { %v8089_v33 = vrot.slane %v8087_v7, 7 }
 0x6b8   : > { %v8092_v54 = vor.u32 %v8090_v58, %v8089_v33 }
 0x6ba   : > { %v8093_v40 = vsel %vm1887_vm1, %v8081_v16, %v8092_v54 }
 0x6bb   : > { %16857 = vmatmul.mubr.msk.bf16.gmra.mrb[28].mxu1 %vm869_vm2, %v8061_v55 }
 0x6bc   : > { %16860 = vmatprep.mubr.msk.bf16.mxu1 %vm869_vm2, %v8069_v18 }
 0x6c3   : > { %16861 = vmatmul.mubr.msk.bf16.gmra.mrb[0].mxu1 %vm869_vm2, %v8077_v41 }
 0x6c4   : > { %16864 = vmatprep.mubr.msk.bf16.mxu1 %vm869_vm2, %v8085_v42 }
 0x6cb   : > { %16865 = vmatmul.mubr.msk.bf16.gmra.mrb[4].mxu1 %vm869_vm2, %v8093_v40 }
 0x6cc   : > { %16876 = vmatprep.mubr.msk.bf16.mxu1 %vm869_vm2, %v21377_v61  ;;  %v8681_v61 = vrot.slane %v8679_v43, 1 }
 0x6cd   : > { %v21551_v12 = vpop.f32.mrb[56].mxu0 }
 0x6ce   : > { %v21553_v8 = vpop.f32.mrb[57].mxu0 }
 0x6cf   : > { %v21555_v23 = vpop.f32.mrb[58].mxu0 }
 0x6d0   : > { %v21557_v45 = vpop.f32.mrb[59].mxu0 }
 0x6d3   : > { %16877 = vmatmul.mubr.msk.bf16.vlgmr.msra.gmra.mrb[8].mxu1 %vm869_vm2, %v21379_v3  ;;  %v8677_v3 = vshrl.u32 %v8650_v24, 16 }
 0x6d4   : > { %16880 = vmatprep.mubr.msk.bf16.mxu1 %vm869_vm2, %v21389_v49  ;;  %16909 = vmatpush3.bf16.msra.mxu1 %v21506_v37  ;;  %v8688_v49 = vshrl.u32 %v8651_v20, 16 }
 0x6d5   : > { %v21564_v55 = vpop.f32.mrb[60].mxu0  ;;  %16910 = vmatprep.subr.bf16.mxu1 %v18782_v63 }
 0x6d6   : > { %23443 = vst [vmem:[#allocation87_spill] sm:$0xff] %v21564_v55  ;;  %v21566_v18 = vpop.f32.mrb[61].mxu0  ;;  %v8690_v24 = vor.u32 %v8688_v49, %v8686_v26 }
 0x6d7   : > { %23444 = vst [vmem:[#allocation88_spill] sm:$0xff] %v21566_v18  ;;  %v21568_v16 = vpop.f32.mrb[62].mxu0  ;;  %v8696_v18 = vshrl.u32 %v8652_v22, 16 }
 0x6d8   : > { %23445 = vst [vmem:[#allocation89_spill] sm:$0xff] %v21568_v16  ;;  %v21570_v62 = vpop.f32.mrb[63].mxu0  ;;  %16911 = vmatpush3.bf16.msra.mxu1 %v18782_v63  ;;  %v8692_v16 = vshll.u32 %v8652_v22, 16  ;;  %v8656_v22 = vmul.bf16 %v21414_v50, %v23427_v29 }
 0x6d9   : > { %23446 = vst [vmem:[#allocation74_spill] sm:$0xff] %v21570_v62  ;;  %16912 = vmatprep.subr.bf16.mxu1 %v18783_v52  ;;  %v8682_v62 = vor.u32 %v8681_v61, %v8677_v3  ;;  %v8655_v61 = vmul.bf16 %v21403_v35, %v23426_v28 }
 0x6da   : > { %v8694_v56 = vrot.slane %v8692_v16, 1  ;;  %v8704_v16 = vshrl.u32 %v8653_v57, 16 }
 0x6db   : > { %16881 = vmatmul.mubr.msk.bf16.gmra.mrb[12].mxu1 %vm869_vm2, %v21391_v1  ;;  %v8687_v43 = vsel %vm1483_vm0, %v8682_v62, %v8686_v26  ;;  %v8716_v62 = vshll.u32 %v8655_v61, 16 }
 0x6dc   : > { %16884 = vmatprep.mubr.msk.bf16.mxu1 %vm869_vm2, %v21401_v27  ;;  %16913 = vmatpush3.bf16.msra.mxu1 %v18783_v52  ;;  %v8698_v3 = vor.u32 %v8696_v18, %v8694_v56  ;;  %v8695_v55 = vsel %vm1483_vm0, %v8690_v24, %v8694_v56  ;;  %v8712_v27 = vshrl.u32 %v8654_v17, 16  ;;  %v8724_v56 = vshll.u32 %v8656_v22, 16 }
 0x6dd   : > { %v21576_v37 = vpop.f32.mrb[32].mxu0  ;;  %16914 = vmatprep.subr.bf16.mxu1 %v18784_v34 }
 0x6de   : > { %v21578_v0 = vpop.f32.mrb[33].mxu0 }
 0x6df   : > { %v21580_v5 = vpop.f32.mrb[34].mxu0 }
 0x6e0   : > { %v21582_v31 = vpop.f32.mrb[35].mxu0  ;;  %16915 = vmatpush3.bf16.msra.mxu1 %v18784_v34 }
 0x6e3   : > { %16885 = vmatmul.mubr.msk.bf16.gmra.mrb[16].mxu1 %vm869_vm2, %v21403_v35  ;;  %v8657_v35 = vmul.bf16 %v21416_v38, %v23428_v30 }
 0x6e4   : > { %16888 = vmatprep.mubr.msk.bf16.mxu1 %vm869_vm2, %v21414_v50  ;;  %v8658_v50 = vmul.bf16 %v21428_v15, %v23429_v9 }
 0x6e5   : > { %v21588_v7 = vpop.f32.mrb[36].mxu0  ;;  %v8732_v24 = vshll.u32 %v8657_v35, 16 }
 0x6e6   : > { %v21590_v41 = vpop.f32.mrb[37].mxu0 }
 0x6e7   : > { %v21592_v42 = vpop.f32.mrb[38].mxu0 }
 0x6e8   : > { %v21594_v33 = vpop.f32.mrb[39].mxu0 }
 0x6eb   : > { %16889 = vmatmul.mubr.msk.bf16.gmra.mrb[20].mxu1 %vm869_vm2, %v21416_v38  ;;  %v8659_v38 = vmul.bf16 %v21430_v32, %v23430_v21 }
 0x6ec   : > { %16892 = vmatprep.mubr.msk.bf16.mxu1 %vm869_vm2, %v21428_v15  ;;  %v8660_v15 = vmul.bf16 %v21441_v51, %v23431_v6 }
 0x6ed   : > { %v21600_v58 = vpop.f32.mrb[40].mxu0 }
 0x6ee   : > { %v21602_v54 = vpop.f32.mrb[41].mxu0 }
 0x6ef   : > { %v21604_v40 = vpop.f32.mrb[42].mxu0 }
 0x6f0   : > { %v21606_v63 = vpop.f32.mrb[43].mxu0 }
 0x6f3   : > { %16893 = vmatmul.mubr.msk.bf16.gmra.mrb[24].mxu1 %vm869_vm2, %v21430_v32  ;;  %v8661_v32 = vmul.bf16 %v21443_v14, %v23432_v47 }
 0x6f4   : > { %16896 = vmatprep.mubr.msk.bf16.mxu1 %vm869_vm2, %v21441_v51 }
 0x6f5   : > { %v21612_v52 = vpop.f32.mrb[44].mxu0 }
 0x6f6   : > { %v21614_v34 = vpop.f32.mrb[45].mxu0 }
 0x6f7   : > { %v21616_v11 = vpop.f32.mrb[46].mxu0 }
 0x6f8   : > { %v21618_v10 = vpop.f32.mrb[47].mxu0 }
 0x6fb   : > { %16897 = vmatmul.mubr.msk.bf16.gmra.mrb[28].mxu1 %vm869_vm2, %v21443_v14 }
 0x6fc   : > { %16900 = vmatprep.mubr.msk.bf16.mxu1 %vm869_vm2, %v21453_v13 }
 0x6fd   : > { %v21624_v53 = vpop.f32.mrb[48].mxu0 }
 0x6fe   : > { %v21628_v2 = vpop.f32.mrb[49].mxu0 }
 0x6ff   : > { %v21630_v48 = vpop.f32.mrb[50].mxu0 }
 0x700   : > { %v21634_v36 = vpop.f32.mrb[51].mxu0 }
 0x703   : > { %16901 = vmatmul.mubr.msk.bf16.gmra.mrb[0].mxu1 %vm869_vm2, %v21526_v59 }
 0x704   : > { %16904 = vmatprep.mubr.msk.bf16.mxu1 %vm869_vm2, %v21282_v25  ;;  %v8700_v25 = vshll.u32 %v8653_v57, 16  ;;  %v8726_v57 = vrot.slane %v8724_v56, 1 }
 0x705   : > { %v21640_v60 = vpop.f32.mrb[52].mxu0 }
 0x706   : > { %v21644_v44 = vpop.f32.mrb[53].mxu0  ;;  %v8702_v1 = vrot.slane %v8700_v25, 1  ;;  %v8718_v25 = vrot.slane %v8716_v62, 1  ;;  %v8740_v62 = vshll.u32 %v8658_v50, 16 }
 0x707   : > { %v21646_v19 = vpop.f32.mrb[54].mxu0 }
 0x708   : > { %v21650_v59 = vpop.f32.mrb[55].mxu0  ;;  %v8703_v20 = vsel %vm1483_vm0, %v8698_v3, %v8702_v1  ;;  %v8706_v26 = vor.u32 %v8704_v16, %v8702_v1  ;;  %v8728_v1 = vshrl.u32 %v8656_v22, 16  ;;  %v8734_v3 = vrot.slane %v8732_v24, 1 }
 0x70b   : > { %16905 = vmatmul.mubr.msk.bf16.gmra.mrb[4].mxu1 %vm869_vm2, %v21535_v46 }
 0x70c   : > { %16916 = vmatprep.mubr.msk.bf16.mxu1 %vm869_vm2, %v8687_v43  ;;  %v8710_v43 = vrot.slane %v8708_v39, 1  ;;  %v8720_v39 = vshrl.u32 %v8655_v61, 16  ;;  %v8736_v61 = vshrl.u32 %v8657_v35, 16  ;;  %v8752_v35 = vshrl.u32 %v8659_v38, 16 }
 0x70e   : > { %v8714_v18 = vor.u32 %v8712_v27, %v8710_v43  ;;  %v8722_v17 = vor.u32 %v8720_v39, %v8718_v25  ;;  %v8742_v27 = vrot.slane %v8740_v62, 1  ;;  %v8738_v22 = vor.u32 %v8736_v61, %v8734_v3 }
 0x70f   : > { %v8764_v39 = vshll.u32 %v8661_v32, 16 }
 0x710   : > { %v8719_v49 = vsel %vm1483_vm0, %v8714_v18, %v8718_v25  ;;  %v8727_v16 = vsel %vm1483_vm0, %v8722_v17, %v8726_v57  ;;  %v8744_v25 = vshrl.u32 %v8658_v50, 16  ;;  %v23447_v17 = vld [vmem:[#allocation82_spill] sm:$0xff] }
 0x711   : > { %v8662_v50 = vmul.bf16 %v21453_v13, %v23447_v17  ;;  %v8766_v14 = vrot.slane %v8764_v39, 1  ;;  %v8768_v13 = vshrl.u32 %v8661_v32, 16  ;;  %v23450_v39 = vld [vmem:[#allocation86_spill] sm:$0xff] }
 0x712   : > { %v8746_v56 = vor.u32 %v8744_v25, %v8742_v27 }
 0x713   : > { %16917 = vmatmul.mubr.msk.bf16.vlgmr.msra.gmra.mrb[8].mxu1 %vm869_vm2, %v8695_v55  ;;  %v8711_v55 = vsel %vm1483_vm0, %v8706_v26, %v8710_v43  ;;  %v8748_v26 = vshll.u32 %v8659_v38, 16 }
 0x714   : > { %16920 = vmatprep.mubr.msk.bf16.mxu1 %vm869_vm2, %v8703_v20  ;;  %v8730_v20 = vor.u32 %v8728_v1, %v8726_v57  ;;  %v8646_v57 = vld [vmem:[#allocation3 + $0x80] sm:$0xff] }
 0x715   : > { %v8750_v18 = vrot.slane %v8748_v26, 1  ;;  %v8772_v26 = vshll.u32 %v8662_v50, 16 }
 0x716   : > { %v8735_v43 = vsel %vm1483_vm0, %v8730_v20, %v8734_v3  ;;  %v8760_v3 = vshrl.u32 %v8660_v15, 16  ;;  %v23448_v20 = vld [vmem:[#allocation83_spill] sm:$0xff] }
 0x717   : > { %v8751_v24 = vsel %vm1483_vm0, %v8746_v56, %v8750_v18  ;;  %v8754_v1 = vor.u32 %v8752_v35, %v8750_v18  ;;  %v8663_v62 = vmul.bf16 %v8646_v57, %v23448_v20  ;;  %v8774_v18 = vrot.slane %v8772_v26, 1  ;;  %v23451_v26 = vld [vmem:[#allocation85_spill] sm:$0xff] }
 0x718   : > { %v8776_v56 = vshrl.u32 %v8662_v50, 16  ;;  %v8665_v35 = vmul.bf16 %v21535_v46, %v23450_v39 }
 0x719   : > { %v8780_v38 = vshll.u32 %v8663_v62, 16 }
 0x71b   : > { %16921 = vmatmul.mubr.msk.bf16.gmra.mrb[12].mxu1 %vm869_vm2, %v8711_v55  ;;  %v8756_v55 = vshll.u32 %v8660_v15, 16  ;;  %v8770_v15 = vor.u32 %v8768_v13, %v8766_v14  ;;  %v8800_v13 = vshrl.u32 %v8665_v35, 16 }
 0x71c   : > { %16924 = vmatprep.mubr.msk.bf16.mxu1 %vm869_vm2, %v8719_v49  ;;  %v8743_v49 = vsel %vm1483_vm0, %v8738_v22, %v8742_v27  ;;  %v23449_v22 = vld [vmem:[#allocation84_spill] sm:$0xff] }
 0x71d   : > { %v8758_v51 = vrot.slane %v8756_v55, 1  ;;  %v8782_v55 = vrot.slane %v8780_v38, 1  ;;  %v8775_v57 = vsel %vm1483_vm0, %v8770_v15, %v8774_v18 }
 0x71f   : > { %v8759_v61 = vsel %vm1483_vm0, %v8754_v1, %v8758_v51 }
 0x723   : > { %16925 = vmatmul.mubr.msk.bf16.gmra.mrb[16].mxu1 %vm869_vm2, %v8727_v16  ;;  %v8647_v16 = vld [vmem:[#allocation3 + $0x88] sm:$0xff] }
 0x724   : > { %16928 = vmatprep.mubr.msk.bf16.mxu1 %vm869_vm2, %v8735_v43  ;;  %v8762_v43 = vor.u32 %v8760_v3, %v8758_v51  ;;  %v8664_v25 = vmul.bf16 %v8647_v16, %v23449_v22  ;;  %v8784_v3 = vshrl.u32 %v8663_v62, 16  ;;  %v8796_v16 = vshll.u32 %v8665_v35, 16  ;;  %v18788_v35 = vld [vmem:[#allocation16 + $0x38] sm:$0xff]  }
 0x726   : > { %v8767_v27 = vsel %vm1483_vm0, %v8762_v43, %v8766_v14  ;;  %v8792_v32 = vshrl.u32 %v8664_v25, 16  ;;  %v8649_v14 = vld [vmem:[#allocation3 + $0x98] sm:$0x1]  ;;  %v8786_v50 = vor.u32 %v8784_v3, %v8782_v55 }
 0x72b   : > { %16929 = vmatmul.mubr.msk.bf16.gmra.mrb[20].mxu1 %vm869_vm2, %v8743_v49  ;;  %v8788_v49 = vshll.u32 %v8664_v25, 16 }
 0x72c   : > { %16932 = vmatprep.mubr.msk.bf16.mxu1 %vm869_vm2, %v8751_v24  ;;  %v8778_v24 = vor.u32 %v8776_v56, %v8774_v18  ;;  %v21709_v56 = vld [vmem:[#allocation3 + $0x8] sm:$0xff] }
 0x72d   : > { %v8790_v1 = vrot.slane %v8788_v49, 1  ;;  %v18786_v49 = vld [vmem:[#allocation16 + $0x28] sm:$0xff]  }
 0x72e   : > { %v8783_v51 = vsel %vm1483_vm0, %v8778_v24, %v8782_v55  ;;  %v18785_v55 = vld [vmem:[#allocation16 + $0x20] sm:$0xff]   ;;  %v18787_v24 = vld [vmem:[#allocation16 + $0x30] sm:$0xff]  }
 0x72f   : > { %v8794_v43 = vor.u32 %v8792_v32, %v8790_v1  ;;  %v8791_v46 = vsel %vm1483_vm0, %v8786_v50, %v8790_v1  ;;  %16948 = vmatprep.subr.bf16.mxu1 %v18785_v55  ;;  %v21714_v1 = vld [vmem:[#allocation15] ss:$0 sm:$0xff] }
 0x730   : > { %16949 = vmatpush3.bf16.msra.mxu1 %v18785_v55 }
 0x731   : > { %16950 = vmatprep.subr.bf16.mxu1 %v18786_v49 }
 0x733   : > { %16933 = vmatmul.mubr.msk.bf16.gmra.mrb[24].mxu1 %vm869_vm2, %v8759_v61  ;;  %v8666_v61 = vmul.bf16 %v8649_v14, %v23451_v26 }
 0x734   : > { %16936 = vmatprep.mubr.msk.bf16.mxu1 %vm869_vm2, %v8767_v27  ;;  %v8798_v27 = vrot.slane %v8796_v16, 1  ;;  %16951 = vmatpush3.bf16.msra.mxu1 %v18786_v49 }
 0x735   : > { %v8804_v18 = vshll.u32 %v8666_v61, 16  ;;  %16952 = vmatprep.subr.bf16.mxu1 %v18787_v24 }
 0x736   : > { %v8799_v38 = vsel %vm1483_vm0, %v8794_v43, %v8798_v27  ;;  %v8802_v15 = vor.u32 %v8800_v13, %v8798_v27 }
 0x737   : > { %v8806_v62 = vrot.slane %v8804_v18, 1 }
 0x738   : > { %16953 = vmatpush3.bf16.msra.mxu1 %v18787_v24 }
 0x739   : > { %v8807_v25 = vsel %vm1483_vm0, %v8802_v15, %v8806_v62  ;;  %16954 = vmatprep.subr.bf16.mxu1 %v18788_v35  ;;  %v21740_v62 = vld [vmem:[#allocation16] sm:$0xff]  }
 0x73b   : > { %16937 = vmatmul.mubr.msk.bf16.gmra.mrb[28].mxu1 %vm869_vm2, %v8775_v57 }
 0x73c   : > { %16940 = vmatprep.mubr.msk.bf16.mxu1 %vm869_vm2, %v8783_v51  ;;  %16955 = vmatpush3.bf16.msra.mxu1 %v18788_v35 }
 0x73d   : > { %16988 = vmatprep.subr.bf16.mxu1 %v21740_v62 }
 0x743   : > { %16941 = vmatmul.mubr.msk.bf16.gmra.mrb[0].mxu1 %vm869_vm2, %v8791_v46 }
 0x744   : > { %16944 = vmatprep.mubr.msk.bf16.mxu1 %vm869_vm2, %v8799_v38 }
 0x74b   : > { %16945 = vmatmul.mubr.msk.bf16.gmra.mrb[4].mxu1 %vm869_vm2, %v8807_v25 }
 0x74c   : > { %16956 = vmatprep.mubr.msk.bf16.mxu1 %vm869_vm2, %v21709_v56 }
 0x7e6   : > { %v16918_v57 = vpop.f32.mrb[8].mxu1 }
 0x7e7   : > { %v17636_v51 = vadd.f32 %v16918_v57, %v21576_v37  ;;  %v8914_v3 = vpop.f32.mrb[9].mxu1 }
 0x7e8   : > { %v17637_v32 = vadd.f32 %v8914_v3, %v21578_v0  ;;  %v16919_v16 = vpop.f32.mrb[10].mxu1 }
 0x7e9   : > { %v17638_v14 = vadd.f32 %v16919_v16, %v21580_v5  ;;  %v8917_v50 = vpop.f32.mrb[11].mxu1  ;;  %v21728_v37 = vadd.f32 %v17636_v51, %v21714_v1 }
 0x7ea   : > { %v21719_v43 = vadd.f32 %v17637_v32, %v21714_v1  ;;  %v17639_v61 = vadd.f32 %v8917_v50, %v21582_v31 }
 0x7eb   : > { %23454 = vst [vmem:[#allocation77_spill] sm:$0xff] %v21728_v37  ;;  %v21734_v38 = vadd.f32 %v17638_v14, %v21714_v1 }
 0x7ec   : > { %23452 = vst [vmem:[#allocation75_spill] sm:$0xff] %v21719_v43  ;;  %v21723_v27 = vadd.f32 %v17639_v61, %v21714_v1  ;;  %9407 = vrot.lane.b32.xlu0 %v21719_v43, %s19661_s22 }
 0x7ed   : > { %23455 = vst [vmem:[#allocation78_spill] sm:$0xff] %v21734_v38 }
 0x7ee   : > { %23453 = vst [vmem:[#allocation76_spill] sm:$0xff] %v21723_v27  ;;  %v16922_v0 = vpop.f32.mrb[12].mxu1  ;;  %9409 = vrot.lane.b32.xlu1 %v21723_v27, %s19661_s22 }
 0x7ef   : > { %v17640_v5 = vadd.f32 %v16922_v0, %v21588_v7  ;;  %v8930_v46 = vpop.f32.mrb[13].mxu1 }
 0x7f0   : > { %v17641_v31 = vadd.f32 %v8930_v46, %v21590_v41  ;;  %v16923_v13 = vpop.f32.mrb[14].mxu1  ;;  %9411 = vrot.lane.b32.xlu0 %v21728_v37, %s19661_s22 }
 0x7f1   : > { %v17642_v18 = vadd.f32 %v16923_v13, %v21592_v42  ;;  %v8933_v15 = vpop.f32.mrb[15].mxu1  ;;  %v21755_v42 = vadd.f32 %v17640_v5, %v21714_v1 }
 0x7f2   : > { %v21743_v25 = vadd.f32 %v17641_v31, %v21714_v1  ;;  %v17643_v7 = vadd.f32 %v8933_v15, %v21594_v33  ;;  %9413 = vrot.lane.b32.xlu1 %v21734_v38, %s19661_s22 }
 0x7f3   : > { %23458 = vst [vmem:[#allocation90_spill] sm:$0xff] %v21755_v42  ;;  %v21761_v24 = vadd.f32 %v17642_v18, %v21714_v1 }
 0x7f4   : > { %23456 = vst [vmem:[#allocation79_spill] sm:$0xff] %v21743_v25  ;;  %v21750_v41 = vadd.f32 %v17643_v7, %v21714_v1  ;;  %9415 = vrot.lane.b32.xlu0 %v21743_v25, %s19661_s22 }
 0x7f5   : > { %23459 = vst [vmem:[#allocation82_spill] sm:$0xff] %v21761_v24 }
 0x7f6   : > { %23457 = vst [vmem:[#allocation80_spill] sm:$0xff] %v21750_v41  ;;  %v16926_v55 = vpop.f32.mrb[16].mxu1  ;;  %9417 = vrot.lane.b32.xlu1 %v21750_v41, %s19661_s22 }
 0x7f7   : > { %v17644_v33 = vadd.f32 %v16926_v55, %v21600_v58  ;;  %v8946_v49 = vpop.f32.mrb[17].mxu1 }
 0x7f8   : > { %v17645_v35 = vadd.f32 %v8946_v49, %v21602_v54  ;;  %v16927_v57 = vpop.f32.mrb[18].mxu1  ;;  %9419 = vrot.lane.b32.xlu0 %v21755_v42, %s19661_s22 }
 0x7f9   : > { %v17646_v51 = vadd.f32 %v16927_v57, %v21604_v40  ;;  %v8949_v3 = vpop.f32.mrb[19].mxu1  ;;  %v21779_v54 = vadd.f32 %v17644_v33, %v21714_v1 }
 0x7fa   : > { %v21768_v32 = vadd.f32 %v17645_v35, %v21714_v1  ;;  %v17647_v16 = vadd.f32 %v8949_v3, %v21606_v63  ;;  %9421 = vrot.lane.b32.xlu1 %v21761_v24, %s19661_s22 }
 0x7fb   : > { %23462 = vst [vmem:[#allocation92_spill] sm:$0xff] %v21779_v54  ;;  %v21785_v63 = vadd.f32 %v17646_v51, %v21714_v1 }
 0x7fc   : > { %23460 = vst [vmem:[#allocation85_spill] sm:$0xff] %v21768_v32  ;;  %v21774_v58 = vadd.f32 %v17647_v16, %v21714_v1  ;;  %9423 = vrot.lane.b32.xlu0 %v21768_v32, %s19661_s22 }
 0x7fd   : > { %23463 = vst [vmem:[#allocation93_spill] sm:$0xff] %v21785_v63 }
 0x7fe   : > { %23461 = vst [vmem:[#allocation91_spill] sm:$0xff] %v21774_v58  ;;  %v16930_v14 = vpop.f32.mrb[20].mxu1  ;;  %9425 = vrot.lane.b32.xlu1 %v21774_v58, %s19661_s22 }
 0x7ff   : > { %v17648_v40 = vadd.f32 %v16930_v14, %v21612_v52  ;;  %v8962_v50 = vpop.f32.mrb[21].mxu1 }
 0x800   : > { %v17649_v61 = vadd.f32 %v8962_v50, %v21614_v34  ;;  %v16931_v0 = vpop.f32.mrb[22].mxu1  ;;  %9427 = vrot.lane.b32.xlu0 %v21779_v54, %s19661_s22 }
 0x801   : > { %v17650_v5 = vadd.f32 %v16931_v0, %v21616_v11  ;;  %v8965_v46 = vpop.f32.mrb[23].mxu1  ;;  %v21803_v34 = vadd.f32 %v17648_v40, %v21714_v1 }
 0x802   : > { %v21792_v31 = vadd.f32 %v17649_v61, %v21714_v1  ;;  %v17651_v13 = vadd.f32 %v8965_v46, %v21618_v10  ;;  %9429 = vrot.lane.b32.xlu1 %v21785_v63, %s19661_s22 }
 0x803   : > { %23466 = vst [vmem:[#allocation96_spill] sm:$0xff] %v21803_v34  ;;  %v21809_v10 = vadd.f32 %v17650_v5, %v21714_v1 }
 0x804   : > { %23464 = vst [vmem:[#allocation94_spill] sm:$0xff] %v21792_v31  ;;  %v21798_v52 = vadd.f32 %v17651_v13, %v21714_v1  ;;  %9431 = vrot.lane.b32.xlu0 %v21792_v31, %s19661_s22 }
 0x805   : > { %23467 = vst [vmem:[#allocation97_spill] sm:$0xff] %v21809_v10 }
 0x806   : > { %23465 = vst [vmem:[#allocation95_spill] sm:$0xff] %v21798_v52  ;;  %v16934_v18 = vpop.f32.mrb[24].mxu1  ;;  %9433 = vrot.lane.b32.xlu1 %v21798_v52, %s19661_s22 }
 0x807   : > { %v17652_v11 = vadd.f32 %v16934_v18, %v21624_v53  ;;  %v8978_v15 = vpop.f32.mrb[25].mxu1 }
 0x808   : > { %v17653_v7 = vadd.f32 %v8978_v15, %v21628_v2  ;;  %v16935_v55 = vpop.f32.mrb[26].mxu1  ;;  %9435 = vrot.lane.b32.xlu0 %v21803_v34, %s19661_s22 }
 0x809   : > { %v17654_v33 = vadd.f32 %v16935_v55, %v21630_v48  ;;  %v8981_v49 = vpop.f32.mrb[27].mxu1  ;;  %v21827_v2 = vadd.f32 %v17652_v11, %v21714_v1 }
 0x80a   : > { %v21816_v35 = vadd.f32 %v17653_v7, %v21714_v1  ;;  %v17655_v57 = vadd.f32 %v8981_v49, %v21634_v36  ;;  %9437 = vrot.lane.b32.xlu1 %v21809_v10, %s19661_s22 }
 0x80b   : > { %23470 = vst [vmem:[#allocation100_spill] sm:$0xff] %v21827_v2  ;;  %v21833_v36 = vadd.f32 %v17654_v33, %v21714_v1 }
 0x80c   : > { %23468 = vst [vmem:[#allocation98_spill] sm:$0xff] %v21816_v35  ;;  %v21822_v53 = vadd.f32 %v17655_v57, %v21714_v1  ;;  %9439 = vrot.lane.b32.xlu0 %v21816_v35, %s19661_s22 }
 0x80d   : > { %23471 = vst [vmem:[#allocation101_spill] sm:$0xff] %v21833_v36 }
 0x80e   : > { %23469 = vst [vmem:[#allocation99_spill] sm:$0xff] %v21822_v53  ;;  %v16938_v51 = vpop.f32.mrb[28].mxu1  ;;  %9441 = vrot.lane.b32.xlu1 %v21822_v53, %s19661_s22 }
 0x80f   : > { %v17656_v48 = vadd.f32 %v16938_v51, %v21640_v60  ;;  %v8994_v3 = vpop.f32.mrb[29].mxu1  ;;  %v23481_v51 = vld [vmem:[#allocation88_spill] sm:$0xff] }
 0x810   : > { %v17657_v16 = vadd.f32 %v8994_v3, %v21644_v44  ;;  %v16939_v14 = vpop.f32.mrb[30].mxu1  ;;  %9443 = vrot.lane.b32.xlu0 %v21827_v2, %s19661_s22 }
 0x811   : > { %v17658_v40 = vadd.f32 %v16939_v14, %v21646_v19  ;;  %v8997_v50 = vpop.f32.mrb[31].mxu1  ;;  %v21851_v44 = vadd.f32 %v17656_v48, %v21714_v1 }
 0x812   : > { %v21840_v61 = vadd.f32 %v17657_v16, %v21714_v1  ;;  %v17659_v0 = vadd.f32 %v8997_v50, %v21650_v59  ;;  %9445 = vrot.lane.b32.xlu1 %v21833_v36, %s19661_s22  ;;  %v23482_v16 = vld [vmem:[#allocation89_spill] sm:$0xff] }
 0x813   : > { %23474 = vst [vmem:[#allocation104_spill] sm:$0xff] %v21851_v44  ;;  %v21857_v59 = vadd.f32 %v17658_v40, %v21714_v1 }
 0x814   : > { %23472 = vst [vmem:[#allocation102_spill] sm:$0xff] %v21840_v61  ;;  %v21846_v60 = vadd.f32 %v17659_v0, %v21714_v1  ;;  %9447 = vrot.lane.b32.xlu0 %v21840_v61, %s19661_s22  ;;  %v23484_v0 = vld [vmem:[#allocation74_spill] sm:$0xff] }
 0x815   : > { %23475 = vst [vmem:[#allocation105_spill] sm:$0xff] %v21857_v59 }
 0x816   : > { %23473 = vst [vmem:[#allocation103_spill] sm:$0xff] %v21846_v60  ;;  %v16942_v5 = vpop.f32.mrb[0].mxu1  ;;  %9449 = vrot.lane.b32.xlu1 %v21846_v60, %s19661_s22 }
 0x817   : > { %v17660_v19 = vadd.f32 %v16942_v5, %v21551_v12  ;;  %v9010_v46 = vpop.f32.mrb[1].mxu1 }
 0x818   : > { %v17661_v13 = vadd.f32 %v9010_v46, %v21553_v8  ;;  %v16943_v18 = vpop.f32.mrb[2].mxu1  ;;  %9451 = vrot.lane.b32.xlu0 %v21851_v44, %s19661_s22 }
 0x819   : > { %v17662_v11 = vadd.f32 %v16943_v18, %v21555_v23  ;;  %v9013_v15 = vpop.f32.mrb[3].mxu1  ;;  %v21875_v8 = vadd.f32 %v17660_v19, %v21714_v1  ;;  %v23479_v23 = vld [vmem:[#allocation87_spill] sm:$0xff]  ;;  %v15131_v18 = vmul.f32 -1.442695, %v21719_v43  ;;  %v23500_v43 = vld [vmem:[#allocation65_spill] sm:$0xff] }
 0x81a   : > { %v21864_v7 = vadd.f32 %v17661_v13, %v21714_v1  ;;  %v17663_v55 = vadd.f32 %v9013_v15, %v21557_v45  ;;  %9453 = vrot.lane.b32.xlu1 %v21857_v59, %s19661_s22  ;;  %v15133_v15 = vmul.f32 -1.442695, %v21728_v37 }
 0x81b   : > { %23478 = vst [vmem:[#allocation108_spill] sm:$0xff] %v21875_v8  ;;  %v21881_v45 = vadd.f32 %v17662_v11, %v21714_v1  ;;  %v15132_v11 = vmul.f32 -1.442695, %v21723_v27  ;;  %18821 = vpow2.f32 %v15131_v18  ;;  %v23501_v27 = vld [vmem:[#allocation66_spill] sm:$0xff] }
 0x81c   : > { %23476 = vst [vmem:[#allocation106_spill] sm:$0xff] %v21864_v7  ;;  %v21870_v12 = vadd.f32 %v17663_v55, %v21714_v1  ;;  %9455 = vrot.lane.b32.xlu0 %v21864_v7, %s19661_s22  ;;  %v15134_v55 = vmul.f32 -1.442695, %v21734_v38 }
 0x81d   : > { %23480 = vst [vmem:[#allocation87_spill] sm:$0xff] %v21881_v45  ;;  %18823 = vpow2.f32 %v15132_v11  ;;  %v15141_v11 = vmul.f32 -1.442695, %v21779_v54 }
 0x81e   : > { %23477 = vst [vmem:[#allocation107_spill] sm:$0xff] %v21870_v12  ;;  %v16946_v33 = vpop.f32.mrb[4].mxu1  ;;  %9457 = vrot.lane.b32.xlu1 %v21870_v12, %s19661_s22  ;;  %18825 = vpow2.f32 %v15133_v15  ;;  %v15142_v15 = vmul.f32 -1.442695, %v21785_v63 }
 0x81f   : > { %v17664_v49 = vadd.f32 %v16946_v33, %v23479_v23  ;;  %v9026_v57 = vpop.f32.mrb[5].mxu1  ;;  %18827 = vpow2.f32 %v15134_v55  ;;  %v15136_v33 = vmul.f32 -1.442695, %v21750_v41 }
 0x820   : > { %v17665_v48 = vadd.f32 %v9026_v57, %v23481_v51  ;;  %v16947_v3 = vpop.f32.mrb[6].mxu1  ;;  %9459 = vrot.lane.b32.xlu0 %v21875_v8, %s19661_s22  ;;  %v15138_v57 = vmul.f32 -1.442695, %v21761_v24 }
 0x821   : > { %v17666_v14 = vadd.f32 %v16947_v3, %v23482_v16  ;;  %v9029_v40 = vpop.f32.mrb[7].mxu1  ;;  %v21899_v46 = vadd.f32 %v17664_v49, %v21714_v1  ;;  %v15137_v49 = vmul.f32 -1.442695, %v21755_v42  ;;  %v15139_v16 = vmul.f32 -1.442695, %v21768_v32  ;;  %v23495_v42 = vld [vmem:[#allocation60_spill] sm:$0xff] }
 0x822   : > { %v21888_v50 = vadd.f32 %v17665_v48, %v21714_v1  ;;  %v17667_v5 = vadd.f32 %v9029_v40, %v23484_v0  ;;  %9461 = vrot.lane.b32.xlu1 %v21881_v45, %s19661_s22 }
 0x823   : > { %23486 = vst [vmem:[#allocation74_spill] sm:$0xff] %v21899_v46  ;;  %v21904_v13 = vadd.f32 %v17666_v14, %v21714_v1  ;;  %v15140_v14 = vmul.f32 -1.442695, %v21774_v58  ;;  %v23494_v58 = vld [vmem:[#allocation59_spill] sm:$0xff] }
 0x824   : > { %23483 = vst [vmem:[#allocation88_spill] sm:$0xff] %v21888_v50  ;;  %v21894_v19 = vadd.f32 %v17667_v5, %v21714_v1  ;;  %9463 = vrot.lane.b32.xlu0 %v21888_v50, %s19661_s22  ;;  %v15135_v1 = vmul.f32 -1.442695, %v21743_v25 }
 0x825   : > { %23487 = vst [vmem:[#allocation109_spill] sm:$0xff] %v21904_v13  ;;  %v18822_v23 = vpop.eup %18821 }
 0x826   : > { %23485 = vst [vmem:[#allocation89_spill] sm:$0xff] %v21894_v19  ;;  %9465 = vrot.lane.b32.xlu1 %v21894_v19, %s19661_s22  ;;  %18829 = vpow2.f32 %v15135_v1  ;;  %v9279_v48 = vadd.f32 1.0, %v18822_v23  ;;  %v15143_v23 = vmul.f32 -1.442695, %v21792_v31 }
 0x827   : > { %18831 = vpow2.f32 %v15136_v33  ;;  %v18824_v51 = vpop.eup %18823 }
 0x828   : > { %9467 = vrot.lane.b32.xlu0 %v21899_v46, %s19661_s22  ;;  %v18826_v3 = vpop.eup %18825  ;;  %18833 = vpow2.f32 %v15137_v49  ;;  %v9280_v40 = vadd.f32 1.0, %v18824_v51  ;;  %v15144_v49 = vmul.f32 -1.442695, %v21798_v52 }
 0x829   : > { %18835 = vpow2.f32 %v15138_v57  ;;  %v18828_v0 = vpop.eup %18827  ;;  %v9281_v5 = vadd.f32 1.0, %v18826_v3  ;;  %v15145_v3 = vmul.f32 -1.442695, %v21803_v34 }
 0x82a   : > { %9469 = vrot.lane.b32.xlu1 %v21904_v13, %s19661_s22  ;;  %18837 = vrcp.f32 %v9279_v48  ;;  %v9282_v55 = vadd.f32 1.0, %v18828_v0 }
 0x82b   : > { %18839 = vpow2.f32 %v15139_v16  ;;  %v15146_v16 = vmul.f32 -1.442695, %v21809_v10 }
 0x82c   : > { %18841 = vpow2.f32 %v15140_v14 }
 0x82d   : > { %18843 = vrcp.f32 %v9280_v40 }
 0x82e   : > { %18845 = vrcp.f32 %v9281_v5 }
 0x82f   : > { %18847 = vpow2.f32 %v15141_v11 }
 0x830   : > { %v18830_v18 = vpop.eup %18829  ;;  %18849 = vpow2.f32 %v15142_v15  ;;  %v15147_v15 = vmul.f32 -1.442695, %v21816_v35 }
 0x831   : > { %v18832_v1 = vpop.eup %18831  ;;  %v9283_v33 = vadd.f32 1.0, %v18830_v18  ;;  %18851 = vrcp.f32 %v9282_v55 }
 0x832   : > { %v18834_v57 = vpop.eup %18833  ;;  %v9284_v51 = vadd.f32 1.0, %v18832_v1  ;;  %v15148_v1 = vmul.f32 -1.442695, %v21822_v53 }
 0x833   : > { %v18836_v48 = vpop.eup %18835  ;;  %18853 = vrcp.f32 %v9283_v33  ;;  %v9285_v40 = vadd.f32 1.0, %v18834_v57 }
 0x834   : > { %18855 = vpow2.f32 %v15143_v23  ;;  %v18838_v14 = vpop.eup %18837  ;;  %v9286_v18 = vadd.f32 1.0, %v18836_v48  ;;  %v15149_v48 = vmul.f32 -1.442695, %v21827_v2  ;;  %v18794_v2 = vld [vmem:[#allocation16 + $0x48] sm:$0xff]  }
 0x835   : > { %18857 = vpow2.f32 %v15144_v49  ;;  %v18840_v0 = vpop.eup %18839 }
 0x836   : > { %18859 = vrcp.f32 %v9284_v51  ;;  %v18842_v11 = vpop.eup %18841  ;;  %v9287_v10 = vadd.f32 1.0, %v18840_v0 }
 0x837   : > { %18861 = vpow2.f32 %v15145_v3  ;;  %v18844_v55 = vpop.eup %18843  ;;  %v9288_v31 = vadd.f32 1.0, %v18842_v11 }
 0x838   : > { %18863 = vpow2.f32 %v15146_v16  ;;  %v18846_v33 = vpop.eup %18845  ;;  %v15150_v16 = vmul.f32 -1.442695, %v21833_v36 }
 0x839   : > { %18865 = vrcp.f32 %v9285_v40  ;;  %v18848_v49 = vpop.eup %18847 }
 0x83a   : > { %18867 = vrcp.f32 %v9286_v18  ;;  %v18850_v51 = vpop.eup %18849  ;;  %v9289_v40 = vadd.f32 1.0, %v18848_v49 }
 0x83b   : > { %18869 = vpow2.f32 %v15147_v15  ;;  %v18852_v35 = vpop.eup %18851  ;;  %v9290_v18 = vadd.f32 1.0, %v18850_v51  ;;  %v15153_v51 = vmul.f32 -1.442695, %v21851_v44 }
 0x83c   : > { %18871 = vpow2.f32 %v15148_v1  ;;  %v15152_v1 = vmul.f32 -1.442695, %v21846_v60 }
 0x83d   : > { %v18854_v63 = vpop.eup %18853  ;;  %18873 = vrcp.f32 %v9287_v10 }
 0x83e   : > { %v18856_v0 = vpop.eup %18855  ;;  %18875 = vrcp.f32 %v9288_v31 }
 0x83f   : > { %v18858_v11 = vpop.eup %18857  ;;  %18877 = vpow2.f32 %v15149_v48 }
 0x840   : > { %18879 = vpow2.f32 %v15150_v16  ;;  %v9292_v49 = vadd.f32 1.0, %v18858_v11 }
 0x841   : > { %18881 = vrcp.f32 %v9289_v40 }
 0x842   : > { %18883 = vrcp.f32 %v9290_v18 }
 0x85e   : > { %v9408_v5 = vpop.permute.xlu0 %9407 }
 0x85f   : > { %v9503_v23 = vmul.f32 %v18838_v14, %v9408_v5 }
 0x860   : > { %v9410_v34 = vpop.permute.xlu1 %9409 }
 0x861   : > { %v9504_v52 = vmul.f32 %v18844_v55, %v9410_v34  ;;  %v18860_v55 = vpop.eup %18859 }
 0x862   : > { %v9412_v57 = vpop.permute.xlu0 %9411  ;;  %v18862_v36 = vpop.eup %18861 }
 0x863   : > { %v9535_v3 = vpack.c.bf16 %v9504_v52, %v9503_v23  ;;  %v9505_v34 = vmul.f32 %v18846_v33, %v9412_v57  ;;  %v15151_v52 = vmul.f32 -1.442695, %v21840_v61  ;;  %v18864_v33 = vpop.eup %18863 }
 0x864   : > { %v9414_v53 = vpop.permute.xlu1 %9413  ;;  %v18866_v57 = vpop.eup %18865 }
 0x865   : > { %9551 = vst.msk [vmem:[#allocation3 + $0x10] sm:$0xff] %vm869_vm2, %v9535_v3  ;;  %v9506_v14 = vmul.f32 %v18852_v35, %v9414_v53  ;;  %v9291_v53 = vadd.f32 1.0, %v18856_v0  ;;  %18885 = vpow2.f32 %v15151_v52  ;;  %v18790_v3 = vld [vmem:[#allocation16 + $0x8] sm:$0xff]   ;;  %v18868_v16 = vpop.eup %18867  ;;  %v9294_v52 = vadd.f32 1.0, %v18864_v33 }
 0x866   : > { %v9416_v5 = vpop.permute.xlu0 %9415  ;;  %18887 = vpow2.f32 %v15152_v1  ;;  %v15155_v1 = vmul.f32 -1.442695, %v21864_v7 }
 0x867   : > { %v9536_v15 = vpack.c.bf16 %v9506_v14, %v9505_v34  ;;  %v9507_v35 = vmul.f32 %v18854_v63, %v9416_v5  ;;  %v15154_v34 = vmul.f32 -1.442695, %v21857_v59  ;;  %v18870_v63 = vpop.eup %18869  ;;  %18889 = vrcp.f32 %v9291_v53  ;;  %v23491_v59 = vld [vmem:[#allocation56_spill] sm:$0xff] }
 0x868   : > { %v9418_v23 = vpop.permute.xlu1 %9417  ;;  %v9293_v5 = vadd.f32 1.0, %v18862_v36  ;;  %v18872_v18 = vpop.eup %18871  ;;  %18891 = vrcp.f32 %v9292_v49  ;;  %v9295_v33 = vadd.f32 1.0, %v18870_v63 }
 0x869   : > { %9552 = vst.msk [vmem:[#allocation3 + $0x18] sm:$0xff] %vm869_vm2, %v9536_v15  ;;  %v9508_v10 = vmul.f32 %v18860_v55, %v9418_v23  ;;  %v18874_v55 = vpop.eup %18873  ;;  %18893 = vpow2.f32 %v15153_v51 }
 0x86a   : > { %v9420_v31 = vpop.permute.xlu0 %9419  ;;  %18895 = vpow2.f32 %v15154_v34 }
 0x86b   : > { %v9537_v48 = vpack.c.bf16 %v9508_v10, %v9507_v35  ;;  %v9509_v40 = vmul.f32 %v18866_v57, %v9420_v31  ;;  %v18791_v35 = vld [vmem:[#allocation16 + $0x10] sm:$0xff]   ;;  %v18876_v10 = vpop.eup %18875  ;;  %v15156_v31 = vmul.f32 -1.442695, %v21870_v12  ;;  %18897 = vrcp.f32 %v9293_v5 }
 0x86c   : > { %v9422_v14 = vpop.permute.xlu1 %9421  ;;  %v21936_v15 = vld [vmem:[#allocation3 + $0x10] sm:$0xff]  ;;  %v18878_v36 = vpop.eup %18877  ;;  %18899 = vrcp.f32 %v9294_v52 }
 0x86d   : > { %9553 = vst.msk [vmem:[#allocation3 + $0x20] sm:$0xff] %vm869_vm2, %v9537_v48  ;;  %v9510_v0 = vmul.f32 %v18868_v16, %v9422_v14  ;;  %16957 = vmatmul.mubr.msk.bf16.vlgmr.msra.gmra.mrb[32].mxu1 %vm869_vm2, %v21936_v15  ;;  %v18880_v51 = vpop.eup %18879  ;;  %v9296_v16 = vadd.f32 1.0, %v18872_v18  ;;  %v15157_v14 = vmul.f32 -1.442695, %v21875_v8  ;;  %18901 = vpow2.f32 %v15155_v1 }
 0x86e   : > { %16989 = vmatpush3.bf16.msra.mxu1 %v21740_v62  ;;  %v9424_v11 = vpop.permute.xlu0 %9423  ;;  %v18882_v34 = vpop.eup %18881  ;;  %18903 = vpow2.f32 %v15156_v31  ;;  %v9297_v18 = vadd.f32 1.0, %v18878_v36  ;;  %v15159_v31 = vmul.f32 -1.442695, %v21888_v50 }
 0x86f   : > { %v9538_v23 = vpack.c.bf16 %v9510_v0, %v9509_v40  ;;  %16990 = vmatprep.subr.bf16.mxu1 %v18790_v3  ;;  %v9511_v62 = vmul.f32 %v18874_v55, %v9424_v11  ;;  %v18792_v0 = vld [vmem:[#allocation16 + $0x18] sm:$0xff]   ;;  %v15158_v11 = vmul.f32 -1.442695, %v21881_v45  ;;  %18905 = vrcp.f32 %v9295_v33  ;;  %v21957_v45 = vld [vmem:[#allocation16 + $0x40] sm:$0xff]  }
 0x870   : > { %v9426_v57 = vpop.permute.xlu1 %9425  ;;  %v21944_v53 = vld [vmem:[#allocation3 + $0x18] sm:$0xff]  ;;  %18907 = vrcp.f32 %v9296_v16 }
 0x871   : > { %9554 = vst.msk [vmem:[#allocation3 + $0x28] sm:$0xff] %vm869_vm2, %v9538_v23  ;;  %v9512_v49 = vmul.f32 %v18876_v10, %v9426_v57  ;;  %16960 = vmatprep.mubr.msk.bf16.mxu1 %vm869_vm2, %v21944_v53  ;;  %v18884_v23 = vpop.eup %18883  ;;  %v9298_v57 = vadd.f32 1.0, %v18880_v51  ;;  %18909 = vpow2.f32 %v15157_v14 }
 0x872   : > { %v9428_v48 = vpop.permute.xlu0 %9427  ;;  %16991 = vmatpush3.bf16.msra.mxu1 %v18790_v3  ;;  %v18886_v63 = vpop.eup %18885  ;;  %18911 = vpow2.f32 %v15158_v11 }
 0x873   : > { %v9539_v40 = vpack.c.bf16 %v9512_v49, %v9511_v62  ;;  %16992 = vmatprep.subr.bf16.mxu1 %v18791_v35  ;;  %v9513_v5 = vmul.f32 %v18882_v34, %v9428_v48  ;;  %v18888_v52 = vpop.eup %18887  ;;  %v15160_v34 = vmul.f32 -1.442695, %v21894_v19  ;;  %18913 = vrcp.f32 %v9297_v18 }
 0x874   : > { %v9430_v55 = vpop.permute.xlu1 %9429  ;;  %v21951_v10 = vld [vmem:[#allocation3 + $0x20] sm:$0xff]  ;;  %v18890_v62 = vpop.eup %18889  ;;  %v9299_v16 = vadd.f32 1.0, %v18886_v63  ;;  %18915 = vrcp.f32 %v9298_v57 }
 0x875   : > { %9555 = vst.msk [vmem:[#allocation3 + $0x30] sm:$0xff] %vm869_vm2, %v9539_v40  ;;  %v9514_v3 = vmul.f32 %v18884_v23, %v9430_v55  ;;  %16961 = vmatmul.mubr.msk.bf16.gmra.mrb[36].mxu1 %vm869_vm2, %v21951_v10  ;;  %v18892_v48 = vpop.eup %18891  ;;  %v9300_v55 = vadd.f32 1.0, %v18888_v52  ;;  %18917 = vpow2.f32 %v15159_v31 }
 0x876   : > { %v9432_v1 = vpop.permute.xlu0 %9431  ;;  %16993 = vmatpush3.bf16.msra.mxu1 %v18791_v35  ;;  %v18894_v36 = vpop.eup %18893  ;;  %18919 = vpow2.f32 %v15160_v34 }
 0x877   : > { %v9540_v49 = vpack.c.bf16 %v9514_v3, %v9513_v5  ;;  %16994 = vmatprep.subr.bf16.mxu1 %v18792_v0  ;;  %v9515_v51 = vmul.f32 %v18890_v62, %v9432_v1  ;;  %v18896_v14 = vpop.eup %18895  ;;  %v15161_v5 = vmul.f32 -1.442695, %v21899_v46  ;;  %v15162_v1 = vmul.f32 -1.442695, %v21904_v13 }
 0x878   : > { %v9434_v40 = vpop.permute.xlu1 %9433  ;;  %v21960_v33 = vld [vmem:[#allocation3 + $0x28] sm:$0xff]  ;;  %v18898_v11 = vpop.eup %18897  ;;  %18921 = vrcp.f32 %v9299_v16 }
 0x879   : > { %9556 = vst.msk [vmem:[#allocation3 + $0x38] sm:$0xff] %vm869_vm2, %v9540_v49  ;;  %v9516_v35 = vmul.f32 %v18892_v48, %v9434_v40  ;;  %16964 = vmatprep.mubr.msk.bf16.mxu1 %vm869_vm2, %v21960_v33  ;;  %v18900_v49 = vpop.eup %18899  ;;  %18923 = vrcp.f32 %v9300_v55  ;;  %v9302_v40 = vadd.f32 1.0, %v18896_v14 }
 0x87a   : > { %v9436_v23 = vpop.permute.xlu0 %9435  ;;  %16995 = vmatpush3.bf16.msra.mxu1 %v18792_v0  ;;  %v18902_v63 = vpop.eup %18901  ;;  %v9301_v0 = vadd.f32 1.0, %v18894_v36  ;;  %18925 = vpow2.f32 %v15161_v5 }
 0x87b   : > { %v9541_v3 = vpack.c.bf16 %v9516_v35, %v9515_v51  ;;  %17028 = vmatprep.subr.bf16.mxu1 %v21957_v45  ;;  %v9517_v18 = vmul.f32 %v18898_v11, %v9436_v23  ;;  %v18904_v57 = vpop.eup %18903  ;;  %18927 = vpow2.f32 %v15162_v1  ;;  %v9303_v36 = vadd.f32 1.0, %v18902_v63 }
 0x87c   : > { %v9438_v62 = vpop.permute.xlu1 %9437  ;;  %v21968_v48 = vld [vmem:[#allocation3 + $0x30] sm:$0xff]  ;;  %v18906_v51 = vpop.eup %18905  ;;  %18929 = vrcp.f32 %v9301_v0  ;;  %v9304_v55 = vadd.f32 1.0, %v18904_v57 }
 0x87d   : > { %9557 = vst.msk [vmem:[#allocation3 + $0x40] sm:$0xff] %vm869_vm2, %v9541_v3  ;;  %v9518_v52 = vmul.f32 %v18900_v49, %v9438_v62  ;;  %16965 = vmatmul.mubr.msk.bf16.gmra.mrb[40].mxu1 %vm869_vm2, %v21968_v48  ;;  %v18908_v35 = vpop.eup %18907  ;;  %18931 = vrcp.f32 %v9302_v40 }
 0x87e   : > { %v9440_v31 = vpop.permute.xlu0 %9439  ;;  %v18910_v3 = vpop.eup %18909  ;;  %18933 = vrcp.f32 %v9303_v36 }
 0x87f   : > { %v9542_v34 = vpack.c.bf16 %v9518_v52, %v9517_v18  ;;  %v9519_v23 = vmul.f32 %v18906_v51, %v9440_v31  ;;  %v18912_v16 = vpop.eup %18911  ;;  %v9305_v63 = vadd.f32 1.0, %v18910_v3  ;;  %18935 = vrcp.f32 %v9304_v55 }
 0x880   : > { %v9442_v13 = vpop.permute.xlu1 %9441  ;;  %v21973_v46 = vld [vmem:[#allocation3 + $0x38] sm:$0xff]  ;;  %v18914_v5 = vpop.eup %18913  ;;  %v9306_v57 = vadd.f32 1.0, %v18912_v16 }
 0x881   : > { %9558 = vst.msk [vmem:[#allocation3 + $0x48] sm:$0xff] %vm869_vm2, %v9542_v34  ;;  %v9520_v11 = vmul.f32 %v18908_v35, %v9442_v13  ;;  %16968 = vmatprep.mubr.msk.bf16.mxu1 %vm869_vm2, %v21973_v46  ;;  %v18916_v1 = vpop.eup %18915  ;;  %18937 = vrcp.f32 %v9305_v63  ;;  %v9591_v41 = vmul.bf16 %v21973_v46, %v23495_v42 }
 0x882   : > { %v9444_v14 = vpop.permute.xlu0 %9443  ;;  %v18918_v52 = vpop.eup %18917  ;;  %18939 = vrcp.f32 %v9306_v57 }
 0x883   : > { %v9543_v49 = vpack.c.bf16 %v9520_v11, %v9519_v23  ;;  %v9521_v31 = vmul.f32 %v18914_v5, %v9444_v14  ;;  %v18920_v0 = vpop.eup %18919  ;;  %v9307_v3 = vadd.f32 1.0, %v18918_v52 }
 0x884   : > { %v9446_v62 = vpop.permute.xlu1 %9445  ;;  %v21978_v18 = vld [vmem:[#allocation3 + $0x40] sm:$0xff]  ;;  %v18922_v40 = vpop.eup %18921  ;;  %v9308_v16 = vadd.f32 1.0, %v18920_v0 }
 0x885   : > { %9559 = vst.msk [vmem:[#allocation3 + $0x50] sm:$0xff] %vm869_vm2, %v9543_v49  ;;  %v9522_v13 = vmul.f32 %v18916_v1, %v9446_v62  ;;  %16969 = vmatmul.mubr.msk.bf16.gmra.mrb[44].mxu1 %vm869_vm2, %v21978_v18  ;;  %v18924_v35 = vpop.eup %18923  ;;  %18941 = vrcp.f32 %v9307_v3 }
 0x886   : > { %v9448_v51 = vpop.permute.xlu0 %9447  ;;  %v18926_v19 = vpop.eup %18925  ;;  %18943 = vrcp.f32 %v9308_v16 }
 0x887   : > { %v9544_v34 = vpack.c.bf16 %v9522_v13, %v9521_v31  ;;  %v9523_v14 = vmul.f32 %v18922_v40, %v9448_v51  ;;  %v18928_v36 = vpop.eup %18927  ;;  %v9309_v63 = vadd.f32 1.0, %v18926_v19 }
 0x888   : > { %v9450_v23 = vpop.permute.xlu1 %9449  ;;  %v21983_v11 = vld [vmem:[#allocation3 + $0x48] sm:$0xff]  ;;  %v18930_v55 = vpop.eup %18929  ;;  %v9310_v40 = vadd.f32 1.0, %v18928_v36 }
 0x889   : > { %9560 = vst.msk [vmem:[#allocation3 + $0x58] sm:$0xff] %vm869_vm2, %v9544_v34  ;;  %v9524_v5 = vmul.f32 %v18924_v35, %v9450_v23  ;;  %16972 = vmatprep.mubr.msk.bf16.mxu1 %vm869_vm2, %v21983_v11  ;;  %v18932_v62 = vpop.eup %18931  ;;  %18945 = vrcp.f32 %v9309_v63 }
 0x88a   : > { %v9452_v49 = vpop.permute.xlu0 %9451  ;;  %v18934_v57 = vpop.eup %18933  ;;  %18947 = vrcp.f32 %v9310_v40 }
 0x88b   : > { %v9545_v1 = vpack.c.bf16 %v9524_v5, %v9523_v14  ;;  %v9525_v34 = vmul.f32 %v18930_v55, %v9452_v49  ;;  %v18936_v35 = vpop.eup %18935 }
 0x88c   : > { %v9454_v31 = vpop.permute.xlu1 %9453  ;;  %v21988_v13 = vld [vmem:[#allocation3 + $0x50] sm:$0xff]  ;;  %v18938_v19 = vpop.eup %18937 }
 0x88d   : > { %9561 = vst.msk [vmem:[#allocation3 + $0x60] sm:$0xff] %vm869_vm2, %v9545_v1  ;;  %v9526_v51 = vmul.f32 %v18932_v62, %v9454_v31  ;;  %16973 = vmatmul.mubr.msk.bf16.gmra.mrb[48].mxu1 %vm869_vm2, %v21988_v13  ;;  %v18940_v16 = vpop.eup %18939  ;;  %v23488_v62 = vld [vmem:[#allocation54_spill] sm:$0xff] }
 0x88e   : > { %v9456_v52 = vpop.permute.xlu0 %9455  ;;  %v9585_v31 = vmul.bf16 %v21709_v56, %v23488_v62 }
 0x88f   : > { %v9546_v0 = vpack.c.bf16 %v9526_v51, %v9525_v34  ;;  %v9527_v5 = vmul.f32 %v18934_v57, %v9456_v52  ;;  %v18942_v63 = vpop.eup %18941 }
 0x890   : > { %v9458_v23 = vpop.permute.xlu1 %9457  ;;  %v21993_v14 = vld [vmem:[#allocation3 + $0x58] sm:$0xff]  ;;  %v18944_v40 = vpop.eup %18943 }
 0x891   : > { %9562 = vst.msk [vmem:[#allocation3 + $0x68] sm:$0xff] %vm869_vm2, %v9546_v0  ;;  %v9528_v1 = vmul.f32 %v18936_v35, %v9458_v23  ;;  %16976 = vmatprep.mubr.msk.bf16.mxu1 %vm869_vm2, %v21993_v14  ;;  %v9567_v23 = vld [vmem:[#allocation3] sm:$0x80] }
 0x892   : > { %v9460_v49 = vpop.permute.xlu0 %9459 }
 0x893   : > { %v9547_v3 = vpack.c.bf16 %v9528_v1, %v9527_v5  ;;  %v9529_v34 = vmul.f32 %v18938_v19, %v9460_v49  ;;  %v9856_v5 = vshrl.u32 %v9585_v31, 16  ;;  %v18946_v19 = vpop.eup %18945 }
 0x894   : > { %v9462_v36 = vpop.permute.xlu1 %9461  ;;  %v21998_v55 = vld [vmem:[#allocation3 + $0x60] sm:$0xff]  ;;  %v18948_v50 = vpop.eup %18947 }
 0x895   : > { %9563 = vst.msk [vmem:[#allocation3 + $0x70] sm:$0xff] %vm869_vm2, %v9547_v3  ;;  %v9530_v51 = vmul.f32 %v18940_v16, %v9462_v36  ;;  %16977 = vmatmul.mubr.msk.bf16.gmra.mrb[52].mxu1 %vm869_vm2, %v21998_v55  ;;  %v23489_v16 = vld [vmem:[#allocation53_spill] sm:$0xff]  ;;  %v9858_v7 = vrot.slane %v9856_v5, 7 }
 0x896   : > { %v9464_v52 = vpop.permute.xlu0 %9463  ;;  %v9584_v36 = vmul.bf16 %v9567_v23, %v23489_v16 }
 0x897   : > { %v9548_v57 = vpack.c.bf16 %v9530_v51, %v9529_v34  ;;  %v9531_v1 = vmul.f32 %v18942_v63, %v9464_v52  ;;  %v23490_v34 = vld [vmem:[#allocation55_spill] sm:$0xff]  ;;  %v9587_v52 = vmul.bf16 %v21944_v53, %v23491_v59 }
 0x898   : > { %v9466_v0 = vpop.permute.xlu1 %9465  ;;  %v22005_v35 = vld [vmem:[#allocation3 + $0x68] sm:$0xff]  ;;  %v9586_v51 = vmul.bf16 %v21936_v15, %v23490_v34  ;;  %v9852_v23 = vshrl.u32 %v9584_v36, 16 }
 0x899   : > { %9564 = vst.msk [vmem:[#allocation3 + $0x78] sm:$0xff] %vm869_vm2, %v9548_v57  ;;  %v9532_v56 = vmul.f32 %v18944_v40, %v9466_v0  ;;  %16980 = vmatprep.mubr.msk.bf16.mxu1 %vm869_vm2, %v22005_v35  ;;  %v9859_v40 = vshll.u32 %v9585_v31, 16  ;;  %v9872_v44 = vshrl.u32 %v9587_v52, 16 }
 0x89a   : > { %v9468_v49 = vpop.permute.xlu0 %9467  ;;  %v9854_v60 = vrot.slane %v9852_v23, 7 }
 0x89b   : > { %v9549_v3 = vpack.c.bf16 %v9532_v56, %v9531_v1  ;;  %v9533_v63 = vmul.f32 %v18946_v19, %v9468_v49  ;;  %v9864_v1 = vshrl.u32 %v9586_v51, 16  ;;  %v9861_v5 = vor.u32 %v9859_v40, %v9858_v7  ;;  %v23492_v49 = vld [vmem:[#allocation57_spill] sm:$0xff]  ;;  %v23493_v19 = vld [vmem:[#allocation58_spill] sm:$0xff] }
 0x89c   : > { %v9470_v8 = vpop.permute.xlu1 %9469  ;;  %v22013_v12 = vld [vmem:[#allocation3 + $0x70] sm:$0xff]  ;;  %v9874_v31 = vrot.slane %v9872_v44, 7  ;;  %v9589_v36 = vmul.bf16 %v21960_v33, %v23493_v19  ;;  %v9875_v40 = vshll.u32 %v9587_v52, 16  ;;  %v9590_v44 = vmul.bf16 %v21968_v48, %v23494_v58 }
 0x89d   : > { %9565 = vst.msk [vmem:[#allocation3 + $0x80] sm:$0xff] %vm869_vm2, %v9549_v3  ;;  %v9534_v57 = vmul.f32 %v18948_v50, %v9470_v8  ;;  %16981 = vmatmul.mubr.msk.bf16.gmra.mrb[56].mxu1 %vm869_vm2, %v22013_v12  ;;  %v9866_v3 = vrot.slane %v9864_v1, 7  ;;  %v9588_v8 = vmul.bf16 %v21951_v10, %v23492_v49 }
 0x89e   : > { %v9888_v1 = vshrl.u32 %v9589_v36, 16  ;;  %v9877_v61 = vor.u32 %v9875_v40, %v9874_v31  ;;  %v9891_v52 = vshll.u32 %v9589_v36, 16  ;;  %v9904_v40 = vshrl.u32 %v9591_v41, 16 }
 0x89f   : > { %v9550_v0 = vpack.c.bf16 %v9534_v57, %v9533_v63  ;;  %v9862_v63 = vsel %vm1887_vm1, %v9854_v60, %v9861_v5  ;;  %v9867_v57 = vshll.u32 %v9586_v51, 16  ;;  %v9883_v51 = vshll.u32 %v9588_v8, 16  ;;  %v18795_v5 = vld [vmem:[#allocation16 + $0x50] sm:$0xff]  }
 0x8a0   : > { %v22020_v56 = vld [vmem:[#allocation3 + $0x78] sm:$0xff]  ;;  %v9890_v24 = vrot.slane %v9888_v1, 7  ;;  %v9878_v60 = vsel %vm1887_vm1, %v9866_v3, %v9877_v61  ;;  %v23496_v1 = vld [vmem:[#allocation61_spill] sm:$0xff] }
 0x8a1   : > { %9566 = vst.msk [vmem:[#allocation3 + $0x88] sm:$0xff] %vm869_vm2, %v9550_v0  ;;  %16984 = vmatprep.mubr.msk.bf16.mxu1 %vm869_vm2, %v22020_v56  ;;  %v9880_v0 = vshrl.u32 %v9588_v8, 16  ;;  %v9869_v23 = vor.u32 %v9867_v57, %v9866_v3  ;;  %v9906_v3 = vrot.slane %v9904_v40, 7  ;;  %v23497_v8 = vld [vmem:[#allocation62_spill] sm:$0xff]  ;;  %v23498_v40 = vld [vmem:[#allocation63_spill] sm:$0xff] }
 0x8a3   : > { %v9882_v54 = vrot.slane %v9880_v0, 7  ;;  %v9870_v32 = vsel %vm1887_vm1, %v9858_v7, %v9869_v23  ;;  %v9893_v7 = vor.u32 %v9891_v52, %v9890_v24  ;;  %v18796_v0 = vld [vmem:[#allocation16 + $0x58] sm:$0xff]  }
 0x8a4   : > { %v22027_v50 = vld [vmem:[#allocation3 + $0x80] sm:$0xff] }
 0x8a5   : > { %16985 = vmatmul.mubr.msk.bf16.gmra.mrb[60].mxu1 %vm869_vm2, %v22027_v50  ;;  %v9885_v57 = vor.u32 %v9883_v51, %v9882_v54  ;;  %v9894_v36 = vsel %vm1887_vm1, %v9882_v54, %v9893_v7  ;;  %v22052_v51 = vld [vmem:[#allocation16 + $0x60] sm:$0xff]  }
 0x8a6   : > { %16996 = vmatprep.mubr.msk.bf16.mxu1 %vm869_vm2, %v9862_v63  ;;  %v9896_v63 = vshrl.u32 %v9590_v44, 16  ;;  %v23499_v7 = vld [vmem:[#allocation64_spill] sm:$0xff] }
 0x8a7   : > { %v9886_v61 = vsel %vm1887_vm1, %v9874_v31, %v9885_v57 }
 0x8a8   : > { %v9898_v23 = vrot.slane %v9896_v63, 7 }
 0x8ad   : > { %16997 = vmatmul.mubr.msk.bf16.vlgmr.msra.gmra.mrb[32].mxu1 %vm869_vm2, %v9870_v32  ;;  %v9592_v32 = vmul.bf16 %v21978_v18, %v23496_v1 }
 0x8ae   : > { %17000 = vmatprep.mubr.msk.bf16.mxu1 %vm869_vm2, %v9878_v60  ;;  %17029 = vmatpush3.bf16.msra.mxu1 %v21957_v45  ;;  %v9593_v45 = vmul.bf16 %v21983_v11, %v23497_v8  ;;  %v9899_v60 = vshll.u32 %v9590_v44, 16 }
 0x8af   : > { %17030 = vmatprep.subr.bf16.mxu1 %v18794_v2  ;;  %v9912_v52 = vshrl.u32 %v9592_v32, 16 }
 0x8b0   : > { %v9901_v63 = vor.u32 %v9899_v60, %v9898_v23  ;;  %v9920_v25 = vshrl.u32 %v9593_v45, 16 }
 0x8b1   : > { %v9914_v57 = vrot.slane %v9912_v52, 7 }
 0x8b2   : > { %17031 = vmatpush3.bf16.msra.mxu1 %v18794_v2  ;;  %v9907_v2 = vshll.u32 %v9591_v41, 16  ;;  %v9902_v54 = vsel %vm1887_vm1, %v9890_v24, %v9901_v63  ;;  %v9922_v44 = vrot.slane %v9920_v25, 7  ;;  %v9595_v41 = vmul.bf16 %v21993_v14, %v23499_v7 }
 0x8b3   : > { %17032 = vmatprep.subr.bf16.mxu1 %v18795_v5  ;;  %v9596_v24 = vmul.bf16 %v21998_v55, %v23500_v43  ;;  %v23502_v43 = vld [vmem:[#allocation67_spill] sm:$0xff] }
 0x8b4   : > { %v9909_v31 = vor.u32 %v9907_v2, %v9906_v3  ;;  %v9936_v52 = vshrl.u32 %v9595_v41, 16 }
 0x8b5   : > { %17001 = vmatmul.mubr.msk.bf16.gmra.mrb[36].mxu1 %vm869_vm2, %v9886_v61  ;;  %v9594_v61 = vmul.bf16 %v21988_v13, %v23498_v40 }
 0x8b6   : > { %17004 = vmatprep.mubr.msk.bf16.mxu1 %vm869_vm2, %v9894_v36  ;;  %17033 = vmatpush3.bf16.msra.mxu1 %v18795_v5  ;;  %v9910_v5 = vsel %vm1887_vm1, %v9898_v23, %v9909_v31  ;;  %v9915_v36 = vshll.u32 %v9592_v32, 16  ;;  %v9938_v63 = vrot.slane %v9936_v52, 7  ;;  %v9944_v31 = vshrl.u32 %v9596_v24, 16 }
 0x8b7   : > { %17034 = vmatprep.subr.bf16.mxu1 %v18796_v0  ;;  %v9928_v60 = vshrl.u32 %v9594_v61, 16  ;;  %v9931_v32 = vshll.u32 %v9594_v61, 16 }
 0x8b8   : > { %v9917_v2 = vor.u32 %v9915_v36, %v9914_v57 }
 0x8b9   : > { %v9930_v37 = vrot.slane %v9928_v60, 7  ;;  %v9946_v60 = vrot.slane %v9944_v31, 7 }
 0x8ba   : > { %17035 = vmatpush3.bf16.msra.mxu1 %v18796_v0  ;;  %v9923_v0 = vshll.u32 %v9593_v45, 16  ;;  %v9918_v25 = vsel %vm1887_vm1, %v9906_v3, %v9917_v2  ;;  %v9939_v45 = vshll.u32 %v9595_v41, 16  ;;  %v9598_v3 = vmul.bf16 %v22013_v12, %v23502_v43  ;;  %v23504_v43 = vld [vmem:[#allocation69_spill] sm:$0xff] }
 0x8bb   : > { %17068 = vmatprep.subr.bf16.mxu1 %v22052_v51 }
 0x8bc   : > { %v9925_v38 = vor.u32 %v9923_v0, %v9922_v44  ;;  %v9941_v0 = vor.u32 %v9939_v45, %v9938_v63  ;;  %v9960_v41 = vshrl.u32 %v9598_v3, 16 }
 0x8bd   : > { %17005 = vmatmul.mubr.msk.bf16.gmra.mrb[40].mxu1 %vm869_vm2, %v9902_v54  ;;  %v9597_v54 = vmul.bf16 %v22005_v35, %v23501_v27  ;;  %v23503_v27 = vld [vmem:[#allocation68_spill] sm:$0xff] }
 0x8be   : > { %17008 = vmatprep.mubr.msk.bf16.mxu1 %vm869_vm2, %v9910_v5  ;;  %v9926_v23 = vsel %vm1887_vm1, %v9914_v57, %v9925_v38  ;;  %v9933_v5 = vor.u32 %v9931_v32, %v9930_v37  ;;  %v9942_v38 = vsel %vm1887_vm1, %v9930_v37, %v9941_v0  ;;  %v9947_v57 = vshll.u32 %v9596_v24, 16  ;;  %v23505_v0 = vld [vmem:[#allocation70_spill] sm:$0xff] }
 0x8bf   : > { %v9952_v36 = vshrl.u32 %v9597_v54, 16  ;;  %v9955_v61 = vshll.u32 %v9597_v54, 16  ;;  %v9962_v31 = vrot.slane %v9960_v41, 7  ;;  %v9963_v37 = vshll.u32 %v9598_v3, 16  ;;  %v18992_v54 = vld [vmem:[#allocation3 + $0x8] sm:$0xff] }
 0x8c0   : > { %v9934_v2 = vsel %vm1887_vm1, %v9922_v44, %v9933_v5  ;;  %v9600_v44 = vmul.bf16 %v22027_v50, %v23504_v43 }
 0x8c1   : > { %v9954_v52 = vrot.slane %v9952_v36, 7 }
 0x8c3   : > { %v9957_v45 = vor.u32 %v9955_v61, %v9954_v52  ;;  %v9965_v61 = vor.u32 %v9963_v37, %v9962_v31 }
 0x8c5   : > { %17009 = vmatmul.mubr.msk.bf16.gmra.mrb[44].mxu1 %vm869_vm2, %v9918_v25  ;;  %v9599_v25 = vmul.bf16 %v22020_v56, %v23503_v27  ;;  %v23506_v27 = vld [vmem:[#allocation71_spill] sm:$0xff] }
 0x8c6   : > { %17012 = vmatprep.mubr.msk.bf16.mxu1 %vm869_vm2, %v9926_v23  ;;  %v9949_v23 = vor.u32 %v9947_v57, %v9946_v60  ;;  %v9976_v57 = vshrl.u32 %v9600_v44, 16  ;;  %v10234_v43 = vmul.bf16 %v21936_v15, %v23506_v27 }
 0x8c7   : > { %v9968_v32 = vshrl.u32 %v9599_v25, 16  ;;  %v9971_v24 = vshll.u32 %v9599_v25, 16 }
 0x8c8   : > { %v9950_v5 = vsel %vm1887_vm1, %v9938_v63, %v9949_v23  ;;  %v9978_v63 = vrot.slane %v9976_v57, 7  ;;  %v9966_v23 = vsel %vm1887_vm1, %v9954_v52, %v9965_v61  ;;  %v10267_v3 = vshll.u32 %v10234_v43, 16 }
 0x8c9   : > { %v9970_v36 = vrot.slane %v9968_v32, 7  ;;  %v9979_v32 = vshll.u32 %v9600_v44, 16 }
 0x8cb   : > { %v9973_v41 = vor.u32 %v9971_v24, %v9970_v36  ;;  %v10269_v24 = vrot.slane %v10267_v3, 1 }
 0x8cd   : > { %17013 = vmatmul.mubr.msk.bf16.gmra.mrb[48].mxu1 %vm869_vm2, %v9934_v2  ;;  %v9958_v2 = vsel %vm1887_vm1, %v9946_v60, %v9957_v45  ;;  %v9974_v60 = vsel %vm1887_vm1, %v9962_v31, %v9973_v41  ;;  %v23507_v45 = vld [vmem:[#allocation72_spill] sm:$0xff]  ;;  %v10237_v41 = vmul.bf16 %v21960_v33, %v23425_v4 }
 0x8ce   : > { %17016 = vmatprep.mubr.msk.bf16.mxu1 %vm869_vm2, %v9942_v38  ;;  %v10233_v38 = vmul.bf16 %v18992_v54, %v23505_v0  ;;  %v23508_v54 = vld [vmem:[#allocation73_spill] sm:$0xff] }
 0x8cf   : > { %v10236_v57 = vmul.bf16 %v21951_v10, %v23508_v54 }
 0x8d0   : > { %v10262_v7 = vshll.u32 %v10233_v38, 16  ;;  %v10260_v37 = vshrl.u32 %v10233_v38, 16  ;;  %v10271_v38 = vshrl.u32 %v10234_v43, 16 }
 0x8d1   : > { %v10283_v44 = vshll.u32 %v10236_v57, 16 }
 0x8d2   : > { %v10264_v25 = vrot.slane %v10262_v7, 1  ;;  %v10273_v3 = vor.u32 %v10271_v38, %v10269_v24 }
 0x8d4   : > { %v10265_v27 = vor.u32 %v10264_v25, %v10260_v37  ;;  %v18798_v25 = vld [vmem:[#allocation16 + $0x68] sm:$0xff]  }
 0x8d5   : > { %17017 = vmatmul.mubr.msk.bf16.gmra.mrb[52].mxu1 %vm869_vm2, %v9950_v5  ;;  %v10235_v5 = vmul.bf16 %v21944_v53, %v23507_v45 }
 0x8d6   : > { %17020 = vmatprep.mubr.msk.bf16.mxu1 %vm869_vm2, %v9958_v2  ;;  %v9981_v2 = vor.u32 %v9979_v32, %v9978_v63  ;;  %v10270_v31 = vsel %vm1483_vm0, %v10265_v27, %v10269_v24  ;;  %v18799_v24 = vld [vmem:[#allocation16 + $0x70] sm:$0xff]  }
 0x8d7   : > { %v10275_v52 = vshll.u32 %v10235_v5, 16  ;;  %v10279_v63 = vshrl.u32 %v10235_v5, 16  ;;  %v10239_v5 = vmul.bf16 %v21973_v46, %v23427_v29 }
 0x8d8   : > { %v9982_v61 = vsel %vm1887_vm1, %v9970_v36, %v9981_v2  ;;  %v10291_v36 = vshll.u32 %v10237_v41, 16 }
 0x8d9   : > { %v10277_v7 = vrot.slane %v10275_v52, 1  ;;  %v10287_v52 = vshrl.u32 %v10236_v57, 16 }
 0x8da   : > { %v10293_v43 = vrot.slane %v10291_v36, 1 }
 0x8db   : > { %v10281_v32 = vor.u32 %v10279_v63, %v10277_v7  ;;  %v10278_v2 = vsel %vm1483_vm0, %v10273_v3, %v10277_v7  ;;  %v10307_v63 = vshll.u32 %v10239_v5, 16  ;;  %v18800_v3 = vld [vmem:[#allocation16 + $0x78] sm:$0xff]  }
 0x8dd   : > { %17021 = vmatmul.mubr.msk.bf16.gmra.mrb[56].mxu1 %vm869_vm2, %v9966_v23  ;;  %v10285_v23 = vrot.slane %v10283_v44, 1  ;;  %v10240_v44 = vmul.bf16 %v21978_v18, %v23428_v30  ;;  %v10309_v57 = vrot.slane %v10307_v63, 1 }
 0x8de   : > { %17024 = vmatprep.mubr.msk.bf16.mxu1 %vm869_vm2, %v9974_v60  ;;  %v10238_v60 = vmul.bf16 %v21968_v48, %v23426_v28 }
 0x8df   : > { %v10286_v27 = vsel %vm1483_vm0, %v10281_v32, %v10285_v23  ;;  %v10289_v7 = vor.u32 %v10287_v52, %v10285_v23  ;;  %v10315_v36 = vshll.u32 %v10240_v44, 16  ;;  %v22119_v23 = vld [vmem:[#allocation16 + $0x80] sm:$0xff]   ;;  %v10319_v63 = vshrl.u32 %v10240_v44, 16 }
 0x8e0   : > { %v10299_v37 = vshll.u32 %v10238_v60, 16  ;;  %v10245_v44 = vmul.bf16 %v22005_v35, %v23447_v17 }
 0x8e5   : > { %17025 = vmatmul.mubr.msk.bf16.gmra.mrb[60].mxu1 %vm869_vm2, %v9982_v61  ;;  %v10295_v61 = vshrl.u32 %v10237_v41, 16  ;;  %v10241_v41 = vmul.bf16 %v21983_v11, %v23429_v9 }
 0x8e6   : > { %17036 = vmatprep.mubr.msk.bf16.mxu1 %vm869_vm2, %v10270_v31  ;;  %v10301_v31 = vrot.slane %v10299_v37, 1  ;;  %v10242_v37 = vmul.bf16 %v21988_v13, %v23430_v21 }
 0x8e7   : > { %v10297_v38 = vor.u32 %v10295_v61, %v10293_v43  ;;  %v10323_v61 = vshll.u32 %v10241_v41, 16 }
 0x8e9   : > { %v10302_v32 = vsel %vm1483_vm0, %v10297_v38, %v10301_v31  ;;  %v10331_v38 = vshll.u32 %v10242_v37, 16 }
 0x8ed   : > { %17037 = vmatmul.mubr.msk.bf16.vlgmr.msra.gmra.mrb[32].mxu1 %vm869_vm2, %v10278_v2  ;;  %v10311_v2 = vshrl.u32 %v10239_v5, 16  ;;  %v10243_v5 = vmul.bf16 %v21993_v14, %v23431_v6 }
 0x8ee   : > { %17040 = vmatprep.mubr.msk.bf16.mxu1 %vm869_vm2, %v10286_v27  ;;  %17069 = vmatpush3.bf16.msra.mxu1 %v22052_v51  ;;  %v10294_v51 = vsel %vm1483_vm0, %v10289_v7, %v10293_v43  ;;  %v10317_v27 = vrot.slane %v10315_v36, 1 }
 0x8ef   : > { %17070 = vmatprep.subr.bf16.mxu1 %v18798_v25  ;;  %v10313_v52 = vor.u32 %v10311_v2, %v10309_v57 }
 0x8f1   : > { %v10318_v7 = vsel %vm1483_vm0, %v10313_v52, %v10317_v27 }
 0x8f2   : > { %17071 = vmatpush3.bf16.msra.mxu1 %v18798_v25  ;;  %v10303_v25 = vshrl.u32 %v10238_v60, 16  ;;  %v10325_v60 = vrot.slane %v10323_v61, 1  ;;  %v10343_v61 = vshrl.u32 %v10243_v5, 16 }
 0x8f3   : > { %17072 = vmatprep.subr.bf16.mxu1 %v18799_v24 }
 0x8f4   : > { %v10305_v43 = vor.u32 %v10303_v25, %v10301_v31  ;;  %v10327_v31 = vshrl.u32 %v10241_v41, 16  ;;  %v10335_v41 = vshrl.u32 %v10242_v37, 16  ;;  %v10247_v37 = vmul.bf16 %v22020_v56, %v23449_v22 }
 0x8f5   : > { %17041 = vmatmul.mubr.msk.bf16.gmra.mrb[36].mxu1 %vm869_vm2, %v10294_v51  ;;  %v10244_v51 = vmul.bf16 %v21998_v55, %v23432_v47 }
 0x8f6   : > { %17044 = vmatprep.mubr.msk.bf16.mxu1 %vm869_vm2, %v10302_v32  ;;  %17073 = vmatpush3.bf16.msra.mxu1 %v18799_v24  ;;  %v10310_v24 = vsel %vm1483_vm0, %v10305_v43, %v10309_v57  ;;  %v10321_v32 = vor.u32 %v10319_v63, %v10317_v27  ;;  %v10329_v36 = vor.u32 %v10327_v31, %v10325_v60  ;;  %v10339_v57 = vshll.u32 %v10243_v5, 16 }
 0x8f7   : > { %17074 = vmatprep.subr.bf16.mxu1 %v18800_v3  ;;  %v10347_v43 = vshll.u32 %v10244_v51, 16  ;;  %v10246_v27 = vmul.bf16 %v22013_v12, %v23448_v20  ;;  %v10351_v5 = vshrl.u32 %v10244_v51, 16 }
 0x8f8   : > { %v10326_v25 = vsel %vm1483_vm0, %v10321_v32, %v10325_v60  ;;  %v10341_v52 = vrot.slane %v10339_v57, 1  ;;  %v10355_v60 = vshll.u32 %v10245_v44, 16  ;;  %v10359_v57 = vshrl.u32 %v10245_v44, 16 }
 0x8f9   : > { %v10363_v32 = vshll.u32 %v10246_v27, 16  ;;  %v10367_v44 = vshrl.u32 %v10246_v27, 16 }
 0x8fa   : > { %17075 = vmatpush3.bf16.msra.mxu1 %v18800_v3  ;;  %v10333_v3 = vrot.slane %v10331_v38, 1  ;;  %v10345_v38 = vor.u32 %v10343_v61, %v10341_v52 }
 0x8fb   : > { %17108 = vmatprep.subr.bf16.mxu1 %v22119_v23 }
 0x8fc   : > { %v10334_v2 = vsel %vm1483_vm0, %v10329_v36, %v10333_v3  ;;  %v10357_v36 = vrot.slane %v10355_v60, 1  ;;  %v10659_v60 = vmul.bf16 %v21936_v15, %v23488_v62  ;;  %v10660_v15 = vmul.bf16 %v21944_v53, %v23490_v34 }
 0x8fd   : > { %17045 = vmatmul.mubr.msk.bf16.gmra.mrb[40].mxu1 %vm869_vm2, %v10310_v24  ;;  %v10349_v24 = vrot.slane %v10347_v43, 1 }
 0x8fe   : > { %17048 = vmatprep.mubr.msk.bf16.mxu1 %vm869_vm2, %v10318_v7  ;;  %v10337_v7 = vor.u32 %v10335_v41, %v10333_v3  ;;  %v10248_v3 = vmul.bf16 %v22027_v50, %v23450_v39  ;;  %v10361_v43 = vor.u32 %v10359_v57, %v10357_v36 }
 0x8ff   : > { %v10350_v31 = vsel %vm1483_vm0, %v10345_v38, %v10349_v24  ;;  %v10232_v38 = vld [vmem:[#allocation3 + $0x88] sm:$0x1] }
 0x900   : > { %v10342_v63 = vsel %vm1483_vm0, %v10337_v7, %v10341_v52  ;;  %v10371_v52 = vshll.u32 %v10247_v37, 16  ;;  %v10379_v7 = vshll.u32 %v10248_v3, 16 }
 0x902   : > { %v10373_v51 = vrot.slane %v10371_v52, 1 }
 0x905   : > { %17049 = vmatmul.mubr.msk.bf16.gmra.mrb[44].mxu1 %vm869_vm2, %v10326_v25  ;;  %v10365_v25 = vrot.slane %v10363_v32, 1  ;;  %v10381_v32 = vrot.slane %v10379_v7, 1  ;;  %v10383_v7 = vshrl.u32 %v10248_v3, 16  ;;  %v10663_v3 = vmul.bf16 %v21968_v48, %v23493_v19 }
 0x906   : > { %17052 = vmatprep.mubr.msk.bf16.mxu1 %vm869_vm2, %v10334_v2  ;;  %v10353_v2 = vor.u32 %v10351_v5, %v10349_v24  ;;  %v10656_v24 = vld [vmem:[#allocation3 + $0x8] sm:$0x80]  ;;  %v10689_v5 = vshrl.u32 %v10659_v60, 16 }
 0x907   : > { %v10366_v61 = vsel %vm1483_vm0, %v10361_v43, %v10365_v25 }
 0x908   : > { %v10358_v41 = vsel %vm1483_vm0, %v10353_v2, %v10357_v36  ;;  %v10369_v36 = vor.u32 %v10367_v44, %v10365_v25  ;;  %v10658_v2 = vmul.bf16 %v10656_v24, %v23489_v16  ;;  %v10691_v52 = vrot.slane %v10689_v5, 7 }
 0x909   : > { %v10697_v44 = vshrl.u32 %v10660_v15, 16  ;;  %v10385_v24 = vor.u32 %v10383_v7, %v10381_v32  ;;  %v10662_v5 = vmul.bf16 %v21960_v33, %v23492_v49  ;;  %v10664_v7 = vmul.bf16 %v21973_v46, %v23494_v58 }
 0x90a   : > { %v10374_v43 = vsel %vm1483_vm0, %v10369_v36, %v10373_v51  ;;  %v10685_v25 = vshrl.u32 %v10658_v2, 16 }
 0x90b   : > { %v10699_v36 = vrot.slane %v10697_v44, 7  ;;  %v10724_v44 = vshll.u32 %v10663_v3, 16 }
 0x90d   : > { %17053 = vmatmul.mubr.msk.bf16.gmra.mrb[48].mxu1 %vm869_vm2, %v10342_v63  ;;  %v10249_v63 = vmul.bf16 %v10232_v38, %v23451_v26 }
 0x90e   : > { %17056 = vmatprep.mubr.msk.bf16.mxu1 %vm869_vm2, %v10350_v31  ;;  %v10375_v31 = vshrl.u32 %v10247_v37, 16  ;;  %v10661_v37 = vmul.bf16 %v21951_v10, %v23491_v59 }
 0x910   : > { %v10377_v57 = vor.u32 %v10375_v31, %v10373_v51  ;;  %v10687_v31 = vrot.slane %v10685_v25, 7  ;;  %v10708_v2 = vshll.u32 %v10661_v37, 16  ;;  %v18802_v25 = vld [vmem:[#allocation16 + $0x88] sm:$0xff]  }
 0x912   : > { %v10382_v27 = vsel %vm1483_vm0, %v10377_v57, %v10381_v32 }
 0x915   : > { %17057 = vmatmul.mubr.msk.bf16.gmra.mrb[52].mxu1 %vm869_vm2, %v10358_v41  ;;  %v10387_v41 = vshll.u32 %v10249_v63, 16  ;;  %v10705_v63 = vshrl.u32 %v10661_v37, 16  ;;  %v10716_v37 = vshll.u32 %v10662_v5, 16 }
 0x916   : > { %17060 = vmatprep.mubr.msk.bf16.mxu1 %vm869_vm2, %v10366_v61  ;;  %v10692_v61 = vshll.u32 %v10659_v60, 16  ;;  %v10700_v60 = vshll.u32 %v10660_v15, 16  ;;  %v10665_v15 = vmul.bf16 %v21978_v18, %v23495_v42 }
 0x917   : > { %v10389_v38 = vrot.slane %v10387_v41, 1  ;;  %v10707_v57 = vrot.slane %v10705_v63, 7  ;;  %v10729_v63 = vshrl.u32 %v10664_v7, 16 }
 0x918   : > { %v10694_v51 = vor.u32 %v10692_v61, %v10691_v52  ;;  %v10702_v32 = vor.u32 %v10700_v60, %v10699_v36  ;;  %v10666_v60 = vmul.bf16 %v21983_v11, %v23496_v1 }
 0x919   : > { %v10390_v53 = vsel %vm1483_vm0, %v10385_v24, %v10389_v38  ;;  %v10710_v41 = vor.u32 %v10708_v2, %v10707_v57  ;;  %v10732_v2 = vshll.u32 %v10664_v7, 16 }
 0x91a   : > { %v10695_v10 = vsel %vm1887_vm1, %v10687_v31, %v10694_v51  ;;  %v10703_v61 = vsel %vm1887_vm1, %v10691_v52, %v10702_v32  ;;  %v18803_v52 = vld [vmem:[#allocation16 + $0x90] sm:$0xff]   ;;  %v10737_v31 = vshrl.u32 %v10665_v15, 16  ;;  %v10740_v32 = vshll.u32 %v10665_v15, 16 }
 0x91b   : > { %v10711_v38 = vsel %vm1887_vm1, %v10699_v36, %v10710_v41  ;;  %v10745_v41 = vshrl.u32 %v10666_v60, 16 }
 0x91d   : > { %17061 = vmatmul.mubr.msk.bf16.gmra.mrb[56].mxu1 %vm869_vm2, %v10374_v43  ;;  %v10713_v43 = vshrl.u32 %v10662_v5, 16  ;;  %v10739_v5 = vrot.slane %v10737_v31, 7 }
 0x91e   : > { %17064 = vmatprep.mubr.msk.bf16.mxu1 %vm869_vm2, %v10382_v27  ;;  %v10721_v27 = vshrl.u32 %v10663_v3, 16  ;;  %v10667_v3 = vmul.bf16 %v21988_v13, %v23497_v8 }
 0x91f   : > { %v10715_v33 = vrot.slane %v10713_v43, 7  ;;  %v22189_v43 = vld [vmem:[#allocation16 + $0xa0] sm:$0xff]  }
 0x920   : > { %v10723_v48 = vrot.slane %v10721_v27, 7  ;;  %v10742_v27 = vor.u32 %v10740_v32, %v10739_v5 }
 0x921   : > { %v10718_v51 = vor.u32 %v10716_v37, %v10715_v33  ;;  %v23509_v37 = vld [vmem:[#allocation64_spill] sm:$0xff] }
 0x922   : > { %v10726_v24 = vor.u32 %v10724_v44, %v10723_v48  ;;  %v10669_v44 = vmul.bf16 %v21998_v55, %v23509_v37 }
 0x923   : > { %v10719_v36 = vsel %vm1887_vm1, %v10707_v57, %v10718_v51  ;;  %v10756_v51 = vshll.u32 %v10667_v3, 16 }
 0x925   : > { %17065 = vmatmul.mubr.msk.bf16.gmra.mrb[60].mxu1 %vm869_vm2, %v10390_v53  ;;  %v18804_v53 = vld [vmem:[#allocation16 + $0x98] sm:$0xff]  }
 0x926   : > { %17076 = vmatprep.mubr.msk.bf16.mxu1 %vm869_vm2, %v10695_v10  ;;  %v10731_v10 = vrot.slane %v10729_v63, 7 }
 0x928   : > { %v10734_v57 = vor.u32 %v10732_v2, %v10731_v10  ;;  %v10743_v7 = vsel %vm1887_vm1, %v10731_v10, %v10742_v27 }
 0x92d   : > { %17077 = vmatmul.mubr.msk.bf16.vlgmr.msra.gmra.mrb[32].mxu1 %vm869_vm2, %v10703_v61  ;;  %v10735_v61 = vsel %vm1887_vm1, %v10723_v48, %v10734_v57  ;;  %v10769_v48 = vshrl.u32 %v10669_v44, 16  ;;  %v23511_v57 = vld [vmem:[#allocation66_spill] sm:$0xff] }
 0x92e   : > { %17080 = vmatprep.mubr.msk.bf16.mxu1 %vm869_vm2, %v10711_v38  ;;  %17109 = vmatpush3.bf16.msra.mxu1 %v22119_v23  ;;  %v10727_v23 = vsel %vm1887_vm1, %v10715_v33, %v10726_v24  ;;  %v10747_v33 = vrot.slane %v10745_v41, 7  ;;  %v10668_v38 = vmul.bf16 %v21993_v14, %v23498_v40  ;;  %v10671_v41 = vmul.bf16 %v22013_v12, %v23511_v57 }
 0x92f   : > { %17110 = vmatprep.subr.bf16.mxu1 %v18802_v25  ;;  %v10771_v32 = vrot.slane %v10769_v48, 7 }
 0x930   : > { %v10761_v24 = vshrl.u32 %v10668_v38, 16 }
 0x932   : > { %17111 = vmatpush3.bf16.msra.mxu1 %v18802_v25  ;;  %v10753_v25 = vshrl.u32 %v10667_v3, 16  ;;  %v10772_v3 = vshll.u32 %v10669_v44, 16  ;;  %v10788_v44 = vshll.u32 %v10671_v41, 16 }
 0x933   : > { %17112 = vmatprep.subr.bf16.mxu1 %v18803_v52 }
 0x934   : > { %v10755_v15 = vrot.slane %v10753_v25, 7 }
 0x935   : > { %17081 = vmatmul.mubr.msk.bf16.gmra.mrb[36].mxu1 %vm869_vm2, %v10719_v36  ;;  %v10763_v36 = vrot.slane %v10761_v24, 7 }
 0x936   : > { %17084 = vmatprep.mubr.msk.bf16.mxu1 %vm869_vm2, %v10727_v23  ;;  %17113 = vmatpush3.bf16.msra.mxu1 %v18803_v52  ;;  %v10748_v52 = vshll.u32 %v10666_v60, 16  ;;  %v10758_v31 = vor.u32 %v10756_v51, %v10755_v15  ;;  %v23510_v23 = vld [vmem:[#allocation65_spill] sm:$0xff]  ;;  %v10764_v60 = vshll.u32 %v10668_v38, 16  ;;  %v23512_v51 = vld [vmem:[#allocation67_spill] sm:$0xff] }
 0x937   : > { %17114 = vmatprep.subr.bf16.mxu1 %v18804_v53  ;;  %v10670_v2 = vmul.bf16 %v22005_v35, %v23510_v23 }
 0x938   : > { %v10750_v63 = vor.u32 %v10748_v52, %v10747_v33  ;;  %v10759_v10 = vsel %vm1887_vm1, %v10747_v33, %v10758_v31  ;;  %v10766_v27 = vor.u32 %v10764_v60, %v10763_v36  ;;  %v23513_v31 = vld [vmem:[#allocation68_spill] sm:$0xff] }
 0x939   : > { %v10777_v25 = vshrl.u32 %v10670_v2, 16  ;;  %v10673_v48 = vmul.bf16 %v22027_v50, %v23513_v31  ;;  %v10780_v38 = vshll.u32 %v10670_v2, 16 }
 0x93a   : > { %17115 = vmatpush3.bf16.msra.mxu1 %v18804_v53  ;;  %v10751_v53 = vsel %vm1887_vm1, %v10739_v5, %v10750_v63  ;;  %v10785_v5 = vshrl.u32 %v10671_v41, 16  ;;  %v10672_v63 = vmul.bf16 %v22020_v56, %v23512_v51 }
 0x93b   : > { %17148 = vmatprep.subr.bf16.mxu1 %v22189_v43  ;;  %v10779_v52 = vrot.slane %v10777_v25, 7  ;;  %v10804_v41 = vshll.u32 %v10673_v48, 16 }
 0x93c   : > { %v10787_v24 = vrot.slane %v10785_v5, 7  ;;  %v10796_v2 = vshll.u32 %v10672_v63, 16 }
 0x93d   : > { %17085 = vmatmul.mubr.msk.bf16.gmra.mrb[40].mxu1 %vm869_vm2, %v10735_v61  ;;  %v10774_v61 = vor.u32 %v10772_v3, %v10771_v32  ;;  %v22216_v3 = vld [vmem:[#allocation3 + $0x88] sm:$0xff] }
 0x93e   : > { %17088 = vmatprep.mubr.msk.bf16.mxu1 %vm869_vm2, %v10743_v7  ;;  %v10767_v7 = vsel %vm1887_vm1, %v10755_v15, %v10766_v27  ;;  %v10790_v60 = vor.u32 %v10788_v44, %v10787_v24  ;;  %v10801_v15 = vshrl.u32 %v10673_v48, 16  ;;  %v18806_v48 = vld [vmem:[#allocation16 + $0xa8] sm:$0xff]  }
 0x93f   : > { %v10775_v33 = vsel %vm1887_vm1, %v10763_v36, %v10774_v61 }
 0x940   : > { %v10791_v61 = vsel %vm1887_vm1, %v10779_v52, %v10790_v60  ;;  %v10803_v5 = vrot.slane %v10801_v15, 7  ;;  %v18994_v60 = vld [vmem:[#allocation3 + $0x18] sm:$0xff]  ;;  %v18996_v15 = vld [vmem:[#allocation3 + $0x28] sm:$0xff] }
 0x942   : > { %v10806_v44 = vor.u32 %v10804_v41, %v10803_v5 }
 0x945   : > { %17089 = vmatmul.mubr.msk.bf16.gmra.mrb[44].mxu1 %vm869_vm2, %v10751_v53  ;;  %v10782_v53 = vor.u32 %v10780_v38, %v10779_v52 }
 0x946   : > { %17092 = vmatprep.mubr.msk.bf16.mxu1 %vm869_vm2, %v10759_v10  ;;  %v10793_v10 = vshrl.u32 %v10672_v63, 16  ;;  %v18993_v63 = vld [vmem:[#allocation3 + $0x10] sm:$0xff] }
 0x947   : > { %v10783_v27 = vsel %vm1887_vm1, %v10771_v32, %v10782_v53 }
 0x948   : > { %v10795_v25 = vrot.slane %v10793_v10, 7 }
 0x94a   : > { %v10807_v32 = vsel %vm1887_vm1, %v10795_v25, %v10806_v44  ;;  %v22269_v44 = vld [vmem:[#allocation3 + $0x30] sm:$0xff] }
 0x94d   : > { %17093 = vmatmul.mubr.msk.bf16.gmra.mrb[48].mxu1 %vm869_vm2, %v10767_v7  ;;  %v23514_v7 = vld [vmem:[#allocation69_spill] sm:$0xff] }
 0x94e   : > { %17096 = vmatprep.mubr.msk.bf16.mxu1 %vm869_vm2, %v10775_v33  ;;  %v10674_v36 = vmul.bf16 %v22216_v3, %v23514_v7  ;;  %v10798_v33 = vor.u32 %v10796_v2, %v10795_v25  ;;  %v18809_v25 = vld [vmem:[#allocation16 + $0xc0] sm:$0xff]  }
 0x950   : > { %v10809_v38 = vshrl.u32 %v10674_v36, 16  ;;  %v10799_v31 = vsel %vm1887_vm1, %v10787_v24, %v10798_v33  ;;  %v10812_v53 = vshll.u32 %v10674_v36, 16  ;;  %v18995_v24 = vld [vmem:[#allocation3 + $0x20] sm:$0xff] }
 0x952   : > { %v10811_v51 = vrot.slane %v10809_v38, 7 }
 0x954   : > { %v10814_v10 = vor.u32 %v10812_v53, %v10811_v51  ;;  %v18808_v51 = vld [vmem:[#allocation16 + $0xb8] sm:$0xff]  }
 0x955   : > { %17097 = vmatmul.mubr.msk.bf16.gmra.mrb[52].mxu1 %vm869_vm2, %v10783_v27  ;;  %v18997_v27 = vld [vmem:[#allocation3 + $0x30] sm:$0xff] }
 0x956   : > { %17100 = vmatprep.mubr.msk.bf16.mxu1 %vm869_vm2, %v10791_v61  ;;  %v10815_v52 = vsel %vm1887_vm1, %v10803_v5, %v10814_v10  ;;  %v22257_v61 = vld [vmem:[#allocation3 + $0x20] sm:$0xff]  ;;  %v11376_v10 = vmul.bf16 %v22269_v44, %v23425_v4 }
 0x95d   : > { %17101 = vmatmul.mubr.msk.bf16.gmra.mrb[56].mxu1 %vm869_vm2, %v10799_v31  ;;  %v18807_v31 = vld [vmem:[#allocation16 + $0xb0] sm:$0xff]  }
 0x95e   : > { %17104 = vmatprep.mubr.msk.bf16.mxu1 %vm869_vm2, %v10807_v32  ;;  %v22275_v32 = vld [vmem:[#allocation3 + $0x38] sm:$0xff] }
 0x965   : > { %17105 = vmatmul.mubr.msk.bf16.gmra.mrb[60].mxu1 %vm869_vm2, %v10815_v52 }
 0x966   : > { %17116 = vmatprep.mubr.msk.bf16.mxu1 %vm869_vm2, %v18993_v63 }
 0x96d   : > { %17117 = vmatmul.mubr.msk.bf16.vlgmr.msra.gmra.mrb[32].mxu1 %vm869_vm2, %v18994_v60  ;;  %v11377_v60 = vmul.bf16 %v22275_v32, %v23426_v28 }
 0x96e   : > { %17120 = vmatprep.mubr.msk.bf16.mxu1 %vm869_vm2, %v18995_v24  ;;  %17149 = vmatpush3.bf16.msra.mxu1 %v22189_v43  ;;  %v11355_v43 = vld [vmem:[#allocation3 + $0x10] sm:$0xff] }
 0x96f   : > { %17150 = vmatprep.subr.bf16.mxu1 %v18806_v48 }
 0x972   : > { %17151 = vmatpush3.bf16.msra.mxu1 %v18806_v48 }
 0x973   : > { %17152 = vmatprep.subr.bf16.mxu1 %v18807_v31 }
 0x975   : > { %17121 = vmatmul.mubr.msk.bf16.gmra.mrb[36].mxu1 %vm869_vm2, %v18996_v15  ;;  %v18810_v15 = vld [vmem:[#allocation16 + $0xc8] sm:$0xff]  }
 0x976   : > { %17124 = vmatprep.mubr.msk.bf16.mxu1 %vm869_vm2, %v18997_v27  ;;  %17153 = vmatpush3.bf16.msra.mxu1 %v18807_v31 }
 0x977   : > { %17154 = vmatprep.subr.bf16.mxu1 %v18808_v51 }
 0x97a   : > { %17155 = vmatpush3.bf16.msra.mxu1 %v18808_v51  ;;  %v11430_v51 = vshll.u32 %v11376_v10, 16 }
 0x97b   : > { %17188 = vmatprep.subr.bf16.mxu1 %v18809_v25 }
 0x97d   : > { %17125 = vmatmul.mubr.msk.bf16.gmra.mrb[40].mxu1 %vm869_vm2, %v21973_v46  ;;  %v22252_v46 = vld [vmem:[#allocation3 + $0x18] sm:$0xff] }
 0x97e   : > { %17128 = vmatprep.mubr.msk.bf16.mxu1 %vm869_vm2, %v21978_v18  ;;  %v11372_v18 = vmul.bf16 %v11355_v43, %v23505_v0  ;;  %v22282_v43 = vld [vmem:[#allocation3 + $0x40] sm:$0xff] }
 0x980   : > { %v11401_v36 = vshll.u32 %v11372_v18, 16  ;;  %v11399_v5 = vshrl.u32 %v11372_v18, 16 }
 0x985   : > { %17129 = vmatmul.mubr.msk.bf16.gmra.mrb[44].mxu1 %vm869_vm2, %v21983_v11  ;;  %v23515_v11 = vld [vmem:[#allocation71_spill] sm:$0xff] }
 0x986   : > { %17132 = vmatprep.mubr.msk.bf16.mxu1 %vm869_vm2, %v21988_v13  ;;  %v11373_v13 = vmul.bf16 %v22252_v46, %v23515_v11 }
 0x988   : > { %v11410_v52 = vshrl.u32 %v11373_v13, 16 }
 0x98d   : > { %17133 = vmatmul.mubr.msk.bf16.gmra.mrb[48].mxu1 %vm869_vm2, %v21993_v14  ;;  %v11406_v14 = vshll.u32 %v11373_v13, 16  ;;  %v22287_v13 = vld [vmem:[#allocation3 + $0x48] sm:$0xff] }
 0x98e   : > { %17136 = vmatprep.mubr.msk.bf16.mxu1 %vm869_vm2, %v21998_v55  ;;  %v22263_v55 = vld [vmem:[#allocation3 + $0x28] sm:$0xff] }
 0x98f   : > { %v11408_v2 = vrot.slane %v11406_v14, 1  ;;  %v11375_v41 = vmul.bf16 %v22263_v55, %v23508_v54  ;;  %v11432_v14 = vrot.slane %v11430_v51, 1  ;;  %v22303_v51 = vld [vmem:[#allocation16 + $0xe0] sm:$0xff]  }
 0x991   : > { %v11412_v24 = vor.u32 %v11410_v52, %v11408_v2 }
 0x995   : > { %17137 = vmatmul.mubr.msk.bf16.gmra.mrb[52].mxu1 %vm869_vm2, %v22005_v35  ;;  %v11374_v35 = vmul.bf16 %v22257_v61, %v23507_v45 }
 0x996   : > { %17140 = vmatprep.mubr.msk.bf16.mxu1 %vm869_vm2, %v22013_v12  ;;  %v11403_v12 = vrot.slane %v11401_v36, 1  ;;  %v11438_v36 = vshll.u32 %v11377_v60, 16 }
 0x997   : > { %v11414_v38 = vshll.u32 %v11374_v35, 16  ;;  %v11418_v63 = vshrl.u32 %v11374_v35, 16  ;;  %v18811_v35 = vld [vmem:[#allocation16 + $0xd0] sm:$0xff]  }
 0x998   : > { %v11404_v33 = vor.u32 %v11403_v12, %v11399_v5  ;;  %v11378_v12 = vmul.bf16 %v22282_v43, %v23427_v29  ;;  %v11426_v5 = vshrl.u32 %v11375_v41, 16 }
 0x999   : > { %v11416_v53 = vrot.slane %v11414_v38, 1  ;;  %v11379_v38 = vmul.bf16 %v22287_v13, %v23428_v30 }
 0x99b   : > { %v11420_v31 = vor.u32 %v11418_v63, %v11416_v53  ;;  %v11417_v27 = vsel %vm1483_vm0, %v11412_v24, %v11416_v53  ;;  %v11446_v53 = vshll.u32 %v11378_v12, 16  ;;  %v22294_v63 = vld [vmem:[#allocation3 + $0x50] sm:$0xff] }
 0x99d   : > { %17141 = vmatmul.mubr.msk.bf16.gmra.mrb[56].mxu1 %vm869_vm2, %v22020_v56  ;;  %v11409_v56 = vsel %vm1483_vm0, %v11404_v33, %v11408_v2  ;;  %v11434_v2 = vshrl.u32 %v11376_v10, 16  ;;  %v11440_v33 = vrot.slane %v11438_v36, 1  ;;  %v22299_v10 = vld [vmem:[#allocation3 + $0x58] sm:$0xff] }
 0x99e   : > { %17144 = vmatprep.mubr.msk.bf16.mxu1 %vm869_vm2, %v22027_v50  ;;  %v11422_v50 = vshll.u32 %v11375_v41, 16  ;;  %v11454_v41 = vshll.u32 %v11379_v38, 16  ;;  %v11381_v36 = vmul.bf16 %v22299_v10, %v23430_v21 }
 0x9a0   : > { %v11424_v48 = vrot.slane %v11422_v50, 1  ;;  %v11436_v50 = vor.u32 %v11434_v2, %v11432_v14 }
 0x9a2   : > { %v11425_v18 = vsel %vm1483_vm0, %v11420_v31, %v11424_v48  ;;  %v11441_v24 = vsel %vm1483_vm0, %v11436_v50, %v11440_v33  ;;  %v11380_v31 = vmul.bf16 %v22294_v63, %v23429_v9 }
 0x9a4   : > { %v11462_v2 = vshll.u32 %v11380_v31, 16 }
 0x9a5   : > { %17145 = vmatmul.mubr.msk.bf16.gmra.mrb[60].mxu1 %vm869_vm2, %v22216_v3 }
 0x9a6   : > { %17156 = vmatprep.mubr.msk.bf16.mxu1 %vm869_vm2, %v11409_v56  ;;  %v11428_v56 = vor.u32 %v11426_v5, %v11424_v48  ;;  %v11448_v48 = vrot.slane %v11446_v53, 1  ;;  %v11464_v53 = vrot.slane %v11462_v2, 1 }
 0x9a8   : > { %v11433_v52 = vsel %vm1483_vm0, %v11428_v56, %v11432_v14  ;;  %v22309_v56 = vld [vmem:[#allocation3 + $0x60] sm:$0xff] }
 0x9ad   : > { %17157 = vmatmul.mubr.msk.bf16.vlgmr.msra.gmra.mrb[32].mxu1 %vm869_vm2, %v11417_v27  ;;  %v11450_v27 = vshrl.u32 %v11378_v12, 16  ;;  %v22314_v12 = vld [vmem:[#allocation3 + $0x68] sm:$0xff] }
 0x9ae   : > { %17160 = vmatprep.mubr.msk.bf16.mxu1 %vm869_vm2, %v11425_v18  ;;  %17189 = vmatpush3.bf16.msra.mxu1 %v18809_v25  ;;  %v18812_v25 = vld [vmem:[#allocation16 + $0xd8] sm:$0xff]   ;;  %v11456_v18 = vrot.slane %v11454_v41, 1  ;;  %v11383_v41 = vmul.bf16 %v22314_v12, %v23432_v47 }
 0x9af   : > { %17190 = vmatprep.subr.bf16.mxu1 %v18810_v15  ;;  %v11452_v5 = vor.u32 %v11450_v27, %v11448_v48  ;;  %v22333_v47 = vld [vmem:[#allocation3 + $0x80] sm:$0xff] }
 0x9b1   : > { %v11457_v50 = vsel %vm1483_vm0, %v11452_v5, %v11456_v18  ;;  %v22321_v5 = vld [vmem:[#allocation3 + $0x70] sm:$0xff] }
 0x9b2   : > { %17191 = vmatpush3.bf16.msra.mxu1 %v18810_v15  ;;  %v11442_v15 = vshrl.u32 %v11377_v60, 16  ;;  %v11470_v60 = vshll.u32 %v11381_v36, 16 }
 0x9b3   : > { %17192 = vmatprep.subr.bf16.mxu1 %v18811_v35 }
 0x9b4   : > { %v11444_v14 = vor.u32 %v11442_v15, %v11440_v33  ;;  %v11382_v33 = vmul.bf16 %v22309_v56, %v23431_v6 }
 0x9b5   : > { %17161 = vmatmul.mubr.msk.bf16.gmra.mrb[36].mxu1 %vm869_vm2, %v11433_v52  ;;  %v11466_v52 = vshrl.u32 %v11380_v31, 16 }
 0x9b6   : > { %17164 = vmatprep.mubr.msk.bf16.mxu1 %vm869_vm2, %v11441_v24  ;;  %17193 = vmatpush3.bf16.msra.mxu1 %v18811_v35  ;;  %v11449_v35 = vsel %vm1483_vm0, %v11444_v14, %v11448_v48  ;;  %v11472_v24 = vrot.slane %v11470_v60, 1  ;;  %v11478_v27 = vshll.u32 %v11382_v33, 16  ;;  %v11482_v60 = vshrl.u32 %v11382_v33, 16 }
 0x9b7   : > { %17194 = vmatprep.subr.bf16.mxu1 %v18812_v25  ;;  %v11468_v15 = vor.u32 %v11466_v52, %v11464_v53  ;;  %v11386_v33 = vmul.bf16 %v22333_v47, %v23449_v22  ;;  %v11795_v22 = vld [vmem:[#allocation3 + $0x10] sm:$0x80] }
 0x9b8   : > { %v11480_v31 = vrot.slane %v11478_v27, 1 }
 0x9b9   : > { %v11473_v2 = vsel %vm1483_vm0, %v11468_v15, %v11472_v24 }
 0x9ba   : > { %17195 = vmatpush3.bf16.msra.mxu1 %v18812_v25  ;;  %v11458_v25 = vshrl.u32 %v11379_v38, 16  ;;  %v22326_v38 = vld [vmem:[#allocation3 + $0x78] sm:$0xff] }
 0x9bb   : > { %17228 = vmatprep.subr.bf16.mxu1 %v22303_v51 }
 0x9bc   : > { %v11460_v48 = vor.u32 %v11458_v25, %v11456_v18  ;;  %v11474_v18 = vshrl.u32 %v11381_v36, 16 }
 0x9bd   : > { %17165 = vmatmul.mubr.msk.bf16.gmra.mrb[40].mxu1 %vm869_vm2, %v11449_v35  ;;  %v11486_v35 = vshll.u32 %v11383_v41, 16 }
 0x9be   : > { %17168 = vmatprep.mubr.msk.bf16.mxu1 %vm869_vm2, %v11457_v50  ;;  %v11465_v14 = vsel %vm1483_vm0, %v11460_v48, %v11464_v53  ;;  %v11384_v50 = vmul.bf16 %v22321_v5, %v23447_v17  ;;  %v11385_v53 = vmul.bf16 %v22326_v38, %v23448_v20  ;;  %v11476_v52 = vor.u32 %v11474_v18, %v11472_v24 }
 0x9bf   : > { %v11488_v25 = vrot.slane %v11486_v35, 1  ;;  %v11484_v48 = vor.u32 %v11482_v60, %v11480_v31  ;;  %v11490_v35 = vshrl.u32 %v11383_v41, 16  ;;  %v11387_v18 = vmul.bf16 %v22216_v3, %v23450_v39 }
 0x9c0   : > { %v11481_v15 = vsel %vm1483_vm0, %v11476_v52, %v11480_v31  ;;  %v11498_v20 = vshrl.u32 %v11384_v50, 16  ;;  %v11510_v52 = vshll.u32 %v11386_v33, 16  ;;  %v11514_v39 = vshrl.u32 %v11386_v33, 16 }
 0x9c1   : > { %v11489_v27 = vsel %vm1483_vm0, %v11484_v48, %v11488_v25  ;;  %v11492_v31 = vor.u32 %v11490_v35, %v11488_v25  ;;  %v11800_v33 = vmul.bf16 %v22263_v55, %v23491_v59 }
 0x9c2   : > { %v11512_v41 = vrot.slane %v11510_v52, 1 }
 0x9c5   : > { %17169 = vmatmul.mubr.msk.bf16.gmra.mrb[44].mxu1 %vm869_vm2, %v11465_v14  ;;  %v11494_v14 = vshll.u32 %v11384_v50, 16  ;;  %v11371_v50 = vld [vmem:[#allocation3 + $0x90] sm:$0x1] }
 0x9c6   : > { %17172 = vmatprep.mubr.msk.bf16.mxu1 %vm869_vm2, %v11473_v2  ;;  %v11502_v2 = vshll.u32 %v11385_v53, 16 }
 0x9c7   : > { %v11496_v36 = vrot.slane %v11494_v14, 1  ;;  %v11798_v14 = vmul.bf16 %v22252_v46, %v23488_v62  ;;  %v11799_v62 = vmul.bf16 %v22257_v61, %v23490_v34 }
 0x9c8   : > { %v11504_v24 = vrot.slane %v11502_v2, 1  ;;  %v11506_v2 = vshrl.u32 %v11385_v53, 16 }
 0x9c9   : > { %v11500_v60 = vor.u32 %v11498_v20, %v11496_v36  ;;  %v11828_v20 = vshrl.u32 %v11798_v14, 16 }
 0x9ca   : > { %v11508_v35 = vor.u32 %v11506_v2, %v11504_v24 }
 0x9cb   : > { %v11505_v48 = vsel %vm1483_vm0, %v11500_v60, %v11504_v24  ;;  %v11830_v53 = vrot.slane %v11828_v20, 7  ;;  %v11522_v24 = vshrl.u32 %v11387_v18, 16  ;;  %v11801_v20 = vmul.bf16 %v22269_v44, %v23492_v49 }
 0x9cc   : > { %v11513_v60 = vsel %vm1483_vm0, %v11508_v35, %v11512_v41 }
 0x9cd   : > { %17173 = vmatmul.mubr.msk.bf16.gmra.mrb[48].mxu1 %vm869_vm2, %v11481_v15  ;;  %v11497_v15 = vsel %vm1483_vm0, %v11492_v31, %v11496_v36  ;;  %v11388_v36 = vmul.bf16 %v11371_v50, %v23451_v26  ;;  %v11516_v31 = vor.u32 %v11514_v39, %v11512_v41  ;;  %v11844_v50 = vshrl.u32 %v11800_v33, 16 }
 0x9ce   : > { %17176 = vmatprep.mubr.msk.bf16.mxu1 %vm869_vm2, %v11489_v27  ;;  %v11518_v27 = vshll.u32 %v11387_v18, 16 }
 0x9cf   : > { %v11846_v18 = vrot.slane %v11844_v50, 7 }
 0x9d0   : > { %v11520_v25 = vrot.slane %v11518_v27, 1  ;;  %v11831_v27 = vshll.u32 %v11798_v14, 16  ;;  %v11802_v14 = vmul.bf16 %v22275_v32, %v23493_v19 }
 0x9d2   : > { %v11521_v52 = vsel %vm1483_vm0, %v11516_v31, %v11520_v25  ;;  %v11833_v41 = vor.u32 %v11831_v27, %v11830_v53  ;;  %v11803_v27 = vmul.bf16 %v22282_v43, %v23494_v58 }
 0x9d4   : > { %v11868_v50 = vshrl.u32 %v11803_v27, 16 }
 0x9d5   : > { %17177 = vmatmul.mubr.msk.bf16.gmra.mrb[52].mxu1 %vm869_vm2, %v11497_v15  ;;  %v11797_v15 = vmul.bf16 %v11795_v22, %v23489_v16  ;;  %v11524_v22 = vor.u32 %v11522_v24, %v11520_v25  ;;  %v11836_v16 = vshrl.u32 %v11799_v62, 16  ;;  %v11839_v25 = vshll.u32 %v11799_v62, 16 }
 0x9d6   : > { %17180 = vmatprep.mubr.msk.bf16.mxu1 %vm869_vm2, %v11505_v48  ;;  %v11526_v48 = vshll.u32 %v11388_v36, 16  ;;  %v11847_v36 = vshll.u32 %v11800_v33, 16  ;;  %v11860_v24 = vshrl.u32 %v11802_v14, 16  ;;  %v11804_v62 = vmul.bf16 %v22287_v13, %v23495_v42 }
 0x9d7   : > { %v11824_v39 = vshrl.u32 %v11797_v15, 16  ;;  %v11852_v15 = vshrl.u32 %v11801_v20, 16  ;;  %v11855_v33 = vshll.u32 %v11801_v20, 16  ;;  %v11805_v42 = vmul.bf16 %v22294_v63, %v23496_v1 }
 0x9d8   : > { %v11528_v2 = vrot.slane %v11526_v48, 1  ;;  %v18814_v48 = vld [vmem:[#allocation16 + $0xe8] sm:$0xff]   ;;  %v11862_v19 = vrot.slane %v11860_v24, 7  ;;  %v11876_v58 = vshrl.u32 %v11804_v62, 16 }
 0x9d9   : > { %v11826_v34 = vrot.slane %v11824_v39, 7  ;;  %v11854_v49 = vrot.slane %v11852_v15, 7 }
 0x9da   : > { %v11529_v35 = vsel %vm1483_vm0, %v11524_v22, %v11528_v2  ;;  %v11878_v20 = vrot.slane %v11876_v58, 7 }
 0x9db   : > { %v11834_v59 = vsel %vm1887_vm1, %v11826_v34, %v11833_v41  ;;  %v11857_v41 = vor.u32 %v11855_v33, %v11854_v49  ;;  %v18816_v34 = vld [vmem:[#allocation16 + $0xf8] sm:$0xff]  }
 0x9dd   : > { %17181 = vmatmul.mubr.msk.bf16.gmra.mrb[56].mxu1 %vm869_vm2, %v11513_v60  ;;  %v11838_v60 = vrot.slane %v11836_v16, 7  ;;  %v11863_v16 = vshll.u32 %v11802_v14, 16  ;;  %v11871_v14 = vshll.u32 %v11803_v27, 16  ;;  %v11887_v27 = vshll.u32 %v11805_v42, 16 }
 0x9de   : > { %17184 = vmatprep.mubr.msk.bf16.mxu1 %vm869_vm2, %v11521_v52  ;;  %v11849_v52 = vor.u32 %v11847_v36, %v11846_v18  ;;  %v22383_v36 = vld [vmem:[#allocation16 + $0x100] sm:$0xff]  }
 0x9df   : > { %v11841_v31 = vor.u32 %v11839_v25, %v11838_v60  ;;  %v11865_v2 = vor.u32 %v11863_v16, %v11862_v19  ;;  %v11879_v25 = vshll.u32 %v11804_v62, 16 }
 0x9e0   : > { %v11850_v22 = vsel %vm1887_vm1, %v11838_v60, %v11849_v52  ;;  %v11870_v60 = vrot.slane %v11868_v50, 7 }
 0x9e1   : > { %v11842_v39 = vsel %vm1887_vm1, %v11830_v53, %v11841_v31  ;;  %v18815_v53 = vld [vmem:[#allocation16 + $0xf0] sm:$0xff]   ;;  %v11884_v31 = vshrl.u32 %v11805_v42, 16  ;;  %v11881_v15 = vor.u32 %v11879_v25, %v11878_v20 }
 0x9e3   : > { %v11886_v24 = vrot.slane %v11884_v31, 7 }
 0x9e5   : > { %17185 = vmatmul.mubr.msk.bf16.gmra.mrb[60].mxu1 %vm869_vm2, %v11529_v35  ;;  %v11858_v35 = vsel %vm1887_vm1, %v11846_v18, %v11857_v41  ;;  %v11873_v18 = vor.u32 %v11871_v14, %v11870_v60  ;;  %v11889_v62 = vor.u32 %v11887_v27, %v11886_v24 }
 0x9e6   : > { %17196 = vmatprep.mubr.msk.bf16.mxu1 %vm869_vm2, %v11834_v59  ;;  %v11806_v59 = vmul.bf16 %v22299_v10, %v23497_v8  ;;  %v11807_v8 = vmul.bf16 %v22309_v56, %v23498_v40  ;;  %v11809_v40 = vmul.bf16 %v22321_v5, %v23510_v23  ;;  %v23516_v23 = vld [vmem:[#allocation67_spill] sm:$0xff] }
 0x9e7   : > { %v11874_v52 = vsel %vm1887_vm1, %v11862_v19, %v11873_v18  ;;  %v11811_v14 = vmul.bf16 %v22333_v47, %v23516_v23 }
 0x9e8   : > { %v11892_v1 = vshrl.u32 %v11806_v59, 16  ;;  %v11900_v33 = vshrl.u32 %v11807_v8, 16  ;;  %v11903_v58 = vshll.u32 %v11807_v8, 16 }
 0x9ea   : > { %v11902_v41 = vrot.slane %v11900_v33, 7  ;;  %v11935_v33 = vshll.u32 %v11811_v14, 16 }
 0x9ed   : > { %17197 = vmatmul.mubr.msk.bf16.vlgmr.msra.gmra.mrb[32].mxu1 %vm869_vm2, %v11842_v39  ;;  %v11894_v39 = vrot.slane %v11892_v1, 7 }
 0x9ee   : > { %17200 = vmatprep.mubr.msk.bf16.mxu1 %vm869_vm2, %v11850_v22  ;;  %17229 = vmatpush3.bf16.msra.mxu1 %v22303_v51  ;;  %v11866_v51 = vsel %vm1887_vm1, %v11854_v49, %v11865_v2  ;;  %v11808_v49 = vmul.bf16 %v22314_v12, %v23509_v37  ;;  %v11895_v22 = vshll.u32 %v11806_v59, 16  ;;  %v11810_v37 = vmul.bf16 %v22326_v38, %v23511_v57  ;;  %v23517_v57 = vld [vmem:[#allocation68_spill] sm:$0xff] }
 0x9ef   : > { %17230 = vmatprep.subr.bf16.mxu1 %v18814_v48  ;;  %v11812_v31 = vmul.bf16 %v22216_v3, %v23517_v57 }
 0x9f0   : > { %v11897_v16 = vor.u32 %v11895_v22, %v11894_v39  ;;  %v11908_v19 = vshrl.u32 %v11808_v49, 16  ;;  %v11927_v1 = vshll.u32 %v11810_v37, 16 }
 0x9f2   : > { %17231 = vmatpush3.bf16.msra.mxu1 %v18814_v48  ;;  %v11882_v48 = vsel %vm1887_vm1, %v11870_v60, %v11881_v15  ;;  %v11898_v50 = vsel %vm1887_vm1, %v11886_v24, %v11897_v16  ;;  %v11910_v2 = vrot.slane %v11908_v19, 7  ;;  %v11916_v60 = vshrl.u32 %v11809_v40, 16 }
 0x9f3   : > { %17232 = vmatprep.subr.bf16.mxu1 %v18815_v53  ;;  %v11919_v15 = vshll.u32 %v11809_v40, 16  ;;  %v11932_v24 = vshrl.u32 %v11811_v14, 16  ;;  %v11943_v19 = vshll.u32 %v11812_v31, 16  ;;  %v12513_v14 = vmul.bf16 %v22263_v55, %v23507_v45 }
 0x9f4   : > { %v11918_v59 = vrot.slane %v11916_v60, 7  ;;  %v18819_v60 = vld [vmem:[#allocation16 + $0x110] sm:$0xff]  }
 0x9f5   : > { %17201 = vmatmul.mubr.msk.bf16.gmra.mrb[36].mxu1 %vm869_vm2, %v11858_v35  ;;  %v11905_v35 = vor.u32 %v11903_v58, %v11902_v41  ;;  %v11934_v27 = vrot.slane %v11932_v24, 7  ;;  %v12553_v57 = vshll.u32 %v12513_v14, 16 }
 0x9f6   : > { %17204 = vmatprep.mubr.msk.bf16.mxu1 %vm869_vm2, %v11866_v51  ;;  %17233 = vmatpush3.bf16.msra.mxu1 %v18815_v53  ;;  %v11890_v53 = vsel %vm1887_vm1, %v11878_v20, %v11889_v62  ;;  %v11924_v51 = vshrl.u32 %v11810_v37, 16 }
 0x9f7   : > { %17234 = vmatprep.subr.bf16.mxu1 %v18816_v34  ;;  %v11906_v20 = vsel %vm1887_vm1, %v11894_v39, %v11905_v35  ;;  %v22410_v39 = vld [vmem:[#allocation3 + $0x90] sm:$0xff] }
 0x9f8   : > { %v11926_v18 = vrot.slane %v11924_v51, 7  ;;  %v11813_v16 = vmul.bf16 %v22410_v39, %v23514_v7  ;;  %v18818_v7 = vld [vmem:[#allocation16 + $0x108] sm:$0xff]   ;;  %v12512_v51 = vmul.bf16 %v22257_v61, %v23515_v11 }
 0x9fa   : > { %17235 = vmatpush3.bf16.msra.mxu1 %v18816_v34  ;;  %v11911_v34 = vshll.u32 %v11808_v49, 16  ;;  %v11929_v8 = vor.u32 %v11927_v1, %v11926_v18  ;;  %v11948_v40 = vshrl.u32 %v11813_v16, 16  ;;  %v11951_v58 = vshll.u32 %v11813_v16, 16 }
 0x9fb   : > { %17268 = vmatprep.subr.bf16.mxu1 %v22383_v36  ;;  %v12549_v45 = vshrl.u32 %v12512_v51, 16 }
 0x9fc   : > { %v11913_v42 = vor.u32 %v11911_v34, %v11910_v2  ;;  %v11930_v22 = vsel %vm1887_vm1, %v11918_v59, %v11929_v8  ;;  %v11950_v37 = vrot.slane %v11948_v40, 7 }
 0x9fd   : > { %17205 = vmatmul.mubr.msk.bf16.gmra.mrb[40].mxu1 %vm869_vm2, %v11874_v52  ;;  %v11921_v52 = vor.u32 %v11919_v15, %v11918_v59  ;;  %v12545_v59 = vshll.u32 %v12512_v51, 16  ;;  %v12515_v15 = vmul.bf16 %v22275_v32, %v23425_v4  ;;  %v12517_v4 = vmul.bf16 %v22287_v13, %v23427_v29 }
 0x9fe   : > { %17208 = vmatprep.mubr.msk.bf16.mxu1 %vm869_vm2, %v11882_v48  ;;  %v11914_v25 = vsel %vm1887_vm1, %v11902_v41, %v11913_v42  ;;  %v11940_v48 = vshrl.u32 %v11812_v31, 16  ;;  %v11953_v34 = vor.u32 %v11951_v58, %v11950_v37  ;;  %v18820_v42 = vld [vmem:[#allocation16 + $0x118] sm:$0xff]   ;;  %v12555_v31 = vrot.slane %v12553_v57, 1 }
 0x9ff   : > { %v11922_v49 = vsel %vm1887_vm1, %v11910_v2, %v11921_v52  ;;  %v12569_v24 = vshll.u32 %v12515_v15, 16  ;;  %v12585_v16 = vshll.u32 %v12517_v4, 16  ;;  %v12519_v29 = vmul.bf16 %v22299_v10, %v23429_v9 }
 0xa00   : > { %v11942_v62 = vrot.slane %v11940_v48, 7  ;;  %v12521_v9 = vmul.bf16 %v22314_v12, %v23431_v6  ;;  %v12523_v6 = vmul.bf16 %v22326_v38, %v23447_v17 }
 0xa01   : > { %v12587_v40 = vrot.slane %v12585_v16, 1  ;;  %v12601_v58 = vshll.u32 %v12519_v29, 16 }
 0xa02   : > { %v11945_v41 = vor.u32 %v11943_v19, %v11942_v62  ;;  %v11954_v35 = vsel %vm1887_vm1, %v11942_v62, %v11953_v34 }
 0xa04   : > { %v11946_v2 = vsel %vm1887_vm1, %v11934_v27, %v11945_v41 }
 0xa05   : > { %17209 = vmatmul.mubr.msk.bf16.gmra.mrb[44].mxu1 %vm869_vm2, %v11890_v53  ;;  %v11937_v53 = vor.u32 %v11935_v33, %v11934_v27  ;;  %v12571_v27 = vrot.slane %v12569_v24, 1 }
 0xa06   : > { %17212 = vmatprep.mubr.msk.bf16.mxu1 %vm869_vm2, %v11898_v50 }
 0xa07   : > { %v11938_v50 = vsel %vm1887_vm1, %v11926_v18, %v11937_v53  ;;  %v12547_v18 = vrot.slane %v12545_v59, 1  ;;  %v12617_v59 = vshll.u32 %v12521_v9, 16  ;;  %vm13210_vm1 = vcmask 64512  }
 0xa0d   : > { %17213 = vmatmul.mubr.msk.bf16.gmra.mrb[48].mxu1 %vm869_vm2, %v11906_v20 }
 0xa0e   : > { %17216 = vmatprep.mubr.msk.bf16.mxu1 %vm869_vm2, %v11914_v25 }
 0xa15   : > { %17217 = vmatmul.mubr.msk.bf16.gmra.mrb[52].mxu1 %vm869_vm2, %v11922_v49 }
 0xa16   : > { %17220 = vmatprep.mubr.msk.bf16.mxu1 %vm869_vm2, %v11930_v22  ;;  %v12573_v22 = vshrl.u32 %v12515_v15, 16 }
 0xa18   : > { %v12575_v33 = vor.u32 %v12573_v22, %v12571_v27 }
 0xa1d   : > { %17221 = vmatmul.mubr.msk.bf16.gmra.mrb[56].mxu1 %vm869_vm2, %v11938_v50  ;;  %v12589_v50 = vshrl.u32 %v12517_v4, 16 }
 0xa1e   : > { %17224 = vmatprep.mubr.msk.bf16.mxu1 %vm869_vm2, %v11946_v2 }
 0xa1f   : > { %v12591_v37 = vor.u32 %v12589_v50, %v12587_v40 }
 0xa25   : > { %17225 = vmatmul.mubr.msk.bf16.gmra.mrb[60].mxu1 %vm869_vm2, %v11954_v35 }
 0xa26   : > { %17236 = vmatprep.mubr.msk.bf16.mxu1 %vm869_vm2, %v22252_v46 }
 0xa2d   : > { %17237 = vmatmul.mubr.msk.bf16.vlgmr.msra.gmra.mrb[32].mxu1 %vm869_vm2, %v22257_v61 }
 0xa2e   : > { %17240 = vmatprep.mubr.msk.bf16.mxu1 %vm869_vm2, %v22263_v55  ;;  %17269 = vmatpush3.bf16.msra.mxu1 %v22383_v36  ;;  %v12511_v36 = vmul.bf16 %v22252_v46, %v23505_v0  ;;  %v12514_v0 = vmul.bf16 %v22269_v44, %v23508_v54  ;;  %v12557_v55 = vshrl.u32 %v12513_v14, 16  ;;  %v12516_v54 = vmul.bf16 %v22282_v43, %v23426_v28 }
 0xa2f   : > { %17270 = vmatprep.subr.bf16.mxu1 %v18818_v7  ;;  %v12518_v28 = vmul.bf16 %v22294_v63, %v23428_v30  ;;  %v12520_v30 = vmul.bf16 %v22309_v56, %v23430_v21  ;;  %v23518_v21 = vld [vmem:[#allocation81_spill] sm:$0xff] }
 0xa30   : > { %v12540_v20 = vshll.u32 %v12511_v36, 16  ;;  %v12538_v25 = vshrl.u32 %v12511_v36, 16  ;;  %v12561_v61 = vshll.u32 %v12514_v0, 16  ;;  %v12559_v52 = vor.u32 %v12557_v55, %v12555_v31 }
 0xa31   : > { %v12577_v49 = vshll.u32 %v12516_v54, 16  ;;  %v12593_v41 = vshll.u32 %v12518_v28, 16 }
 0xa32   : > { %17271 = vmatpush3.bf16.msra.mxu1 %v18818_v7  ;;  %v12542_v23 = vrot.slane %v12540_v20, 1  ;;  %v12563_v1 = vrot.slane %v12561_v61, 1  ;;  %v12609_v7 = vshll.u32 %v12520_v30, 16 }
 0xa33   : > { %17272 = vmatprep.subr.bf16.mxu1 %v18819_v60  ;;  %v12579_v62 = vrot.slane %v12577_v49, 1  ;;  %v12595_v2 = vrot.slane %v12593_v41, 1 }
 0xa34   : > { %v12543_v46 = vor.u32 %v12542_v23, %v12538_v25  ;;  %v12564_v48 = vsel %vm1483_vm0, %v12559_v52, %v12563_v1  ;;  %v12611_v36 = vrot.slane %v12609_v7, 1 }
 0xa35   : > { %17241 = vmatmul.mubr.msk.bf16.gmra.mrb[36].mxu1 %vm869_vm2, %v22269_v44  ;;  %v12551_v44 = vor.u32 %v12549_v45, %v12547_v18  ;;  %v12580_v53 = vsel %vm1483_vm0, %v12575_v33, %v12579_v62  ;;  %v12596_v35 = vsel %vm1483_vm0, %v12591_v37, %v12595_v2  ;;  %v13053_v37 = vld [vmem:[#allocation25 + $0x10] sm:$0xff] }
 0xa36   : > { %17244 = vmatprep.mubr.msk.bf16.mxu1 %vm869_vm2, %v22275_v32  ;;  %17273 = vmatpush3.bf16.msra.mxu1 %v18819_v60  ;;  %v12548_v11 = vsel %vm1483_vm0, %v12543_v46, %v12547_v18  ;;  %v12565_v32 = vshrl.u32 %v12514_v0, 16  ;;  %v12603_v60 = vrot.slane %v12601_v58, 1  ;;  %v12619_v18 = vrot.slane %v12617_v59, 1  ;;  %v13054_v58 = vld [vmem:[#allocation25 + $0x18] sm:$0xff] }
 0xa37   : > { %17274 = vmatprep.subr.bf16.mxu1 %v18820_v42  ;;  %v12556_v8 = vsel %vm1483_vm0, %v12551_v44, %v12555_v31  ;;  %v12621_v0 = vshrl.u32 %v12521_v9, 16  ;;  %v12633_v31 = vshll.u32 %v12523_v6, 16  ;;  %v12637_v44 = vshrl.u32 %v12523_v6, 16 }
 0xa39   : > { %v12623_v61 = vor.u32 %v12621_v0, %v12619_v18  ;;  %v12635_v17 = vrot.slane %v12633_v31, 1  ;;  %v23526_v0 = vld [vmem:[#allocation79_spill] sm:$0xff]  ;;  %v23528_v31 = vld [vmem:[#allocation90_spill] sm:$0xff] }
 0xa3a   : > { %17275 = vmatpush3.bf16.msra.mxu1 %v18820_v42  ;;  %v12605_v42 = vshrl.u32 %v12519_v29, 16 }
 0xa3c   : > { %v12607_v20 = vor.u32 %v12605_v42, %v12603_v60  ;;  %v23524_v42 = vld [vmem:[#allocation77_spill] sm:$0xff] }
 0xa3d   : > { %17245 = vmatmul.mubr.msk.bf16.gmra.mrb[40].mxu1 %vm869_vm2, %v22282_v43  ;;  %v12567_v43 = vor.u32 %v12565_v32, %v12563_v1  ;;  %v23520_v1 = vld [vmem:[#allocation84_spill] sm:$0xff] }
 0xa3e   : > { %17248 = vmatprep.mubr.msk.bf16.mxu1 %vm869_vm2, %v22287_v13  ;;  %v12581_v13 = vshrl.u32 %v12516_v54, 16  ;;  %v12612_v14 = vsel %vm1483_vm0, %v12607_v20, %v12611_v36  ;;  %v12525_v54 = vmul.bf16 %v22216_v3, %v23520_v1  ;;  %v13057_v20 = vld [vmem:[#allocation25 + $0x30] sm:$0xff] }
 0xa3f   : > { %v12572_v19 = vsel %vm1483_vm0, %v12567_v43, %v12571_v27 }
 0xa45   : > { %17249 = vmatmul.mubr.msk.bf16.gmra.mrb[44].mxu1 %vm869_vm2, %v22294_v63  ;;  %v12583_v63 = vor.u32 %v12581_v13, %v12579_v62  ;;  %v12510_v62 = vld [vmem:[#allocation3 + $0x98] sm:$0x1] }
 0xa46   : > { %17252 = vmatprep.mubr.msk.bf16.mxu1 %vm869_vm2, %v22299_v10  ;;  %v12597_v10 = vshrl.u32 %v12518_v28, 16  ;;  %v12527_v16 = vmul.bf16 %v12510_v62, %v23451_v26  ;;  %v23289_v26 = vmov 0.0|0.0  }
 0xa47   : > { %v12588_v34 = vsel %vm1483_vm0, %v12583_v63, %v12587_v40  ;;  %17540 = vmatprep.subr.bf16.mxu0 %v23289_v26 }
 0xa48   : > { %v12599_v51 = vor.u32 %v12597_v10, %v12595_v2  ;;  %v12665_v40 = vshll.u32 %v12527_v16, 16  ;;  %v13051_v2 = vld [vmem:[#allocation25] sm:$0xff]  ;;  %v22557_v16 = vld [vmem:[#allocation18] ss:$0 sm:$0xff] }
 0xa4a   : > { %v12604_v23 = vsel %vm1483_vm0, %v12599_v51, %v12603_v60  ;;  %v12667_v13 = vrot.slane %v12665_v40, 1  ;;  %v23523_v60 = vld [vmem:[#allocation75_spill] sm:$0xff] }
 0xa4b   : > { %v9112_v9 = vsel %vm869_vm2, %v23523_v60, 0.0  ;;  %v13056_v51 = vld [vmem:[#allocation25 + $0x28] sm:$0xff] }
 0xa4d   : > { %17253 = vmatmul.mubr.msk.bf16.gmra.mrb[48].mxu1 %vm869_vm2, %v22309_v56  ;;  %v12522_v56 = vmul.bf16 %v22321_v5, %v23518_v21 }
 0xa4e   : > { %17256 = vmatprep.mubr.msk.bf16.mxu1 %vm869_vm2, %v22314_v12  ;;  %v12613_v12 = vshrl.u32 %v12520_v30, 16  ;;  %v13052_v30 = vld [vmem:[#allocation25 + $0x8] sm:$0xff] }
 0xa4f   : > { %v12625_v25 = vshll.u32 %v12522_v56, 16  ;;  %v17541_v63 = vpack.c.bf16 %v13052_v30, %v13051_v2  ;;  %v23537_v2 = vld [vmem:[#allocation97_spill] sm:$0xff] }
 0xa50   : > { %v9141_v30 = vsel %vm869_vm2, %v23537_v2, 0.0 }
 0xa51   : > { %v12627_v46 = vrot.slane %v12625_v25, 1  ;;  %17542 = vmatpush3.bf16.msra.mxu0 %v17541_v63  ;;  %v23525_v25 = vld [vmem:[#allocation78_spill] sm:$0xff] }
 0xa52   : > { %17543 = vmatprep.subr.bf16.mxu0 %v23289_v26 }
 0xa53   : > { %v12628_v45 = vsel %vm1483_vm0, %v12623_v61, %v12627_v46 }
 0xa55   : > { %17257 = vmatmul.mubr.msk.bf16.gmra.mrb[52].mxu1 %vm869_vm2, %v22321_v5  ;;  %v23519_v5 = vld [vmem:[#allocation83_spill] sm:$0xff] }
 0xa56   : > { %17260 = vmatprep.mubr.msk.bf16.mxu1 %vm869_vm2, %v22326_v38  ;;  %v12524_v57 = vmul.bf16 %v22333_v47, %v23519_v5  ;;  %v12629_v38 = vshrl.u32 %v12522_v56, 16  ;;  %v13055_v56 = vld [vmem:[#allocation25 + $0x20] sm:$0xff] }
 0xa57   : > { %v17547_v59 = vpack.c.bf16 %v13056_v51, %v13055_v56 }
 0xa58   : > { %v12641_v55 = vshll.u32 %v12524_v57, 16  ;;  %v12631_v24 = vor.u32 %v12629_v38, %v12627_v46  ;;  %v12645_v28 = vshrl.u32 %v12524_v57, 16  ;;  %v9119_v46 = vsel %vm869_vm2, %v23526_v0, 0.0  ;;  %v23527_v57 = vld [vmem:[#allocation80_spill] sm:$0xff] }
 0xa5a   : > { %v12643_v52 = vrot.slane %v12641_v55, 1  ;;  %v12636_v27 = vsel %vm1483_vm0, %v12631_v24, %v12635_v17  ;;  %v23529_v55 = vld [vmem:[#allocation82_spill] sm:$0xff] }
 0xa5b   : > { %v9125_v1 = vsel %vm869_vm2, %v23529_v55, 0.0  ;;  %v13571_v55 = vld [vmem:[#allocation21 + $0x38] sm:$0xff] }
 0xa5c   : > { %v12647_v33 = vor.u32 %v12645_v28, %v12643_v52  ;;  %v23535_v28 = vld [vmem:[#allocation95_spill] sm:$0xff] }
 0xa5d   : > { %17261 = vmatmul.mubr.msk.bf16.gmra.mrb[56].mxu1 %vm869_vm2, %v22333_v47  ;;  %v12649_v47 = vshll.u32 %v12525_v54, 16 }
 0xa5e   : > { %17264 = vmatprep.mubr.msk.bf16.mxu1 %vm869_vm2, %v22216_v3  ;;  %v12653_v3 = vshrl.u32 %v12525_v54, 16 }
 0xa5f   : > { %v12651_v32 = vrot.slane %v12649_v47, 1 }
 0xa61   : > { %v12655_v43 = vor.u32 %v12653_v3, %v12651_v32  ;;  %v23534_v3 = vld [vmem:[#allocation94_spill] sm:$0xff] }
 0xa65   : > { %17265 = vmatmul.mubr.msk.bf16.gmra.mrb[60].mxu1 %vm869_vm2, %v22410_v39 }
 0xa66   : > { %17276 = vmatprep.mubr.msk.bf16.mxu1 %vm869_vm2, %v12548_v11  ;;  %v12615_v11 = vor.u32 %v12613_v12, %v12611_v36  ;;  %v9115_v36 = vsel %vm869_vm2, %v23524_v42, 0.0 }
 0xa68   : > { %v12620_v15 = vsel %vm1483_vm0, %v12615_v11, %v12619_v18  ;;  %v9117_v18 = vsel %vm869_vm2, %v23525_v25, 0.0  ;;  %v9121_v11 = vsel %vm869_vm2, %v23527_v57, 0.0 }
 0xa6d   : > { %17277 = vmatmul.mubr.msk.bf16.vlgmr.msra.gmra.mrb[32].mxu1 %vm869_vm2, %v12556_v8  ;;  %v12639_v8 = vor.u32 %v12637_v44, %v12635_v17  ;;  %v23530_v17 = vld [vmem:[#allocation85_spill] sm:$0xff] }
 0xa6e   : > { %17280 = vmatprep.mubr.msk.bf16.mxu1 %vm869_vm2, %v12564_v48  ;;  %v23521_v48 = vld [vmem:[#allocation86_spill] sm:$0xff]  ;;  %v9127_v38 = vsel %vm869_vm2, %v23530_v17, 0.0  ;;  %v13570_v17 = vld [vmem:[#allocation21 + $0x30] sm:$0xff] }
 0xa6f   : > { %v12526_v49 = vmul.bf16 %v22410_v39, %v23521_v48  ;;  %v12644_v4 = vsel %vm1483_vm0, %v12639_v8, %v12643_v52  ;;  %v12652_v39 = vsel %vm1483_vm0, %v12647_v33, %v12651_v32  ;;  %v23531_v52 = vld [vmem:[#allocation91_spill] sm:$0xff]  ;;  %v23532_v8 = vld [vmem:[#allocation92_spill] sm:$0xff] }
 0xa70   : > { %v9129_v47 = vsel %vm869_vm2, %v23531_v52, 0.0  ;;  %v9131_v48 = vsel %vm869_vm2, %v23532_v8, 0.0 }
 0xa71   : > { %v12657_v22 = vshll.u32 %v12526_v49, 16  ;;  %v12661_v41 = vshrl.u32 %v12526_v49, 16 }
 0xa75   : > { %17281 = vmatmul.mubr.msk.bf16.gmra.mrb[36].mxu1 %vm869_vm2, %v12572_v19  ;;  %v12659_v19 = vrot.slane %v12657_v22, 1  ;;  %v9135_v22 = vsel %vm869_vm2, %v23534_v3, 0.0 }
 0xa76   : > { %17284 = vmatprep.mubr.msk.bf16.mxu1 %vm869_vm2, %v12580_v53 }
 0xa77   : > { %v12660_v53 = vsel %vm1483_vm0, %v12655_v43, %v12659_v19  ;;  %v12663_v29 = vor.u32 %v12661_v41, %v12659_v19  ;;  %v9137_v43 = vsel %vm869_vm2, %v23535_v28, 0.0  ;;  %v23536_v19 = vld [vmem:[#allocation96_spill] sm:$0xff]  ;;  %v13044_v28 = vld [vmem:[#allocation24 + $0x8] sm:$0xff] }
 0xa79   : > { %v12668_v50 = vsel %vm1483_vm0, %v12663_v29, %v12667_v13  ;;  %vm19663_vm0 = vmmov 0  }
 0xa7d   : > { %17285 = vmatmul.mubr.msk.bf16.gmra.mrb[40].mxu1 %vm869_vm2, %v12588_v34  ;;  %v17544_v34 = vpack.c.bf16 %v13054_v58, %v13053_v37 }
 0xa7e   : > { %17288 = vmatprep.mubr.msk.bf16.mxu1 %vm869_vm2, %v12596_v35  ;;  %v23522_v35 = vld [vmem:[#allocation76_spill] sm:$0xff] }
 0xa7f   : > { %17545 = vmatpush3.bf16.msra.mxu0 %v17544_v34  ;;  %v9113_v7 = vsel %vm869_vm2, %v23522_v35, 0.0  ;;  %v23538_v34 = vld [vmem:[#allocation98_spill] sm:$0xff] }
 0xa80   : > { %17546 = vmatprep.subr.bf16.mxu0 %v23289_v26  ;;  %v9114_v10 = vadd.f32 %v9113_v7, %v9112_v9  ;;  %v9143_v7 = vsel %vm869_vm2, %v23538_v34, 0.0 }
 0xa82   : > { %v9116_v21 = vadd.f32 %v9115_v36, %v9114_v10 }
 0xa83   : > { %17548 = vmatpush3.bf16.msra.mxu0 %v17547_v59 }
 0xa84   : > { %v9118_v12 = vadd.f32 %v9117_v18, %v9116_v21  ;;  %17549 = vmatprep.subr.bf16.mxu0 %v23289_v26  ;;  %v23539_v18 = vld [vmem:[#allocation99_spill] sm:$0xff] }
 0xa85   : > { %17289 = vmatmul.mubr.msk.bf16.gmra.mrb[44].mxu1 %vm869_vm2, %v12604_v23  ;;  %v13058_v23 = vld [vmem:[#allocation25 + $0x38] sm:$0xff] }
 0xa86   : > { %17292 = vmatprep.mubr.msk.bf16.mxu1 %vm869_vm2, %v12612_v14  ;;  %v23291_v14 = vmov 0.0   ;;  %v17550_v6 = vpack.c.bf16 %v13058_v23, %v13057_v20  ;;  %v9120_v5 = vadd.f32 %v9119_v46, %v9118_v12 }
 0xa87   : > { %17324 = vmatprep.mubr.msk.f32.mxu0 %vm19663_vm0, %v23291_v14 }
 0xa88   : > { %17551 = vmatpush3.bf16.msra.mxu0 %v17550_v6  ;;  %v9122_v61 = vadd.f32 %v9121_v11, %v9120_v5  ;;  %v9145_v6 = vsel %vm869_vm2, %v23539_v18, 0.0 }
 0xa89   : > { %17552 = vmatprep.subr.bf16.mxu0 %v23289_v26 }
 0xa8d   : > { %17293 = vmatmul.mubr.msk.bf16.gmra.mrb[48].mxu1 %vm869_vm2, %v12620_v15  ;;  %v9123_v15 = vsel %vm869_vm2, %v23528_v31, 0.0 }
 0xa8e   : > { %17296 = vmatprep.mubr.msk.bf16.mxu1 %vm869_vm2, %v12628_v45  ;;  %v9124_v45 = vadd.f32 %v9123_v15, %v9122_v61 }
 0xa90   : > { %v9126_v54 = vadd.f32 %v9125_v1, %v9124_v45 }
 0xa92   : > { %v9128_v44 = vadd.f32 %v9127_v38, %v9126_v54 }
 0xa94   : > { %v9130_v24 = vadd.f32 %v9129_v47, %v9128_v44 }
 0xa95   : > { %17297 = vmatmul.mubr.msk.bf16.gmra.mrb[52].mxu1 %vm869_vm2, %v12636_v27  ;;  %v23533_v27 = vld [vmem:[#allocation93_spill] sm:$0xff] }
 0xa96   : > { %17300 = vmatprep.mubr.msk.bf16.mxu1 %vm869_vm2, %v12644_v4  ;;  %v9132_v49 = vadd.f32 %v9131_v48, %v9130_v24  ;;  %v9133_v4 = vsel %vm869_vm2, %v23533_v27, 0.0  ;;  %v23540_v48 = vld [vmem:[#allocation100_spill] sm:$0xff] }
 0xa98   : > { %v9134_v32 = vadd.f32 %v9133_v4, %v9132_v49  ;;  %v9147_v49 = vsel %vm869_vm2, %v23540_v48, 0.0  ;;  %v23551_v48 = vld [vmem:[#allocation89_spill] sm:$0xff] }
 0xa9a   : > { %v9136_v62 = vadd.f32 %v9135_v22, %v9134_v32 }
 0xa9c   : > { %v9138_v33 = vadd.f32 %v9137_v43, %v9136_v62 }
 0xa9d   : > { %17301 = vmatmul.mubr.msk.bf16.gmra.mrb[56].mxu1 %vm869_vm2, %v12652_v39  ;;  %v9139_v39 = vsel %vm869_vm2, %v23536_v19, 0.0 }
 0xa9e   : > { %17304 = vmatprep.mubr.msk.bf16.mxu1 %vm869_vm2, %v12660_v53  ;;  %v9140_v41 = vadd.f32 %v9139_v39, %v9138_v33 }
 0xaa0   : > { %v9142_v58 = vadd.f32 %v9141_v30, %v9140_v41 }
 0xaa2   : > { %v9144_v20 = vadd.f32 %v9143_v7, %v9142_v58 }
 0xaa4   : > { %v9146_v54 = vadd.f32 %v9145_v6, %v9144_v20 }
 0xaa5   : > { %17305 = vmatmul.mubr.msk.bf16.gmra.mrb[60].mxu1 %vm869_vm2, %v12668_v50 }
 0xaa6   : > { %v9148_v22 = vadd.f32 %v9147_v49, %v9146_v54 }
 0xb40   : > { %v17278_v53 = vpop.f32.mrb[32].mxu1 }
 0xb41   : > { %v12775_v40 = vpop.f32.mrb[33].mxu1  ;;  %v22567_v63 = vadd.f32 %v17278_v53, %v22557_v16 }
 0xb42   : > { %v22562_v29 = vadd.f32 %v22557_v16, %v12775_v40  ;;  %v17279_v13 = vpop.f32.mrb[34].mxu1 }
 0xb43   : > { %v12778_v50 = vpop.f32.mrb[35].mxu1  ;;  %v22577_v10 = vadd.f32 %v17279_v13, %v22557_v16  ;;  %v12976_v56 = vsel %vm869_vm2, %v22567_v63, 0.0  ;;  %v23541_v13 = vld [vmem:[#allocation101_spill] sm:$0xff] }
 0xb44   : > { %v22570_v37 = vadd.f32 %v22557_v16, %v12778_v50  ;;  %v12973_v9 = vsel %vm869_vm2, %v22562_v29, 0.0  ;;  %v9149_v50 = vsel %vm869_vm2, %v23541_v13, 0.0 }
 0xb45   : > { %v12978_v12 = vsel %vm869_vm2, %v22577_v10, 0.0 }
 0xb46   : > { %v12974_v36 = vsel %vm869_vm2, %v22570_v37, 0.0 }
 0xb47   : > { %v12975_v21 = vadd.f32 %v12974_v36, %v12973_v9  ;;  %v9150_v9 = vadd.f32 %v9149_v50, %v9148_v22 }
 0xb48   : > { %v17282_v51 = vpop.f32.mrb[36].mxu1 }
 0xb49   : > { %v12977_v59 = vadd.f32 %v12976_v56, %v12975_v21  ;;  %v12791_v23 = vpop.f32.mrb[37].mxu1  ;;  %v22591_v15 = vadd.f32 %v17282_v51, %v22557_v16  ;;  %v23542_v21 = vld [vmem:[#allocation102_spill] sm:$0xff] }
 0xb4a   : > { %v22588_v46 = vadd.f32 %v22557_v16, %v12791_v23  ;;  %v17283_v5 = vpop.f32.mrb[38].mxu1  ;;  %v9151_v56 = vsel %vm869_vm2, %v23542_v21, 0.0 }
 0xb4b   : > { %v12979_v11 = vadd.f32 %v12978_v12, %v12977_v59  ;;  %v12794_v61 = vpop.f32.mrb[39].mxu1  ;;  %v22599_v44 = vadd.f32 %v17283_v5, %v22557_v16  ;;  %v12984_v4 = vsel %vm869_vm2, %v22591_v15, 0.0  ;;  %v9152_v12 = vadd.f32 %v9151_v56, %v9150_v9 }
 0xb4c   : > { %v12980_v45 = vsel %vm869_vm2, %v22588_v46, 0.0  ;;  %v22596_v1 = vadd.f32 %v22557_v16, %v12794_v61  ;;  %v23543_v61 = vld [vmem:[#allocation103_spill] sm:$0xff] }
 0xb4d   : > { %v12981_v38 = vadd.f32 %v12980_v45, %v12979_v11  ;;  %v12986_v33 = vsel %vm869_vm2, %v22599_v44, 0.0  ;;  %v9153_v45 = vsel %vm869_vm2, %v23543_v61, 0.0 }
 0xb4e   : > { %v12982_v47 = vsel %vm869_vm2, %v22596_v1, 0.0 }
 0xb4f   : > { %v12983_v24 = vadd.f32 %v12982_v47, %v12981_v38 }
 0xb50   : > { %v17286_v32 = vpop.f32.mrb[40].mxu1 }
 0xb51   : > { %v12985_v62 = vadd.f32 %v12984_v4, %v12983_v24  ;;  %v12807_v43 = vpop.f32.mrb[41].mxu1  ;;  %v22615_v30 = vadd.f32 %v17286_v32, %v22557_v16 }
 0xb52   : > { %v22610_v39 = vadd.f32 %v22557_v16, %v12807_v43  ;;  %v17287_v53 = vpop.f32.mrb[42].mxu1 }
 0xb53   : > { %v12987_v41 = vadd.f32 %v12986_v33, %v12985_v62  ;;  %v12810_v40 = vpop.f32.mrb[43].mxu1  ;;  %v22625_v51 = vadd.f32 %v17287_v53, %v22557_v16  ;;  %v12992_v23 = vsel %vm869_vm2, %v22615_v30, 0.0  ;;  %v9154_v62 = vadd.f32 %v9153_v45, %v9152_v12 }
 0xb54   : > { %v12988_v58 = vsel %vm869_vm2, %v22610_v39, 0.0  ;;  %v22620_v7 = vadd.f32 %v22557_v16, %v12810_v40  ;;  %v23544_v40 = vld [vmem:[#allocation104_spill] sm:$0xff] }
 0xb55   : > { %v12989_v36 = vadd.f32 %v12988_v58, %v12987_v41  ;;  %v12994_v54 = vsel %vm869_vm2, %v22625_v51, 0.0  ;;  %v9155_v50 = vsel %vm869_vm2, %v23544_v40, 0.0  ;;  %v23550_v40 = vld [vmem:[#allocation88_spill] sm:$0xff] }
 0xb56   : > { %v12990_v20 = vsel %vm869_vm2, %v22620_v7, 0.0 }
 0xb57   : > { %v12991_v59 = vadd.f32 %v12990_v20, %v12989_v36  ;;  %v9156_v36 = vadd.f32 %v9155_v50, %v9154_v62  ;;  %v23546_v62 = vld [vmem:[#allocation106_spill] sm:$0xff] }
 0xb58   : > { %v17290_v6 = vpop.f32.mrb[44].mxu1 }
 0xb59   : > { %v12993_v5 = vadd.f32 %v12992_v23, %v12991_v59  ;;  %v12823_v11 = vpop.f32.mrb[45].mxu1  ;;  %v22639_v4 = vadd.f32 %v17290_v6, %v22557_v16 }
 0xb5a   : > { %v22636_v38 = vadd.f32 %v22557_v16, %v12823_v11  ;;  %v17291_v47 = vpop.f32.mrb[46].mxu1  ;;  %v23545_v11 = vld [vmem:[#allocation105_spill] sm:$0xff] }
 0xb5b   : > { %v12995_v24 = vadd.f32 %v12994_v54, %v12993_v5  ;;  %v12826_v49 = vpop.f32.mrb[47].mxu1  ;;  %v22647_v33 = vadd.f32 %v17291_v47, %v22557_v16  ;;  %v13000_v58 = vsel %vm869_vm2, %v22639_v4, 0.0  ;;  %v9157_v45 = vsel %vm869_vm2, %v23545_v11, 0.0 }
 0xb5c   : > { %v12996_v32 = vsel %vm869_vm2, %v22636_v38, 0.0  ;;  %v22644_v22 = vadd.f32 %v22557_v16, %v12826_v49  ;;  %v9158_v49 = vadd.f32 %v9157_v45, %v9156_v36 }
 0xb5d   : > { %v12997_v43 = vadd.f32 %v12996_v32, %v12995_v24  ;;  %v13002_v59 = vsel %vm869_vm2, %v22647_v33, 0.0 }
 0xb5e   : > { %v12998_v53 = vsel %vm869_vm2, %v22644_v22, 0.0 }
 0xb5f   : > { %v12999_v41 = vadd.f32 %v12998_v53, %v12997_v43  ;;  %v9159_v43 = vsel %vm869_vm2, %v23546_v62, 0.0 }
 0xb60   : > { %v17294_v9 = vpop.f32.mrb[48].mxu1 }
 0xb61   : > { %v13001_v56 = vadd.f32 %v13000_v58, %v12999_v41  ;;  %v12839_v20 = vpop.f32.mrb[49].mxu1  ;;  %v22663_v54 = vadd.f32 %v17294_v9, %v22557_v16 }
 0xb62   : > { %v22658_v23 = vadd.f32 %v22557_v16, %v12839_v20  ;;  %v17295_v6 = vpop.f32.mrb[50].mxu1 }
 0xb63   : > { %v13003_v12 = vadd.f32 %v13002_v59, %v13001_v56  ;;  %v12842_v5 = vpop.f32.mrb[51].mxu1  ;;  %v22673_v53 = vadd.f32 %v17295_v6, %v22557_v16  ;;  %v13008_v58 = vsel %vm869_vm2, %v22663_v54, 0.0  ;;  %v9160_v56 = vadd.f32 %v9159_v43, %v9158_v49 }
 0xb64   : > { %v13004_v47 = vsel %vm869_vm2, %v22658_v23, 0.0  ;;  %v22668_v24 = vadd.f32 %v22557_v16, %v12842_v5  ;;  %v23547_v5 = vld [vmem:[#allocation107_spill] sm:$0xff] }
 0xb65   : > { %v13005_v32 = vadd.f32 %v13004_v47, %v13003_v12  ;;  %v9161_v36 = vsel %vm869_vm2, %v23547_v5, 0.0  ;;  %v13010_v12 = vsel %vm869_vm2, %v22673_v53, 0.0 }
 0xb66   : > { %v13006_v41 = vsel %vm869_vm2, %v22668_v24, 0.0 }
 0xb67   : > { %v13007_v50 = vadd.f32 %v13006_v41, %v13005_v32  ;;  %v9162_v41 = vadd.f32 %v9161_v36, %v9160_v56 }
 0xb68   : > { %v17298_v9 = vpop.f32.mrb[52].mxu1 }
 0xb69   : > { %v13009_v20 = vadd.f32 %v13008_v58, %v13007_v50  ;;  %v12855_v59 = vpop.f32.mrb[53].mxu1  ;;  %v22687_v32 = vadd.f32 %v17298_v9, %v22557_v16 }
 0xb6a   : > { %v22684_v6 = vadd.f32 %v22557_v16, %v12855_v59  ;;  %v17299_v45 = vpop.f32.mrb[54].mxu1 }
 0xb6b   : > { %v13011_v47 = vadd.f32 %v13010_v12, %v13009_v20  ;;  %v12858_v26 = vpop.f32.mrb[55].mxu1  ;;  %v22695_v58 = vadd.f32 %v17299_v45, %v22557_v16  ;;  %v23548_v20 = vld [vmem:[#allocation108_spill] sm:$0xff]  ;;  %v13016_v9 = vsel %vm869_vm2, %v22687_v32, 0.0 }
 0xb6c   : > { %v13012_v49 = vsel %vm869_vm2, %v22684_v6, 0.0  ;;  %v22692_v43 = vadd.f32 %v22557_v16, %v12858_v26  ;;  %v9163_v12 = vsel %vm869_vm2, %v23548_v20, 0.0 }
 0xb6d   : > { %v13013_v50 = vadd.f32 %v13012_v49, %v13011_v47  ;;  %v9164_v62 = vadd.f32 %v9163_v12, %v9162_v41  ;;  %v13018_v56 = vsel %vm869_vm2, %v22695_v58, 0.0 }
 0xb6e   : > { %v13014_v59 = vsel %vm869_vm2, %v22692_v43, 0.0 }
 0xb6f   : > { %v13015_v14 = vadd.f32 %v13014_v59, %v13013_v50  ;;  %v23549_v50 = vld [vmem:[#allocation87_spill] sm:$0xff] }
 0xb70   : > { %v17302_v5 = vpop.f32.mrb[56].mxu1  ;;  %v9165_v59 = vsel %vm869_vm2, %v23549_v50, 0.0 }
 0xb71   : > { %v13017_v11 = vadd.f32 %v13016_v9, %v13015_v14  ;;  %v12871_v26 = vpop.f32.mrb[57].mxu1  ;;  %v22711_v20 = vadd.f32 %v17302_v5, %v22557_v16  ;;  %v9166_v12 = vadd.f32 %v9165_v59, %v9164_v62  ;;  %v9169_v62 = vsel %vm869_vm2, %v23551_v48, 0.0 }
 0xb72   : > { %v22706_v36 = vadd.f32 %v22557_v16, %v12871_v26  ;;  %v17303_v45 = vpop.f32.mrb[58].mxu1  ;;  %v9167_v26 = vsel %vm869_vm2, %v23550_v40, 0.0 }
 0xb73   : > { %v13019_v47 = vadd.f32 %v13018_v56, %v13017_v11  ;;  %v12874_v49 = vpop.f32.mrb[59].mxu1  ;;  %v22721_v11 = vadd.f32 %v17303_v45, %v22557_v16  ;;  %v13024_v5 = vsel %vm869_vm2, %v22711_v20, 0.0  ;;  %v9168_v21 = vadd.f32 %v9167_v26, %v9166_v12 }
 0xb74   : > { %v13020_v41 = vsel %vm869_vm2, %v22706_v36, 0.0  ;;  %v22716_v14 = vadd.f32 %v22557_v16, %v12874_v49 }
 0xb75   : > { %v13021_v9 = vadd.f32 %v13020_v41, %v13019_v47  ;;  %v13026_v47 = vsel %vm869_vm2, %v22721_v11, 0.0  ;;  %v9170_v26 = vadd.f32 %v9169_v62, %v9168_v21  ;;  %v23553_v62 = vld [vmem:[#allocation109_spill] sm:$0xff] }
 0xb76   : > { %v13022_v56 = vsel %vm869_vm2, %v22716_v14, 0.0 }
 0xb77   : > { %v13023_v50 = vadd.f32 %v13022_v56, %v13021_v9 }
 0xb78   : > { %v17306_v61 = vpop.f32.mrb[60].mxu1 }
 0xb79   : > { %v13025_v13 = vadd.f32 %v13024_v5, %v13023_v50  ;;  %v12887_v49 = vpop.f32.mrb[61].mxu1  ;;  %v22735_v9 = vadd.f32 %v17306_v61, %v22557_v16 }
 0xb7a   : > { %v22732_v45 = vadd.f32 %v22557_v16, %v12887_v49  ;;  %v17307_v59 = vpop.f32.mrb[62].mxu1 }
 0xb7b   : > { %v13027_v41 = vadd.f32 %v13026_v47, %v13025_v13  ;;  %v12890_v40 = vpop.f32.mrb[63].mxu1  ;;  %v22743_v5 = vadd.f32 %v17307_v59, %v22557_v16  ;;  %v23552_v13 = vld [vmem:[#allocation74_spill] sm:$0xff]  ;;  %v13032_v61 = vsel %vm869_vm2, %v22735_v9, 0.0 }
 0xb7c   : > { %v13028_v12 = vsel %vm869_vm2, %v22732_v45, 0.0  ;;  %v22740_v50 = vadd.f32 %v22557_v16, %v12890_v40  ;;  %v9171_v47 = vsel %vm869_vm2, %v23552_v13, 0.0  ;;  %v9173_v16 = vsel %vm869_vm2, %v23553_v62, 0.0  ;;  %v13043_v13 = vld [vmem:[#allocation24] sm:$0xff] }
 0xb7d   : > { %v13029_v56 = vadd.f32 %v13028_v12, %v13027_v41  ;;  %v9172_v18 = vadd.f32 %v9171_v47, %v9170_v26  ;;  %v13034_v40 = vsel %vm869_vm2, %v22743_v5, 0.0  ;;  %v17553_v26 = vpack.c.bf16 %v13044_v28, %v13043_v13  ;;  %v13045_v47 = vld [vmem:[#allocation24 + $0x10] sm:$0xff]  ;;  %v13050_v28 = vld [vmem:[#allocation24 + $0x38] sm:$0xff] }
 0xb7e   : > { %v13030_v49 = vsel %vm869_vm2, %v22740_v50, 0.0  ;;  %v13568_v62 = vld [vmem:[#allocation21 + $0x20] sm:$0xff] }
 0xb7f   : > { %v13031_v48 = vadd.f32 %v13030_v49, %v13029_v56  ;;  %v9174_v59 = vadd.f32 %v9173_v16, %v9172_v18  ;;  %v23554_v18 = vmov 0.0   ;;  %v13048_v16 = vld [vmem:[#allocation24 + $0x28] sm:$0xff] }
 0xb81   : > { %v13033_v34 = vadd.f32 %v13032_v61, %v13031_v48  ;;  %v9175_v2 = vrot.slane %v9174_v59, 4  ;;  %v13046_v61 = vld [vmem:[#allocation24 + $0x18] sm:$0xff] }
 0xb83   : > { %v13035_v21 = vadd.f32 %v13034_v40, %v13033_v34  ;;  %v9176_v3 = vadd.f32 %v9175_v2, %v9174_v59  ;;  %v17556_v34 = vpack.c.bf16 %v13046_v61, %v13045_v47  ;;  %v23555_v40 = vmov 0.0|0.0  }
 0xb85   : > { %v13036_v41 = vrot.slane %v13035_v21, 4  ;;  %v9177_v8 = vrot.slane %v9176_v3, 2 }
 0xb87   : > { %v13037_v12 = vadd.f32 %v13036_v41, %v13035_v21  ;;  %v13047_v21 = vld [vmem:[#allocation24 + $0x20] sm:$0xff]  ;;  %v9178_v41 = vadd.f32 %v9177_v8, %v9176_v3 }
 0xb88   : > { %v17559_v2 = vpack.c.bf16 %v13048_v16, %v13047_v21  ;;  %v13208_v8 = vld [vmem:[#allocation28] sm:$0xff] }
 0xb89   : > { %v13038_v56 = vrot.slane %v13037_v12, 2  ;;  %v13415_v21 = vld [vmem:[#allocation19] sm:$0xff]  ;;  %v13416_v16 = vld [vmem:[#allocation19 + $0x8] sm:$0xff] }
 0xb8b   : > { %v13039_v49 = vadd.f32 %v13038_v56, %v13037_v12 }
 0xb8d   : > { %v13040_v19 = vrot.slane %v13039_v49, 1 }
 0xb8f   : > { %v13041_v27 = vadd.f32 %v13040_v19, %v13039_v49  ;;  %v9179_v19 = vrot.slane %v9178_v41, 1 }
 0xb91   : > { %v13042_v48 = vmul.f32 0.00390625, %v13041_v27  ;;  %v13049_v27 = vld [vmem:[#allocation24 + $0x30] sm:$0xff]  ;;  %v9180_v59 = vadd.f32 %v9179_v19, %v9178_v41  ;;  %v13419_v19 = vld [vmem:[#allocation19 + $0x20] sm:$0xff] }
 0xb92   : > { %v17562_v13 = vpack.c.bf16 %v13050_v28, %v13049_v27  ;;  %v13417_v41 = vld [vmem:[#allocation19 + $0x10] sm:$0xff]  ;;  %v13418_v27 = vld [vmem:[#allocation19 + $0x18] sm:$0xff] }
 0xb93   : > { %17325 = vmatmul.mubr.msk.f32.vlgmr.msra.gmra.mrb[64].mxu0 %vm869_vm2, %v13042_v48  ;;  %v9182_v12 = vmul.f32 0.00390625, %v9180_v59  ;;  %v17568_v28 = vpack.c.bf16 %v13418_v27, %v13417_v41 }
 0xb94   : > { %17554 = vmatpush3.bf16.msra.mxu0 %v17553_v26  ;;  %17343 = vmatprep.mubr.msk.f32.mxu0 %vm19663_vm0, %v23554_v18  ;;  %v13205_v26 = vld [vmem:[#allocation27] sm:$0x1] }
 0xb95   : > { %17555 = vmatprep.subr.bf16.mxu0 %v23555_v40 }
 0xb98   : > { %17557 = vmatpush3.bf16.msra.mxu0 %v17556_v34 }
 0xb99   : > { %17558 = vmatprep.subr.bf16.mxu0 %v23555_v40 }
 0xb9c   : > { %17560 = vmatpush3.bf16.msra.mxu0 %v17559_v2  ;;  %v17564_v2 = vpack.c.bf16 %v13416_v16, %v13415_v21 }
 0xb9d   : > { %17561 = vmatprep.subr.bf16.mxu0 %v23555_v40  ;;  %v13290_v40 = vld [vmem:[#allocation31] sm:$0xff] }
 0xba0   : > { %17563 = vmatpush3.bf16.msra.mxu0 %v17562_v13  ;;  %v13420_v13 = vld [vmem:[#allocation19 + $0x28] sm:$0xff] }
 0xba1   : > { %17346 = vmatprep.subr.mxu0 %v23554_v18  ;;  %v17572_v59 = vpack.c.bf16 %v13420_v13, %v13419_v19 }
 0xba3   : > { %17344 = vmatmul.mubr.msk.f32.vlgmr.msra.gmra.mrb[66].mxu0 %vm869_vm2, %v9182_v12  ;;  %v13421_v12 = vld [vmem:[#allocation19 + $0x30] sm:$0xff] }
 0xba4   : > { %17348 = vmatprep.mubr.msk.f32.mxu0 %vm19663_vm0, %v23554_v18  ;;  %17347 = vmatpush3.msra.mxu0 %v13208_v8  ;;  %v13422_v8 = vld [vmem:[#allocation19 + $0x38] sm:$0xff] }
 0xba5   : > { %17351 = vmatprep.subr.mxu0 %v23554_v18 }
 0xc66   : > { %v13128_v3 = vpop.f32.mrb[64].mxu0 }
 0xc67   : > { %v17326_v56 = vpop.f32.mrb[65].mxu0 }
 0xc68   : > { %v13564_v56 = vld [vmem:[#allocation21] sm:$0xff] }
 0xc76   : > { %v13201_v49 = vpop.f32.mrb[66].mxu0 }
 0xc77   : > { %v13202_v48 = vadd.f32 %v13201_v49, %v13128_v3  ;;  %v17345_v47 = vpop.f32.mrb[67].mxu0  ;;  %v17576_v3 = vpack.c.bf16 %v13422_v8, %v13421_v12  ;;  %v13565_v49 = vld [vmem:[#allocation21 + $0x8] sm:$0xff]  ;;  %v23557_v8 = vld [vmem:[#allocation52_spill] sm:$0xff] }
 0xc79   : > { %v13206_v61 = vadd.f32 %v13205_v26, %v13202_v48  ;;  %v17580_v26 = vpack.c.bf16 %v13565_v49, %v13564_v56  ;;  %v13209_v48 = vld [vmem:[#allocation30] sm:$0x1]  ;;  %v13371_v56 = vadd.s32 16, %v23557_v8 }
 0xc7b   : > { %v13207_v34 = vmax.f32 %v13206_v61, 0.0 }
 0xc7d   : > { %17349 = vmatmul.mubr.msk.f32.vlgmr.msra.gmra.mrb[68].mxu0 %vm13210_vm1, %v13207_v34 }
 0xc7e   : > { %17352 = vmatpush3.msra.mxu0 %v13290_v40  ;;  %17353 = vmatprep.mubr.msk.f32.mxu0 %vm19663_vm0, %v23554_v18  ;;  %v13291_v40 = vld [vmem:[#allocation33] sm:$0x1] }
 0xc7f   : > { %17565 = vmatprep.subr.bf16.mxu0 %v17564_v2 }
 0xc81   : > { %17354 = vmatmul.mubr.msk.f32.vlgmr.msra.gmra.mrb[70].mxu0 %vm13210_vm1, %v13207_v34 }
 0xc82   : > { %17567 = vmatpush3.bf16.msra.mxu0 %v17564_v2 }
 0xc83   : > { %17569 = vmatprep.subr.bf16.mxu0 %v17568_v28 }
 0xc86   : > { %17571 = vmatpush3.bf16.msra.mxu0 %v17568_v28 }
 0xc87   : > { %17573 = vmatprep.subr.bf16.mxu0 %v17572_v59 }
 0xc8a   : > { %17575 = vmatpush3.bf16.msra.mxu0 %v17572_v59  ;;  %v23556_v59 = vlaneseq }
 0xc8b   : > { %17577 = vmatprep.subr.bf16.mxu0 %v17576_v3 }
 0xc8c   : > { %v13378_v12 = vand.u32 127, %v23556_v59  ;;  %v13375_v59 = vadd.s32 48, %v23557_v8 }
 0xc8e   : > { %17579 = vmatpush3.bf16.msra.mxu0 %v17576_v3  ;;  %v13370_v3 = vadd.s32 8, %v23557_v8  ;;  %vm13379_vm9 = vcmp.eq.s32.totalorder %v23557_v8, %v13378_v12  ;;  %vm13381_vm11 = vcmp.eq.s32.totalorder %v13371_v56, %v13378_v12  ;;  %vm13385_vm15 = vcmp.eq.s32.totalorder %v13375_v59, %v13378_v12 }
 0xc8f   : > { %17581 = vmatprep.subr.bf16.mxu0 %v17580_v26 }
 0xc90   : > { %vm13380_vm10 = vcmp.eq.s32.totalorder %v13370_v3, %v13378_v12 }
 0xd50   : > { %v13280_v47 = vpop.f32.mrb[68].mxu0 }
 0xd51   : > { %v13281_v61 = vadd.f32 %v13280_v47, %v13209_v48  ;;  %v17350_v34 = vpop.f32.mrb[69].mxu0  ;;  %v13405_v48 = vsub.s32 0, %v23557_v8  ;;  %v13372_v47 = vadd.s32 24, %v23557_v8 }
 0xd53   : > { %v15347_v21 = vmul.f32 -1.442695, %v13281_v61  ;;  %v13373_v61 = vadd.s32 32, %v23557_v8  ;;  %vm13382_vm12 = vcmp.eq.s32.totalorder %v13372_v47, %v13378_v12  ;;  %v13376_v47 = vadd.s32 56, %v23557_v8 }
 0xd54   : > { %v13358_v16 = vpop.f32.mrb[70].mxu0 }
 0xd55   : > { %18949 = vpow2.f32 %v15347_v21  ;;  %v13359_v41 = vadd.f32 %v13358_v16, %v13291_v40  ;;  %v17355_v2 = vpop.f32.mrb[71].mxu0  ;;  %v15350_v40 = vsel %vm13379_vm9, 1.0, %v23554_v18  ;;  %v15351_v21 = vsel %vm13380_vm10, 1.0, %v23554_v18 }
 0xd56   : > { %v13567_v2 = vld [vmem:[#allocation21 + $0x18] sm:$0xff]  ;;  %vm13383_vm13 = vcmp.eq.s32.totalorder %v13373_v61, %v13378_v12  ;;  %vm13386_vm3 = vcmp.eq.s32.totalorder %v13376_v47, %v13378_v12 }
 0xd57   : > { %v15349_v27 = vmul.f32 -1.442695, %v13359_v41  ;;  %v13566_v41 = vld [vmem:[#allocation21 + $0x10] sm:$0xff]  ;;  %v15354_v52 = vsel %vm13383_vm13, 1.0, %v23554_v18 }
 0xd58   : > { %v17584_v3 = vpack.c.bf16 %v13567_v2, %v13566_v41 }
 0xd59   : > { %18951 = vpow2.f32 %v15349_v27  ;;  %v15352_v27 = vsel %vm13381_vm11, 1.0, %v23554_v18 }
 0xd5f   : > { %v18950_v28 = vpop.eup %18949 }
 0xd60   : > { %v13287_v19 = vadd.f32 1.0, %v18950_v28  ;;  %v13374_v28 = vadd.s32 40, %v23557_v8 }
 0xd62   : > { %18953 = vrcp.f32 %v13287_v19  ;;  %vm13384_vm14 = vcmp.eq.s32.totalorder %v13374_v28, %v13378_v12 }
 0xd63   : > { %v18952_v13 = vpop.eup %18951 }
 0xd64   : > { %v13365_v49 = vadd.f32 1.0, %v18952_v13 }
 0xd66   : > { %18955 = vrcp.f32 %v13365_v49  ;;  %v15353_v49 = vsel %vm13382_vm12, 1.0, %v23554_v18 }
 0xd6c   : > { %v18954_v34 = vpop.eup %18953 }
 0xd6d   : > { %v13406_v16 = vrot.slane %v18954_v34, %v13405_v48  ;;  %v13569_v34 = vld [vmem:[#allocation21 + $0x28] sm:$0xff] }
 0xd6e   : > { %v17588_v41 = vpack.c.bf16 %v13569_v34, %v13568_v62  ;;  %v15357_v62 = vsel %vm13386_vm3, 1.0, %v23554_v18 }
 0xd6f   : > { %v13407_v19 = vmul.f32 %v15350_v40, %v13406_v16  ;;  %v13408_v13 = vmul.f32 %v15351_v21, %v13406_v16  ;;  %v13409_v56 = vmul.f32 %v15352_v27, %v13406_v16  ;;  %v13410_v61 = vmul.f32 %v15353_v49, %v13406_v16 }
 0xd70   : > { %v13411_v2 = vmul.f32 %v15354_v52, %v13406_v16  ;;  %v18956_v31 = vpop.eup %18955 }
 0xd71   : > { %17372 = vmatprep.mubr.msk.f32.mxu0 %vm869_vm2, %v13407_v19  ;;  %v15355_v19 = vsel %vm13384_vm14, 1.0, %v23554_v18  ;;  %v13555_v28 = vrot.slane %v18956_v31, %v13405_v48 }
 0xd72   : > { %17373 = vmatmul.mubr.msk.f32.vlgmr.msra.gmra.mrb[72].mxu0 %vm869_vm2, %v13408_v13  ;;  %v15356_v13 = vsel %vm13385_vm15, 1.0, %v23554_v18  ;;  %v13412_v8 = vmul.f32 %v15355_v19, %v13406_v16 }
 0xd73   : > { %17375 = vmatprep.mubr.msk.f32.mxu0 %vm869_vm2, %v13409_v56  ;;  %17583 = vmatpush3.bf16.msra.mxu0 %v17580_v26  ;;  %v17592_v26 = vpack.c.bf16 %v13571_v55, %v13570_v17  ;;  %v13413_v59 = vmul.f32 %v15356_v13, %v13406_v16  ;;  %v13414_v56 = vmul.f32 %v15357_v62, %v13406_v16 }
 0xd74   : > { %17585 = vmatprep.subr.bf16.mxu0 %v17584_v3  ;;  %v13556_v34 = vmul.f32 %v15350_v40, %v13555_v28  ;;  %v13557_v12 = vmul.f32 %v15351_v21, %v13555_v28  ;;  %v13559_v31 = vmul.f32 %v15353_v49, %v13555_v28  ;;  %v13560_v55 = vmul.f32 %v15354_v52, %v13555_v28 }
 0xd75   : > { %v13561_v17 = vmul.f32 %v15355_v19, %v13555_v28  ;;  %v13562_v18 = vmul.f32 %v15356_v13, %v13555_v28  ;;  %v13563_v48 = vmul.f32 %v15357_v62, %v13555_v28 }
 0xd76   : > { %17376 = vmatmul.mubr.msk.f32.gmra.mrb[74].mxu0 %vm869_vm2, %v13410_v61 }
 0xd77   : > { %17378 = vmatprep.mubr.msk.f32.mxu0 %vm869_vm2, %v13411_v2  ;;  %17587 = vmatpush3.bf16.msra.mxu0 %v17584_v3  ;;  %v13558_v3 = vmul.f32 %v15352_v27, %v13555_v28 }
 0xd78   : > { %17589 = vmatprep.subr.bf16.mxu0 %v17588_v41 }
 0xd7a   : > { %17379 = vmatmul.mubr.msk.f32.gmra.mrb[76].mxu0 %vm869_vm2, %v13412_v8 }
 0xd7b   : > { %17381 = vmatprep.mubr.msk.f32.mxu0 %vm869_vm2, %v13413_v59  ;;  %17591 = vmatpush3.bf16.msra.mxu0 %v17588_v41 }
 0xd7c   : > { %17593 = vmatprep.subr.bf16.mxu0 %v17592_v26 }
 0xd7e   : > { %17382 = vmatmul.mubr.msk.f32.gmra.mrb[78].mxu0 %vm869_vm2, %v13414_v56 }
 0xd7f   : > { %17595 = vmatpush3.bf16.msra.mxu0 %v17592_v26  ;;  %17400 = vmatprep.mubr.msk.f32.mxu0 %vm869_vm2, %v13556_v34 }
 0xd82   : > { %17401 = vmatmul.mubr.msk.f32.vlgmr.msra.gmra.mrb[80].mxu0 %vm869_vm2, %v13557_v12 }
 0xd83   : > { %17403 = vmatprep.mubr.msk.f32.mxu0 %vm869_vm2, %v13558_v3 }
 0xd86   : > { %17404 = vmatmul.mubr.msk.f32.gmra.mrb[82].mxu0 %vm869_vm2, %v13559_v31 }
 0xd87   : > { %17406 = vmatprep.mubr.msk.f32.mxu0 %vm869_vm2, %v13560_v55 }
 0xd8a   : > { %17407 = vmatmul.mubr.msk.f32.gmra.mrb[84].mxu0 %vm869_vm2, %v13561_v17 }
 0xd8b   : > { %17409 = vmatprep.mubr.msk.f32.mxu0 %vm869_vm2, %v13562_v18 }
 0xd8e   : > { %17410 = vmatmul.mubr.msk.f32.gmra.mrb[86].mxu0 %vm869_vm2, %v13563_v48 }
 0xd8f   : > { %17428 = vmatprep.mubr.msk.f32.mxu0 %vm869_vm2, %v22562_v29 }
 0xe45   : > { %v17374_v40 = vpop.f32.mrb[72].mxu0 }
 0xe46   : > { %v13513_v21 = vpop.f32.mrb[73].mxu0 }
 0xe47   : > { %v17612_v16 = vpack.c.bf16 %v17374_v40, %v13513_v21 }
 0xe49   : > { %v17377_v52 = vpop.f32.mrb[74].mxu0 }
 0xe4a   : > { %v13523_v27 = vpop.f32.mrb[75].mxu0 }
 0xe4b   : > { %v17616_v49 = vpack.c.bf16 %v17377_v52, %v13523_v27  ;;  %v14449_v27 = vld [vmem:[%s20275_s20 + $0x18] sm:$0xff] }
 0xe4d   : > { %v17380_v47 = vpop.f32.mrb[76].mxu0 }
 0xe4e   : > { %v13533_v61 = vpop.f32.mrb[77].mxu0 }
 0xe4f   : > { %v17620_v41 = vpack.c.bf16 %v17380_v47, %v13533_v61  ;;  %v14448_v47 = vld [vmem:[%s20275_s20 + $0x10] sm:$0xff] }
 0xe51   : > { %v17383_v2 = vpop.f32.mrb[78].mxu0 }
 0xe52   : > { %v13543_v19 = vpop.f32.mrb[79].mxu0 }
 0xe53   : > { %v17624_v13 = vpack.c.bf16 %v17383_v2, %v13543_v19 }
 0xe55   : > { %v17402_v8 = vpop.f32.mrb[80].mxu0 }
 0xe56   : > { %v13662_v26 = vpop.f32.mrb[81].mxu0 }
 0xe57   : > { %v17596_v28 = vpack.c.bf16 %v17402_v8, %v13662_v26 }
 0xe59   : > { %v17405_v59 = vpop.f32.mrb[82].mxu0  ;;  %17597 = vmatprep.subr.bf16.mxu0 %v17596_v28 }
 0xe5a   : > { %v13672_v62 = vpop.f32.mrb[83].mxu0  ;;  %17599 = vmatpush3.bf16.msra.mxu0 %v17596_v28 }
 0xe5b   : > { %v17600_v29 = vpack.c.bf16 %v17405_v59, %v13672_v62  ;;  %v14451_v62 = vld [vmem:[%s20275_s20 + $0x28] sm:$0xff] }
 0xe5d   : > { %v17408_v56 = vpop.f32.mrb[84].mxu0  ;;  %17601 = vmatprep.subr.bf16.mxu0 %v17600_v29 }
 0xe5e   : > { %v13682_v34 = vpop.f32.mrb[85].mxu0  ;;  %17603 = vmatpush3.bf16.msra.mxu0 %v17600_v29 }
 0xe5f   : > { %v17604_v12 = vpack.c.bf16 %v17408_v56, %v13682_v34  ;;  %v14450_v56 = vld [vmem:[%s20275_s20 + $0x20] sm:$0xff] }
 0xe61   : > { %v17411_v3 = vpop.f32.mrb[86].mxu0  ;;  %17605 = vmatprep.subr.bf16.mxu0 %v17604_v12 }
 0xe62   : > { %v13692_v31 = vpop.f32.mrb[87].mxu0  ;;  %17607 = vmatpush3.bf16.msra.mxu0 %v17604_v12 }
 0xe63   : > { %v17608_v55 = vpack.c.bf16 %v17411_v3, %v13692_v31 }
 0xe65   : > { %17609 = vmatprep.subr.bf16.mxu0 %v17608_v55 }
 0xe66   : > { %17611 = vmatpush3.bf16.msra.mxu0 %v17608_v55 }
 0xe67   : > { %17613 = vmatprep.subr.bf16.mxu0 %v17612_v16 }
 0xe69   : > { %17429 = vmatmul.mubr.msk.f32.vlgmr.msra.gmra.mrb[88].mxu0 %vm869_vm2, %v22570_v37  ;;  %v23559_v37 = vld [vmem:[#allocation82_spill] sm:$0xff] }
 0xe6a   : > { %17431 = vmatprep.mubr.msk.f32.mxu0 %vm869_vm2, %v22567_v63  ;;  %17615 = vmatpush3.bf16.msra.mxu0 %v17612_v16  ;;  %v23558_v63 = vld [vmem:[#allocation90_spill] sm:$0xff] }
 0xe6b   : > { %17617 = vmatprep.subr.bf16.mxu0 %v17616_v49 }
 0xe6d   : > { %17432 = vmatmul.mubr.msk.f32.gmra.mrb[90].mxu0 %vm869_vm2, %v22577_v10  ;;  %v23566_v10 = vld [vmem:[#allocation96_spill] sm:$0xff] }
 0xe6e   : > { %17434 = vmatprep.mubr.msk.f32.mxu0 %vm869_vm2, %v22588_v46  ;;  %17619 = vmatpush3.bf16.msra.mxu0 %v17616_v49  ;;  %v23567_v46 = vld [vmem:[#allocation97_spill] sm:$0xff] }
 0xe6f   : > { %17621 = vmatprep.subr.bf16.mxu0 %v17620_v41 }
 0xe71   : > { %17435 = vmatmul.mubr.msk.f32.gmra.mrb[92].mxu0 %vm869_vm2, %v22596_v1  ;;  %v23569_v1 = vld [vmem:[#allocation99_spill] sm:$0xff] }
 0xe72   : > { %17437 = vmatprep.mubr.msk.f32.mxu0 %vm869_vm2, %v22591_v15  ;;  %17623 = vmatpush3.bf16.msra.mxu0 %v17620_v41  ;;  %v23568_v15 = vld [vmem:[#allocation98_spill] sm:$0xff] }
 0xe73   : > { %17625 = vmatprep.subr.bf16.mxu0 %v17624_v13 }
 0xe75   : > { %17438 = vmatmul.mubr.msk.f32.gmra.mrb[94].mxu0 %vm869_vm2, %v22599_v44  ;;  %v23570_v44 = vld [vmem:[#allocation100_spill] sm:$0xff] }
 0xe76   : > { %17440 = vmatprep.mubr.msk.f32.mxu0 %vm869_vm2, %v22610_v39  ;;  %17627 = vmatpush3.bf16.msra.mxu0 %v17624_v13  ;;  %v23571_v39 = vld [vmem:[#allocation101_spill] sm:$0xff] }
 0xe79   : > { %17441 = vmatmul.mubr.msk.f32.gmra.mrb[96].mxu0 %vm869_vm2, %v22620_v7  ;;  %v23573_v7 = vld [vmem:[#allocation103_spill] sm:$0xff] }
 0xe7a   : > { %17443 = vmatprep.mubr.msk.f32.mxu0 %vm869_vm2, %v22615_v30  ;;  %v23572_v30 = vld [vmem:[#allocation102_spill] sm:$0xff] }
 0xe7d   : > { %17444 = vmatmul.mubr.msk.f32.gmra.mrb[98].mxu0 %vm869_vm2, %v22625_v51  ;;  %v23574_v51 = vld [vmem:[#allocation104_spill] sm:$0xff] }
 0xe7e   : > { %17446 = vmatprep.mubr.msk.f32.mxu0 %vm869_vm2, %v22636_v38  ;;  %v23575_v38 = vld [vmem:[#allocation105_spill] sm:$0xff] }
 0xe81   : > { %17447 = vmatmul.mubr.msk.f32.gmra.mrb[100].mxu0 %vm869_vm2, %v22644_v22  ;;  %v23577_v22 = vld [vmem:[#allocation107_spill] sm:$0xff] }
 0xe82   : > { %17449 = vmatprep.mubr.msk.f32.mxu0 %vm869_vm2, %v22639_v4  ;;  %v23576_v4 = vld [vmem:[#allocation106_spill] sm:$0xff] }
 0xe85   : > { %17450 = vmatmul.mubr.msk.f32.gmra.mrb[102].mxu0 %vm869_vm2, %v22647_v33  ;;  %v23578_v33 = vld [vmem:[#allocation108_spill] sm:$0xff] }
 0xe86   : > { %17452 = vmatprep.mubr.msk.f32.mxu0 %vm869_vm2, %v22658_v23  ;;  %v23579_v23 = vld [vmem:[#allocation87_spill] sm:$0xff] }
 0xe89   : > { %17453 = vmatmul.mubr.msk.f32.gmra.mrb[104].mxu0 %vm869_vm2, %v22668_v24  ;;  %v23581_v24 = vld [vmem:[#allocation89_spill] sm:$0xff] }
 0xe8a   : > { %17455 = vmatprep.mubr.msk.f32.mxu0 %vm869_vm2, %v22663_v54  ;;  %v23580_v54 = vld [vmem:[#allocation88_spill] sm:$0xff] }
 0xe8d   : > { %17456 = vmatmul.mubr.msk.f32.gmra.mrb[106].mxu0 %vm869_vm2, %v22673_v53  ;;  %v23582_v53 = vld [vmem:[#allocation74_spill] sm:$0xff] }
 0xe8e   : > { %17458 = vmatprep.mubr.msk.f32.mxu0 %vm869_vm2, %v22684_v6  ;;  %v23583_v6 = vld [vmem:[#allocation109_spill] sm:$0xff] }
 0xe91   : > { %17459 = vmatmul.mubr.msk.f32.gmra.mrb[108].mxu0 %vm869_vm2, %v22692_v43 }
 0xe92   : > { %17461 = vmatprep.mubr.msk.f32.mxu0 %vm869_vm2, %v22687_v32  ;;  %v22930_v32 = vld [vmem:[#allocation22] ss:$0 sm:$0xff] }
 0xe95   : > { %17462 = vmatmul.mubr.msk.f32.gmra.mrb[110].mxu0 %vm869_vm2, %v22695_v58 }
 0xe96   : > { %17464 = vmatprep.mubr.msk.f32.mxu0 %vm869_vm2, %v22706_v36 }
 0xe99   : > { %17465 = vmatmul.mubr.msk.f32.gmra.mrb[112].mxu0 %vm869_vm2, %v22716_v14 }
 0xe9a   : > { %17467 = vmatprep.mubr.msk.f32.mxu0 %vm869_vm2, %v22711_v20 }
 0xe9d   : > { %17468 = vmatmul.mubr.msk.f32.gmra.mrb[114].mxu0 %vm869_vm2, %v22721_v11  ;;  %v14447_v11 = vld [vmem:[%s20275_s20 + $0x8] sm:$0xff] }
 0xe9e   : > { %17470 = vmatprep.mubr.msk.f32.mxu0 %vm869_vm2, %v22732_v45 }
 0xea1   : > { %17471 = vmatmul.mubr.msk.f32.gmra.mrb[116].mxu0 %vm869_vm2, %v22740_v50 }
 0xea2   : > { %17473 = vmatprep.mubr.msk.f32.mxu0 %vm869_vm2, %v22735_v9  ;;  %v14446_v9 = vld [vmem:[%s20275_s20] sm:$0xff] }
 0xea5   : > { %17474 = vmatmul.mubr.msk.f32.gmra.mrb[118].mxu0 %vm869_vm2, %v22743_v5 }
 0xea6   : > { %17492 = vmatprep.mubr.msk.f32.mxu0 %vm869_vm2, %v23523_v60  ;;  %v23560_v60 = vld [vmem:[#allocation85_spill] sm:$0xff] }
 0xea9   : > { %17493 = vmatmul.mubr.msk.f32.vlgmr.msra.gmra.mrb[88].mxu0 %vm869_vm2, %v23522_v35  ;;  %v23561_v35 = vld [vmem:[#allocation91_spill] sm:$0xff] }
 0xeaa   : > { %17495 = vmatprep.mubr.msk.f32.mxu0 %vm869_vm2, %v23524_v42  ;;  %v23562_v42 = vld [vmem:[#allocation92_spill] sm:$0xff] }
 0xead   : > { %17496 = vmatmul.mubr.msk.f32.gmra.mrb[90].mxu0 %vm869_vm2, %v23525_v25  ;;  %v23563_v25 = vld [vmem:[#allocation93_spill] sm:$0xff] }
 0xeae   : > { %17498 = vmatprep.mubr.msk.f32.mxu0 %vm869_vm2, %v23526_v0  ;;  %v23564_v0 = vld [vmem:[#allocation94_spill] sm:$0xff] }
 0xeb1   : > { %17499 = vmatmul.mubr.msk.f32.gmra.mrb[92].mxu0 %vm869_vm2, %v23527_v57  ;;  %v23565_v57 = vld [vmem:[#allocation95_spill] sm:$0xff] }
 0xeb2   : > { %17501 = vmatprep.mubr.msk.f32.mxu0 %vm869_vm2, %v23558_v63 }
 0xeb5   : > { %17502 = vmatmul.mubr.msk.f32.gmra.mrb[94].mxu0 %vm869_vm2, %v23559_v37 }
 0xeb6   : > { %17504 = vmatprep.mubr.msk.f32.mxu0 %vm869_vm2, %v23560_v60 }
 0xeb9   : > { %17505 = vmatmul.mubr.msk.f32.gmra.mrb[96].mxu0 %vm869_vm2, %v23561_v35 }
 0xeba   : > { %17507 = vmatprep.mubr.msk.f32.mxu0 %vm869_vm2, %v23562_v42  ;;  %v14453_v42 = vld [vmem:[%s20275_s20 + $0x38] sm:$0xff] }
 0xebd   : > { %17508 = vmatmul.mubr.msk.f32.gmra.mrb[98].mxu0 %vm869_vm2, %v23563_v25 }
 0xebe   : > { %17510 = vmatprep.mubr.msk.f32.mxu0 %vm869_vm2, %v23564_v0  ;;  %v14452_v0 = vld [vmem:[%s20275_s20 + $0x30] sm:$0xff] }
 0xec1   : > { %17511 = vmatmul.mubr.msk.f32.gmra.mrb[100].mxu0 %vm869_vm2, %v23565_v57 }
 0xec2   : > { %17513 = vmatprep.mubr.msk.f32.mxu0 %vm869_vm2, %v23566_v10 }
 0xec5   : > { %17514 = vmatmul.mubr.msk.f32.gmra.mrb[102].mxu0 %vm869_vm2, %v23567_v46 }
 0xec6   : > { %17516 = vmatprep.mubr.msk.f32.mxu0 %vm869_vm2, %v23568_v15 }
 0xec9   : > { %17517 = vmatmul.mubr.msk.f32.gmra.mrb[104].mxu0 %vm869_vm2, %v23569_v1 }
 0xeca   : > { %17519 = vmatprep.mubr.msk.f32.mxu0 %vm869_vm2, %v23570_v44 }
 0xecd   : > { %17520 = vmatmul.mubr.msk.f32.gmra.mrb[106].mxu0 %vm869_vm2, %v23571_v39 }
 0xece   : > { %17522 = vmatprep.mubr.msk.f32.mxu0 %vm869_vm2, %v23572_v30 }
 0xed1   : > { %17523 = vmatmul.mubr.msk.f32.gmra.mrb[108].mxu0 %vm869_vm2, %v23573_v7 }
 0xed2   : > { %17525 = vmatprep.mubr.msk.f32.mxu0 %vm869_vm2, %v23574_v51  ;;  %v14455_v51 = vld [vmem:[%s20275_s20 + $0x48] sm:$0xff] }
 0xed5   : > { %17526 = vmatmul.mubr.msk.f32.gmra.mrb[110].mxu0 %vm869_vm2, %v23575_v38 }
 0xed6   : > { %17528 = vmatprep.mubr.msk.f32.mxu0 %vm869_vm2, %v23576_v4  ;;  %v14454_v4 = vld [vmem:[%s20275_s20 + $0x40] sm:$0xff] }
 0xed9   : > { %17529 = vmatmul.mubr.msk.f32.gmra.mrb[112].mxu0 %vm869_vm2, %v23577_v22 }
 0xeda   : > { %17531 = vmatprep.mubr.msk.f32.mxu0 %vm869_vm2, %v23578_v33 }
 0xedd   : > { %17532 = vmatmul.mubr.msk.f32.gmra.mrb[114].mxu0 %vm869_vm2, %v23579_v23 }
 0xede   : > { %17534 = vmatprep.mubr.msk.f32.mxu0 %vm869_vm2, %v23580_v54 }
 0xee1   : > { %17535 = vmatmul.mubr.msk.f32.gmra.mrb[116].mxu0 %vm869_vm2, %v23581_v24 }
 0xee2   : > { %17537 = vmatprep.mubr.msk.f32.mxu0 %vm869_vm2, %v23582_v53 }
 0xee5   : > { %17538 = vmatmul.mubr.msk.f32.gmra.mrb[118].mxu0 %vm869_vm2, %v23583_v6 }
 0xf7c   : > { %v17494_v43 = vpop.f32.mrb[88].mxu0 }
 0xf7d   : > { %v14319_v58 = vadd.f32 %v17494_v43, %v22930_v32  ;;  %v14152_v20 = vpop.f32.mrb[89].mxu0 }
 0xf7e   : > { %v14318_v36 = vadd.f32 %v22930_v32, %v14152_v20  ;;  %v14457_v20 = vld [vmem:[%s20275_s20 + $0x58] sm:$0xff] }
 0xf7f   : > { %vm14351_vm4 = vcmp.ge.f32.partialorder %v14319_v58, 0.0  ;;  %v14383_v14 = vmul.f32 0.05, %v14319_v58 }
 0xf80   : > { %vm14350_vm5 = vcmp.ge.f32.partialorder %v14318_v36, 0.0  ;;  %v14382_v45 = vmul.f32 0.05, %v14318_v36  ;;  %v17497_v50 = vpop.f32.mrb[90].mxu0 }
 0xf81   : > { %v14415_v5 = vsel %vm14351_vm4, %v14319_v58, %v14383_v14  ;;  %v14321_v17 = vadd.f32 %v17497_v50, %v22930_v32  ;;  %v14162_v18 = vpop.f32.mrb[91].mxu0  ;;  %v14456_v14 = vld [vmem:[%s20275_s20 + $0x50] sm:$0xff] }
 0xf82   : > { %v14479_v48 = vadd.f32 %v14447_v11, %v14415_v5  ;;  %v14414_v40 = vsel %vm14350_vm5, %v14318_v36, %v14382_v45  ;;  %v14320_v21 = vadd.f32 %v22930_v32, %v14162_v18 }
 0xf83   : > { %v14478_v16 = vadd.f32 %v14446_v9, %v14414_v40  ;;  %vm14353_vm2 = vcmp.ge.f32.partialorder %v14321_v17, 0.0  ;;  %v14385_v52 = vmul.f32 0.05, %v14321_v17 }
 0xf84   : > { %14511 = vst [vmem:[%s22941_s26 + $0x8] sm:$0xff] %v14479_v48  ;;  %vm14352_vm6 = vcmp.ge.f32.partialorder %v14320_v21, 0.0  ;;  %v14384_v49 = vmul.f32 0.05, %v14320_v21  ;;  %v17500_v61 = vpop.f32.mrb[92].mxu0 }
 0xf85   : > { %14510 = vst [vmem:[%s22941_s26] sm:$0xff] %v14478_v16  ;;  %v14417_v41 = vsel %vm14353_vm2, %v14321_v17, %v14385_v52  ;;  %v14323_v2 = vadd.f32 %v17500_v61, %v22930_v32  ;;  %v14172_v19 = vpop.f32.mrb[93].mxu0  ;;  %v14458_v52 = vld [vmem:[%s20275_s20 + $0x60] sm:$0xff] }
 0xf86   : > { %v14481_v13 = vadd.f32 %v14449_v27, %v14417_v41  ;;  %v14416_v8 = vsel %vm14352_vm6, %v14320_v21, %v14384_v49  ;;  %v14322_v26 = vadd.f32 %v22930_v32, %v14172_v19  ;;  %v14459_v21 = vld [vmem:[%s20275_s20 + $0x68] sm:$0xff] }
 0xf87   : > { %v14480_v28 = vadd.f32 %v14448_v47, %v14416_v8  ;;  %vm14355_vm7 = vcmp.ge.f32.partialorder %v14323_v2, 0.0  ;;  %v14387_v59 = vmul.f32 0.05, %v14323_v2 }
 0xf88   : > { %14513 = vst [vmem:[%s22941_s26 + $0x18] sm:$0xff] %v14481_v13  ;;  %vm14354_vm8 = vcmp.ge.f32.partialorder %v14322_v26, 0.0  ;;  %v14386_v29 = vmul.f32 0.05, %v14322_v26  ;;  %v17503_v34 = vpop.f32.mrb[94].mxu0 }
 0xf89   : > { %14512 = vst [vmem:[%s22941_s26 + $0x10] sm:$0xff] %v14480_v28  ;;  %v14419_v12 = vsel %vm14355_vm7, %v14323_v2, %v14387_v59  ;;  %v14325_v3 = vadd.f32 %v17503_v34, %v22930_v32  ;;  %v14182_v31 = vpop.f32.mrb[95].mxu0  ;;  %v14460_v59 = vld [vmem:[%s20275_s20 + $0x70] sm:$0xff] }
 0xf8a   : > { %v14483_v55 = vadd.f32 %v14451_v62, %v14419_v12  ;;  %v14418_v63 = vsel %vm14354_vm8, %v14322_v26, %v14386_v29  ;;  %v14324_v37 = vadd.f32 %v22930_v32, %v14182_v31  ;;  %v14461_v26 = vld [vmem:[%s20275_s20 + $0x78] sm:$0xff] }
 0xf8b   : > { %v14482_v60 = vadd.f32 %v14450_v56, %v14418_v63  ;;  %vm14357_vm0 = vcmp.ge.f32.partialorder %v14325_v3, 0.0  ;;  %v14389_v35 = vmul.f32 0.05, %v14325_v3 }
 0xf8c   : > { %14515 = vst [vmem:[%s22941_s26 + $0x28] sm:$0xff] %v14483_v55  ;;  %vm14356_vm1 = vcmp.ge.f32.partialorder %v14324_v37, 0.0  ;;  %v14388_v25 = vmul.f32 0.05, %v14324_v37  ;;  %v17506_v57 = vpop.f32.mrb[96].mxu0 }
 0xf8d   : > { %14514 = vst [vmem:[%s22941_s26 + $0x20] sm:$0xff] %v14482_v60  ;;  %v14421_v10 = vsel %vm14357_vm0, %v14325_v3, %v14389_v35  ;;  %v14327_v46 = vadd.f32 %v17506_v57, %v22930_v32  ;;  %v14192_v15 = vpop.f32.mrb[97].mxu0  ;;  %v14462_v35 = vld [vmem:[%s20275_s20 + $0x80] sm:$0xff] }
 0xf8e   : > { %v14485_v1 = vadd.f32 %v14453_v42, %v14421_v10  ;;  %v14420_v44 = vsel %vm14356_vm1, %v14324_v37, %v14388_v25  ;;  %v14326_v39 = vadd.f32 %v22930_v32, %v14192_v15  ;;  %v14463_v37 = vld [vmem:[%s20275_s20 + $0x88] sm:$0xff] }
 0xf8f   : > { %v14484_v30 = vadd.f32 %v14452_v0, %v14420_v44  ;;  %vm14359_vm9 = vcmp.ge.f32.partialorder %v14327_v46, 0.0  ;;  %v14391_v7 = vmul.f32 0.05, %v14327_v46 }
 0xf90   : > { %14517 = vst [vmem:[%s22941_s26 + $0x38] sm:$0xff] %v14485_v1  ;;  %vm14358_vm10 = vcmp.ge.f32.partialorder %v14326_v39, 0.0  ;;  %v14390_v38 = vmul.f32 0.05, %v14326_v39  ;;  %v17509_v22 = vpop.f32.mrb[98].mxu0 }
 0xf91   : > { %14516 = vst [vmem:[%s22941_s26 + $0x30] sm:$0xff] %v14484_v30  ;;  %v14423_v33 = vsel %vm14359_vm9, %v14327_v46, %v14391_v7  ;;  %v14329_v23 = vadd.f32 %v17509_v22, %v22930_v32  ;;  %v14202_v54 = vpop.f32.mrb[99].mxu0  ;;  %v14464_v7 = vld [vmem:[%s20275_s20 + $0x90] sm:$0xff] }
 0xf92   : > { %v14487_v24 = vadd.f32 %v14455_v51, %v14423_v33  ;;  %v14422_v53 = vsel %vm14358_vm10, %v14326_v39, %v14390_v38  ;;  %v14328_v6 = vadd.f32 %v22930_v32, %v14202_v54  ;;  %v14465_v39 = vld [vmem:[%s20275_s20 + $0x98] sm:$0xff] }
 0xf93   : > { %v14486_v43 = vadd.f32 %v14454_v4, %v14422_v53  ;;  %vm14361_vm11 = vcmp.ge.f32.partialorder %v14329_v23, 0.0  ;;  %v14393_v58 = vmul.f32 0.05, %v14329_v23 }
 0xf94   : > { %14519 = vst [vmem:[%s22941_s26 + $0x48] sm:$0xff] %v14487_v24  ;;  %vm14360_vm12 = vcmp.ge.f32.partialorder %v14328_v6, 0.0  ;;  %v14392_v36 = vmul.f32 0.05, %v14328_v6  ;;  %v17512_v11 = vpop.f32.mrb[100].mxu0 }
 0xf95   : > { %14518 = vst [vmem:[%s22941_s26 + $0x40] sm:$0xff] %v14486_v43  ;;  %v14425_v45 = vsel %vm14361_vm11, %v14329_v23, %v14393_v58  ;;  %v14331_v9 = vadd.f32 %v17512_v11, %v22930_v32  ;;  %v14212_v50 = vpop.f32.mrb[101].mxu0  ;;  %v14466_v58 = vld [vmem:[%s20275_s20 + $0xa0] sm:$0xff] }
 0xf96   : > { %v14489_v5 = vadd.f32 %v14457_v20, %v14425_v45  ;;  %v14424_v17 = vsel %vm14360_vm12, %v14328_v6, %v14392_v36  ;;  %v14330_v18 = vadd.f32 %v22930_v32, %v14212_v50  ;;  %v14467_v6 = vld [vmem:[%s20275_s20 + $0xa8] sm:$0xff] }
 0xf97   : > { %v14488_v48 = vadd.f32 %v14456_v14, %v14424_v17  ;;  %vm14363_vm13 = vcmp.ge.f32.partialorder %v14331_v9, 0.0  ;;  %v14395_v40 = vmul.f32 0.05, %v14331_v9 }
 0xf98   : > { %14521 = vst [vmem:[%s22941_s26 + $0x58] sm:$0xff] %v14489_v5  ;;  %vm14362_vm14 = vcmp.ge.f32.partialorder %v14330_v18, 0.0  ;;  %v14394_v16 = vmul.f32 0.05, %v14330_v18  ;;  %v17515_v27 = vpop.f32.mrb[102].mxu0 }
 0xf99   : > { %14520 = vst [vmem:[%s22941_s26 + $0x50] sm:$0xff] %v14488_v48  ;;  %v14427_v49 = vsel %vm14363_vm13, %v14331_v9, %v14395_v40  ;;  %v14333_v47 = vadd.f32 %v17515_v27, %v22930_v32  ;;  %v14222_v61 = vpop.f32.mrb[103].mxu0  ;;  %v14468_v40 = vld [vmem:[%s20275_s20 + $0xb0] sm:$0xff] }
 0xf9a   : > { %v14491_v41 = vadd.f32 %v14459_v21, %v14427_v49  ;;  %v14426_v2 = vsel %vm14362_vm14, %v14330_v18, %v14394_v16  ;;  %v14332_v19 = vadd.f32 %v22930_v32, %v14222_v61  ;;  %v14469_v18 = vld [vmem:[%s20275_s20 + $0xb8] sm:$0xff] }
 0xf9b   : > { %v14490_v13 = vadd.f32 %v14458_v52, %v14426_v2  ;;  %vm14365_vm15 = vcmp.ge.f32.partialorder %v14333_v47, 0.0  ;;  %v14397_v8 = vmul.f32 0.05, %v14333_v47 }
 0xf9c   : > { %14523 = vst [vmem:[%s22941_s26 + $0x68] sm:$0xff] %v14491_v41  ;;  %vm14364_vm3 = vcmp.ge.f32.partialorder %v14332_v19, 0.0  ;;  %v14396_v28 = vmul.f32 0.05, %v14332_v19  ;;  %v17518_v62 = vpop.f32.mrb[104].mxu0 }
 0xf9d   : > { %14522 = vst [vmem:[%s22941_s26 + $0x60] sm:$0xff] %v14490_v13  ;;  %v14429_v29 = vsel %vm14365_vm15, %v14333_v47, %v14397_v8  ;;  %v14335_v56 = vadd.f32 %v17518_v62, %v22930_v32  ;;  %v14232_v34 = vpop.f32.mrb[105].mxu0  ;;  %v14470_v8 = vld [vmem:[%s20275_s20 + $0xc0] sm:$0xff] }
 0xf9e   : > { %v14493_v12 = vadd.f32 %v14461_v26, %v14429_v29  ;;  %v14428_v3 = vsel %vm14364_vm3, %v14332_v19, %v14396_v28  ;;  %v14334_v31 = vadd.f32 %v22930_v32, %v14232_v34  ;;  %v14471_v19 = vld [vmem:[%s20275_s20 + $0xc8] sm:$0xff] }
 0xf9f   : > { %v14492_v55 = vadd.f32 %v14460_v59, %v14428_v3  ;;  %vm14367_vm4 = vcmp.ge.f32.partialorder %v14335_v56, 0.0  ;;  %v14399_v63 = vmul.f32 0.05, %v14335_v56 }
 0xfa0   : > { %14525 = vst [vmem:[%s22941_s26 + $0x78] sm:$0xff] %v14493_v12  ;;  %vm14366_vm5 = vcmp.ge.f32.partialorder %v14334_v31, 0.0  ;;  %v14398_v60 = vmul.f32 0.05, %v14334_v31  ;;  %v17521_v42 = vpop.f32.mrb[106].mxu0 }
 0xfa1   : > { %14524 = vst [vmem:[%s22941_s26 + $0x70] sm:$0xff] %v14492_v55  ;;  %v14431_v25 = vsel %vm14367_vm4, %v14335_v56, %v14399_v63  ;;  %v14337_v0 = vadd.f32 %v17521_v42, %v22930_v32  ;;  %v14242_v57 = vpop.f32.mrb[107].mxu0  ;;  %v14472_v63 = vld [vmem:[%s20275_s20 + $0xd0] sm:$0xff] }
 0xfa2   : > { %v14495_v10 = vadd.f32 %v14463_v37, %v14431_v25  ;;  %v14430_v46 = vsel %vm14366_vm5, %v14334_v31, %v14398_v60  ;;  %v14336_v15 = vadd.f32 %v22930_v32, %v14242_v57  ;;  %v14473_v31 = vld [vmem:[%s20275_s20 + $0xd8] sm:$0xff] }
 0xfa3   : > { %v14494_v1 = vadd.f32 %v14462_v35, %v14430_v46  ;;  %vm14369_vm2 = vcmp.ge.f32.partialorder %v14337_v0, 0.0  ;;  %v14401_v44 = vmul.f32 0.05, %v14337_v0 }
 0xfa4   : > { %14527 = vst [vmem:[%s22941_s26 + $0x88] sm:$0xff] %v14495_v10  ;;  %vm14368_vm6 = vcmp.ge.f32.partialorder %v14336_v15, 0.0  ;;  %v14400_v30 = vmul.f32 0.05, %v14336_v15  ;;  %v17524_v51 = vpop.f32.mrb[108].mxu0 }
 0xfa5   : > { %14526 = vst [vmem:[%s22941_s26 + $0x80] sm:$0xff] %v14494_v1  ;;  %v14433_v38 = vsel %vm14369_vm2, %v14337_v0, %v14401_v44  ;;  %v14339_v4 = vadd.f32 %v17524_v51, %v22930_v32  ;;  %v14252_v22 = vpop.f32.mrb[109].mxu0  ;;  %v14474_v44 = vld [vmem:[%s20275_s20 + $0xe0] sm:$0xff] }
 0xfa6   : > { %v14497_v33 = vadd.f32 %v14465_v39, %v14433_v38  ;;  %v14432_v23 = vsel %vm14368_vm6, %v14336_v15, %v14400_v30  ;;  %v14338_v54 = vadd.f32 %v22930_v32, %v14252_v22  ;;  %v14475_v15 = vld [vmem:[%s20275_s20 + $0xe8] sm:$0xff] }
 0xfa7   : > { %v14496_v24 = vadd.f32 %v14464_v7, %v14432_v23  ;;  %vm14371_vm7 = vcmp.ge.f32.partialorder %v14339_v4, 0.0  ;;  %v14403_v53 = vmul.f32 0.05, %v14339_v4 }
 0xfa8   : > { %14529 = vst [vmem:[%s22941_s26 + $0x98] sm:$0xff] %v14497_v33  ;;  %vm14370_vm8 = vcmp.ge.f32.partialorder %v14338_v54, 0.0  ;;  %v14402_v43 = vmul.f32 0.05, %v14338_v54  ;;  %v17527_v20 = vpop.f32.mrb[110].mxu0 }
 0xfa9   : > { %14528 = vst [vmem:[%s22941_s26 + $0x90] sm:$0xff] %v14496_v24  ;;  %v14435_v36 = vsel %vm14371_vm7, %v14339_v4, %v14403_v53  ;;  %v14341_v14 = vadd.f32 %v17527_v20, %v22930_v32  ;;  %v14262_v11 = vpop.f32.mrb[111].mxu0  ;;  %v14476_v53 = vld [vmem:[%s20275_s20 + $0xf0] sm:$0xff] }
 0xfaa   : > { %v14499_v45 = vadd.f32 %v14467_v6, %v14435_v36  ;;  %v14434_v9 = vsel %vm14370_vm8, %v14338_v54, %v14402_v43  ;;  %v14340_v50 = vadd.f32 %v22930_v32, %v14262_v11  ;;  %v14477_v54 = vld [vmem:[%s20275_s20 + $0xf8] sm:$0xff]  ;;  %s19665_s20 = smov [#allocation34]  }
 0xfab   : > { %v14498_v5 = vadd.f32 %v14466_v58, %v14434_v9  ;;  %vm14373_vm0 = vcmp.ge.f32.partialorder %v14341_v14, 0.0  ;;  %v14405_v17 = vmul.f32 0.05, %v14341_v14  ;;  %s19536_s6 = sshll.u32 %s19665_s20, 4  ;;  %s19537_s6 = int_to_ptr.vmem [resolvable:$false] %s19536_s6 }
 0xfac   : > { %14531 = vst [vmem:[%s22941_s26 + $0xa8] sm:$0xff] %v14499_v45  ;;  %vm14372_vm1 = vcmp.ge.f32.partialorder %v14340_v50, 0.0  ;;  %v14404_v48 = vmul.f32 0.05, %v14340_v50  ;;  %v17530_v21 = vpop.f32.mrb[112].mxu0  ;;  %s19538_s22 = scalar_lea.vmem %s19537_s6, 8192  ;;  %p19539_p12 = scmp.lt.s32.totalorder %s23037_s14, %s19537_s6 }
 0xfad   : > { %14530 = vst [vmem:[%s22941_s26 + $0xa0] sm:$0xff] %v14498_v5  ;;  %v14437_v16 = vsel %vm14373_vm0, %v14341_v14, %v14405_v17  ;;  %v14343_v52 = vadd.f32 %v17530_v21, %v22930_v32  ;;  %v14272_v27 = vpop.f32.mrb[113].mxu0  ;;  %p19540_p1 = scmp.lt.s32.totalorder %s19538_s22, %s19532_s24 }
 0xfae   : > { %v14501_v49 = vadd.f32 %v14469_v18, %v14437_v16  ;;  %v14436_v47 = vsel %vm14372_vm1, %v14340_v50, %v14404_v48  ;;  %v14342_v61 = vadd.f32 %v22930_v32, %v14272_v27 }
 0xfaf   : > { %v14500_v41 = vadd.f32 %v14468_v40, %v14436_v47  ;;  %vm14375_vm9 = vcmp.ge.f32.partialorder %v14343_v52, 0.0  ;;  %v14407_v2 = vmul.f32 0.05, %v14343_v52  ;;  %p19541_p13 = por %p19540_p1, %p19539_p12 }
 0xfb0   : > { %14533 = vst [vmem:[%s22941_s26 + $0xb8] sm:$0xff] %v14501_v49  ;;  %vm14374_vm10 = vcmp.ge.f32.partialorder %v14342_v61, 0.0  ;;  %v14406_v13 = vmul.f32 0.05, %v14342_v61  ;;  %v17533_v26 = vpop.f32.mrb[114].mxu0 }
 0xfb1   : > { %14532 = vst [vmem:[%s22941_s26 + $0xb0] sm:$0xff] %v14500_v41  ;;  %v14439_v28 = vsel %vm14375_vm9, %v14343_v52, %v14407_v2  ;;  %v14345_v59 = vadd.f32 %v17533_v26, %v22930_v32  ;;  %v14282_v62 = vpop.f32.mrb[115].mxu0  ;;  %p19542_p0 = pnand %p19541_p13, %p19535_p9 }
 0xfb2   : > { %v14503_v29 = vadd.f32 %v14471_v19, %v14439_v28  ;;  %v14438_v56 = vsel %vm14374_vm10, %v14342_v61, %v14406_v13  ;;  %v14344_v34 = vadd.f32 %v22930_v32, %v14282_v62 }
 0xfb3   : > { %v14502_v12 = vadd.f32 %v14470_v8, %v14438_v56  ;;  %vm14377_vm11 = vcmp.ge.f32.partialorder %v14345_v59, 0.0  ;;  %v14409_v3 = vmul.f32 0.05, %v14345_v59 }
 0xfb4   : > { %14535 = vst [vmem:[%s22941_s26 + $0xc8] sm:$0xff] %v14503_v29  ;;  %vm14376_vm12 = vcmp.ge.f32.partialorder %v14344_v34, 0.0  ;;  %v14408_v55 = vmul.f32 0.05, %v14344_v34  ;;  %v17536_v37 = vpop.f32.mrb[116].mxu0 }
 0xfb5   : > { %14534 = vst [vmem:[%s22941_s26 + $0xc0] sm:$0xff] %v14502_v12  ;;  %v14441_v60 = vsel %vm14377_vm11, %v14345_v59, %v14409_v3  ;;  %v14347_v35 = vadd.f32 %v17536_v37, %v22930_v32  ;;  %v14292_v42 = vpop.f32.mrb[117].mxu0 }
 0xfb6   : > { %v14505_v25 = vadd.f32 %v14473_v31, %v14441_v60  ;;  %v14440_v0 = vsel %vm14376_vm12, %v14344_v34, %v14408_v55  ;;  %v14346_v57 = vadd.f32 %v22930_v32, %v14292_v42 }
 0xfb7   : > { %v14504_v10 = vadd.f32 %v14472_v63, %v14440_v0  ;;  %vm14379_vm13 = vcmp.ge.f32.partialorder %v14347_v35, 0.0  ;;  %v14411_v46 = vmul.f32 0.05, %v14347_v35 }
 0xfb8   : > { %14537 = vst [vmem:[%s22941_s26 + $0xd8] sm:$0xff] %v14505_v25  ;;  %vm14378_vm14 = vcmp.ge.f32.partialorder %v14346_v57, 0.0  ;;  %v14410_v1 = vmul.f32 0.05, %v14346_v57  ;;  %v17539_v39 = vpop.f32.mrb[118].mxu0 }
 0xfb9   : > { %14536 = vst [vmem:[%s22941_s26 + $0xd0] sm:$0xff] %v14504_v10  ;;  %v14443_v30 = vsel %vm14379_vm13, %v14347_v35, %v14411_v46  ;;  %v14349_v7 = vadd.f32 %v17539_v39, %v22930_v32  ;;  %v14302_v51 = vpop.f32.mrb[119].mxu0 }
 0xfba   : > { %v14507_v38 = vadd.f32 %v14475_v15, %v14443_v30  ;;  %v14442_v4 = vsel %vm14378_vm14, %v14346_v57, %v14410_v1  ;;  %v14348_v22 = vadd.f32 %v22930_v32, %v14302_v51 }
 0xfbb   : > { %v14506_v33 = vadd.f32 %v14474_v44, %v14442_v4  ;;  %vm14381_vm15 = vcmp.ge.f32.partialorder %v14349_v7, 0.0  ;;  %v14413_v23 = vmul.f32 0.05, %v14349_v7 }
 0xfbc   : > { %14539 = vst [vmem:[%s22941_s26 + $0xe8] sm:$0xff] %v14507_v38  ;;  %vm14380_vm3 = vcmp.ge.f32.partialorder %v14348_v22, 0.0  ;;  %v14412_v24 = vmul.f32 0.05, %v14348_v22 }
 0xfbd   : > { %14538 = vst [vmem:[%s22941_s26 + $0xe0] sm:$0xff] %v14506_v33  ;;  %v14445_v6 = vsel %vm14381_vm15, %v14349_v7, %v14413_v23 }
 0xfbe   : > { %v14509_v43 = vadd.f32 %v14477_v54, %v14445_v6  ;;  %v14444_v58 = vsel %vm14380_vm3, %v14348_v22, %v14412_v24 }
 0xfbf   : > { %v14508_v32 = vadd.f32 %v14476_v53, %v14444_v58 }
 0xfc0   : > { %14541 = vst [vmem:[%s22941_s26 + $0xf8] sm:$0xff] %v14509_v43 }
 0xfc1   : > { %14540 = vst [vmem:[%s22941_s26 + $0xf0] sm:$0xff] %v14508_v32 }
 0xfc2   : > { %19545 = shalt.err (!%p19542_p0)
}
 0xfc3   : > { %s19546_s26 = scalar_lea.hbm %s23035_s2, 4096  ;;  %s19550_s30 = scalar_lea.hbm %s23584_s29, 8192 }
 0xfc4   : > { %p19547_p2 = scmp.ne.s32.totalorder %s23035_s2, %s19546_s26  ;;  %p19551_p10 = scmp.lt.u32.totalorder %s23035_s2, %s23584_s29 }
 0xfc5   : > { %p19552_p11 = scmp.lt.u32.totalorder %s19550_s30, %s19546_s26  ;;  %p19554_p5 = scmp.lt.u32.totalorder %s19546_s26, %s23035_s2 }
 0xfc6   : > { %p19548_p8 = pnand %p19547_p2, %p23585_p7 }
 0xfc7   : > { %p19553_p3 = por %p19552_p11, %p19551_p10 }
 0xfc8   : > { %p19549_p4 = pneg %p19548_p8 }
 0xfc9   : > { %p19555_p6 = por %p19554_p5, %p19553_p3 }
 0xfcb   : > { %p19556_p9 = pnand %p19555_p6, %p19549_p4 }
 0xfcd   : > { %19559 = shalt.err (!%p19556_p9)
}
 0xfce   : > { %s19666_s24 = smov 128   ;;  %s19667_s22 = smov 8  }
 0xfcf   : > { %18510 = dma.vmem_to_hbm [thread:$0]  (%p23585_p7), %s23037_s14, 4096, %s23035_s2, %s14543_s0, %s19666_s24, %s19666_s24, %s19667_s22  }
 0xfd0 PF: > { %s23586_s21 = sld [smem:[#allocation46_spill]]  ;;  %s23587_s19 = sld [smem:[#allocation49_spill]] }
 0xfd1   : > { %p23588_p12 = scmp.ne.s32.totalorder %s23337_s27, 0 }
 0xfd6   : > { %s14571_s20 = sand.u32 1, %s23586_s21   ;;  %p23589_p1 = scmp.ge.s32.totalorder %s23587_s19, 2 }
 0xfd7   : > { %s14572_s26 = scalar_lea.sflag [#allocation6], %s14571_s20 }
 0xfd8   : > { %p18572_p13 = pnand %p23589_p1, %p23588_p12 }
 0xfda   : > { %19617 = dma.done.wait (!%p18572_p13), %s14572_s26, 4096  }
 0xfdb   : > { %19619 = vsyncadd (!%p18572_p13), %s14572_s26, 4294963200  ;;  %s23590_s0 = sld [smem:[#allocation47_spill]]  ;;  %s23591_s30 = sld [smem:[#allocation48_spill]] }
 0xfdc   : > { %p41_p0 = scmp.ge.s32.totalorder %s20187_s3, 4   ;;  %s23592_s20 = smov %s20198_s28 }
 0xfdd   : > { %s23593_s21 = smov %s20187_s3 }
 0xfde   :  { %43 = sbr.rel (!%p41_p0) target bundleno = 26 (0x1a), region = 237 }
 0xfe5   :  { %14577 = vsyncpa [#allocation5], 1 }
 0xfe6   :  { %14579 = vsyncpa [#allocation5 + $0x1], 1 }
 0xfe7   :  { %14580 = vsyncpa [#allocation8], 1 }
 0xfe8   :  { %14581 = vsyncpa [#allocation11], 1 }
 0xfe9   :  { %14582 = vsyncpa [#allocation14], 1 }
 0xfea   :  { %14583 = vsyncpa [#allocation17], 1 }
 0xfeb   :  { %14584 = vsyncpa [#allocation20], 1 }
 0xfec   :  { %14585 = vsyncpa [#allocation23], 1 }
 0xfed   :  { %14586 = vsyncpa [#allocation26], 1 }
 0xfee   :  { %14587 = vsyncpa [#allocation29], 1 }
 0xfef   :  { %14588 = vsyncpa [#allocation32], 1 }
 0xff0   :  { %14589 = vsyncpa [#allocation6], 1 }
 0xff1   :  { %14591 = vsyncpa [#allocation6 + $0x1], 1 }

</bundles_post_ra>
